<compile_context>
chip_gen: v7x
topology: tpu7x:2x2x1
jax: 0.10.0
libtpu: 0.0.40
codegen_flags: <defaults>
</compile_context>

<pallas_src>
import functools

import jax
import jax.numpy as jnp
from jax.experimental import pallas as pl
from jax.experimental.pallas import tpu as pltpu

EPS = 1e-5
CHANNELS = [4, 8, 32]

IMG_H = IMG_W = 16           # canvas per image; covers every layer of this model
IMG = IMG_H * IMG_W          # 256 lanes per image (2 x 128, lane aligned)
PADL = 128                   # zero border in the shift-staging slab (lane aligned)
CMAX = 32                    # max padded channel count
KTAPS = 9

ENC_SHIFTS = tuple(i * IMG_W + j for i in range(3) for j in range(3))
DEC_SHIFTS = tuple((i - 2) * IMG_W + (j - 2) for i in range(3) for j in range(3))


def _pad8(c):
    return max(8, ((c + 7) // 8) * 8)


# ----------------------------------------------------------------------------
# Fused Pallas kernel: all six conv / conv-transpose + BN + activation layers
# ----------------------------------------------------------------------------
def _autoencoder_kernel(x_ref, *refs, n_img, layer_cfgs):
    *param_refs, o_ref, pad_buf, tap_buf, rmp_buf = refs
    s_tot = n_img * IMG

    # Zero the shift-staging slab once; only [:, PADL:PADL+s_tot] is rewritten per
    # layer, so the left/right borders stay zero and provide the conv zero padding.
    pad_buf[...] = jnp.zeros(pad_buf.shape, jnp.bfloat16)

    # Validity masks (one per distinct output size), hoisted out of the layer loop.
    lane = jax.lax.broadcasted_iota(jnp.int32, (1, s_tot), 1)
    hh = (lane >> 4) & (IMG_H - 1)           # row within the 16x16 image
    ww = lane & (IMG_W - 1)                  # col within the 16x16 image
    masks = {ho: jnp.where((hh < ho) & (ww < ho), 1.0, 0.0).astype(jnp.float32)
             for ho in sorted({cfg[3] for cfg in layer_cfgs})}

    # Per-image stride-2 remap matrices, built in-kernel from iota compares
    # (no HBM traffic; 0/1 values are exact in bf16).
    src = jax.lax.broadcasted_iota(jnp.int32, (IMG, IMG), 0)
    dst = jax.lax.broadcasted_iota(jnp.int32, (IMG, IMG), 1)
    sh_, sw_ = src >> 4, src & (IMG_W - 1)
    dh_, dw_ = dst >> 4, dst & (IMG_W - 1)
    m_down = ((sh_ == 2 * dh_) & (sw_ == 2 * dw_)).astype(jnp.bfloat16)   # subsample
    m_up = ((dh_ == 2 * sh_) & (dw_ == 2 * sw_)).astype(jnp.bfloat16)     # zero-dilate

    def remap(v, m, rows):
        # Apply the per-image (IMG, IMG) remap to each 256-lane image slice.
        for n in range(n_img):
            rmp_buf[0:rows, n * IMG:(n + 1) * IMG] = jnp.dot(
                v[:, n * IMG:(n + 1) * IMG].astype(jnp.bfloat16), m,
                preferred_element_type=jnp.float32)
        return rmp_buf[0:rows, :]

    x = x_ref[...]                           # (8, s_tot) input canvas (channel 0 real)
    for li, (kind, cin_p, cout_p, hout, bn, act) in enumerate(layer_cfgs):
        w_ref = param_refs[2 * li]           # (cout_p, 9*cin_p) bf16 folded taps
        pbn_ref = param_refs[2 * li + 1]     # (cout_p, 3) f32: [bias, gamma, beta]
        shifts = ENC_SHIFTS if kind.startswith("conv") else DEC_SHIFTS

        if kind == "deconv2":                # stride-2 transposed conv: zero-dilate input
            x = remap(x, m_up, cin_p)

        # Stage the bf16 canvas between zero borders (in-kernel im2col), then copy the
        # 9 shifted windows into one (9*cin_p, s_tot) slab so the layer is ONE matmul.
        pad_buf[0:cin_p, PADL:PADL + s_tot] = x.astype(jnp.bfloat16)
        for t, sh in enumerate(shifts):
            tap_buf[t * cin_p:(t + 1) * cin_p, :] = \
                pad_buf[0:cin_p, PADL + sh:PADL + sh + s_tot]

        y = jnp.dot(w_ref[...], tap_buf[0:KTAPS * cin_p, :],
                    preferred_element_type=jnp.float32)

        if kind == "conv2":                  # stride-2 conv: keep even rows/cols
            y = remap(y, m_down, cout_p)

        mask = masks[hout]
        if bn:
            # Training-mode BatchNorm2d with one-pass masked stats; conv bias omitted
            # (mean subtraction cancels it exactly). Variance clamped against f32
            # cancellation going slightly negative.
            inv_cnt = 1.0 / float(n_img * hout * hout)
            ym = y * mask
            mean = jnp.sum(ym, axis=1, keepdims=True) * inv_cnt
            ex2 = jnp.sum(ym * y, axis=1, keepdims=True) * inv_cnt
            var = jnp.maximum(ex2 - mean * mean, 0.0)
            y = (y - mean) * jax.lax.rsqrt(var + EPS)
            y = y * pbn_ref[:, 1:2] + pbn_ref[:, 2:3]
        else:
            y = y + pbn_ref[:, 0:1]          # bias only on the final (non-BN) layer

        # sigmoid(y) = 0.5 * (1 + tanh(0.5*y)): a single EUP push per activation.
        if act == "silu":
            y = y * (0.5 * (jnp.tanh(0.5 * y) + 1.0))
        elif act == "sigmoid":
            y = 0.5 * (jnp.tanh(0.5 * y) + 1.0)

        x = y * mask                         # keep zeros outside the valid region

    o_ref[...] = x[0:1, :]


# ----------------------------------------------------------------------------
# Host-side parameter packing and wrapper
# ----------------------------------------------------------------------------
def _conv_taps(w):
    """(Cout, Cin, 3, 3) -> (9, Cout, Cin), tap index t = i*3 + j."""
    cout, cin = w.shape[0], w.shape[1]
    return w.transpose(2, 3, 0, 1).reshape(9, cout, cin)


def _deconv_taps(w):
    """ConvTranspose weight (Cin, Cout, 3, 3) -> equivalent forward-conv taps."""
    weq = jnp.flip(w, axis=(2, 3)).transpose(1, 0, 2, 3)
    return _conv_taps(weq)


def _fold_taps(t9, cout_p, cin_p):
    """(9, Cout, Cin) -> (cout_p, 9*cin_p) bf16: taps folded into the MXU K dim."""
    cout, cin = t9.shape[1], t9.shape[2]
    t = jnp.pad(t9, ((0, 0), (0, cout_p - cout), (0, cin_p - cin)))
    return jnp.transpose(t, (1, 0, 2)).reshape(cout_p, 9 * cin_p).astype(jnp.bfloat16)


def _pack_bn(bias, gamma, beta, cout_p):
    cout = bias.shape[0]
    b = jnp.zeros((cout_p,), jnp.float32).at[:cout].set(bias)
    g = jnp.ones((cout_p,), jnp.float32).at[:cout].set(gamma)
    be = jnp.zeros((cout_p,), jnp.float32).at[:cout].set(beta)
    return jnp.stack([b, g, be], axis=1)     # (cout_p, 3)


def autoencoder_forward(params, x):
    n_img, cin0, hin, win = x.shape
    # Guard: the shifted-window im2col + per-layer masks assume 1x16x16 inputs.
    assert cin0 == 1 and hin == IMG_H and win == IMG_W, "canvas layout assumes 1x16x16"
    s = n_img * IMG

    # Input canvas: channel on sublanes (padded to 8), flattened (n, h, w) on lanes.
    xc = x[:, 0, :, :].reshape(1, s)
    x8 = jnp.concatenate([xc, jnp.zeros((7, s), jnp.float32)], axis=0)

    layer_defs = [
        # kind,     weight,           bias,             gamma,           beta,            cin, cout, Hout, bn,    act
        ("conv1",   params["enc1_w"], params["enc1_b"], params["bn1_g"], params["bn1_b"], 1,   4,    14,   True,  "silu"),
        ("conv2",   params["enc2_w"], params["enc2_b"], params["bn2_g"], params["bn2_b"], 4,   8,    6,    True,  "silu"),
        ("conv1",   params["enc3_w"], params["enc3_b"], params["bn3_g"], params["bn3_b"], 8,   32,   4,    True,  "none"),
        ("deconv1", params["dec1_w"], params["dec1_b"], params["bn4_g"], params["bn4_b"], 32,  8,    6,    True,  "silu"),
        ("deconv2", params["dec2_w"], params["dec2_b"], params["bn5_g"], params["bn5_b"], 8,   4,    14,   True,  "silu"),
        ("deconv1", params["dec3_w"], params["dec3_b"], None,            None,            4,   1,    16,   False, "sigmoid"),
    ]

    kernel_inputs = [x8]
    layer_cfgs = []
    for kind, w, b, g, be, cin, cout, hout, bn, act in layer_defs:
        cin_p, cout_p = _pad8(cin), _pad8(cout)
        taps = _conv_taps(w) if kind.startswith("conv") else _deconv_taps(w)
        kernel_inputs.append(_fold_taps(taps, cout_p, cin_p))
        if g is None:
            g = jnp.ones((cout,), jnp.float32)
            be = jnp.zeros((cout,), jnp.float32)
        kernel_inputs.append(_pack_bn(b, g, be, cout_p))
        layer_cfgs.append((kind, cin_p, cout_p, hout, bn, act))

    kernel = functools.partial(_autoencoder_kernel, n_img=n_img,
                               layer_cfgs=tuple(layer_cfgs))
    # NOTE: no batch grid — training-mode BatchNorm needs whole-batch statistics, so
    # splitting the batch across grid blocks / TensorCores would change the semantics.
    out = pl.pallas_call(
        kernel,
        out_shape=jax.ShapeDtypeStruct((1, s), jnp.float32),
        in_specs=[pl.BlockSpec(memory_space=pltpu.MemorySpace.VMEM)] * len(kernel_inputs),
        out_specs=pl.BlockSpec(memory_space=pltpu.MemorySpace.VMEM),
        scratch_shapes=[
            pltpu.VMEM((CMAX, PADL + s + PADL), jnp.bfloat16),   # zero-bordered staging
            pltpu.VMEM((KTAPS * CMAX, s), jnp.bfloat16),         # folded 9-tap slab
            pltpu.VMEM((CMAX, s), jnp.float32),                  # stride-2 remap result
        ],
        compiler_params=pltpu.CompilerParams(vmem_limit_bytes=32 * 1024 * 1024),
    )(*kernel_inputs)

    return out.reshape(n_img, 1, IMG_H, IMG_W)


# ----------------------------------------------------------------------------
# Pure-JAX reference (same math, same bf16 matmul-operand rounding) and params
# ----------------------------------------------------------------------------
def reference_forward(params, x):
    def conv(h, w, b, stride):
        y = jax.lax.conv_general_dilated(
            h.astype(jnp.bfloat16), w.astype(jnp.bfloat16),
            window_strides=(stride, stride), padding="VALID",
            dimension_numbers=("NCHW", "OIHW", "NCHW"),
            preferred_element_type=jnp.float32)
        return y + b.reshape(1, -1, 1, 1)

    def deconv(h, w, b, stride, out_pad):
        weq = jnp.flip(w, axis=(2, 3)).transpose(1, 0, 2, 3)
        y = jax.lax.conv_general_dilated(
            h.astype(jnp.bfloat16), weq.astype(jnp.bfloat16),
            window_strides=(1, 1),
            padding=[(2, 2 + out_pad), (2, 2 + out_pad)],
            lhs_dilation=(stride, stride),
            dimension_numbers=("NCHW", "OIHW", "NCHW"),
            preferred_element_type=jnp.float32)
        return y + b.reshape(1, -1, 1, 1)

    def bn(h, g, b):
        m = jnp.mean(h, axis=(0, 2, 3), keepdims=True)
        v = jnp.mean(jnp.square(h - m), axis=(0, 2, 3), keepdims=True)
        return (h - m) * jax.lax.rsqrt(v + EPS) * g.reshape(1, -1, 1, 1) + b.reshape(1, -1, 1, 1)

    silu = lambda t: t * jax.nn.sigmoid(t)

    h = silu(bn(conv(x, params["enc1_w"], params["enc1_b"], 1), params["bn1_g"], params["bn1_b"]))
    h = silu(bn(conv(h, params["enc2_w"], params["enc2_b"], 2), params["bn2_g"], params["bn2_b"]))
    h = bn(conv(h, params["enc3_w"], params["enc3_b"], 1), params["bn3_g"], params["bn3_b"])
    h = silu(bn(deconv(h, params["dec1_w"], params["dec1_b"], 1, 0), params["bn4_g"], params["bn4_b"]))
    h = silu(bn(deconv(h, params["dec2_w"], params["dec2_b"], 2, 1), params["bn5_g"], params["bn5_b"]))
    h = jax.nn.sigmoid(deconv(h, params["dec3_w"], params["dec3_b"], 1, 0))
    return h


def init_params(key):
    c0, c1, c2 = CHANNELS
    ks = list(jax.random.split(key, 22))
    nrm = lambda k, shape, sc=0.1: sc * jax.random.normal(k, shape, jnp.float32)
    p = {}
    p["enc1_w"], p["enc1_b"] = nrm(ks[0], (c0, 1, 3, 3)), nrm(ks[1], (c0,))
    p["bn1_g"], p["bn1_b"] = 1.0 + nrm(ks[2], (c0,)), nrm(ks[3], (c0,))
    p["enc2_w"], p["enc2_b"] = nrm(ks[4], (c1, c0, 3, 3)), nrm(ks[5], (c1,))
    p["bn2_g"], p["bn2_b"] = 1.0 + nrm(ks[6], (c1,)), nrm(ks[7], (c1,))
    p["enc3_w"], p["enc3_b"] = nrm(ks[8], (c2, c1, 3, 3)), nrm(ks[9], (c2,))
    p["bn3_g"], p["bn3_b"] = 1.0 + nrm(ks[10], (c2,)), nrm(ks[11], (c2,))
    p["dec1_w"], p["dec1_b"] = nrm(ks[12], (c2, c1, 3, 3)), nrm(ks[13], (c1,))
    p["bn4_g"], p["bn4_b"] = 1.0 + nrm(ks[14], (c1,)), nrm(ks[15], (c1,))
    p["dec2_w"], p["dec2_b"] = nrm(ks[16], (c1, c0, 3, 3)), nrm(ks[17], (c0,))
    p["bn5_g"], p["bn5_b"] = 1.0 + nrm(ks[18], (c0,)), nrm(ks[19], (c0,))
    p["dec3_w"], p["dec3_b"] = nrm(ks[20], (c0, 1, 3, 3)), nrm(ks[21], (1,))
    return p


if __name__ == "__main__":
    key = jax.random.PRNGKey(0)
    kx, kp = jax.random.split(key)
    x = jax.random.normal(kx, (2, 1, 16, 16), jnp.float32)   # NCHW, like PyTorch
    params = init_params(kp)

    fwd = jax.jit(autoencoder_forward)
    y = fwd(params, x)
    jax.block_until_ready(y)

    assert y.shape == (2, 1, 16, 16), y.shape
    assert bool(jnp.all(jnp.isfinite(y)))
    assert bool(jnp.all((y >= 0.0) & (y <= 1.0)))            # sigmoid output range

    y_ref = jax.jit(reference_forward)(params, x)
    err = float(jnp.max(jnp.abs(y - y_ref)))
    assert err < 3e-2, f"max |pallas - reference| = {err}"
    print("KERNEL_OK")
</pallas_src>

<mosaic_0001>
module attributes {stable_mosaic.version = 11 : i64} {
  func.func @_autoencoder_kernel(%arg0: memref<8x512xf32, #tpu.memory_space<vmem>>, %arg1: memref<8x72xbf16, #tpu.memory_space<vmem>>, %arg2: memref<8x3xf32, #tpu.memory_space<vmem>>, %arg3: memref<8x72xbf16, #tpu.memory_space<vmem>>, %arg4: memref<8x3xf32, #tpu.memory_space<vmem>>, %arg5: memref<32x72xbf16, #tpu.memory_space<vmem>>, %arg6: memref<32x3xf32, #tpu.memory_space<vmem>>, %arg7: memref<8x288xbf16, #tpu.memory_space<vmem>>, %arg8: memref<8x3xf32, #tpu.memory_space<vmem>>, %arg9: memref<8x72xbf16, #tpu.memory_space<vmem>>, %arg10: memref<8x3xf32, #tpu.memory_space<vmem>>, %arg11: memref<8x72xbf16, #tpu.memory_space<vmem>>, %arg12: memref<8x3xf32, #tpu.memory_space<vmem>>, %arg13: memref<1x512xf32, #tpu.memory_space<vmem>>, %arg14: memref<32x768xbf16, #tpu.memory_space<vmem>>, %arg15: memref<288x512xbf16, #tpu.memory_space<vmem>>, %arg16: memref<32x512xf32, #tpu.memory_space<vmem>>) attributes {dimension_semantics = [], scalar_prefetch = 0 : i64, scratch_operands = 3 : i64, tpu.core_type = #tpu.core_type<tc>} {
    %cst = arith.constant 0.000000e+00 : bf16
    %0 = vector.broadcast %cst : bf16 to vector<32x768xbf16>
    %c0 = arith.constant 0 : index
    %c0_0 = arith.constant 0 : index
    %1 = vector.load %arg14[%c0, %c0_0] : memref<32x768xbf16, #tpu.memory_space<vmem>>, vector<32x768xbf16>
    tpu.vector_store %arg14[%c0, %c0_0], %0 {strides = array<i32>} : memref<32x768xbf16, #tpu.memory_space<vmem>>, vector<32x768xbf16>,
    %2 = tpu.iota {dimensions = array<i32: 1>} : vector<1x512xi32>
    %c4_i32 = arith.constant 4 : i32
    %3 = vector.broadcast %c4_i32 : i32 to vector<1x512xi32>
    %4 = arith.shrsi %2, %3 : vector<1x512xi32>
    %c15_i32 = arith.constant 15 : i32
    %5 = vector.broadcast %c15_i32 : i32 to vector<1x512xi32>
    %6 = arith.andi %4, %5 : vector<1x512xi32>
    %c15_i32_1 = arith.constant 15 : i32
    %7 = vector.broadcast %c15_i32_1 : i32 to vector<1x512xi32>
    %8 = arith.andi %2, %7 : vector<1x512xi32>
    %c4_i32_2 = arith.constant 4 : i32
    %9 = vector.broadcast %c4_i32_2 : i32 to vector<1x512xi32>
    %10 = arith.cmpi slt, %6, %9 : vector<1x512xi32>
    %c4_i32_3 = arith.constant 4 : i32
    %11 = vector.broadcast %c4_i32_3 : i32 to vector<1x512xi32>
    %12 = arith.cmpi slt, %8, %11 : vector<1x512xi32>
    %13 = arith.andi %10, %12 : vector<1x512xi1>
    %cst_4 = arith.constant 1.000000e+00 : f32
    %cst_5 = arith.constant 0.000000e+00 : f32
    %14 = vector.broadcast %cst_4 : f32 to vector<1x512xf32>
    %15 = vector.broadcast %cst_5 : f32 to vector<1x512xf32>
    %16 = arith.select %13, %14, %15 : vector<1x512xi1>, vector<1x512xf32>
    %c6_i32 = arith.constant 6 : i32
    %17 = vector.broadcast %c6_i32 : i32 to vector<1x512xi32>
    %18 = arith.cmpi slt, %6, %17 : vector<1x512xi32>
    %c6_i32_6 = arith.constant 6 : i32
    %19 = vector.broadcast %c6_i32_6 : i32 to vector<1x512xi32>
    %20 = arith.cmpi slt, %8, %19 : vector<1x512xi32>
    %21 = arith.andi %18, %20 : vector<1x512xi1>
    %cst_7 = arith.constant 1.000000e+00 : f32
    %cst_8 = arith.constant 0.000000e+00 : f32
    %22 = vector.broadcast %cst_7 : f32 to vector<1x512xf32>
    %23 = vector.broadcast %cst_8 : f32 to vector<1x512xf32>
    %24 = arith.select %21, %22, %23 : vector<1x512xi1>, vector<1x512xf32>
    %c14_i32 = arith.constant 14 : i32
    %25 = vector.broadcast %c14_i32 : i32 to vector<1x512xi32>
    %26 = arith.cmpi slt, %6, %25 : vector<1x512xi32>
    %c14_i32_9 = arith.constant 14 : i32
    %27 = vector.broadcast %c14_i32_9 : i32 to vector<1x512xi32>
    %28 = arith.cmpi slt, %8, %27 : vector<1x512xi32>
    %29 = arith.andi %26, %28 : vector<1x512xi1>
    %cst_10 = arith.constant 1.000000e+00 : f32
    %cst_11 = arith.constant 0.000000e+00 : f32
    %30 = vector.broadcast %cst_10 : f32 to vector<1x512xf32>
    %31 = vector.broadcast %cst_11 : f32 to vector<1x512xf32>
    %32 = arith.select %29, %30, %31 : vector<1x512xi1>, vector<1x512xf32>
    %c16_i32 = arith.constant 16 : i32
    %33 = vector.broadcast %c16_i32 : i32 to vector<1x512xi32>
    %34 = arith.cmpi slt, %6, %33 : vector<1x512xi32>
    %c16_i32_12 = arith.constant 16 : i32
    %35 = vector.broadcast %c16_i32_12 : i32 to vector<1x512xi32>
    %36 = arith.cmpi slt, %8, %35 : vector<1x512xi32>
    %37 = arith.andi %34, %36 : vector<1x512xi1>
    %cst_13 = arith.constant 1.000000e+00 : f32
    %cst_14 = arith.constant 0.000000e+00 : f32
    %38 = vector.broadcast %cst_13 : f32 to vector<1x512xf32>
    %39 = vector.broadcast %cst_14 : f32 to vector<1x512xf32>
    %40 = arith.select %37, %38, %39 : vector<1x512xi1>, vector<1x512xf32>
    %41 = tpu.iota {dimensions = array<i32: 0>} : vector<256x256xi32>
    %42 = tpu.iota {dimensions = array<i32: 1>} : vector<256x256xi32>
    %c4_i32_15 = arith.constant 4 : i32
    %43 = vector.broadcast %c4_i32_15 : i32 to vector<256x256xi32>
    %44 = arith.shrsi %41, %43 : vector<256x256xi32>
    %c15_i32_16 = arith.constant 15 : i32
    %45 = vector.broadcast %c15_i32_16 : i32 to vector<256x256xi32>
    %46 = arith.andi %41, %45 : vector<256x256xi32>
    %c4_i32_17 = arith.constant 4 : i32
    %47 = vector.broadcast %c4_i32_17 : i32 to vector<256x256xi32>
    %48 = arith.shrsi %42, %47 : vector<256x256xi32>
    %c15_i32_18 = arith.constant 15 : i32
    %49 = vector.broadcast %c15_i32_18 : i32 to vector<256x256xi32>
    %50 = arith.andi %42, %49 : vector<256x256xi32>
    %c2_i32 = arith.constant 2 : i32
    %51 = vector.broadcast %c2_i32 : i32 to vector<256x256xi32>
    %52 = arith.muli %51, %48 : vector<256x256xi32>
    %53 = arith.cmpi eq, %44, %52 : vector<256x256xi32>
    %c2_i32_19 = arith.constant 2 : i32
    %54 = vector.broadcast %c2_i32_19 : i32 to vector<256x256xi32>
    %55 = arith.muli %54, %50 : vector<256x256xi32>
    %56 = arith.cmpi eq, %46, %55 : vector<256x256xi32>
    %57 = arith.andi %53, %56 : vector<256x256xi1>
    %58 = arith.extui %57 : vector<256x256xi1> to vector<256x256xi32>
    %59 = arith.sitofp %58 : vector<256x256xi32> to vector<256x256xf32>
    %60 = arith.truncf %59 : vector<256x256xf32> to vector<256x256xbf16>
    %c2_i32_20 = arith.constant 2 : i32
    %61 = vector.broadcast %c2_i32_20 : i32 to vector<256x256xi32>
    %62 = arith.muli %61, %44 : vector<256x256xi32>
    %63 = arith.cmpi eq, %48, %62 : vector<256x256xi32>
    %c2_i32_21 = arith.constant 2 : i32
    %64 = vector.broadcast %c2_i32_21 : i32 to vector<256x256xi32>
    %65 = arith.muli %64, %46 : vector<256x256xi32>
    %66 = arith.cmpi eq, %50, %65 : vector<256x256xi32>
    %67 = arith.andi %63, %66 : vector<256x256xi1>
    %68 = arith.extui %67 : vector<256x256xi1> to vector<256x256xi32>
    %69 = arith.sitofp %68 : vector<256x256xi32> to vector<256x256xf32>
    %70 = arith.truncf %69 : vector<256x256xf32> to vector<256x256xbf16>
    %c0_22 = arith.constant 0 : index
    %c0_23 = arith.constant 0 : index
    %71 = vector.load %arg0[%c0_22, %c0_23] : memref<8x512xf32, #tpu.memory_space<vmem>>, vector<8x512xf32>
    %72 = arith.truncf %71 : vector<8x512xf32> to vector<8x512xbf16>
    %c0_24 = arith.constant 0 : index
    %c128 = arith.constant 128 : index
    %73 = vector.load %arg14[%c0_24, %c128] : memref<32x768xbf16, #tpu.memory_space<vmem>>, vector<8x512xbf16>
    tpu.vector_store %arg14[%c0_24, %c128], %72 {strides = array<i32>} : memref<32x768xbf16, #tpu.memory_space<vmem>>, vector<8x512xbf16>,
    %c0_25 = arith.constant 0 : index
    %c128_26 = arith.constant 128 : index
    %74 = vector.load %arg14[%c0_25, %c128_26] : memref<32x768xbf16, #tpu.memory_space<vmem>>, vector<8x512xbf16>
    %c0_27 = arith.constant 0 : index
    %c0_28 = arith.constant 0 : index
    %75 = vector.load %arg15[%c0_27, %c0_28] : memref<288x512xbf16, #tpu.memory_space<vmem>>, vector<8x512xbf16>
    tpu.vector_store %arg15[%c0_27, %c0_28], %74 {strides = array<i32>} : memref<288x512xbf16, #tpu.memory_space<vmem>>, vector<8x512xbf16>,
    %c0_29 = arith.constant 0 : index
    %c129 = arith.constant 129 : index
    %76 = vector.load %arg14[%c0_29, %c129] : memref<32x768xbf16, #tpu.memory_space<vmem>>, vector<8x512xbf16>
    %c8 = arith.constant 8 : index
    %c0_30 = arith.constant 0 : index
    %77 = vector.load %arg15[%c8, %c0_30] : memref<288x512xbf16, #tpu.memory_space<vmem>>, vector<8x512xbf16>
    tpu.vector_store %arg15[%c8, %c0_30], %76 {strides = array<i32>} : memref<288x512xbf16, #tpu.memory_space<vmem>>, vector<8x512xbf16>,
    %c0_31 = arith.constant 0 : index
    %c130 = arith.constant 130 : index
    %78 = vector.load %arg14[%c0_31, %c130] : memref<32x768xbf16, #tpu.memory_space<vmem>>, vector<8x512xbf16>
    %c16 = arith.constant 16 : index
    %c0_32 = arith.constant 0 : index
    %79 = vector.load %arg15[%c16, %c0_32] : memref<288x512xbf16, #tpu.memory_space<vmem>>, vector<8x512xbf16>
    tpu.vector_store %arg15[%c16, %c0_32], %78 {strides = array<i32>} : memref<288x512xbf16, #tpu.memory_space<vmem>>, vector<8x512xbf16>,
    %c0_33 = arith.constant 0 : index
    %c144 = arith.constant 144 : index
    %80 = vector.load %arg14[%c0_33, %c144] : memref<32x768xbf16, #tpu.memory_space<vmem>>, vector<8x512xbf16>
    %c24 = arith.constant 24 : index
    %c0_34 = arith.constant 0 : index
    %81 = vector.load %arg15[%c24, %c0_34] : memref<288x512xbf16, #tpu.memory_space<vmem>>, vector<8x512xbf16>
    tpu.vector_store %arg15[%c24, %c0_34], %80 {strides = array<i32>} : memref<288x512xbf16, #tpu.memory_space<vmem>>, vector<8x512xbf16>,
    %c0_35 = arith.constant 0 : index
    %c145 = arith.constant 145 : index
    %82 = vector.load %arg14[%c0_35, %c145] : memref<32x768xbf16, #tpu.memory_space<vmem>>, vector<8x512xbf16>
    %c32 = arith.constant 32 : index
    %c0_36 = arith.constant 0 : index
    %83 = vector.load %arg15[%c32, %c0_36] : memref<288x512xbf16, #tpu.memory_space<vmem>>, vector<8x512xbf16>
    tpu.vector_store %arg15[%c32, %c0_36], %82 {strides = array<i32>} : memref<288x512xbf16, #tpu.memory_space<vmem>>, vector<8x512xbf16>,
    %c0_37 = arith.constant 0 : index
    %c146 = arith.constant 146 : index
    %84 = vector.load %arg14[%c0_37, %c146] : memref<32x768xbf16, #tpu.memory_space<vmem>>, vector<8x512xbf16>
    %c40 = arith.constant 40 : index
    %c0_38 = arith.constant 0 : index
    %85 = vector.load %arg15[%c40, %c0_38] : memref<288x512xbf16, #tpu.memory_space<vmem>>, vector<8x512xbf16>
    tpu.vector_store %arg15[%c40, %c0_38], %84 {strides = array<i32>} : memref<288x512xbf16, #tpu.memory_space<vmem>>, vector<8x512xbf16>,
    %c0_39 = arith.constant 0 : index
    %c160 = arith.constant 160 : index
    %86 = vector.load %arg14[%c0_39, %c160] : memref<32x768xbf16, #tpu.memory_space<vmem>>, vector<8x512xbf16>
    %c48 = arith.constant 48 : index
    %c0_40 = arith.constant 0 : index
    %87 = vector.load %arg15[%c48, %c0_40] : memref<288x512xbf16, #tpu.memory_space<vmem>>, vector<8x512xbf16>
    tpu.vector_store %arg15[%c48, %c0_40], %86 {strides = array<i32>} : memref<288x512xbf16, #tpu.memory_space<vmem>>, vector<8x512xbf16>,
    %c0_41 = arith.constant 0 : index
    %c161 = arith.constant 161 : index
    %88 = vector.load %arg14[%c0_41, %c161] : memref<32x768xbf16, #tpu.memory_space<vmem>>, vector<8x512xbf16>
    %c56 = arith.constant 56 : index
    %c0_42 = arith.constant 0 : index
    %89 = vector.load %arg15[%c56, %c0_42] : memref<288x512xbf16, #tpu.memory_space<vmem>>, vector<8x512xbf16>
    tpu.vector_store %arg15[%c56, %c0_42], %88 {strides = array<i32>} : memref<288x512xbf16, #tpu.memory_space<vmem>>, vector<8x512xbf16>,
    %c0_43 = arith.constant 0 : index
    %c162 = arith.constant 162 : index
    %90 = vector.load %arg14[%c0_43, %c162] : memref<32x768xbf16, #tpu.memory_space<vmem>>, vector<8x512xbf16>
    %c64 = arith.constant 64 : index
    %c0_44 = arith.constant 0 : index
    %91 = vector.load %arg15[%c64, %c0_44] : memref<288x512xbf16, #tpu.memory_space<vmem>>, vector<8x512xbf16>
    tpu.vector_store %arg15[%c64, %c0_44], %90 {strides = array<i32>} : memref<288x512xbf16, #tpu.memory_space<vmem>>, vector<8x512xbf16>,
    %c0_45 = arith.constant 0 : index
    %c0_46 = arith.constant 0 : index
    %92 = vector.load %arg1[%c0_45, %c0_46] : memref<8x72xbf16, #tpu.memory_space<vmem>>, vector<8x72xbf16>
    %c0_47 = arith.constant 0 : index
    %c0_48 = arith.constant 0 : index
    %93 = vector.load %arg15[%c0_47, %c0_48] : memref<288x512xbf16, #tpu.memory_space<vmem>>, vector<72x512xbf16>
    %cst_49 = arith.constant dense<0.000000e+00> : vector<8x512xf32>
    %94 = tpu.matmul %92, %93, %cst_49 {dimension_numbers = #tpu.dot_dimension_numbers<[1], [0], [0], [1], [0, 0, 1, 1], [], []>} : vector<8x72xbf16>, vector<72x512xbf16>, vector<8x512xf32> -> vector<8x512xf32>
    %95 = vector.broadcast %32 : vector<1x512xf32> to vector<8x512xf32>
    %96 = arith.mulf %94, %95 : vector<8x512xf32>
    %cst_50 = arith.constant dense<0.000000e+00> : vector<8xf32>
    %97 = vector.multi_reduction <add>, %96, %cst_50 [1] : vector<8x512xf32> to vector<8xf32>
    %98 = vector.shape_cast %97 : vector<8xf32> to vector<8x1xf32>
    %cst_51 = arith.constant 0.00255102036 : f32
    %99 = vector.broadcast %cst_51 : f32 to vector<8x1xf32>
    %100 = arith.mulf %98, %99 : vector<8x1xf32>
    %101 = arith.mulf %96, %94 : vector<8x512xf32>
    %cst_52 = arith.constant dense<0.000000e+00> : vector<8xf32>
    %102 = vector.multi_reduction <add>, %101, %cst_52 [1] : vector<8x512xf32> to vector<8xf32>
    %103 = vector.shape_cast %102 : vector<8xf32> to vector<8x1xf32>
    %cst_53 = arith.constant 0.00255102036 : f32
    %104 = vector.broadcast %cst_53 : f32 to vector<8x1xf32>
    %105 = arith.mulf %103, %104 : vector<8x1xf32>
    %106 = arith.mulf %100, %100 : vector<8x1xf32>
    %107 = arith.subf %105, %106 : vector<8x1xf32>
    %cst_54 = arith.constant 0.000000e+00 : f32
    %108 = vector.broadcast %cst_54 : f32 to vector<8x1xf32>
    %109 = arith.maximumf %107, %108 : vector<8x1xf32>
    %110 = vector.broadcast %100 : vector<8x1xf32> to vector<8x512xf32>
    %111 = arith.subf %94, %110 : vector<8x512xf32>
    %cst_55 = arith.constant 9.99999974E-6 : f32
    %112 = vector.broadcast %cst_55 : f32 to vector<8x1xf32>
    %113 = arith.addf %109, %112 : vector<8x1xf32>
    %114 = math.rsqrt %113 : vector<8x1xf32>
    %115 = vector.broadcast %114 : vector<8x1xf32> to vector<8x512xf32>
    %116 = arith.mulf %111, %115 : vector<8x512xf32>
    %c0_56 = arith.constant 0 : index
    %c1 = arith.constant 1 : index
    %117 = vector.load %arg2[%c0_56, %c1] : memref<8x3xf32, #tpu.memory_space<vmem>>, vector<8x1xf32>
    %118 = vector.broadcast %117 : vector<8x1xf32> to vector<8x512xf32>
    %119 = arith.mulf %116, %118 : vector<8x512xf32>
    %c0_57 = arith.constant 0 : index
    %c2 = arith.constant 2 : index
    %120 = vector.load %arg2[%c0_57, %c2] : memref<8x3xf32, #tpu.memory_space<vmem>>, vector<8x1xf32>
    %121 = vector.broadcast %120 : vector<8x1xf32> to vector<8x512xf32>
    %122 = arith.addf %119, %121 : vector<8x512xf32>
    %cst_58 = arith.constant 5.000000e-01 : f32
    %123 = vector.broadcast %cst_58 : f32 to vector<8x512xf32>
    %124 = arith.mulf %123, %122 : vector<8x512xf32>
    %125 = math.tanh %124 : vector<8x512xf32>
    %cst_59 = arith.constant 1.000000e+00 : f32
    %126 = vector.broadcast %cst_59 : f32 to vector<8x512xf32>
    %127 = arith.addf %125, %126 : vector<8x512xf32>
    %cst_60 = arith.constant 5.000000e-01 : f32
    %128 = vector.broadcast %cst_60 : f32 to vector<8x512xf32>
    %129 = arith.mulf %128, %127 : vector<8x512xf32>
    %130 = arith.mulf %122, %129 : vector<8x512xf32>
    %131 = vector.broadcast %32 : vector<1x512xf32> to vector<8x512xf32>
    %132 = arith.mulf %130, %131 : vector<8x512xf32>
    %133 = arith.truncf %132 : vector<8x512xf32> to vector<8x512xbf16>
    %c0_61 = arith.constant 0 : index
    %c128_62 = arith.constant 128 : index
    %134 = vector.load %arg14[%c0_61, %c128_62] : memref<32x768xbf16, #tpu.memory_space<vmem>>, vector<8x512xbf16>
    tpu.vector_store %arg14[%c0_61, %c128_62], %133 {strides = array<i32>} : memref<32x768xbf16, #tpu.memory_space<vmem>>, vector<8x512xbf16>,
    %c0_63 = arith.constant 0 : index
    %c128_64 = arith.constant 128 : index
    %135 = vector.load %arg14[%c0_63, %c128_64] : memref<32x768xbf16, #tpu.memory_space<vmem>>, vector<8x512xbf16>
    %c0_65 = arith.constant 0 : index
    %c0_66 = arith.constant 0 : index
    %136 = vector.load %arg15[%c0_65, %c0_66] : memref<288x512xbf16, #tpu.memory_space<vmem>>, vector<8x512xbf16>
    tpu.vector_store %arg15[%c0_65, %c0_66], %135 {strides = array<i32>} : memref<288x512xbf16, #tpu.memory_space<vmem>>, vector<8x512xbf16>,
    %c0_67 = arith.constant 0 : index
    %c129_68 = arith.constant 129 : index
    %137 = vector.load %arg14[%c0_67, %c129_68] : memref<32x768xbf16, #tpu.memory_space<vmem>>, vector<8x512xbf16>
    %c8_69 = arith.constant 8 : index
    %c0_70 = arith.constant 0 : index
    %138 = vector.load %arg15[%c8_69, %c0_70] : memref<288x512xbf16, #tpu.memory_space<vmem>>, vector<8x512xbf16>
    tpu.vector_store %arg15[%c8_69, %c0_70], %137 {strides = array<i32>} : memref<288x512xbf16, #tpu.memory_space<vmem>>, vector<8x512xbf16>,
    %c0_71 = arith.constant 0 : index
    %c130_72 = arith.constant 130 : index
    %139 = vector.load %arg14[%c0_71, %c130_72] : memref<32x768xbf16, #tpu.memory_space<vmem>>, vector<8x512xbf16>
    %c16_73 = arith.constant 16 : index
    %c0_74 = arith.constant 0 : index
    %140 = vector.load %arg15[%c16_73, %c0_74] : memref<288x512xbf16, #tpu.memory_space<vmem>>, vector<8x512xbf16>
    tpu.vector_store %arg15[%c16_73, %c0_74], %139 {strides = array<i32>} : memref<288x512xbf16, #tpu.memory_space<vmem>>, vector<8x512xbf16>,
    %c0_75 = arith.constant 0 : index
    %c144_76 = arith.constant 144 : index
    %141 = vector.load %arg14[%c0_75, %c144_76] : memref<32x768xbf16, #tpu.memory_space<vmem>>, vector<8x512xbf16>
    %c24_77 = arith.constant 24 : index
    %c0_78 = arith.constant 0 : index
    %142 = vector.load %arg15[%c24_77, %c0_78] : memref<288x512xbf16, #tpu.memory_space<vmem>>, vector<8x512xbf16>
    tpu.vector_store %arg15[%c24_77, %c0_78], %141 {strides = array<i32>} : memref<288x512xbf16, #tpu.memory_space<vmem>>, vector<8x512xbf16>,
    %c0_79 = arith.constant 0 : index
    %c145_80 = arith.constant 145 : index
    %143 = vector.load %arg14[%c0_79, %c145_80] : memref<32x768xbf16, #tpu.memory_space<vmem>>, vector<8x512xbf16>
    %c32_81 = arith.constant 32 : index
    %c0_82 = arith.constant 0 : index
    %144 = vector.load %arg15[%c32_81, %c0_82] : memref<288x512xbf16, #tpu.memory_space<vmem>>, vector<8x512xbf16>
    tpu.vector_store %arg15[%c32_81, %c0_82], %143 {strides = array<i32>} : memref<288x512xbf16, #tpu.memory_space<vmem>>, vector<8x512xbf16>,
    %c0_83 = arith.constant 0 : index
    %c146_84 = arith.constant 146 : index
    %145 = vector.load %arg14[%c0_83, %c146_84] : memref<32x768xbf16, #tpu.memory_space<vmem>>, vector<8x512xbf16>
    %c40_85 = arith.constant 40 : index
    %c0_86 = arith.constant 0 : index
    %146 = vector.load %arg15[%c40_85, %c0_86] : memref<288x512xbf16, #tpu.memory_space<vmem>>, vector<8x512xbf16>
    tpu.vector_store %arg15[%c40_85, %c0_86], %145 {strides = array<i32>} : memref<288x512xbf16, #tpu.memory_space<vmem>>, vector<8x512xbf16>,
    %c0_87 = arith.constant 0 : index
    %c160_88 = arith.constant 160 : index
    %147 = vector.load %arg14[%c0_87, %c160_88] : memref<32x768xbf16, #tpu.memory_space<vmem>>, vector<8x512xbf16>
    %c48_89 = arith.constant 48 : index
    %c0_90 = arith.constant 0 : index
    %148 = vector.load %arg15[%c48_89, %c0_90] : memref<288x512xbf16, #tpu.memory_space<vmem>>, vector<8x512xbf16>
    tpu.vector_store %arg15[%c48_89, %c0_90], %147 {strides = array<i32>} : memref<288x512xbf16, #tpu.memory_space<vmem>>, vector<8x512xbf16>,
    %c0_91 = arith.constant 0 : index
    %c161_92 = arith.constant 161 : index
    %149 = vector.load %arg14[%c0_91, %c161_92] : memref<32x768xbf16, #tpu.memory_space<vmem>>, vector<8x512xbf16>
    %c56_93 = arith.constant 56 : index
    %c0_94 = arith.constant 0 : index
    %150 = vector.load %arg15[%c56_93, %c0_94] : memref<288x512xbf16, #tpu.memory_space<vmem>>, vector<8x512xbf16>
    tpu.vector_store %arg15[%c56_93, %c0_94], %149 {strides = array<i32>} : memref<288x512xbf16, #tpu.memory_space<vmem>>, vector<8x512xbf16>,
    %c0_95 = arith.constant 0 : index
    %c162_96 = arith.constant 162 : index
    %151 = vector.load %arg14[%c0_95, %c162_96] : memref<32x768xbf16, #tpu.memory_space<vmem>>, vector<8x512xbf16>
    %c64_97 = arith.constant 64 : index
    %c0_98 = arith.constant 0 : index
    %152 = vector.load %arg15[%c64_97, %c0_98] : memref<288x512xbf16, #tpu.memory_space<vmem>>, vector<8x512xbf16>
    tpu.vector_store %arg15[%c64_97, %c0_98], %151 {strides = array<i32>} : memref<288x512xbf16, #tpu.memory_space<vmem>>, vector<8x512xbf16>,
    %c0_99 = arith.constant 0 : index
    %c0_100 = arith.constant 0 : index
    %153 = vector.load %arg3[%c0_99, %c0_100] : memref<8x72xbf16, #tpu.memory_space<vmem>>, vector<8x72xbf16>
    %c0_101 = arith.constant 0 : index
    %c0_102 = arith.constant 0 : index
    %154 = vector.load %arg15[%c0_101, %c0_102] : memref<288x512xbf16, #tpu.memory_space<vmem>>, vector<72x512xbf16>
    %cst_103 = arith.constant dense<0.000000e+00> : vector<8x512xf32>
    %155 = tpu.matmul %153, %154, %cst_103 {dimension_numbers = #tpu.dot_dimension_numbers<[1], [0], [0], [1], [0, 0, 1, 1], [], []>} : vector<8x72xbf16>, vector<72x512xbf16>, vector<8x512xf32> -> vector<8x512xf32>
    %156 = vector.extract_strided_slice %155 {offsets = [0, 0], sizes = [8, 256], strides = [1, 1]} : vector<8x512xf32> to vector<8x256xf32>
    %157 = arith.truncf %156 : vector<8x256xf32> to vector<8x256xbf16>
    %cst_104 = arith.constant dense<0.000000e+00> : vector<8x256xf32>
    %158 = tpu.matmul %157, %60, %cst_104 {dimension_numbers = #tpu.dot_dimension_numbers<[1], [0], [0], [1], [0, 0, 1, 1], [], []>} : vector<8x256xbf16>, vector<256x256xbf16>, vector<8x256xf32> -> vector<8x256xf32>
    %c0_105 = arith.constant 0 : index
    %c0_106 = arith.constant 0 : index
    %159 = vector.load %arg16[%c0_105, %c0_106] : memref<32x512xf32, #tpu.memory_space<vmem>>, vector<8x256xf32>
    tpu.vector_store %arg16[%c0_105, %c0_106], %158 {strides = array<i32>} : memref<32x512xf32, #tpu.memory_space<vmem>>, vector<8x256xf32>,
    %160 = vector.extract_strided_slice %155 {offsets = [0, 256], sizes = [8, 256], strides = [1, 1]} : vector<8x512xf32> to vector<8x256xf32>
    %161 = arith.truncf %160 : vector<8x256xf32> to vector<8x256xbf16>
    %cst_107 = arith.constant dense<0.000000e+00> : vector<8x256xf32>
    %162 = tpu.matmul %161, %60, %cst_107 {dimension_numbers = #tpu.dot_dimension_numbers<[1], [0], [0], [1], [0, 0, 1, 1], [], []>} : vector<8x256xbf16>, vector<256x256xbf16>, vector<8x256xf32> -> vector<8x256xf32>
    %c0_108 = arith.constant 0 : index
    %c256 = arith.constant 256 : index
    %163 = vector.load %arg16[%c0_108, %c256] : memref<32x512xf32, #tpu.memory_space<vmem>>, vector<8x256xf32>
    tpu.vector_store %arg16[%c0_108, %c256], %162 {strides = array<i32>} : memref<32x512xf32, #tpu.memory_space<vmem>>, vector<8x256xf32>,
    %c0_109 = arith.constant 0 : index
    %c0_110 = arith.constant 0 : index
    %164 = vector.load %arg16[%c0_109, %c0_110] : memref<32x512xf32, #tpu.memory_space<vmem>>, vector<8x512xf32>
    %165 = vector.broadcast %24 : vector<1x512xf32> to vector<8x512xf32>
    %166 = arith.mulf %164, %165 : vector<8x512xf32>
    %cst_111 = arith.constant dense<0.000000e+00> : vector<8xf32>
    %167 = vector.multi_reduction <add>, %166, %cst_111 [1] : vector<8x512xf32> to vector<8xf32>
    %168 = vector.shape_cast %167 : vector<8xf32> to vector<8x1xf32>
    %cst_112 = arith.constant 0.013888889 : f32
    %169 = vector.broadcast %cst_112 : f32 to vector<8x1xf32>
    %170 = arith.mulf %168, %169 : vector<8x1xf32>
    %171 = arith.mulf %166, %164 : vector<8x512xf32>
    %cst_113 = arith.constant dense<0.000000e+00> : vector<8xf32>
    %172 = vector.multi_reduction <add>, %171, %cst_113 [1] : vector<8x512xf32> to vector<8xf32>
    %173 = vector.shape_cast %172 : vector<8xf32> to vector<8x1xf32>
    %cst_114 = arith.constant 0.013888889 : f32
    %174 = vector.broadcast %cst_114 : f32 to vector<8x1xf32>
    %175 = arith.mulf %173, %174 : vector<8x1xf32>
    %176 = arith.mulf %170, %170 : vector<8x1xf32>
    %177 = arith.subf %175, %176 : vector<8x1xf32>
    %cst_115 = arith.constant 0.000000e+00 : f32
    %178 = vector.broadcast %cst_115 : f32 to vector<8x1xf32>
    %179 = arith.maximumf %177, %178 : vector<8x1xf32>
    %180 = vector.broadcast %170 : vector<8x1xf32> to vector<8x512xf32>
    %181 = arith.subf %164, %180 : vector<8x512xf32>
    %cst_116 = arith.constant 9.99999974E-6 : f32
    %182 = vector.broadcast %cst_116 : f32 to vector<8x1xf32>
    %183 = arith.addf %179, %182 : vector<8x1xf32>
    %184 = math.rsqrt %183 : vector<8x1xf32>
    %185 = vector.broadcast %184 : vector<8x1xf32> to vector<8x512xf32>
    %186 = arith.mulf %181, %185 : vector<8x512xf32>
    %c0_117 = arith.constant 0 : index
    %c1_118 = arith.constant 1 : index
    %187 = vector.load %arg4[%c0_117, %c1_118] : memref<8x3xf32, #tpu.memory_space<vmem>>, vector<8x1xf32>
    %188 = vector.broadcast %187 : vector<8x1xf32> to vector<8x512xf32>
    %189 = arith.mulf %186, %188 : vector<8x512xf32>
    %c0_119 = arith.constant 0 : index
    %c2_120 = arith.constant 2 : index
    %190 = vector.load %arg4[%c0_119, %c2_120] : memref<8x3xf32, #tpu.memory_space<vmem>>, vector<8x1xf32>
    %191 = vector.broadcast %190 : vector<8x1xf32> to vector<8x512xf32>
    %192 = arith.addf %189, %191 : vector<8x512xf32>
    %cst_121 = arith.constant 5.000000e-01 : f32
    %193 = vector.broadcast %cst_121 : f32 to vector<8x512xf32>
    %194 = arith.mulf %193, %192 : vector<8x512xf32>
    %195 = math.tanh %194 : vector<8x512xf32>
    %cst_122 = arith.constant 1.000000e+00 : f32
    %196 = vector.broadcast %cst_122 : f32 to vector<8x512xf32>
    %197 = arith.addf %195, %196 : vector<8x512xf32>
    %cst_123 = arith.constant 5.000000e-01 : f32
    %198 = vector.broadcast %cst_123 : f32 to vector<8x512xf32>
    %199 = arith.mulf %198, %197 : vector<8x512xf32>
    %200 = arith.mulf %192, %199 : vector<8x512xf32>
    %201 = vector.broadcast %24 : vector<1x512xf32> to vector<8x512xf32>
    %202 = arith.mulf %200, %201 : vector<8x512xf32>
    %203 = arith.truncf %202 : vector<8x512xf32> to vector<8x512xbf16>
    %c0_124 = arith.constant 0 : index
    %c128_125 = arith.constant 128 : index
    %204 = vector.load %arg14[%c0_124, %c128_125] : memref<32x768xbf16, #tpu.memory_space<vmem>>, vector<8x512xbf16>
    tpu.vector_store %arg14[%c0_124, %c128_125], %203 {strides = array<i32>} : memref<32x768xbf16, #tpu.memory_space<vmem>>, vector<8x512xbf16>,
    %c0_126 = arith.constant 0 : index
    %c128_127 = arith.constant 128 : index
    %205 = vector.load %arg14[%c0_126, %c128_127] : memref<32x768xbf16, #tpu.memory_space<vmem>>, vector<8x512xbf16>
    %c0_128 = arith.constant 0 : index
    %c0_129 = arith.constant 0 : index
    %206 = vector.load %arg15[%c0_128, %c0_129] : memref<288x512xbf16, #tpu.memory_space<vmem>>, vector<8x512xbf16>
    tpu.vector_store %arg15[%c0_128, %c0_129], %205 {strides = array<i32>} : memref<288x512xbf16, #tpu.memory_space<vmem>>, vector<8x512xbf16>,
    %c0_130 = arith.constant 0 : index
    %c129_131 = arith.constant 129 : index
    %207 = vector.load %arg14[%c0_130, %c129_131] : memref<32x768xbf16, #tpu.memory_space<vmem>>, vector<8x512xbf16>
    %c8_132 = arith.constant 8 : index
    %c0_133 = arith.constant 0 : index
    %208 = vector.load %arg15[%c8_132, %c0_133] : memref<288x512xbf16, #tpu.memory_space<vmem>>, vector<8x512xbf16>
    tpu.vector_store %arg15[%c8_132, %c0_133], %207 {strides = array<i32>} : memref<288x512xbf16, #tpu.memory_space<vmem>>, vector<8x512xbf16>,
    %c0_134 = arith.constant 0 : index
    %c130_135 = arith.constant 130 : index
    %209 = vector.load %arg14[%c0_134, %c130_135] : memref<32x768xbf16, #tpu.memory_space<vmem>>, vector<8x512xbf16>
    %c16_136 = arith.constant 16 : index
    %c0_137 = arith.constant 0 : index
    %210 = vector.load %arg15[%c16_136, %c0_137] : memref<288x512xbf16, #tpu.memory_space<vmem>>, vector<8x512xbf16>
    tpu.vector_store %arg15[%c16_136, %c0_137], %209 {strides = array<i32>} : memref<288x512xbf16, #tpu.memory_space<vmem>>, vector<8x512xbf16>,
    %c0_138 = arith.constant 0 : index
    %c144_139 = arith.constant 144 : index
    %211 = vector.load %arg14[%c0_138, %c144_139] : memref<32x768xbf16, #tpu.memory_space<vmem>>, vector<8x512xbf16>
    %c24_140 = arith.constant 24 : index
    %c0_141 = arith.constant 0 : index
    %212 = vector.load %arg15[%c24_140, %c0_141] : memref<288x512xbf16, #tpu.memory_space<vmem>>, vector<8x512xbf16>
    tpu.vector_store %arg15[%c24_140, %c0_141], %211 {strides = array<i32>} : memref<288x512xbf16, #tpu.memory_space<vmem>>, vector<8x512xbf16>,
    %c0_142 = arith.constant 0 : index
    %c145_143 = arith.constant 145 : index
    %213 = vector.load %arg14[%c0_142, %c145_143] : memref<32x768xbf16, #tpu.memory_space<vmem>>, vector<8x512xbf16>
    %c32_144 = arith.constant 32 : index
    %c0_145 = arith.constant 0 : index
    %214 = vector.load %arg15[%c32_144, %c0_145] : memref<288x512xbf16, #tpu.memory_space<vmem>>, vector<8x512xbf16>
    tpu.vector_store %arg15[%c32_144, %c0_145], %213 {strides = array<i32>} : memref<288x512xbf16, #tpu.memory_space<vmem>>, vector<8x512xbf16>,
    %c0_146 = arith.constant 0 : index
    %c146_147 = arith.constant 146 : index
    %215 = vector.load %arg14[%c0_146, %c146_147] : memref<32x768xbf16, #tpu.memory_space<vmem>>, vector<8x512xbf16>
    %c40_148 = arith.constant 40 : index
    %c0_149 = arith.constant 0 : index
    %216 = vector.load %arg15[%c40_148, %c0_149] : memref<288x512xbf16, #tpu.memory_space<vmem>>, vector<8x512xbf16>
    tpu.vector_store %arg15[%c40_148, %c0_149], %215 {strides = array<i32>} : memref<288x512xbf16, #tpu.memory_space<vmem>>, vector<8x512xbf16>,
    %c0_150 = arith.constant 0 : index
    %c160_151 = arith.constant 160 : index
    %217 = vector.load %arg14[%c0_150, %c160_151] : memref<32x768xbf16, #tpu.memory_space<vmem>>, vector<8x512xbf16>
    %c48_152 = arith.constant 48 : index
    %c0_153 = arith.constant 0 : index
    %218 = vector.load %arg15[%c48_152, %c0_153] : memref<288x512xbf16, #tpu.memory_space<vmem>>, vector<8x512xbf16>
    tpu.vector_store %arg15[%c48_152, %c0_153], %217 {strides = array<i32>} : memref<288x512xbf16, #tpu.memory_space<vmem>>, vector<8x512xbf16>,
    %c0_154 = arith.constant 0 : index
    %c161_155 = arith.constant 161 : index
    %219 = vector.load %arg14[%c0_154, %c161_155] : memref<32x768xbf16, #tpu.memory_space<vmem>>, vector<8x512xbf16>
    %c56_156 = arith.constant 56 : index
    %c0_157 = arith.constant 0 : index
    %220 = vector.load %arg15[%c56_156, %c0_157] : memref<288x512xbf16, #tpu.memory_space<vmem>>, vector<8x512xbf16>
    tpu.vector_store %arg15[%c56_156, %c0_157], %219 {strides = array<i32>} : memref<288x512xbf16, #tpu.memory_space<vmem>>, vector<8x512xbf16>,
    %c0_158 = arith.constant 0 : index
    %c162_159 = arith.constant 162 : index
    %221 = vector.load %arg14[%c0_158, %c162_159] : memref<32x768xbf16, #tpu.memory_space<vmem>>, vector<8x512xbf16>
    %c64_160 = arith.constant 64 : index
    %c0_161 = arith.constant 0 : index
    %222 = vector.load %arg15[%c64_160, %c0_161] : memref<288x512xbf16, #tpu.memory_space<vmem>>, vector<8x512xbf16>
    tpu.vector_store %arg15[%c64_160, %c0_161], %221 {strides = array<i32>} : memref<288x512xbf16, #tpu.memory_space<vmem>>, vector<8x512xbf16>,
    %c0_162 = arith.constant 0 : index
    %c0_163 = arith.constant 0 : index
    %223 = vector.load %arg5[%c0_162, %c0_163] : memref<32x72xbf16, #tpu.memory_space<vmem>>, vector<32x72xbf16>
    %c0_164 = arith.constant 0 : index
    %c0_165 = arith.constant 0 : index
    %224 = vector.load %arg15[%c0_164, %c0_165] : memref<288x512xbf16, #tpu.memory_space<vmem>>, vector<72x512xbf16>
    %cst_166 = arith.constant dense<0.000000e+00> : vector<32x512xf32>
    %225 = tpu.matmul %223, %224, %cst_166 {dimension_numbers = #tpu.dot_dimension_numbers<[1], [0], [0], [1], [0, 0, 1, 1], [], []>} : vector<32x72xbf16>, vector<72x512xbf16>, vector<32x512xf32> -> vector<32x512xf32>
    %226 = vector.broadcast %16 : vector<1x512xf32> to vector<32x512xf32>
    %227 = arith.mulf %225, %226 : vector<32x512xf32>
    %cst_167 = arith.constant dense<0.000000e+00> : vector<32xf32>
    %228 = vector.multi_reduction <add>, %227, %cst_167 [1] : vector<32x512xf32> to vector<32xf32>
    %229 = vector.shape_cast %228 : vector<32xf32> to vector<32x1xf32>
    %cst_168 = arith.constant 3.125000e-02 : f32
    %230 = vector.broadcast %cst_168 : f32 to vector<32x1xf32>
    %231 = arith.mulf %229, %230 : vector<32x1xf32>
    %232 = arith.mulf %227, %225 : vector<32x512xf32>
    %cst_169 = arith.constant dense<0.000000e+00> : vector<32xf32>
    %233 = vector.multi_reduction <add>, %232, %cst_169 [1] : vector<32x512xf32> to vector<32xf32>
    %234 = vector.shape_cast %233 : vector<32xf32> to vector<32x1xf32>
    %cst_170 = arith.constant 3.125000e-02 : f32
    %235 = vector.broadcast %cst_170 : f32 to vector<32x1xf32>
    %236 = arith.mulf %234, %235 : vector<32x1xf32>
    %237 = arith.mulf %231, %231 : vector<32x1xf32>
    %238 = arith.subf %236, %237 : vector<32x1xf32>
    %cst_171 = arith.constant 0.000000e+00 : f32
    %239 = vector.broadcast %cst_171 : f32 to vector<32x1xf32>
    %240 = arith.maximumf %238, %239 : vector<32x1xf32>
    %241 = vector.broadcast %231 : vector<32x1xf32> to vector<32x512xf32>
    %242 = arith.subf %225, %241 : vector<32x512xf32>
    %cst_172 = arith.constant 9.99999974E-6 : f32
    %243 = vector.broadcast %cst_172 : f32 to vector<32x1xf32>
    %244 = arith.addf %240, %243 : vector<32x1xf32>
    %245 = math.rsqrt %244 : vector<32x1xf32>
    %246 = vector.broadcast %245 : vector<32x1xf32> to vector<32x512xf32>
    %247 = arith.mulf %242, %246 : vector<32x512xf32>
    %c0_173 = arith.constant 0 : index
    %c1_174 = arith.constant 1 : index
    %248 = vector.load %arg6[%c0_173, %c1_174] : memref<32x3xf32, #tpu.memory_space<vmem>>, vector<32x1xf32>
    %249 = vector.broadcast %248 : vector<32x1xf32> to vector<32x512xf32>
    %250 = arith.mulf %247, %249 : vector<32x512xf32>
    %c0_175 = arith.constant 0 : index
    %c2_176 = arith.constant 2 : index
    %251 = vector.load %arg6[%c0_175, %c2_176] : memref<32x3xf32, #tpu.memory_space<vmem>>, vector<32x1xf32>
    %252 = vector.broadcast %251 : vector<32x1xf32> to vector<32x512xf32>
    %253 = arith.addf %250, %252 : vector<32x512xf32>
    %254 = vector.broadcast %16 : vector<1x512xf32> to vector<32x512xf32>
    %255 = arith.mulf %253, %254 : vector<32x512xf32>
    %256 = arith.truncf %255 : vector<32x512xf32> to vector<32x512xbf16>
    %c0_177 = arith.constant 0 : index
    %c128_178 = arith.constant 128 : index
    %257 = vector.load %arg14[%c0_177, %c128_178] : memref<32x768xbf16, #tpu.memory_space<vmem>>, vector<32x512xbf16>
    tpu.vector_store %arg14[%c0_177, %c128_178], %256 {strides = array<i32>} : memref<32x768xbf16, #tpu.memory_space<vmem>>, vector<32x512xbf16>,
    %c0_179 = arith.constant 0 : index
    %c94 = arith.constant 94 : index
    %258 = vector.load %arg14[%c0_179, %c94] : memref<32x768xbf16, #tpu.memory_space<vmem>>, vector<32x512xbf16>
    %c0_180 = arith.constant 0 : index
    %c0_181 = arith.constant 0 : index
    %259 = vector.load %arg15[%c0_180, %c0_181] : memref<288x512xbf16, #tpu.memory_space<vmem>>, vector<32x512xbf16>
    tpu.vector_store %arg15[%c0_180, %c0_181], %258 {strides = array<i32>} : memref<288x512xbf16, #tpu.memory_space<vmem>>, vector<32x512xbf16>,
    %c0_182 = arith.constant 0 : index
    %c95 = arith.constant 95 : index
    %260 = vector.load %arg14[%c0_182, %c95] : memref<32x768xbf16, #tpu.memory_space<vmem>>, vector<32x512xbf16>
    %c32_183 = arith.constant 32 : index
    %c0_184 = arith.constant 0 : index
    %261 = vector.load %arg15[%c32_183, %c0_184] : memref<288x512xbf16, #tpu.memory_space<vmem>>, vector<32x512xbf16>
    tpu.vector_store %arg15[%c32_183, %c0_184], %260 {strides = array<i32>} : memref<288x512xbf16, #tpu.memory_space<vmem>>, vector<32x512xbf16>,
    %c0_185 = arith.constant 0 : index
    %c96 = arith.constant 96 : index
    %262 = vector.load %arg14[%c0_185, %c96] : memref<32x768xbf16, #tpu.memory_space<vmem>>, vector<32x512xbf16>
    %c64_186 = arith.constant 64 : index
    %c0_187 = arith.constant 0 : index
    %263 = vector.load %arg15[%c64_186, %c0_187] : memref<288x512xbf16, #tpu.memory_space<vmem>>, vector<32x512xbf16>
    tpu.vector_store %arg15[%c64_186, %c0_187], %262 {strides = array<i32>} : memref<288x512xbf16, #tpu.memory_space<vmem>>, vector<32x512xbf16>,
    %c0_188 = arith.constant 0 : index
    %c110 = arith.constant 110 : index
    %264 = vector.load %arg14[%c0_188, %c110] : memref<32x768xbf16, #tpu.memory_space<vmem>>, vector<32x512xbf16>
    %c96_189 = arith.constant 96 : index
    %c0_190 = arith.constant 0 : index
    %265 = vector.load %arg15[%c96_189, %c0_190] : memref<288x512xbf16, #tpu.memory_space<vmem>>, vector<32x512xbf16>
    tpu.vector_store %arg15[%c96_189, %c0_190], %264 {strides = array<i32>} : memref<288x512xbf16, #tpu.memory_space<vmem>>, vector<32x512xbf16>,
    %c0_191 = arith.constant 0 : index
    %c111 = arith.constant 111 : index
    %266 = vector.load %arg14[%c0_191, %c111] : memref<32x768xbf16, #tpu.memory_space<vmem>>, vector<32x512xbf16>
    %c128_192 = arith.constant 128 : index
    %c0_193 = arith.constant 0 : index
    %267 = vector.load %arg15[%c128_192, %c0_193] : memref<288x512xbf16, #tpu.memory_space<vmem>>, vector<32x512xbf16>
    tpu.vector_store %arg15[%c128_192, %c0_193], %266 {strides = array<i32>} : memref<288x512xbf16, #tpu.memory_space<vmem>>, vector<32x512xbf16>,
    %c0_194 = arith.constant 0 : index
    %c112 = arith.constant 112 : index
    %268 = vector.load %arg14[%c0_194, %c112] : memref<32x768xbf16, #tpu.memory_space<vmem>>, vector<32x512xbf16>
    %c160_195 = arith.constant 160 : index
    %c0_196 = arith.constant 0 : index
    %269 = vector.load %arg15[%c160_195, %c0_196] : memref<288x512xbf16, #tpu.memory_space<vmem>>, vector<32x512xbf16>
    tpu.vector_store %arg15[%c160_195, %c0_196], %268 {strides = array<i32>} : memref<288x512xbf16, #tpu.memory_space<vmem>>, vector<32x512xbf16>,
    %c0_197 = arith.constant 0 : index
    %c126 = arith.constant 126 : index
    %270 = vector.load %arg14[%c0_197, %c126] : memref<32x768xbf16, #tpu.memory_space<vmem>>, vector<32x512xbf16>
    %c192 = arith.constant 192 : index
    %c0_198 = arith.constant 0 : index
    %271 = vector.load %arg15[%c192, %c0_198] : memref<288x512xbf16, #tpu.memory_space<vmem>>, vector<32x512xbf16>
    tpu.vector_store %arg15[%c192, %c0_198], %270 {strides = array<i32>} : memref<288x512xbf16, #tpu.memory_space<vmem>>, vector<32x512xbf16>,
    %c0_199 = arith.constant 0 : index
    %c127 = arith.constant 127 : index
    %272 = vector.load %arg14[%c0_199, %c127] : memref<32x768xbf16, #tpu.memory_space<vmem>>, vector<32x512xbf16>
    %c224 = arith.constant 224 : index
    %c0_200 = arith.constant 0 : index
    %273 = vector.load %arg15[%c224, %c0_200] : memref<288x512xbf16, #tpu.memory_space<vmem>>, vector<32x512xbf16>
    tpu.vector_store %arg15[%c224, %c0_200], %272 {strides = array<i32>} : memref<288x512xbf16, #tpu.memory_space<vmem>>, vector<32x512xbf16>,
    %c0_201 = arith.constant 0 : index
    %c128_202 = arith.constant 128 : index
    %274 = vector.load %arg14[%c0_201, %c128_202] : memref<32x768xbf16, #tpu.memory_space<vmem>>, vector<32x512xbf16>
    %c256_203 = arith.constant 256 : index
    %c0_204 = arith.constant 0 : index
    %275 = vector.load %arg15[%c256_203, %c0_204] : memref<288x512xbf16, #tpu.memory_space<vmem>>, vector<32x512xbf16>
    tpu.vector_store %arg15[%c256_203, %c0_204], %274 {strides = array<i32>} : memref<288x512xbf16, #tpu.memory_space<vmem>>, vector<32x512xbf16>,
    %c0_205 = arith.constant 0 : index
    %c0_206 = arith.constant 0 : index
    %276 = vector.load %arg7[%c0_205, %c0_206] : memref<8x288xbf16, #tpu.memory_space<vmem>>, vector<8x288xbf16>
    %c0_207 = arith.constant 0 : index
    %c0_208 = arith.constant 0 : index
    %277 = vector.load %arg15[%c0_207, %c0_208] : memref<288x512xbf16, #tpu.memory_space<vmem>>, vector<288x512xbf16>
    %cst_209 = arith.constant dense<0.000000e+00> : vector<8x512xf32>
    %278 = tpu.matmul %276, %277, %cst_209 {dimension_numbers = #tpu.dot_dimension_numbers<[1], [0], [0], [1], [0, 0, 1, 1], [], []>} : vector<8x288xbf16>, vector<288x512xbf16>, vector<8x512xf32> -> vector<8x512xf32>
    %279 = vector.broadcast %24 : vector<1x512xf32> to vector<8x512xf32>
    %280 = arith.mulf %278, %279 : vector<8x512xf32>
    %cst_210 = arith.constant dense<0.000000e+00> : vector<8xf32>
    %281 = vector.multi_reduction <add>, %280, %cst_210 [1] : vector<8x512xf32> to vector<8xf32>
    %282 = vector.shape_cast %281 : vector<8xf32> to vector<8x1xf32>
    %cst_211 = arith.constant 0.013888889 : f32
    %283 = vector.broadcast %cst_211 : f32 to vector<8x1xf32>
    %284 = arith.mulf %282, %283 : vector<8x1xf32>
    %285 = arith.mulf %280, %278 : vector<8x512xf32>
    %cst_212 = arith.constant dense<0.000000e+00> : vector<8xf32>
    %286 = vector.multi_reduction <add>, %285, %cst_212 [1] : vector<8x512xf32> to vector<8xf32>
    %287 = vector.shape_cast %286 : vector<8xf32> to vector<8x1xf32>
    %cst_213 = arith.constant 0.013888889 : f32
    %288 = vector.broadcast %cst_213 : f32 to vector<8x1xf32>
    %289 = arith.mulf %287, %288 : vector<8x1xf32>
    %290 = arith.mulf %284, %284 : vector<8x1xf32>
    %291 = arith.subf %289, %290 : vector<8x1xf32>
    %cst_214 = arith.constant 0.000000e+00 : f32
    %292 = vector.broadcast %cst_214 : f32 to vector<8x1xf32>
    %293 = arith.maximumf %291, %292 : vector<8x1xf32>
    %294 = vector.broadcast %284 : vector<8x1xf32> to vector<8x512xf32>
    %295 = arith.subf %278, %294 : vector<8x512xf32>
    %cst_215 = arith.constant 9.99999974E-6 : f32
    %296 = vector.broadcast %cst_215 : f32 to vector<8x1xf32>
    %297 = arith.addf %293, %296 : vector<8x1xf32>
    %298 = math.rsqrt %297 : vector<8x1xf32>
    %299 = vector.broadcast %298 : vector<8x1xf32> to vector<8x512xf32>
    %300 = arith.mulf %295, %299 : vector<8x512xf32>
    %c0_216 = arith.constant 0 : index
    %c1_217 = arith.constant 1 : index
    %301 = vector.load %arg8[%c0_216, %c1_217] : memref<8x3xf32, #tpu.memory_space<vmem>>, vector<8x1xf32>
    %302 = vector.broadcast %301 : vector<8x1xf32> to vector<8x512xf32>
    %303 = arith.mulf %300, %302 : vector<8x512xf32>
    %c0_218 = arith.constant 0 : index
    %c2_219 = arith.constant 2 : index
    %304 = vector.load %arg8[%c0_218, %c2_219] : memref<8x3xf32, #tpu.memory_space<vmem>>, vector<8x1xf32>
    %305 = vector.broadcast %304 : vector<8x1xf32> to vector<8x512xf32>
    %306 = arith.addf %303, %305 : vector<8x512xf32>
    %cst_220 = arith.constant 5.000000e-01 : f32
    %307 = vector.broadcast %cst_220 : f32 to vector<8x512xf32>
    %308 = arith.mulf %307, %306 : vector<8x512xf32>
    %309 = math.tanh %308 : vector<8x512xf32>
    %cst_221 = arith.constant 1.000000e+00 : f32
    %310 = vector.broadcast %cst_221 : f32 to vector<8x512xf32>
    %311 = arith.addf %309, %310 : vector<8x512xf32>
    %cst_222 = arith.constant 5.000000e-01 : f32
    %312 = vector.broadcast %cst_222 : f32 to vector<8x512xf32>
    %313 = arith.mulf %312, %311 : vector<8x512xf32>
    %314 = arith.mulf %306, %313 : vector<8x512xf32>
    %315 = vector.broadcast %24 : vector<1x512xf32> to vector<8x512xf32>
    %316 = arith.mulf %314, %315 : vector<8x512xf32>
    %317 = vector.extract_strided_slice %316 {offsets = [0, 0], sizes = [8, 256], strides = [1, 1]} : vector<8x512xf32> to vector<8x256xf32>
    %318 = arith.truncf %317 : vector<8x256xf32> to vector<8x256xbf16>
    %cst_223 = arith.constant dense<0.000000e+00> : vector<8x256xf32>
    %319 = tpu.matmul %318, %70, %cst_223 {dimension_numbers = #tpu.dot_dimension_numbers<[1], [0], [0], [1], [0, 0, 1, 1], [], []>} : vector<8x256xbf16>, vector<256x256xbf16>, vector<8x256xf32> -> vector<8x256xf32>
    %c0_224 = arith.constant 0 : index
    %c0_225 = arith.constant 0 : index
    %320 = vector.load %arg16[%c0_224, %c0_225] : memref<32x512xf32, #tpu.memory_space<vmem>>, vector<8x256xf32>
    tpu.vector_store %arg16[%c0_224, %c0_225], %319 {strides = array<i32>} : memref<32x512xf32, #tpu.memory_space<vmem>>, vector<8x256xf32>,
    %321 = vector.extract_strided_slice %316 {offsets = [0, 256], sizes = [8, 256], strides = [1, 1]} : vector<8x512xf32> to vector<8x256xf32>
    %322 = arith.truncf %321 : vector<8x256xf32> to vector<8x256xbf16>
    %cst_226 = arith.constant dense<0.000000e+00> : vector<8x256xf32>
    %323 = tpu.matmul %322, %70, %cst_226 {dimension_numbers = #tpu.dot_dimension_numbers<[1], [0], [0], [1], [0, 0, 1, 1], [], []>} : vector<8x256xbf16>, vector<256x256xbf16>, vector<8x256xf32> -> vector<8x256xf32>
    %c0_227 = arith.constant 0 : index
    %c256_228 = arith.constant 256 : index
    %324 = vector.load %arg16[%c0_227, %c256_228] : memref<32x512xf32, #tpu.memory_space<vmem>>, vector<8x256xf32>
    tpu.vector_store %arg16[%c0_227, %c256_228], %323 {strides = array<i32>} : memref<32x512xf32, #tpu.memory_space<vmem>>, vector<8x256xf32>,
    %c0_229 = arith.constant 0 : index
    %c0_230 = arith.constant 0 : index
    %325 = vector.load %arg16[%c0_229, %c0_230] : memref<32x512xf32, #tpu.memory_space<vmem>>, vector<8x512xf32>
    %326 = arith.truncf %325 : vector<8x512xf32> to vector<8x512xbf16>
    %c0_231 = arith.constant 0 : index
    %c128_232 = arith.constant 128 : index
    %327 = vector.load %arg14[%c0_231, %c128_232] : memref<32x768xbf16, #tpu.memory_space<vmem>>, vector<8x512xbf16>
    tpu.vector_store %arg14[%c0_231, %c128_232], %326 {strides = array<i32>} : memref<32x768xbf16, #tpu.memory_space<vmem>>, vector<8x512xbf16>,
    %c0_233 = arith.constant 0 : index
    %c94_234 = arith.constant 94 : index
    %328 = vector.load %arg14[%c0_233, %c94_234] : memref<32x768xbf16, #tpu.memory_space<vmem>>, vector<8x512xbf16>
    %c0_235 = arith.constant 0 : index
    %c0_236 = arith.constant 0 : index
    %329 = vector.load %arg15[%c0_235, %c0_236] : memref<288x512xbf16, #tpu.memory_space<vmem>>, vector<8x512xbf16>
    tpu.vector_store %arg15[%c0_235, %c0_236], %328 {strides = array<i32>} : memref<288x512xbf16, #tpu.memory_space<vmem>>, vector<8x512xbf16>,
    %c0_237 = arith.constant 0 : index
    %c95_238 = arith.constant 95 : index
    %330 = vector.load %arg14[%c0_237, %c95_238] : memref<32x768xbf16, #tpu.memory_space<vmem>>, vector<8x512xbf16>
    %c8_239 = arith.constant 8 : index
    %c0_240 = arith.constant 0 : index
    %331 = vector.load %arg15[%c8_239, %c0_240] : memref<288x512xbf16, #tpu.memory_space<vmem>>, vector<8x512xbf16>
    tpu.vector_store %arg15[%c8_239, %c0_240], %330 {strides = array<i32>} : memref<288x512xbf16, #tpu.memory_space<vmem>>, vector<8x512xbf16>,
    %c0_241 = arith.constant 0 : index
    %c96_242 = arith.constant 96 : index
    %332 = vector.load %arg14[%c0_241, %c96_242] : memref<32x768xbf16, #tpu.memory_space<vmem>>, vector<8x512xbf16>
    %c16_243 = arith.constant 16 : index
    %c0_244 = arith.constant 0 : index
    %333 = vector.load %arg15[%c16_243, %c0_244] : memref<288x512xbf16, #tpu.memory_space<vmem>>, vector<8x512xbf16>
    tpu.vector_store %arg15[%c16_243, %c0_244], %332 {strides = array<i32>} : memref<288x512xbf16, #tpu.memory_space<vmem>>, vector<8x512xbf16>,
    %c0_245 = arith.constant 0 : index
    %c110_246 = arith.constant 110 : index
    %334 = vector.load %arg14[%c0_245, %c110_246] : memref<32x768xbf16, #tpu.memory_space<vmem>>, vector<8x512xbf16>
    %c24_247 = arith.constant 24 : index
    %c0_248 = arith.constant 0 : index
    %335 = vector.load %arg15[%c24_247, %c0_248] : memref<288x512xbf16, #tpu.memory_space<vmem>>, vector<8x512xbf16>
    tpu.vector_store %arg15[%c24_247, %c0_248], %334 {strides = array<i32>} : memref<288x512xbf16, #tpu.memory_space<vmem>>, vector<8x512xbf16>,
    %c0_249 = arith.constant 0 : index
    %c111_250 = arith.constant 111 : index
    %336 = vector.load %arg14[%c0_249, %c111_250] : memref<32x768xbf16, #tpu.memory_space<vmem>>, vector<8x512xbf16>
    %c32_251 = arith.constant 32 : index
    %c0_252 = arith.constant 0 : index
    %337 = vector.load %arg15[%c32_251, %c0_252] : memref<288x512xbf16, #tpu.memory_space<vmem>>, vector<8x512xbf16>
    tpu.vector_store %arg15[%c32_251, %c0_252], %336 {strides = array<i32>} : memref<288x512xbf16, #tpu.memory_space<vmem>>, vector<8x512xbf16>,
    %c0_253 = arith.constant 0 : index
    %c112_254 = arith.constant 112 : index
    %338 = vector.load %arg14[%c0_253, %c112_254] : memref<32x768xbf16, #tpu.memory_space<vmem>>, vector<8x512xbf16>
    %c40_255 = arith.constant 40 : index
    %c0_256 = arith.constant 0 : index
    %339 = vector.load %arg15[%c40_255, %c0_256] : memref<288x512xbf16, #tpu.memory_space<vmem>>, vector<8x512xbf16>
    tpu.vector_store %arg15[%c40_255, %c0_256], %338 {strides = array<i32>} : memref<288x512xbf16, #tpu.memory_space<vmem>>, vector<8x512xbf16>,
    %c0_257 = arith.constant 0 : index
    %c126_258 = arith.constant 126 : index
    %340 = vector.load %arg14[%c0_257, %c126_258] : memref<32x768xbf16, #tpu.memory_space<vmem>>, vector<8x512xbf16>
    %c48_259 = arith.constant 48 : index
    %c0_260 = arith.constant 0 : index
    %341 = vector.load %arg15[%c48_259, %c0_260] : memref<288x512xbf16, #tpu.memory_space<vmem>>, vector<8x512xbf16>
    tpu.vector_store %arg15[%c48_259, %c0_260], %340 {strides = array<i32>} : memref<288x512xbf16, #tpu.memory_space<vmem>>, vector<8x512xbf16>,
    %c0_261 = arith.constant 0 : index
    %c127_262 = arith.constant 127 : index
    %342 = vector.load %arg14[%c0_261, %c127_262] : memref<32x768xbf16, #tpu.memory_space<vmem>>, vector<8x512xbf16>
    %c56_263 = arith.constant 56 : index
    %c0_264 = arith.constant 0 : index
    %343 = vector.load %arg15[%c56_263, %c0_264] : memref<288x512xbf16, #tpu.memory_space<vmem>>, vector<8x512xbf16>
    tpu.vector_store %arg15[%c56_263, %c0_264], %342 {strides = array<i32>} : memref<288x512xbf16, #tpu.memory_space<vmem>>, vector<8x512xbf16>,
    %c0_265 = arith.constant 0 : index
    %c128_266 = arith.constant 128 : index
    %344 = vector.load %arg14[%c0_265, %c128_266] : memref<32x768xbf16, #tpu.memory_space<vmem>>, vector<8x512xbf16>
    %c64_267 = arith.constant 64 : index
    %c0_268 = arith.constant 0 : index
    %345 = vector.load %arg15[%c64_267, %c0_268] : memref<288x512xbf16, #tpu.memory_space<vmem>>, vector<8x512xbf16>
    tpu.vector_store %arg15[%c64_267, %c0_268], %344 {strides = array<i32>} : memref<288x512xbf16, #tpu.memory_space<vmem>>, vector<8x512xbf16>,
    %c0_269 = arith.constant 0 : index
    %c0_270 = arith.constant 0 : index
    %346 = vector.load %arg9[%c0_269, %c0_270] : memref<8x72xbf16, #tpu.memory_space<vmem>>, vector<8x72xbf16>
    %c0_271 = arith.constant 0 : index
    %c0_272 = arith.constant 0 : index
    %347 = vector.load %arg15[%c0_271, %c0_272] : memref<288x512xbf16, #tpu.memory_space<vmem>>, vector<72x512xbf16>
    %cst_273 = arith.constant dense<0.000000e+00> : vector<8x512xf32>
    %348 = tpu.matmul %346, %347, %cst_273 {dimension_numbers = #tpu.dot_dimension_numbers<[1], [0], [0], [1], [0, 0, 1, 1], [], []>} : vector<8x72xbf16>, vector<72x512xbf16>, vector<8x512xf32> -> vector<8x512xf32>
    %349 = vector.broadcast %32 : vector<1x512xf32> to vector<8x512xf32>
    %350 = arith.mulf %348, %349 : vector<8x512xf32>
    %cst_274 = arith.constant dense<0.000000e+00> : vector<8xf32>
    %351 = vector.multi_reduction <add>, %350, %cst_274 [1] : vector<8x512xf32> to vector<8xf32>
    %352 = vector.shape_cast %351 : vector<8xf32> to vector<8x1xf32>
    %cst_275 = arith.constant 0.00255102036 : f32
    %353 = vector.broadcast %cst_275 : f32 to vector<8x1xf32>
    %354 = arith.mulf %352, %353 : vector<8x1xf32>
    %355 = arith.mulf %350, %348 : vector<8x512xf32>
    %cst_276 = arith.constant dense<0.000000e+00> : vector<8xf32>
    %356 = vector.multi_reduction <add>, %355, %cst_276 [1] : vector<8x512xf32> to vector<8xf32>
    %357 = vector.shape_cast %356 : vector<8xf32> to vector<8x1xf32>
    %cst_277 = arith.constant 0.00255102036 : f32
    %358 = vector.broadcast %cst_277 : f32 to vector<8x1xf32>
    %359 = arith.mulf %357, %358 : vector<8x1xf32>
    %360 = arith.mulf %354, %354 : vector<8x1xf32>
    %361 = arith.subf %359, %360 : vector<8x1xf32>
    %cst_278 = arith.constant 0.000000e+00 : f32
    %362 = vector.broadcast %cst_278 : f32 to vector<8x1xf32>
    %363 = arith.maximumf %361, %362 : vector<8x1xf32>
    %364 = vector.broadcast %354 : vector<8x1xf32> to vector<8x512xf32>
    %365 = arith.subf %348, %364 : vector<8x512xf32>
    %cst_279 = arith.constant 9.99999974E-6 : f32
    %366 = vector.broadcast %cst_279 : f32 to vector<8x1xf32>
    %367 = arith.addf %363, %366 : vector<8x1xf32>
    %368 = math.rsqrt %367 : vector<8x1xf32>
    %369 = vector.broadcast %368 : vector<8x1xf32> to vector<8x512xf32>
    %370 = arith.mulf %365, %369 : vector<8x512xf32>
    %c0_280 = arith.constant 0 : index
    %c1_281 = arith.constant 1 : index
    %371 = vector.load %arg10[%c0_280, %c1_281] : memref<8x3xf32, #tpu.memory_space<vmem>>, vector<8x1xf32>
    %372 = vector.broadcast %371 : vector<8x1xf32> to vector<8x512xf32>
    %373 = arith.mulf %370, %372 : vector<8x512xf32>
    %c0_282 = arith.constant 0 : index
    %c2_283 = arith.constant 2 : index
    %374 = vector.load %arg10[%c0_282, %c2_283] : memref<8x3xf32, #tpu.memory_space<vmem>>, vector<8x1xf32>
    %375 = vector.broadcast %374 : vector<8x1xf32> to vector<8x512xf32>
    %376 = arith.addf %373, %375 : vector<8x512xf32>
    %cst_284 = arith.constant 5.000000e-01 : f32
    %377 = vector.broadcast %cst_284 : f32 to vector<8x512xf32>
    %378 = arith.mulf %377, %376 : vector<8x512xf32>
    %379 = math.tanh %378 : vector<8x512xf32>
    %cst_285 = arith.constant 1.000000e+00 : f32
    %380 = vector.broadcast %cst_285 : f32 to vector<8x512xf32>
    %381 = arith.addf %379, %380 : vector<8x512xf32>
    %cst_286 = arith.constant 5.000000e-01 : f32
    %382 = vector.broadcast %cst_286 : f32 to vector<8x512xf32>
    %383 = arith.mulf %382, %381 : vector<8x512xf32>
    %384 = arith.mulf %376, %383 : vector<8x512xf32>
    %385 = vector.broadcast %32 : vector<1x512xf32> to vector<8x512xf32>
    %386 = arith.mulf %384, %385 : vector<8x512xf32>
    %387 = arith.truncf %386 : vector<8x512xf32> to vector<8x512xbf16>
    %c0_287 = arith.constant 0 : index
    %c128_288 = arith.constant 128 : index
    %388 = vector.load %arg14[%c0_287, %c128_288] : memref<32x768xbf16, #tpu.memory_space<vmem>>, vector<8x512xbf16>
    tpu.vector_store %arg14[%c0_287, %c128_288], %387 {strides = array<i32>} : memref<32x768xbf16, #tpu.memory_space<vmem>>, vector<8x512xbf16>,
    %c0_289 = arith.constant 0 : index
    %c94_290 = arith.constant 94 : index
    %389 = vector.load %arg14[%c0_289, %c94_290] : memref<32x768xbf16, #tpu.memory_space<vmem>>, vector<8x512xbf16>
    %c0_291 = arith.constant 0 : index
    %c0_292 = arith.constant 0 : index
    %390 = vector.load %arg15[%c0_291, %c0_292] : memref<288x512xbf16, #tpu.memory_space<vmem>>, vector<8x512xbf16>
    tpu.vector_store %arg15[%c0_291, %c0_292], %389 {strides = array<i32>} : memref<288x512xbf16, #tpu.memory_space<vmem>>, vector<8x512xbf16>,
    %c0_293 = arith.constant 0 : index
    %c95_294 = arith.constant 95 : index
    %391 = vector.load %arg14[%c0_293, %c95_294] : memref<32x768xbf16, #tpu.memory_space<vmem>>, vector<8x512xbf16>
    %c8_295 = arith.constant 8 : index
    %c0_296 = arith.constant 0 : index
    %392 = vector.load %arg15[%c8_295, %c0_296] : memref<288x512xbf16, #tpu.memory_space<vmem>>, vector<8x512xbf16>
    tpu.vector_store %arg15[%c8_295, %c0_296], %391 {strides = array<i32>} : memref<288x512xbf16, #tpu.memory_space<vmem>>, vector<8x512xbf16>,
    %c0_297 = arith.constant 0 : index
    %c96_298 = arith.constant 96 : index
    %393 = vector.load %arg14[%c0_297, %c96_298] : memref<32x768xbf16, #tpu.memory_space<vmem>>, vector<8x512xbf16>
    %c16_299 = arith.constant 16 : index
    %c0_300 = arith.constant 0 : index
    %394 = vector.load %arg15[%c16_299, %c0_300] : memref<288x512xbf16, #tpu.memory_space<vmem>>, vector<8x512xbf16>
    tpu.vector_store %arg15[%c16_299, %c0_300], %393 {strides = array<i32>} : memref<288x512xbf16, #tpu.memory_space<vmem>>, vector<8x512xbf16>,
    %c0_301 = arith.constant 0 : index
    %c110_302 = arith.constant 110 : index
    %395 = vector.load %arg14[%c0_301, %c110_302] : memref<32x768xbf16, #tpu.memory_space<vmem>>, vector<8x512xbf16>
    %c24_303 = arith.constant 24 : index
    %c0_304 = arith.constant 0 : index
    %396 = vector.load %arg15[%c24_303, %c0_304] : memref<288x512xbf16, #tpu.memory_space<vmem>>, vector<8x512xbf16>
    tpu.vector_store %arg15[%c24_303, %c0_304], %395 {strides = array<i32>} : memref<288x512xbf16, #tpu.memory_space<vmem>>, vector<8x512xbf16>,
    %c0_305 = arith.constant 0 : index
    %c111_306 = arith.constant 111 : index
    %397 = vector.load %arg14[%c0_305, %c111_306] : memref<32x768xbf16, #tpu.memory_space<vmem>>, vector<8x512xbf16>
    %c32_307 = arith.constant 32 : index
    %c0_308 = arith.constant 0 : index
    %398 = vector.load %arg15[%c32_307, %c0_308] : memref<288x512xbf16, #tpu.memory_space<vmem>>, vector<8x512xbf16>
    tpu.vector_store %arg15[%c32_307, %c0_308], %397 {strides = array<i32>} : memref<288x512xbf16, #tpu.memory_space<vmem>>, vector<8x512xbf16>,
    %c0_309 = arith.constant 0 : index
    %c112_310 = arith.constant 112 : index
    %399 = vector.load %arg14[%c0_309, %c112_310] : memref<32x768xbf16, #tpu.memory_space<vmem>>, vector<8x512xbf16>
    %c40_311 = arith.constant 40 : index
    %c0_312 = arith.constant 0 : index
    %400 = vector.load %arg15[%c40_311, %c0_312] : memref<288x512xbf16, #tpu.memory_space<vmem>>, vector<8x512xbf16>
    tpu.vector_store %arg15[%c40_311, %c0_312], %399 {strides = array<i32>} : memref<288x512xbf16, #tpu.memory_space<vmem>>, vector<8x512xbf16>,
    %c0_313 = arith.constant 0 : index
    %c126_314 = arith.constant 126 : index
    %401 = vector.load %arg14[%c0_313, %c126_314] : memref<32x768xbf16, #tpu.memory_space<vmem>>, vector<8x512xbf16>
    %c48_315 = arith.constant 48 : index
    %c0_316 = arith.constant 0 : index
    %402 = vector.load %arg15[%c48_315, %c0_316] : memref<288x512xbf16, #tpu.memory_space<vmem>>, vector<8x512xbf16>
    tpu.vector_store %arg15[%c48_315, %c0_316], %401 {strides = array<i32>} : memref<288x512xbf16, #tpu.memory_space<vmem>>, vector<8x512xbf16>,
    %c0_317 = arith.constant 0 : index
    %c127_318 = arith.constant 127 : index
    %403 = vector.load %arg14[%c0_317, %c127_318] : memref<32x768xbf16, #tpu.memory_space<vmem>>, vector<8x512xbf16>
    %c56_319 = arith.constant 56 : index
    %c0_320 = arith.constant 0 : index
    %404 = vector.load %arg15[%c56_319, %c0_320] : memref<288x512xbf16, #tpu.memory_space<vmem>>, vector<8x512xbf16>
    tpu.vector_store %arg15[%c56_319, %c0_320], %403 {strides = array<i32>} : memref<288x512xbf16, #tpu.memory_space<vmem>>, vector<8x512xbf16>,
    %c0_321 = arith.constant 0 : index
    %c128_322 = arith.constant 128 : index
    %405 = vector.load %arg14[%c0_321, %c128_322] : memref<32x768xbf16, #tpu.memory_space<vmem>>, vector<8x512xbf16>
    %c64_323 = arith.constant 64 : index
    %c0_324 = arith.constant 0 : index
    %406 = vector.load %arg15[%c64_323, %c0_324] : memref<288x512xbf16, #tpu.memory_space<vmem>>, vector<8x512xbf16>
    tpu.vector_store %arg15[%c64_323, %c0_324], %405 {strides = array<i32>} : memref<288x512xbf16, #tpu.memory_space<vmem>>, vector<8x512xbf16>,
    %c0_325 = arith.constant 0 : index
    %c0_326 = arith.constant 0 : index
    %407 = vector.load %arg11[%c0_325, %c0_326] : memref<8x72xbf16, #tpu.memory_space<vmem>>, vector<8x72xbf16>
    %c0_327 = arith.constant 0 : index
    %c0_328 = arith.constant 0 : index
    %408 = vector.load %arg15[%c0_327, %c0_328] : memref<288x512xbf16, #tpu.memory_space<vmem>>, vector<72x512xbf16>
    %cst_329 = arith.constant dense<0.000000e+00> : vector<8x512xf32>
    %409 = tpu.matmul %407, %408, %cst_329 {dimension_numbers = #tpu.dot_dimension_numbers<[1], [0], [0], [1], [0, 0, 1, 1], [], []>} : vector<8x72xbf16>, vector<72x512xbf16>, vector<8x512xf32> -> vector<8x512xf32>
    %c0_330 = arith.constant 0 : index
    %c0_331 = arith.constant 0 : index
    %410 = vector.load %arg12[%c0_330, %c0_331] : memref<8x3xf32, #tpu.memory_space<vmem>>, vector<8x1xf32>
    %411 = vector.broadcast %410 : vector<8x1xf32> to vector<8x512xf32>
    %412 = arith.addf %409, %411 : vector<8x512xf32>
    %cst_332 = arith.constant 5.000000e-01 : f32
    %413 = vector.broadcast %cst_332 : f32 to vector<8x512xf32>
    %414 = arith.mulf %413, %412 : vector<8x512xf32>
    %415 = math.tanh %414 : vector<8x512xf32>
    %cst_333 = arith.constant 1.000000e+00 : f32
    %416 = vector.broadcast %cst_333 : f32 to vector<8x512xf32>
    %417 = arith.addf %415, %416 : vector<8x512xf32>
    %cst_334 = arith.constant 5.000000e-01 : f32
    %418 = vector.broadcast %cst_334 : f32 to vector<8x512xf32>
    %419 = arith.mulf %418, %417 : vector<8x512xf32>
    %420 = vector.broadcast %40 : vector<1x512xf32> to vector<8x512xf32>
    %421 = arith.mulf %419, %420 : vector<8x512xf32>
    %422 = vector.extract_strided_slice %421 {offsets = [0, 0], sizes = [1, 512], strides = [1, 1]} : vector<8x512xf32> to vector<1x512xf32>
    %c0_335 = arith.constant 0 : index
    %c0_336 = arith.constant 0 : index
    %423 = vector.load %arg13[%c0_335, %c0_336] : memref<1x512xf32, #tpu.memory_space<vmem>>, vector<1x512xf32>
    tpu.vector_store %arg13[%c0_335, %c0_336], %422 {strides = array<i32>} : memref<1x512xf32, #tpu.memory_space<vmem>>, vector<1x512xf32>,
    return
  }
}

</mosaic_0001>

<bundles_post_ra>
// kernel: squeeze.1
= control target key start
LH: loop header
LB: loop body
LE: loop exit
PB: predicated region body
PF: predicated region fallthrough
CT: control target
= control target key end

     0   :  { %s89_s8 = smov 112   ;;  %s90_s11 = smov 80   ;;  %vm3_vm0 = vcmask 130048   ;;  %vm9_vm1 = vcmask 1048448   ;;  %vm15_vm2 = vcmask 917248   ;;  %vm21_vm3 = vcmask 786048   ;;  %s142_s0 = inlined_call_operand.vmem [shape: f32[2,1,16,16], index: 0, kind: input, shape index: {}]   ;;  %s143_s1 = inlined_call_operand.vmem [shape: f32[1,512], index: 1, kind: output, shape index: {}]  }
   0x1   :  { %v72_v0 = vld [vmem:[%s142_s0 + $0x7] ss:$8 sm:$0xf]   ;;  %v74_v1 = vld [vmem:[%s142_s0 + $0x5] ss:$8 sm:$0xf]  }
   0x2   :  { %7 = vrot.lane.b32.xlu0 %v72_v0, %s89_s8  ;;  %19 = vrot.lane.b32.xlu1 %v74_v1, %s90_s11  ;;  %v73_v2 = vld [vmem:[%s142_s0 + $0x6] ss:$8 sm:$0xf]   ;;  %v75_v3 = vld [vmem:[%s142_s0 + $0x4] ss:$8 sm:$0xf]  }
   0x3   :  { %s91_s16 = smov 96   ;;  %v2_v4 = vld [vmem:[%s142_s0] ss:$8 sm:$0xf]   ;;  %s92_s19 = smov 64   ;;  %vm27_vm4 = vcmask 654848  }
   0x4   :  { %v76_v5 = vld [vmem:[%s142_s0 + $0x3] ss:$8 sm:$0xf]   ;;  %4 = vst.msk [vmem:[#allocation0] ss:$8 sm:$0xf] %vm3_vm0, %v2_v4  }
   0x5   :  { %v77_v6 = vld [vmem:[%s142_s0 + $0x2] ss:$8 sm:$0xf]   ;;  %s93_s24 = smov 48   ;;  %s94_s25 = smov 32   ;;  %vm33_vm5 = vcmask 523648  }
   0x6   :  { %13 = vrot.lane.b32.xlu0 %v73_v2, %s91_s16  ;;  %25 = vrot.lane.b32.xlu1 %v75_v3, %s92_s19  ;;  %v78_v7 = vld [vmem:[%s142_s0 + $0x1] ss:$8 sm:$0xf]   ;;  %s95_s0 = smov 16   ;;  %vm39_vm6 = vcmask 392448   ;;  %vm45_vm7 = vcmask 261248  }
   0xa   :  { %31 = vrot.lane.b32.xlu0 %v76_v5, %s93_s24  ;;  %37 = vrot.lane.b32.xlu1 %v77_v6, %s94_s25 }
   0xe   :  { %43 = vrot.lane.b32.xlu0 %v78_v7, %s95_s0 }
  0x74   :  { %v8_v8 = vpop.permute.xlu0 %7   ;;  %v20_v9 = vpop.permute.xlu1 %19  }
  0x75   :  { %10 = vst.msk [vmem:[#allocation0] ss:$8 sm:$0xf] %vm9_vm1, %v8_v8  }
  0x78   :  { %v14_v10 = vpop.permute.xlu0 %13   ;;  %v26_v11 = vpop.permute.xlu1 %25  }
  0x79   :  { %16 = vst.msk [vmem:[#allocation0] ss:$8 sm:$0xf] %vm15_vm2, %v14_v10  }
  0x7a   :  { %22 = vst.msk [vmem:[#allocation0] ss:$8 sm:$0xf] %vm21_vm3, %v20_v9  }
  0x7b   :  { %28 = vst.msk [vmem:[#allocation0] ss:$8 sm:$0xf] %vm27_vm4, %v26_v11  }
  0x7c   :  { %v32_v12 = vpop.permute.xlu0 %31   ;;  %v38_v13 = vpop.permute.xlu1 %37  }
  0x7d   :  { %34 = vst.msk [vmem:[#allocation0] ss:$8 sm:$0xf] %vm33_vm5, %v32_v12  }
  0x7e   :  { %40 = vst.msk [vmem:[#allocation0] ss:$8 sm:$0xf] %vm39_vm6, %v38_v13  }
  0x80   :  { %v44_v14 = vpop.permute.xlu0 %43  }
  0x81   :  { %46 = vst.msk [vmem:[#allocation0] ss:$8 sm:$0xf] %vm45_vm7, %v44_v14  }
  0x88   :  { %v50_v15 = vld [vmem:[#allocation0] sm:$0x1]  ;;  %v54_v16 = vld [vmem:[#allocation0 + $0x8] sm:$0x1]  ;;  %v59_v17 = vld [vmem:[#allocation0 + $0x10] sm:$0x1] }
  0x89   :  { %52 = vst [vmem:[%s143_s1] sm:$0x1] %v50_v15  ;;  %79 = vst [vmem:[%s143_s1 + $0x1] sm:$0x1] %v54_v16  ;;  %v65_v18 = vld [vmem:[#allocation0 + $0x18] sm:$0x1] }
  0x8a   :  { %80 = vst [vmem:[%s143_s1 + $0x2] sm:$0x1] %v59_v17  ;;  %81 = vst [vmem:[%s143_s1 + $0x3] sm:$0x1] %v65_v18 }

// kernel: autoencoder_forward.1
= control target key start
LH: loop header
LB: loop body
LE: loop exit
PB: predicated region body
PF: predicated region fallthrough
CT: control target
= control target key end

     0   :  { %v5240_v0 = vmov 0   ;;  %s5241_s16 = smov 127   ;;  %s5242_s17 = smov 126   ;;  %vm8732_vm0 = vcmask 1031168   ;;  %vm8730_vm1 = vcmask 1039360   ;;  %vm8728_vm2 = vcmask 916480   ;;  %s8710_s0 = inlined_call_operand.vmem [shape: f32[8,512], index: 0, kind: input, shape index: {}]   ;;  %s8711_s1 = inlined_call_operand.vmem [shape: bf16[8,72], index: 1, kind: input, shape index: {}]   ;;  %s8712_s2 = inlined_call_operand.vmem [shape: f32[8,3], index: 2, kind: input, shape index: {}]   ;;  %s8713_s3 = inlined_call_operand.vmem [shape: bf16[8,72], index: 3, kind: input, shape index: {}]   ;;  %s8714_s4 = inlined_call_operand.vmem [shape: f32[8,3], index: 4, kind: input, shape index: {}]   ;;  %s8715_s5 = inlined_call_operand.vmem [shape: bf16[32,72], index: 5, kind: input, shape index: {}]   ;;  %s8716_s6 = inlined_call_operand.vmem [shape: f32[32,3], index: 6, kind: input, shape index: {}]   ;;  %s8717_s7 = inlined_call_operand.vmem [shape: bf16[8,288], index: 7, kind: input, shape index: {}]   ;;  %s8718_s8 = inlined_call_operand.vmem [shape: f32[8,3], index: 8, kind: input, shape index: {}]   ;;  %s8719_s9 = inlined_call_operand.vmem [shape: bf16[8,72], index: 9, kind: input, shape index: {}]   ;;  %s8720_s10 = inlined_call_operand.vmem [shape: f32[8,3], index: 10, kind: input, shape index: {}]   ;;  %s8721_s12 = inlined_call_operand.vmem [shape: f32[8,3], index: 12, kind: input, shape index: {}]   ;;  %s8722_s11 = inlined_call_operand.vmem [shape: bf16[8,72], index: 11, kind: input, shape index: {}]   ;;  %s8723_s13 = inlined_call_operand.vmem [shape: f32[1,512], index: 13, kind: output, shape index: {}]  }
   0x1   :  { %50 = vst [vmem:[#allocation2 + $0x28] sm:$0xff] %v5240_v0  ;;  %45 = vst [vmem:[#allocation2] sm:$0xff] %v5240_v0  ;;  %v1008_v1 = vld [vmem:[%s8710_s0 + $0x8] sm:$0xff]  ;;  %v1009_v2 = vld [vmem:[%s8710_s0 + $0x10] sm:$0xff]  ;;  %1381 = vmatprep.mubr.bf16.mxu0 %v5240_v0  ;;  %1422 = vmatprep.mubr.bf16.mxu1 %v5240_v0  ;;  %s5244_s18 = smov 111   ;;  %s5245_s19 = smov 110  }
   0x2   :  { %46 = vst [vmem:[#allocation2 + $0x8] sm:$0xff] %v5240_v0  ;;  %47 = vst [vmem:[#allocation2 + $0x10] sm:$0xff] %v5240_v0  ;;  %v1007_v3 = vld [vmem:[%s8710_s0] sm:$0xff]  ;;  %v1012_v4 = vpack.c.bf16 %v1008_v1, %v1008_v1  ;;  %v1013_v5 = vpack.c.bf16 %v1009_v2, %v1009_v2  ;;  %v1010_v7 = vld [vmem:[%s8710_s0 + $0x18] sm:$0xff]  ;;  %s5243_s0 = smov 112   ;;  %s5246_s20 = smov 96  }
   0x3   :  { %48 = vst [vmem:[#allocation2 + $0x18] sm:$0xff] %v5240_v0  ;;  %49 = vst [vmem:[#allocation2 + $0x20] sm:$0xff] %v5240_v0  ;;  %v1011_v6 = vpack.c.bf16 %v1007_v3, %v1007_v3  ;;  %v1014_v8 = vpack.c.bf16 %v1010_v7, %v1010_v7  ;;  %s5247_s21 = smov 95   ;;  %s5248_s22 = smov 94   ;;  %vm8731_vm3 = vcmask 908288   ;;  %vm8727_vm4 = vcmask 900096  }
   0x4   :  { %1016 = vst [vmem:[#allocation2 + $0x10] sm:$0xf] %v1012_v4  ;;  %1017 = vst [vmem:[#allocation2 + $0x18] sm:$0xf] %v1013_v5  ;;  %vm8729_vm5 = vcmask 785408   ;;  %vm8726_vm6 = vcmask 777216  }
   0x5   :  { %1015 = vst [vmem:[#allocation2 + $0x8] sm:$0xf] %v1011_v6  ;;  %1018 = vst [vmem:[#allocation2 + $0x20] sm:$0xf] %v1014_v8  ;;  %vm8733_vm7 = vcmask 769024   ;;  %vm8725_vm8 = vcmask 1043456  }
   0x6   :  { %vm8724_vm9 = vcmask 588800   ;;  %s5257_s23 = smov 18   ;;  %s5258_s24 = smov 2  }
   0x7   :  { %s5260_s25 = smov 1  }
   0x8   :  { %v1031_v9 = vld [vmem:[#allocation2 + $0x28] sm:$0xf] }
   0x9   :  { %v1041_v10 = vrot.slane %v1031_v9, 4  ;;  %v1069_v34 = vld [vmem:[#allocation2 + $0x28] sm:$0xf] }
   0xa   :  { %v1102_v36 = vld [vmem:[#allocation2 + $0x28] sm:$0xf] }
   0xb   :  { %1050 = vrot.lane.b32.xlu0 %v1041_v10, %s5241_s16  ;;  %v1066_v11 = vld [vmem:[#allocation2 + $0x10] sm:$0xf]  ;;  %v1067_v13 = vld [vmem:[#allocation2 + $0x18] sm:$0xf]  ;;  %v1112_v37 = vrot.slane %v1102_v36, 4 }
   0xc   :  { %v1027_v12 = vld [vmem:[#allocation2 + $0x8] sm:$0xf]  ;;  %1077 = vrot.lane.b32.xlu1 %v1066_v11, %s5242_s17  ;;  %v1028_v15 = vld [vmem:[#allocation2 + $0x10] sm:$0xf]  ;;  %v1030_v16 = vld [vmem:[#allocation2 + $0x20] sm:$0xf] }
   0xd   :  { %v1037_v14 = vrot.slane %v1027_v12, 4  ;;  %v1038_v17 = vrot.slane %v1028_v15, 4  ;;  %v1040_v18 = vrot.slane %v1030_v16, 4  ;;  %v1029_v19 = vld [vmem:[#allocation2 + $0x18] sm:$0xf] }
   0xe   :  { %v1099_v20 = vld [vmem:[#allocation2 + $0x10] sm:$0xf]  ;;  %v1039_v21 = vrot.slane %v1029_v19, 4  ;;  %v1100_v23 = vld [vmem:[#allocation2 + $0x18] sm:$0xf] }
   0xf   :  { %1079 = vrot.lane.b32.xlu0 %v1067_v13, %s5242_s17  ;;  %v1109_v22 = vrot.slane %v1099_v20, 4  ;;  %v1110_v24 = vrot.slane %v1100_v23, 4  ;;  %v1098_v25 = vld [vmem:[#allocation2 + $0x8] sm:$0xf]  ;;  %v1022_v28 = vld [vmem:[#allocation2 + $0x20] sm:$0xf] }
  0x10   :  { %1042 = vrot.lane.b32.xlu1 %v1037_v14, %s5241_s16  ;;  %v1065_v26 = vld [vmem:[#allocation2 + $0x8] sm:$0xf]  ;;  %v1108_v27 = vrot.slane %v1098_v25, 4  ;;  %1026 = vst [vmem:[#allocation3 + $0x18] sm:$0xf] %v1022_v28 }
  0x11   :  { %v1020_v29 = vld [vmem:[#allocation2 + $0x10] sm:$0xf]  ;;  %v1021_v30 = vld [vmem:[#allocation2 + $0x18] sm:$0xf]  ;;  %v1019_v31 = vld [vmem:[#allocation2 + $0x8] sm:$0xf] }
  0x12   :  { %1024 = vst [vmem:[#allocation3 + $0x8] sm:$0xf] %v1020_v29  ;;  %1025 = vst [vmem:[#allocation3 + $0x10] sm:$0xf] %v1021_v30  ;;  %v1068_v32 = vld [vmem:[#allocation2 + $0x20] sm:$0xf] }
  0x13   :  { %1044 = vrot.lane.b32.xlu0 %v1038_v17, %s5241_s16  ;;  %1023 = vst [vmem:[#allocation3] sm:$0xf] %v1019_v31  ;;  %v1101_v33 = vld [vmem:[#allocation2 + $0x20] sm:$0xf]  ;;  %v1137_v38 = vld [vmem:[#allocation2 + $0x10] sm:$0xf] }
  0x14   :  { %1048 = vrot.lane.b32.xlu1 %v1040_v18, %s5241_s16  ;;  %v1111_v35 = vrot.slane %v1101_v33, 4  ;;  %v1170_v39 = vld [vmem:[#allocation2 + $0x10] sm:$0xf]  ;;  %v1138_v40 = vld [vmem:[#allocation2 + $0x18] sm:$0xf] }
  0x15   :  { %v1180_v41 = vrot.slane %v1170_v39, 4  ;;  %v1171_v42 = vld [vmem:[#allocation2 + $0x18] sm:$0xf]  ;;  %v1169_v44 = vld [vmem:[#allocation2 + $0x8] sm:$0xf] }
  0x16   :  { %v1181_v43 = vrot.slane %v1171_v42, 4  ;;  %v1136_v45 = vld [vmem:[#allocation2 + $0x8] sm:$0xf]  ;;  %v1179_v46 = vrot.slane %v1169_v44, 4  ;;  %v1139_v47 = vld [vmem:[#allocation2 + $0x20] sm:$0xf] }
  0x17   :  { %1046 = vrot.lane.b32.xlu0 %v1039_v21, %s5241_s16  ;;  %v1172_v48 = vld [vmem:[#allocation2 + $0x20] sm:$0xf]  ;;  %v1140_v49 = vld [vmem:[#allocation2 + $0x28] sm:$0xf]  ;;  %v1208_v53 = vld [vmem:[#allocation2 + $0x10] sm:$0xf] }
  0x18   :  { %1115 = vrot.lane.b32.xlu1 %v1109_v22, %s5243_s0  ;;  %v1182_v50 = vrot.slane %v1172_v48, 4  ;;  %v1173_v51 = vld [vmem:[#allocation2 + $0x28] sm:$0xf]  ;;  %v1241_v54 = vld [vmem:[#allocation2 + $0x10] sm:$0xf] }
  0x19   :  { %v1183_v52 = vrot.slane %v1173_v51, 4  ;;  %v1209_v55 = vld [vmem:[#allocation2 + $0x18] sm:$0xf]  ;;  %v1251_v56 = vrot.slane %v1241_v54, 4  ;;  %v1240_v59 = vld [vmem:[#allocation2 + $0x8] sm:$0xf] }
  0x1a   :  { %v1242_v57 = vld [vmem:[#allocation2 + $0x18] sm:$0xf]  ;;  %v1207_v60 = vld [vmem:[#allocation2 + $0x8] sm:$0xf]  ;;  %v1250_v61 = vrot.slane %v1240_v59, 4 }
  0x1b   :  { %1117 = vrot.lane.b32.xlu0 %v1110_v24, %s5243_s0  ;;  %v1252_v58 = vrot.slane %v1242_v57, 4  ;;  %v1210_v62 = vld [vmem:[#allocation2 + $0x20] sm:$0xf]  ;;  %v1211_v1 = vld [vmem:[#allocation2 + $0x28] sm:$0xf] }
  0x1c   :  { %1075 = vrot.lane.b32.xlu1 %v1065_v26, %s5242_s17  ;;  %v1243_v63 = vld [vmem:[#allocation2 + $0x20] sm:$0xf]  ;;  %v1244_v3 = vld [vmem:[#allocation2 + $0x28] sm:$0xf]  ;;  %v1279_v6 = vld [vmem:[#allocation2 + $0x10] sm:$0xf] }
  0x1d   :  { %v1253_v2 = vrot.slane %v1243_v63, 4  ;;  %v1254_v4 = vrot.slane %v1244_v3, 4  ;;  %v1278_v5 = vld [vmem:[#allocation2 + $0x8] sm:$0xf]  ;;  %v1280_v7 = vld [vmem:[#allocation2 + $0x18] sm:$0xf] }
  0x1e   :  { %v1281_v8 = vld [vmem:[#allocation2 + $0x20] sm:$0xf]  ;;  %v1282_v9 = vld [vmem:[#allocation2 + $0x28] sm:$0xf] }
  0x1f   :  { %1113 = vrot.lane.b32.xlu0 %v1108_v27, %s5243_s0 }
  0x20   :  { %1081 = vrot.lane.b32.xlu1 %v1068_v32, %s5242_s17 }
  0x23   :  { %1083 = vrot.lane.b32.xlu0 %v1069_v34, %s5242_s17 }
  0x24   :  { %1119 = vrot.lane.b32.xlu1 %v1111_v35, %s5243_s0 }
  0x27   :  { %1121 = vrot.lane.b32.xlu0 %v1112_v37, %s5243_s0 }
  0x28   :  { %1148 = vrot.lane.b32.xlu1 %v1137_v38, %s5244_s18 }
  0x2b   :  { %1150 = vrot.lane.b32.xlu0 %v1138_v40, %s5244_s18 }
  0x2c   :  { %1186 = vrot.lane.b32.xlu1 %v1180_v41, %s5245_s19 }
  0x2f   :  { %1188 = vrot.lane.b32.xlu0 %v1181_v43, %s5245_s19 }
  0x30   :  { %1146 = vrot.lane.b32.xlu1 %v1136_v45, %s5244_s18 }
  0x33   :  { %1184 = vrot.lane.b32.xlu0 %v1179_v46, %s5245_s19 }
  0x34   :  { %1152 = vrot.lane.b32.xlu1 %v1139_v47, %s5244_s18 }
  0x37   :  { %1154 = vrot.lane.b32.xlu0 %v1140_v49, %s5244_s18 }
  0x38   :  { %1190 = vrot.lane.b32.xlu1 %v1182_v50, %s5245_s19 }
  0x3b   :  { %1192 = vrot.lane.b32.xlu0 %v1183_v52, %s5245_s19 }
  0x3c   :  { %1219 = vrot.lane.b32.xlu1 %v1208_v53, %s5246_s20 }
  0x3f   :  { %1221 = vrot.lane.b32.xlu0 %v1209_v55, %s5246_s20 }
  0x40   :  { %1257 = vrot.lane.b32.xlu1 %v1251_v56, %s5247_s21 }
  0x43   :  { %1259 = vrot.lane.b32.xlu0 %v1252_v58, %s5247_s21 }
  0x44   :  { %1217 = vrot.lane.b32.xlu1 %v1207_v60, %s5246_s20 }
  0x47   :  { %1255 = vrot.lane.b32.xlu0 %v1250_v61, %s5247_s21 }
  0x48   :  { %1223 = vrot.lane.b32.xlu1 %v1210_v62, %s5246_s20 }
  0x4b   :  { %1225 = vrot.lane.b32.xlu0 %v1211_v1, %s5246_s20 }
  0x4c   :  { %1261 = vrot.lane.b32.xlu1 %v1253_v2, %s5247_s21 }
  0x4f   :  { %1263 = vrot.lane.b32.xlu0 %v1254_v4, %s5247_s21 }
  0x50   :  { %1288 = vrot.lane.b32.xlu1 %v1278_v5, %s5248_s22 }
  0x53   :  { %1290 = vrot.lane.b32.xlu0 %v1279_v6, %s5248_s22 }
  0x54   :  { %1292 = vrot.lane.b32.xlu1 %v1280_v7, %s5248_s22 }
  0x57   :  { %1294 = vrot.lane.b32.xlu0 %v1281_v8, %s5248_s22 }
  0x58   :  { %1296 = vrot.lane.b32.xlu1 %v1282_v9, %s5248_s22 }
  0x7d   :  { %v1051_v10 = vpop.permute.xlu0 %1050 }
  0x7e   :  { %v1078_v11 = vpop.permute.xlu1 %1077 }
  0x81   :  { %v1080_v12 = vpop.permute.xlu0 %1079 }
  0x82   :  { %v1087_v13 = vsel %vm8732_vm0, %v1078_v11, %v1080_v12  ;;  %v1043_v14 = vpop.permute.xlu1 %1042 }
  0x83   :  { %1095 = vst [vmem:[#allocation3 + $0x28] sm:$0xf] %v1087_v13 }
  0x85   :  { %v1045_v15 = vpop.permute.xlu0 %1044 }
  0x86   :  { %v1053_v16 = vsel %vm8730_vm1, %v1043_v14, %v1045_v15  ;;  %v1049_v17 = vpop.permute.xlu1 %1048 }
  0x87   :  { %1061 = vst [vmem:[#allocation3] sm:$0xf0] %v1053_v16  ;;  %v1056_v18 = vsel %vm8730_vm1, %v1049_v17, %v1051_v10 }
  0x88   :  { %1064 = vst [vmem:[#allocation3 + $0x18] sm:$0xf0] %v1056_v18 }
  0x89   :  { %v1047_v19 = vpop.permute.xlu0 %1046 }
  0x8a   :  { %v1054_v20 = vsel %vm8730_vm1, %v1045_v15, %v1047_v19  ;;  %v1055_v21 = vsel %vm8730_vm1, %v1047_v19, %v1049_v17  ;;  %v1116_v22 = vpop.permute.xlu1 %1115 }
  0x8b   :  { %1062 = vst [vmem:[#allocation3 + $0x8] sm:$0xf0] %v1054_v20  ;;  %1063 = vst [vmem:[#allocation3 + $0x10] sm:$0xf0] %v1055_v21 }
  0x8d   :  { %v1118_v23 = vpop.permute.xlu0 %1117 }
  0x8e   :  { %v1125_v24 = vsel %vm8728_vm2, %v1116_v22, %v1118_v23  ;;  %v1076_v25 = vpop.permute.xlu1 %1075  ;;  %v1312_v34 = vld [vmem:[#allocation3] sm:$0xff] }
  0x8f   :  { %1133 = vst [vmem:[#allocation3 + $0x28] sm:$0xf0] %v1125_v24  ;;  %v1086_v26 = vsel %vm8732_vm0, %v1076_v25, %v1078_v11  ;;  %v1315_v27 = vld [vmem:[#allocation3 + $0x18] sm:$0xff] }
  0x90   :  { %1094 = vst [vmem:[#allocation3 + $0x20] sm:$0xf] %v1086_v26  ;;  %1390 = vmatprep.subr.bf16.mxu1 %v1315_v27 }
  0x91   :  { %v1114_v28 = vpop.permute.xlu0 %1113 }
  0x92   :  { %v1124_v29 = vsel %vm8728_vm2, %v1114_v28, %v1116_v22  ;;  %v1082_v30 = vpop.permute.xlu1 %1081  ;;  %v1313_v31 = vld [vmem:[#allocation3 + $0x8] sm:$0xff]  ;;  %v1314_v32 = vld [vmem:[#allocation3 + $0x10] sm:$0xff] }
  0x93   :  { %1132 = vst [vmem:[#allocation3 + $0x20] sm:$0xf0] %v1124_v29  ;;  %v1088_v33 = vsel %vm8732_vm0, %v1080_v12, %v1082_v30  ;;  %1349 = vmatprep.subr.bf16.mxu0 %v1313_v31  ;;  %1391 = vmatpush1.bf16.msra.mxu1 %v1314_v32 }
  0x94   :  { %1096 = vst [vmem:[#allocation3 + $0x30] sm:$0xf] %v1088_v33  ;;  %1350 = vmatpush1.bf16.msra.mxu0 %v1312_v34 }
  0x95   :  { %v1084_v35 = vpop.permute.xlu0 %1083 }
  0x96   :  { %v1089_v36 = vsel %vm8732_vm0, %v1082_v30, %v1084_v35  ;;  %v1120_v37 = vpop.permute.xlu1 %1119  ;;  %v1317_v38 = vld [vmem:[#allocation3 + $0x28] sm:$0xff] }
  0x97   :  { %1097 = vst [vmem:[#allocation3 + $0x38] sm:$0xf] %v1089_v36  ;;  %v1126_v39 = vsel %vm8728_vm2, %v1118_v23, %v1120_v37  ;;  %1351 = vmatprep.subr.bf16.mxu0 %v1317_v38  ;;  %v1311_v38 = vld [vmem:[%s8711_s1] sm:$0xf]  ;;  %s5259_s1 = smov 16  }
  0x98   :  { %1134 = vst [vmem:[#allocation3 + $0x30] sm:$0xf0] %v1126_v39 }
  0x99   :  { %v1122_v40 = vpop.permute.xlu0 %1121 }
  0x9a   :  { %v1127_v41 = vsel %vm8728_vm2, %v1120_v37, %v1122_v40  ;;  %v1149_v42 = vpop.permute.xlu1 %1148  ;;  %v1316_v43 = vld [vmem:[#allocation3 + $0x20] sm:$0xff] }
  0x9b   :  { %1135 = vst [vmem:[#allocation3 + $0x38] sm:$0xf0] %v1127_v41  ;;  %1352 = vmatpush1.bf16.msra.mxu0 %v1316_v43  ;;  %v8741_v43 = vmov 2  }
  0x9c   :  { %5131 = vset.pattern.permute.xlu1 %v8741_v43  ;;  %v9002_v43 = vmov 0 }
  0x9d   :  { %v1151_v44 = vpop.permute.xlu0 %1150 }
  0x9e   :  { %v1158_v45 = vsel %vm8731_vm3, %v1149_v42, %v1151_v44  ;;  %v1187_v46 = vpop.permute.xlu1 %1186 }
  0x9f   :  { %1166 = vst [vmem:[#allocation3 + $0x48] sm:$0xf] %v1158_v45  ;;  %v1318_v52 = vld [vmem:[#allocation3 + $0x30] sm:$0xff] }
  0xa1   :  { %v1189_v47 = vpop.permute.xlu0 %1188 }
  0xa2   :  { %v1196_v48 = vsel %vm8727_vm4, %v1187_v46, %v1189_v47  ;;  %v1147_v49 = vpop.permute.xlu1 %1146  ;;  %v1319_v50 = vld [vmem:[#allocation3 + $0x38] sm:$0xff] }
  0xa3   :  { %1204 = vst [vmem:[#allocation3 + $0x48] sm:$0xf0] %v1196_v48  ;;  %v1157_v51 = vsel %vm8731_vm3, %v1147_v49, %v1149_v42  ;;  %1392 = vmatprep.subr.bf16.mxu1 %v1319_v50  ;;  %v8745_v42 = vmov 1  }
  0xa4   :  { %1165 = vst [vmem:[#allocation3 + $0x40] sm:$0xf] %v1157_v51  ;;  %1393 = vmatpush1.bf16.msra.mxu1 %v1318_v52  ;;  %5130 = vset.pattern.permute.xlu0 %v8745_v42  ;;  %v8751_v42 = vmov 1.0|1.0  }
  0xa5   :  { %v1185_v53 = vpop.permute.xlu0 %1184 }
  0xa6   :  { %v1195_v54 = vsel %vm8727_vm4, %v1185_v53, %v1187_v46  ;;  %v1153_v55 = vpop.permute.xlu1 %1152 }
  0xa7   :  { %1203 = vst [vmem:[#allocation3 + $0x40] sm:$0xf0] %v1195_v54  ;;  %v1159_v56 = vsel %vm8731_vm3, %v1151_v44, %v1153_v55  ;;  %v8740_v44 = vlaneseq }
  0xa8   :  { %1167 = vst [vmem:[#allocation3 + $0x50] sm:$0xf] %v1159_v56 }
  0xa9   :  { %v1155_v57 = vpop.permute.xlu0 %1154  ;;  %v58_v45 = vand.u32 127, %v8740_v44 }
  0xaa   :  { %v1160_v58 = vsel %vm8731_vm3, %v1153_v55, %v1155_v57  ;;  %v1191_v59 = vpop.permute.xlu1 %1190  ;;  %v1321_v60 = vld [vmem:[#allocation3 + $0x48] sm:$0xff] }
  0xab   :  { %1168 = vst [vmem:[#allocation3 + $0x58] sm:$0xf] %v1160_v58  ;;  %v1197_v61 = vsel %vm8727_vm4, %v1189_v47, %v1191_v59  ;;  %1353 = vmatprep.subr.bf16.mxu0 %v1321_v60  ;;  %v59_v46 = vadd.s32 128, %v58_v45  ;;  %v5438_v47 = vshra.s32 %v58_v45, 4  ;;  %v60_v48 = vadd.s32 256, %v58_v45 }
  0xac   :  { %1205 = vst [vmem:[#allocation3 + $0x50] sm:$0xf0] %v1197_v61  ;;  %v61_v50 = vadd.s32 384, %v58_v45  ;;  %v8749_v60 = vmov 0.0  }
  0xad   :  { %v1193_v62 = vpop.permute.xlu0 %1192  ;;  %v5440_v49 = vshra.s32 %v59_v46, 4  ;;  %v5443_v51 = vand.u32 15, %v5438_v47  ;;  %v64_v52 = vshra.s32 %v60_v48, 4  ;;  %v5450_v54 = vand.u32 15, %v59_v46 }
  0xae   :  { %v1198_v63 = vsel %vm8727_vm4, %v1191_v59, %v1193_v62  ;;  %v1220_v1 = vpop.permute.xlu1 %1219  ;;  %v1320_v2 = vld [vmem:[#allocation3 + $0x40] sm:$0xff]  ;;  %v65_v55 = vshra.s32 %v61_v50, 4  ;;  %v5456_v57 = vand.u32 15, %v60_v48  ;;  %v5462_v59 = vand.u32 15, %v61_v50 }
  0xaf   :  { %1206 = vst [vmem:[#allocation3 + $0x58] sm:$0xf0] %v1198_v63  ;;  %1354 = vmatpush1.bf16.msra.mxu0 %v1320_v2  ;;  %8925 = vst [vmem:[#allocation5_spill] sm:$0xff] %v5443_v51  ;;  %v5448_v53 = vand.u32 15, %v5440_v49  ;;  %vm106_vm10 = vcmp.lt.s32.totalorder %v5443_v51, 14  ;;  %v5454_v56 = vand.u32 15, %v64_v52 }
  0xb0   :  { %vm111_vm13 = vcmp.lt.s32.totalorder %v5450_v54, 14  ;;  %v5460_v58 = vand.u32 15, %v65_v55  ;;  %vm113_vm4 = vcmp.lt.s32.totalorder %v5462_v59, 14 }
  0xb1   :  { %v1222_v3 = vpop.permute.xlu0 %1221  ;;  %8926 = vst [vmem:[#allocation6_spill] sm:$0xff] %v5448_v53  ;;  %8927 = vst [vmem:[#allocation7_spill] sm:$0xff] %v5454_v56  ;;  %vm107_vm12 = vcmp.lt.s32.totalorder %v5448_v53, 14 }
  0xb2   :  { %v1229_v4 = vsel %vm8729_vm5, %v1220_v1, %v1222_v3  ;;  %v1258_v5 = vpop.permute.xlu1 %1257  ;;  %8928 = vst [vmem:[#allocation8_spill] sm:$0xff] %v5460_v58  ;;  %vm115_vm15 = vmand %vm107_vm12, %vm111_vm13 }
  0xb3   :  { %1237 = vst [vmem:[#allocation3 + $0x68] sm:$0xf] %v1229_v4  ;;  %v1322_v11 = vld [vmem:[#allocation3 + $0x50] sm:$0xff]  ;;  %v5472_v62 = vsel %vm115_vm15, 1.0, %v8749_v60 }
  0xb4   :  { %8930 = vst [vmem:[#allocation10_spill] sm:$0xff] %v5472_v62 }
  0xb5   :  { %v1260_v6 = vpop.permute.xlu0 %1259 }
  0xb6   :  { %v1267_v7 = vsel %vm8726_vm6, %v1258_v5, %v1260_v6  ;;  %v1218_v8 = vpop.permute.xlu1 %1217  ;;  %v1323_v9 = vld [vmem:[#allocation3 + $0x58] sm:$0xff] }
  0xb7   :  { %1275 = vst [vmem:[#allocation3 + $0x68] sm:$0xf0] %v1267_v7  ;;  %v1228_v10 = vsel %vm8729_vm5, %v1218_v8, %v1220_v1  ;;  %1394 = vmatprep.subr.bf16.mxu1 %v1323_v9 }
  0xb8   :  { %1236 = vst [vmem:[#allocation3 + $0x60] sm:$0xf] %v1228_v10  ;;  %1395 = vmatpush1.bf16.msra.mxu1 %v1322_v11 }
  0xb9   :  { %v1256_v12 = vpop.permute.xlu0 %1255 }
  0xba   :  { %v1266_v13 = vsel %vm8726_vm6, %v1256_v12, %v1258_v5  ;;  %v1224_v14 = vpop.permute.xlu1 %1223 }
  0xbb   :  { %1274 = vst [vmem:[#allocation3 + $0x60] sm:$0xf0] %v1266_v13  ;;  %v1230_v15 = vsel %vm8729_vm5, %v1222_v3, %v1224_v14 }
  0xbc   :  { %1238 = vst [vmem:[#allocation3 + $0x70] sm:$0xf] %v1230_v15 }
  0xbd   :  { %v1226_v16 = vpop.permute.xlu0 %1225 }
  0xbe   :  { %v1231_v17 = vsel %vm8729_vm5, %v1224_v14, %v1226_v16  ;;  %v1262_v18 = vpop.permute.xlu1 %1261  ;;  %v1325_v19 = vld [vmem:[#allocation3 + $0x68] sm:$0xff] }
  0xbf   :  { %1239 = vst [vmem:[#allocation3 + $0x78] sm:$0xf] %v1231_v17  ;;  %v1268_v20 = vsel %vm8726_vm6, %v1260_v6, %v1262_v18  ;;  %1355 = vmatprep.subr.bf16.mxu0 %v1325_v19 }
  0xc0   :  { %1276 = vst [vmem:[#allocation3 + $0x70] sm:$0xf0] %v1268_v20 }
  0xc1   :  { %v1264_v21 = vpop.permute.xlu0 %1263 }
  0xc2   :  { %v1269_v22 = vsel %vm8726_vm6, %v1262_v18, %v1264_v21  ;;  %v1289_v23 = vpop.permute.xlu1 %1288  ;;  %v1324_v24 = vld [vmem:[#allocation3 + $0x60] sm:$0xff]  ;;  %vm109_vm6 = vcmp.lt.s32.totalorder %v5460_v58, 14 }
  0xc3   :  { %1277 = vst [vmem:[#allocation3 + $0x78] sm:$0xf0] %v1269_v22  ;;  %1356 = vmatpush1.bf16.msra.mxu0 %v1324_v24  ;;  %v1464_v24 = vld [vmem:[%s8712_s2] sm:$0xff] }
  0xc5   :  { %v1291_v25 = vpop.permute.xlu0 %1290 }
  0xc6   :  { %v1299_v26 = vsel %vm8733_vm7, %v1289_v23, %v1291_v25  ;;  %v1293_v27 = vpop.permute.xlu1 %1292 }
  0xc7   :  { %1307 = vst [vmem:[#allocation3 + $0x80] sm:$0xf] %v1299_v26  ;;  %v1300_v28 = vsel %vm8733_vm7, %v1291_v25, %v1293_v27  ;;  %v1326_v34 = vld [vmem:[#allocation3 + $0x70] sm:$0xff]  ;;  %v1563_v25 = vld [vmem:[#allocation2 + $0x28] sm:$0xf] }
  0xc8   :  { %1308 = vst [vmem:[#allocation3 + $0x88] sm:$0xf] %v1300_v28  ;;  %v1595_v26 = vld [vmem:[#allocation2 + $0x28] sm:$0xf] }
  0xc9   :  { %v1295_v29 = vpop.permute.xlu0 %1294  ;;  %v1632_v28 = vld [vmem:[#allocation2 + $0x28] sm:$0xf] }
  0xca   :  { %v1301_v30 = vsel %vm8733_vm7, %v1293_v27, %v1295_v29  ;;  %v1297_v31 = vpop.permute.xlu1 %1296  ;;  %v1327_v32 = vld [vmem:[#allocation3 + $0x78] sm:$0xff]  ;;  %v1605_v27 = vrot.slane %v1595_v26, 4 }
  0xcb   :  { %1309 = vst [vmem:[#allocation3 + $0x90] sm:$0xf] %v1301_v30  ;;  %v1302_v33 = vsel %vm8733_vm7, %v1295_v29, %v1297_v31  ;;  %1396 = vmatprep.subr.bf16.mxu1 %v1327_v32  ;;  %v1664_v29 = vld [vmem:[#allocation2 + $0x28] sm:$0xf] }
  0xcc   :  { %1310 = vst [vmem:[#allocation3 + $0x98] sm:$0xf] %v1302_v33  ;;  %1397 = vmatpush1.bf16.msra.mxu1 %v1326_v34  ;;  %v1674_v30 = vrot.slane %v1664_v29, 4  ;;  %v1701_v31 = vld [vmem:[#allocation2 + $0x28] sm:$0xf] }
  0xcd   :  { %v1526_v32 = vld [vmem:[#allocation2 + $0x28] sm:$0xf] }
  0xce   :  { %v1328_v35 = vld [vmem:[#allocation3 + $0x80] sm:$0xf]  ;;  %v1733_v33 = vld [vmem:[#allocation2 + $0x28] sm:$0xf]  ;;  %v1536_v34 = vrot.slane %v1526_v32, 4 }
  0xcf   :  { %v1329_v36 = vld [vmem:[#allocation3 + $0x88] sm:$0xf]  ;;  %v1338_v37 = vsel %vm8725_vm8, %v1328_v35, 0  ;;  %v1743_v35 = vrot.slane %v1733_v33, 4 }
  0xd0   :  { %4815 = vmatprep.subr.msk.bf16.mxu0 %vm8725_vm8, %v1329_v36 }
  0xd1   :  { %1358 = vmatpush1.bf16.msra.mxu0 %v1338_v37 }
  0xd2   :  { %v1330_v39 = vld [vmem:[#allocation3 + $0x90] sm:$0xf] }
  0xd3   :  { %v1331_v40 = vld [vmem:[#allocation3 + $0x98] sm:$0xf]  ;;  %v1344_v41 = vsel %vm8725_vm8, %v1330_v39, 0 }
  0xd4   :  { %4816 = vmatmul.mubr.msk.bf16.vlgmr.msra.gmra.mrb[0].mxu0 %vm8724_vm9, %v1311_v38  ;;  %4817 = vmatprep.subr.msk.bf16.mxu1 %vm8725_vm8, %v1331_v40  ;;  %vm112_vm8 = vcmp.lt.s32.totalorder %v5456_v57, 14 }
  0xd5   :  { %1399 = vmatpush1.bf16.msra.mxu1 %v1344_v41  ;;  %1866 = vmatprep.mubr.bf16.mxu0 %v5240_v0 }
  0xd8   :  { %4818 = vmatmul.mubr.msk.bf16.vlgmr.msra.gmra.mrb[0].mxu1 %vm8724_vm9, %v1311_v38  ;;  %vm108_vm9 = vcmp.lt.s32.totalorder %v5454_v56, 14 }
  0xd9   :  { %1907 = vmatprep.mubr.bf16.mxu1 %v5240_v0  ;;  %v5445_v0 = vand.u32 15, %v58_v45  ;;  %vm116_vm2 = vmand %vm108_vm9, %vm112_vm8  ;;  %vm8938_vm9 = vcmask 900096  }
  0xda   :  { %v5483_v5 = vsel %vm116_vm2, 1.0, %v8749_v60  ;;  %vm8933_vm2 = vcmask 916480   ;;  %vm8940_vm12 = vmmov %vm8938_vm9 }
  0xdb   :  { %vm110_vm11 = vcmp.lt.s32.totalorder %v5445_v0, 14  ;;  %8931 = vst [vmem:[#allocation11_spill] sm:$0xff] %v5483_v5  ;;  %vm8937_vm8 = vmmov %vm8933_vm2 }
  0xdc   :  { %vm114_vm14 = vmand %vm106_vm10, %vm110_vm11 }
  0xdd   :  { %v5469_v61 = vsel %vm114_vm14, 1.0, %v8749_v60  ;;  %vm117_vm10 = vmand %vm109_vm6, %vm113_vm4 }
  0xde   :  { %8929 = vst [vmem:[#allocation9_spill] sm:$0xff] %v5469_v61  ;;  %v5487_v8 = vsel %vm117_vm10, 1.0, %v8749_v60  ;;  %vm8934_vm4 = vmmov %vm8933_vm2 }
  0xdf   :  { %8932 = vst [vmem:[#allocation12_spill] sm:$0xff] %v5487_v8  ;;  %vm8936_vm6 = vmmov %vm8933_vm2 }
  0xe0   :  { %vm8939_vm11 = vmmov %vm8938_vm9 }
  0xe1   :  { %vm8941_vm13 = vmmov %vm8938_vm9 }
 0x1a7   :  { %v5474_v63 = vpop.f32.mrb[0].mxu0 }
 0x1a8   :  { %v1431_v1 = vmul.f32 %v5474_v63, %v5469_v61  ;;  %v5478_v2 = vpop.f32.mrb[1].mxu0 }
 0x1a9   :  { %v1432_v3 = vmul.f32 %v5478_v2, %v5472_v62  ;;  %v1387_v4 = vpop.f32.mrb[2].mxu0 }
 0x1aa   :  { %v1441_v6 = vmul.f32 %v1431_v1, %v5474_v63  ;;  %v1388_v7 = vpop.f32.mrb[3].mxu0 }
 0x1ab   :  { %v1442_v9 = vmul.f32 %v1432_v3, %v5478_v2  ;;  %v1424_v10 = vpop.f32.mrb[0].mxu1  ;;  %v1435_v11 = vadd.f32 %v1432_v3, %v1431_v1 }
 0x1ac   :  { %v1433_v12 = vmul.f32 %v1424_v10, %v5483_v5  ;;  %v1426_v13 = vpop.f32.mrb[1].mxu1 }
 0x1ad   :  { %v1428_v14 = vpop.f32.mrb[2].mxu1  ;;  %v1434_v15 = vmul.f32 %v1426_v13, %v5487_v8  ;;  %v1445_v16 = vadd.f32 %v1442_v9, %v1441_v6 }
 0x1ae   :  { %v1443_v17 = vmul.f32 %v1433_v12, %v1424_v10  ;;  %v1429_v18 = vpop.f32.mrb[3].mxu1  ;;  %v1436_v19 = vadd.f32 %v1435_v11, %v1433_v12 }
 0x1af   :  { %v1444_v20 = vmul.f32 %v1434_v15, %v1426_v13 }
 0x1b0   :  { %v1437_v21 = vadd.f32 %v1436_v19, %v1434_v15  ;;  %v1446_v22 = vadd.f32 %v1445_v16, %v1443_v17 }
 0x1b2   :  { %1438 = vadd.xlane.f32.xlu0 %v1437_v21  ;;  %v1447_v23 = vadd.f32 %v1446_v22, %v1444_v20 }
 0x1b4   :  { %1448 = vadd.xlane.f32.xlu1 %v1447_v23 }
 0x1c5   :  { %1475 = vperm.xlu1 %5131, %v1464_v24  }
 0x1c8   :  { %1467 = vperm.xlu0 %5130, %v1464_v24  }
 0x1c9   :  { %1545 = vrot.lane.b32.xlu1 %v1536_v34, %s5241_s16 }
 0x1cc   :  { %1577 = vrot.lane.b32.xlu0 %v1563_v25, %s5242_s17 }
 0x1d0   :  { %1614 = vrot.lane.b32.xlu0 %v1605_v27, %s5243_s0 }
 0x1d4   :  { %1646 = vrot.lane.b32.xlu0 %v1632_v28, %s5244_s18 }
 0x1d8   :  { %1683 = vrot.lane.b32.xlu0 %v1674_v30, %s5245_s19 }
 0x1dc   :  { %1715 = vrot.lane.b32.xlu0 %v1701_v31, %s5246_s20 }
 0x1e0   :  { %1752 = vrot.lane.b32.xlu0 %v1743_v35, %s5247_s21 }
 0x23f   :  { %v1439_v36 = vpop.xlane.xlu0 %1438 }
 0x240   :  { %v1440_v37 = vmul.f32 0.0025510204, %v1439_v36 }
 0x241   :  { %v1449_v38 = vpop.xlane.xlu1 %1448 }
 0x242   :  { %v1450_v39 = vmul.f32 0.0025510204, %v1449_v38  ;;  %v1451_v40 = vmul.f32 %v1440_v37, %v1440_v37  ;;  %v1454_v48 = vsub.f32 %v5474_v63, %v1440_v37  ;;  %v1455_v50 = vsub.f32 %v5478_v2, %v1440_v37 }
 0x243   :  { %v1456_v52 = vsub.f32 %v1424_v10, %v1440_v37  ;;  %v1457_v55 = vsub.f32 %v1426_v13, %v1440_v37 }
 0x244   :  { %v1452_v41 = vsub.f32 %v1450_v39, %v1451_v40 }
 0x245   :  { %v1476_v11 = vpop.permute.xlu1 %1475 }
 0x246   :  { %v1453_v45 = vmax.f32 %v1452_v41, 0.0 }
 0x247   :  { %v1468_v3 = vpop.permute.xlu0 %1467 }
 0x248   :  { %v1458_v46 = vadd.f32 1e-05, %v1453_v45 }
 0x24a   :  { %5180 = vrsqrt.f32 %v1458_v46 }
 0x254   :  { %v5181_v1 = vpop.eup %5180 }
 0x255   :  { %v1460_v4 = vmul.f32 %v5181_v1, %v1454_v48  ;;  %v1461_v6 = vmul.f32 %v5181_v1, %v1455_v50  ;;  %v1462_v7 = vmul.f32 %v5181_v1, %v1456_v52  ;;  %v1463_v9 = vmul.f32 %v5181_v1, %v1457_v55 }
 0x257   :  { %v1470_v12 = vmul.f32 %v1468_v3, %v1460_v4  ;;  %v1471_v14 = vmul.f32 %v1468_v3, %v1461_v6  ;;  %v1472_v15 = vmul.f32 %v1468_v3, %v1462_v7  ;;  %v1473_v16 = vmul.f32 %v1468_v3, %v1463_v9 }
 0x259   :  { %v1478_v17 = vadd.f32 %v1476_v11, %v1470_v12  ;;  %v1479_v18 = vadd.f32 %v1476_v11, %v1471_v14  ;;  %v1480_v19 = vadd.f32 %v1476_v11, %v1472_v15  ;;  %v1481_v20 = vadd.f32 %v1476_v11, %v1473_v16 }
 0x25b   :  { %v1482_v63 = vmul.f32 0.5, %v1478_v17  ;;  %v1483_v21 = vmul.f32 0.5, %v1479_v18  ;;  %v1484_v2 = vmul.f32 0.5, %v1480_v19  ;;  %v1485_v10 = vmul.f32 0.5, %v1481_v20 }
 0x25d   :  { %5182 = vtanh.f32 %v1482_v63 }
 0x25e   :  { %5184 = vtanh.f32 %v1483_v21 }
 0x25f   :  { %5186 = vtanh.f32 %v1484_v2 }
 0x260   :  { %5188 = vtanh.f32 %v1485_v10 }
 0x267   :  { %v5183_v13 = vpop.eup %5182 }
 0x268   :  { %v5185_v22 = vpop.eup %5184  ;;  %v1490_v23 = vadd.f32 1.0, %v5183_v13 }
 0x269   :  { %v5187_v24 = vpop.eup %5186  ;;  %v1491_v25 = vadd.f32 1.0, %v5185_v22 }
 0x26a   :  { %v5189_v26 = vpop.eup %5188  ;;  %v1492_v27 = vadd.f32 1.0, %v5187_v24  ;;  %v1494_v28 = vmul.f32 0.5, %v1490_v23 }
 0x26b   :  { %v1493_v29 = vadd.f32 1.0, %v5189_v26  ;;  %v1495_v30 = vmul.f32 0.5, %v1491_v25 }
 0x26c   :  { %v1496_v31 = vmul.f32 0.5, %v1492_v27  ;;  %v1498_v32 = vmul.f32 %v1494_v28, %v1478_v17 }
 0x26d   :  { %v1497_v33 = vmul.f32 0.5, %v1493_v29  ;;  %v1499_v34 = vmul.f32 %v1495_v30, %v1479_v18 }
 0x26e   :  { %v1500_v35 = vmul.f32 %v1496_v31, %v1480_v19  ;;  %v1502_v36 = vmul.f32 %v1498_v32, %v5469_v61  ;;  %v9021_v61 = vmov 0 }
 0x26f   :  { %v1501_v37 = vmul.f32 %v1497_v33, %v1481_v20  ;;  %v1503_v38 = vmul.f32 %v1499_v34, %v5472_v62 }
 0x270   :  { %v1504_v39 = vmul.f32 %v1500_v35, %v5483_v5  ;;  %v1506_v40 = vpack.c.bf16 %v1502_v36, %v1502_v36 }
 0x271   :  { %v1505_v41 = vmul.f32 %v1501_v37, %v5487_v8  ;;  %v1507_v45 = vpack.c.bf16 %v1503_v38, %v1503_v38  ;;  %v9016_v8 = vmov 0 }
 0x272   :  { %v1508_v46 = vpack.c.bf16 %v1504_v39, %v1504_v39  ;;  %1510 = vst [vmem:[#allocation2 + $0x8] sm:$0xf] %v1506_v40 }
 0x273   :  { %v1509_v48 = vpack.c.bf16 %v1505_v41, %v1505_v41  ;;  %1511 = vst [vmem:[#allocation2 + $0x10] sm:$0xf] %v1507_v45 }
 0x274   :  { %1512 = vst [vmem:[#allocation2 + $0x18] sm:$0xf] %v1508_v46 }
 0x275   :  { %1513 = vst [vmem:[#allocation2 + $0x20] sm:$0xf] %v1509_v48 }
 0x279   :  { %v1559_v55 = vld [vmem:[#allocation2 + $0x8] sm:$0xf] }
 0x27a   :  { %v1560_v50 = vld [vmem:[#allocation2 + $0x10] sm:$0xf]  ;;  %v1591_v11 = vld [vmem:[#allocation2 + $0x8] sm:$0xf] }
 0x27b   :  { %v1561_v52 = vld [vmem:[#allocation2 + $0x18] sm:$0xf]  ;;  %1571 = vrot.lane.b32.xlu1 %v1560_v50, %s5242_s17  ;;  %v1629_v9 = vld [vmem:[#allocation2 + $0x10] sm:$0xf]  ;;  %v1514_v14 = vld [vmem:[#allocation2 + $0x8] sm:$0xf] }
 0x27c   :  { %1573 = vrot.lane.b32.xlu0 %v1561_v52, %s5242_s17  ;;  %v1630_v1 = vld [vmem:[#allocation2 + $0x18] sm:$0xf]  ;;  %v1562_v3 = vld [vmem:[#allocation2 + $0x20] sm:$0xf]  ;;  %v1515_v12 = vld [vmem:[#allocation2 + $0x10] sm:$0xf] }
 0x27d   :  { %v1699_v4 = vld [vmem:[#allocation2 + $0x18] sm:$0xf]  ;;  %1519 = vst [vmem:[#allocation3 + $0x8] sm:$0xf] %v1515_v12  ;;  %1518 = vst [vmem:[#allocation3] sm:$0xf] %v1514_v14 }
 0x27e   :  { %v1593_v6 = vld [vmem:[#allocation2 + $0x18] sm:$0xf]  ;;  %v1517_v15 = vld [vmem:[#allocation2 + $0x20] sm:$0xf]  ;;  %v1601_v17 = vrot.slane %v1591_v11, 4 }
 0x27f   :  { %1569 = vrot.lane.b32.xlu1 %v1559_v55, %s5242_s17  ;;  %v1603_v7 = vrot.slane %v1593_v6, 4  ;;  %v1516_v16 = vld [vmem:[#allocation2 + $0x18] sm:$0xf]  ;;  %1521 = vst [vmem:[#allocation3 + $0x18] sm:$0xf] %v1517_v15  ;;  %v1578_v6 = vpop.permute.xlu0 %1577  ;;  %v1546_v15 = vpop.permute.xlu1 %1545 }
 0x280   :  { %1642 = vrot.lane.b32.xlu0 %v1630_v1, %s5244_s18  ;;  %1520 = vst [vmem:[#allocation3 + $0x10] sm:$0xf] %v1516_v16  ;;  %v1628_v18 = vld [vmem:[#allocation2 + $0x8] sm:$0xf]  ;;  %v1662_v19 = vld [vmem:[#allocation2 + $0x18] sm:$0xf] }
 0x281   :  { %v1672_v20 = vrot.slane %v1662_v19, 4  ;;  %v1631_v63 = vld [vmem:[#allocation2 + $0x20] sm:$0xf]  ;;  %v1660_v21 = vld [vmem:[#allocation2 + $0x8] sm:$0xf] }
 0x282   :  { %v1670_v2 = vrot.slane %v1660_v21, 4  ;;  %v1698_v10 = vld [vmem:[#allocation2 + $0x10] sm:$0xf]  ;;  %v1731_v13 = vld [vmem:[#allocation2 + $0x18] sm:$0xf] }
 0x283   :  { %1575 = vrot.lane.b32.xlu1 %v1562_v3, %s5242_s17  ;;  %v1741_v22 = vrot.slane %v1731_v13, 4  ;;  %v1697_v23 = vld [vmem:[#allocation2 + $0x8] sm:$0xf]  ;;  %v1700_v26 = vld [vmem:[#allocation2 + $0x20] sm:$0xf] }
 0x284   :  { %1711 = vrot.lane.b32.xlu0 %v1699_v4, %s5246_s20  ;;  %v1729_v24 = vld [vmem:[#allocation2 + $0x8] sm:$0xf]  ;;  %v1523_v28 = vld [vmem:[#allocation2 + $0x10] sm:$0xf]  ;;  %v1524_v31 = vld [vmem:[#allocation2 + $0x18] sm:$0xf] }
 0x285   :  { %v1739_v25 = vrot.slane %v1729_v24, 4  ;;  %v1766_v27 = vld [vmem:[#allocation2 + $0x8] sm:$0xf]  ;;  %v1767_v29 = vld [vmem:[#allocation2 + $0x10] sm:$0xf]  ;;  %v1533_v30 = vrot.slane %v1523_v28, 4 }
 0x286   :  { %v1769_v32 = vld [vmem:[#allocation2 + $0x20] sm:$0xf]  ;;  %v1534_v33 = vrot.slane %v1524_v31, 4  ;;  %v1522_v34 = vld [vmem:[#allocation2 + $0x8] sm:$0xf] }
 0x287   :  { %1640 = vrot.lane.b32.xlu1 %v1629_v9, %s5244_s18  ;;  %v1532_v35 = vrot.slane %v1522_v34, 4  ;;  %v1525_v36 = vld [vmem:[#allocation2 + $0x20] sm:$0xf]  ;;  %v1592_v38 = vld [vmem:[#allocation2 + $0x10] sm:$0xf]  ;;  %v5541_v9 = vpop.permute.xlu0 %1614 }
 0x288   :  { %1610 = vrot.lane.b32.xlu0 %v1603_v7, %s5243_s0  ;;  %v1535_v37 = vrot.slane %v1525_v36, 4  ;;  %v1602_v39 = vrot.slane %v1592_v38, 4  ;;  %v1594_v40 = vld [vmem:[#allocation2 + $0x20] sm:$0xf]  ;;  %v1661_v45 = vld [vmem:[#allocation2 + $0x10] sm:$0xf] }
 0x289   :  { %v1604_v41 = vrot.slane %v1594_v40, 4  ;;  %v1671_v46 = vrot.slane %v1661_v45, 4  ;;  %v1663_v48 = vld [vmem:[#allocation2 + $0x20] sm:$0xf]  ;;  %v1730_v52 = vld [vmem:[#allocation2 + $0x10] sm:$0xf] }
 0x28a   :  { %v1673_v50 = vrot.slane %v1663_v48, 4  ;;  %v1740_v55 = vrot.slane %v1730_v52, 4  ;;  %v1768_v1 = vld [vmem:[#allocation2 + $0x18] sm:$0xf]  ;;  %v1732_v3 = vld [vmem:[#allocation2 + $0x20] sm:$0xf] }
 0x28b   :  { %1638 = vrot.lane.b32.xlu1 %v1628_v18, %s5244_s18  ;;  %v1742_v4 = vrot.slane %v1732_v3, 4  ;;  %v1770_v7 = vld [vmem:[#allocation2 + $0x28] sm:$0xf]  ;;  %v1647_v11 = vpop.permute.xlu0 %1646 }
 0x28c   :  { %1606 = vrot.lane.b32.xlu0 %v1601_v17, %s5243_s0 }
 0x28f   :  { %1644 = vrot.lane.b32.xlu1 %v1631_v63, %s5244_s18  ;;  %v5543_v12 = vpop.permute.xlu0 %1683 }
 0x290   :  { %1679 = vrot.lane.b32.xlu0 %v1672_v20, %s5245_s19 }
 0x293   :  { %1709 = vrot.lane.b32.xlu1 %v1698_v10, %s5246_s20  ;;  %v1716_v14 = vpop.permute.xlu0 %1715 }
 0x294   :  { %1675 = vrot.lane.b32.xlu0 %v1670_v2, %s5245_s19 }
 0x297   :  { %1707 = vrot.lane.b32.xlu1 %v1697_v23, %s5246_s20  ;;  %v5545_v16 = vpop.permute.xlu0 %1752 }
 0x298   :  { %1748 = vrot.lane.b32.xlu0 %v1741_v22, %s5247_s21 }
 0x29b   :  { %1713 = vrot.lane.b32.xlu1 %v1700_v26, %s5246_s20 }
 0x29c   :  { %1744 = vrot.lane.b32.xlu0 %v1739_v25, %s5247_s21 }
 0x29f   :  { %1776 = vrot.lane.b32.xlu1 %v1766_v27, %s5248_s22 }
 0x2a0   :  { %1778 = vrot.lane.b32.xlu0 %v1767_v29, %s5248_s22 }
 0x2a3   :  { %1539 = vrot.lane.b32.xlu1 %v1533_v30, %s5241_s16 }
 0x2a4   :  { %1782 = vrot.lane.b32.xlu0 %v1769_v32, %s5248_s22 }
 0x2a7   :  { %1541 = vrot.lane.b32.xlu1 %v1534_v33, %s5241_s16 }
 0x2ab   :  { %1537 = vrot.lane.b32.xlu1 %v1532_v35, %s5241_s16 }
 0x2af   :  { %1543 = vrot.lane.b32.xlu1 %v1535_v37, %s5241_s16 }
 0x2b3   :  { %1608 = vrot.lane.b32.xlu1 %v1602_v39, %s5243_s0 }
 0x2b7   :  { %1612 = vrot.lane.b32.xlu1 %v1604_v41, %s5243_s0 }
 0x2bb   :  { %1677 = vrot.lane.b32.xlu1 %v1671_v46, %s5245_s19 }
 0x2bf   :  { %1681 = vrot.lane.b32.xlu1 %v1673_v50, %s5245_s19 }
 0x2c3   :  { %1746 = vrot.lane.b32.xlu1 %v1740_v55, %s5247_s21 }
 0x2c7   :  { %1780 = vrot.lane.b32.xlu1 %v1768_v1, %s5248_s22 }
 0x2cb   :  { %1750 = vrot.lane.b32.xlu1 %v1742_v4, %s5247_s21 }
 0x2cf   :  { %1784 = vrot.lane.b32.xlu1 %v1770_v7, %s5248_s22 }
 0x2ed   :  { %v1572_v17 = vpop.permute.xlu1 %1571 }
 0x2ee   :  { %v1574_v18 = vpop.permute.xlu0 %1573 }
 0x2ef   :  { %v1580_v19 = vsel %vm8732_vm0, %v1572_v17, %v1574_v18 }
 0x2f0   :  { %1588 = vst [vmem:[#allocation3 + $0x28] sm:$0xf] %v1580_v19 }
 0x2f1   :  { %v1570_v20 = vpop.permute.xlu1 %1569 }
 0x2f2   :  { %v1579_v63 = vsel %vm8732_vm0, %v1570_v20, %v1572_v17  ;;  %v1643_v21 = vpop.permute.xlu0 %1642 }
 0x2f3   :  { %1587 = vst [vmem:[#allocation3 + $0x20] sm:$0xf] %v1579_v63  ;;  %v5576_v63 = vshrl.u32 %v8740_v44, 7 }
 0x2f5   :  { %v1576_v2 = vpop.permute.xlu1 %1575  ;;  %8935 = vst [vmem:[#allocation13_spill] sm:$0xff] %v5576_v63  ;;  %v153_v5 = vadd.s32 112, %v5576_v63  ;;  %v154_v62 = vadd.s32 120, %v5576_v63 }
 0x2f6   :  { %v1581_v10 = vsel %vm8732_vm0, %v1574_v18, %v1576_v2  ;;  %v1582_v13 = vsel %vm8732_vm0, %v1576_v2, %v1578_v6  ;;  %v1712_v22 = vpop.permute.xlu0 %1711  ;;  %vm8971_vm0 = vcmask 777216  }
 0x2f7   :  { %1589 = vst [vmem:[#allocation3 + $0x30] sm:$0xf] %v1581_v10  ;;  %1590 = vst [vmem:[#allocation3 + $0x38] sm:$0xf] %v1582_v13 }
 0x2f9   :  { %v1641_v23 = vpop.permute.xlu1 %1640 }
 0x2fa   :  { %v1649_v24 = vsel %vm8731_vm3, %v1641_v23, %v1643_v21  ;;  %v1611_v25 = vpop.permute.xlu0 %1610 }
 0x2fb   :  { %1657 = vst [vmem:[#allocation3 + $0x48] sm:$0xf] %v1649_v24 }
 0x2fd   :  { %v1639_v26 = vpop.permute.xlu1 %1638 }
 0x2fe   :  { %v1648_v27 = vsel %vm8731_vm3, %v1639_v26, %v1641_v23  ;;  %v1607_v28 = vpop.permute.xlu0 %1606 }
 0x2ff   :  { %1656 = vst [vmem:[#allocation3 + $0x40] sm:$0xf] %v1648_v27 }
 0x301   :  { %v1645_v29 = vpop.permute.xlu1 %1644 }
 0x302   :  { %v1650_v30 = vsel %vm8731_vm3, %v1643_v21, %v1645_v29  ;;  %v1651_v31 = vsel %vm8731_vm3, %v1645_v29, %v1647_v11  ;;  %v5555_v32 = vpop.permute.xlu0 %1679  ;;  %v5592_v29 = vmul.u32 2, %v5440_v49 }
 0x303   :  { %1658 = vst [vmem:[#allocation3 + $0x50] sm:$0xf] %v1650_v30  ;;  %1659 = vst [vmem:[#allocation3 + $0x58] sm:$0xf] %v1651_v31  ;;  %v5595_v30 = vmul.u32 2, %v5450_v54  ;;  %v141_v31 = vadd.s32 16, %v5576_v63 }
 0x305   :  { %v1710_v33 = vpop.permute.xlu1 %1709 }
 0x306   :  { %v1718_v34 = vsel %vm8729_vm5, %v1710_v33, %v1712_v22  ;;  %v1676_v35 = vpop.permute.xlu0 %1675 }
 0x307   :  { %1726 = vst [vmem:[#allocation3 + $0x68] sm:$0xf] %v1718_v34 }
 0x309   :  { %v1708_v36 = vpop.permute.xlu1 %1707 }
 0x30a   :  { %v1717_v37 = vsel %vm8729_vm5, %v1708_v36, %v1710_v33  ;;  %v5559_v38 = vpop.permute.xlu0 %1748 }
 0x30b   :  { %1725 = vst [vmem:[#allocation3 + $0x60] sm:$0xf] %v1717_v37  ;;  %v5604_v37 = vmul.u32 2, %v5438_v47 }
 0x30d   :  { %v1714_v39 = vpop.permute.xlu1 %1713 }
 0x30e   :  { %v1719_v40 = vsel %vm8729_vm5, %v1712_v22, %v1714_v39  ;;  %v1720_v41 = vsel %vm8729_vm5, %v1714_v39, %v1716_v14  ;;  %v5563_v45 = vpop.permute.xlu0 %1744  ;;  %v140_v22 = vadd.s32 8, %v5576_v63  ;;  %v5607_v39 = vmul.u32 2, %v5445_v0 }
 0x30f   :  { %1727 = vst [vmem:[#allocation3 + $0x70] sm:$0xf] %v1719_v40  ;;  %1728 = vst [vmem:[#allocation3 + $0x78] sm:$0xf] %v1720_v41 }
 0x310   :  { %v5598_v33 = vshra.s32 %v140_v22, 4  ;;  %v5600_v34 = vand.u32 15, %v140_v22 }
 0x311   :  { %v1777_v46 = vpop.permute.xlu1 %1776 }
 0x312   :  { %v5565_v48 = vpop.permute.xlu0 %1778  ;;  %vm240_vm10 = vcmp.eq.s32.totalorder %v5598_v33, %v5592_v29 }
 0x313   :  { %v1786_v50 = vsel %vm8733_vm7, %v1777_v46, %v5565_v48 }
 0x314   :  { %1794 = vst [vmem:[#allocation3 + $0x80] sm:$0xf] %v1786_v50 }
 0x315   :  { %v1540_v52 = vpop.permute.xlu1 %1539 }
 0x319   :  { %v1542_v55 = vpop.permute.xlu1 %1541 }
 0x31a   :  { %v1548_v1 = vsel %vm8730_vm1, %v1540_v52, %v1542_v55 }
 0x31b   :  { %1556 = vst [vmem:[#allocation3 + $0x8] sm:$0xf0] %v1548_v1  ;;  %v5619_v1 = vshra.s32 %v141_v31, 4 }
 0x31d   :  { %v1538_v3 = vpop.permute.xlu1 %1537 }
 0x31e   :  { %v1547_v4 = vsel %vm8730_vm1, %v1538_v3, %v1540_v52  ;;  %v143_v52 = vadd.s32 32, %v5576_v63 }
 0x31f   :  { %1555 = vst [vmem:[#allocation3] sm:$0xf0] %v1547_v4 }
 0x321   :  { %v1544_v6 = vpop.permute.xlu1 %1543 }
 0x322   :  { %v1549_v7 = vsel %vm8730_vm1, %v1542_v55, %v1544_v6  ;;  %v1550_v11 = vsel %vm8730_vm1, %v1544_v6, %v1546_v15  ;;  %v1800_v14 = vld [vmem:[#allocation3 + $0x8] sm:$0xff]  ;;  %v144_v55 = vadd.s32 40, %v5576_v63 }
 0x323   :  { %1557 = vst [vmem:[#allocation3 + $0x10] sm:$0xf0] %v1549_v7  ;;  %1558 = vst [vmem:[#allocation3 + $0x18] sm:$0xf0] %v1550_v11  ;;  %1834 = vmatprep.subr.bf16.mxu0 %v1800_v14 }
 0x325   :  { %v1609_v17 = vpop.permute.xlu1 %1608 }
 0x326   :  { %v1616_v18 = vsel %vm8933_vm2, %v1607_v28, %v1609_v17  ;;  %v1617_v19 = vsel %vm8934_vm4, %v1609_v17, %v1611_v25  ;;  %v1799_v20 = vld [vmem:[#allocation3] sm:$0xff]  ;;  %vm306_vm2 = vcmp.eq.s32.totalorder %v5600_v34, %v5595_v30  ;;  %v9070_v17 = vmov 0 }
 0x327   :  { %1624 = vst [vmem:[#allocation3 + $0x20] sm:$0xf0] %v1616_v18  ;;  %1625 = vst [vmem:[#allocation3 + $0x28] sm:$0xf0] %v1617_v19  ;;  %1835 = vmatpush1.bf16.msra.mxu0 %v1799_v20  ;;  %v5653_v18 = vshra.s32 %v143_v52, 4  ;;  %v5655_v19 = vshra.s32 %v144_v55, 4 }
 0x328   :  { %v5671_v20 = vand.u32 15, %v143_v52  ;;  %v148_v52 = vadd.s32 72, %v5576_v63 }
 0x329   :  { %v1613_v21 = vpop.permute.xlu1 %1612  ;;  %8949 = vst [vmem:[#allocation17_spill] sm:$0xff] %v5653_v18  ;;  %8950 = vst [vmem:[#allocation18_spill] sm:$0xff] %v5655_v19 }
 0x32a   :  { %v1618_v2 = vsel %vm8936_vm6, %v1611_v25, %v1613_v21  ;;  %v1619_v15 = vsel %vm8937_vm8, %v1613_v21, %v5541_v9  ;;  %v1802_v10 = vld [vmem:[#allocation3 + $0x18] sm:$0xff]  ;;  %v1801_v13 = vld [vmem:[#allocation3 + $0x10] sm:$0xff]  ;;  %v5586_v25 = vshra.s32 %v5576_v63, 4  ;;  %v5589_v9 = vand.u32 15, %v5576_v63  ;;  %8953 = vst [vmem:[#allocation19_spill] sm:$0xff] %v5671_v20 }
 0x32b   :  { %1626 = vst [vmem:[#allocation3 + $0x30] sm:$0xf0] %v1618_v2  ;;  %1627 = vst [vmem:[#allocation3 + $0x38] sm:$0xf0] %v1619_v15  ;;  %1875 = vmatprep.subr.bf16.mxu1 %v1802_v10  ;;  %vm239_vm6 = vcmp.eq.s32.totalorder %v5598_v33, %v5604_v37  ;;  %v145_v21 = vadd.s32 48, %v5576_v63  ;;  %v8954_v2 = vmov 0 }
 0x32c   :  { %1876 = vmatpush1.bf16.msra.mxu1 %v1801_v13  ;;  %vm238_vm14 = vcmp.eq.s32.totalorder %v5586_v25, %v5592_v29  ;;  %vm304_vm15 = vcmp.eq.s32.totalorder %v5589_v9, %v5595_v30  ;;  %vm237_vm4 = vcmp.eq.s32.totalorder %v5586_v25, %v5604_v37  ;;  %vm303_vm8 = vcmp.eq.s32.totalorder %v5589_v9, %v5607_v39  ;;  %v5691_v13 = vpop.permute.xlu0 %1782 }
 0x32d   :  { %v1678_v23 = vpop.permute.xlu1 %1677  ;;  %v5688_v15 = vand.u32 15, %v144_v55  ;;  %v146_v10 = vadd.s32 56, %v5576_v63 }
 0x32e   :  { %v1685_v24 = vsel %vm8938_vm9, %v1676_v35, %v1678_v23  ;;  %v1686_v26 = vsel %vm8939_vm11, %v1678_v23, %v5555_v32  ;;  %v1804_v27 = vld [vmem:[#allocation3 + $0x28] sm:$0xff]  ;;  %v1803_v28 = vld [vmem:[#allocation3 + $0x20] sm:$0xff]  ;;  %v142_v35 = vadd.s32 24, %v5576_v63  ;;  %vm305_vm9 = vcmp.eq.s32.totalorder %v5600_v34, %v5607_v39 }
 0x32f   :  { %1693 = vst [vmem:[#allocation3 + $0x40] sm:$0xf0] %v1685_v24  ;;  %1694 = vst [vmem:[#allocation3 + $0x48] sm:$0xf0] %v1686_v26  ;;  %1836 = vmatprep.subr.bf16.mxu0 %v1804_v27  ;;  %vm8945_vm11 = vcmask 777216   ;;  %v8957_v23 = vmov 0 }
 0x330   :  { %1837 = vmatpush1.bf16.msra.mxu0 %v1803_v28  ;;  %v5629_v3 = vand.u32 15, %v142_v35  ;;  %8956 = vst [vmem:[#allocation20_spill] sm:$0xff] %v5688_v15 }
 0x331   :  { %v1682_v36 = vpop.permute.xlu1 %1681 }
 0x332   :  { %v1687_v40 = vsel %vm8940_vm12, %v5555_v32, %v1682_v36  ;;  %v1688_v41 = vsel %vm8941_vm13, %v1682_v36, %v5543_v12  ;;  %v1806_v46 = vld [vmem:[#allocation3 + $0x38] sm:$0xff]  ;;  %v1805_v50 = vld [vmem:[#allocation3 + $0x30] sm:$0xff]  ;;  %v5621_v32 = vand.u32 15, %v141_v31  ;;  %v5627_v12 = vshra.s32 %v142_v35, 4  ;;  %8944 = vst [vmem:[#allocation16_spill] sm:$0xff] %v5629_v3  ;;  %vm8946_vm12 = vmmov %vm8945_vm11 }
 0x333   :  { %1695 = vst [vmem:[#allocation3 + $0x50] sm:$0xf0] %v1687_v40  ;;  %1696 = vst [vmem:[#allocation3 + $0x58] sm:$0xf0] %v1688_v41  ;;  %1877 = vmatprep.subr.bf16.mxu1 %v1806_v46  ;;  %vm309_vm3 = vcmp.eq.s32.totalorder %v5629_v3, %v5607_v39  ;;  %v8959_v31 = vmov 0  ;;  %v5745_v35 = vshra.s32 %v145_v21, 4 }
 0x334   :  { %8942 = vst [vmem:[#allocation14_spill] sm:$0xff] %v5621_v32  ;;  %1878 = vmatpush1.bf16.msra.mxu1 %v1805_v50  ;;  %8943 = vst [vmem:[#allocation15_spill] sm:$0xff] %v5627_v12  ;;  %vm243_vm5 = vcmp.eq.s32.totalorder %v5627_v12, %v5604_v37  ;;  %vm307_vm1 = vcmp.eq.s32.totalorder %v5621_v32, %v5607_v39  ;;  %v5747_v36 = vand.u32 15, %v145_v21  ;;  %v147_v40 = vadd.s32 64, %v5576_v63 }
 0x335   :  { %v1747_v4 = vpop.permute.xlu1 %1746  ;;  %vm5649_vm13 = vmand %vm238_vm14, %vm304_vm15  ;;  %vm242_vm14 = vcmp.eq.s32.totalorder %v5619_v1, %v5592_v29  ;;  %vm308_vm15 = vcmp.eq.s32.totalorder %v5621_v32, %v5595_v30  ;;  %8963 = vst [vmem:[#allocation21_spill] sm:$0xff] %v5745_v35  ;;  %v8965_v41 = vmov 0  ;;  %v5762_v46 = vshra.s32 %v146_v10, 4 }
 0x336   :  { %v1754_v6 = vsel %vm8945_vm11, %v5563_v45, %v1747_v4  ;;  %v1755_v7 = vsel %vm8946_vm12, %v1747_v4, %v5559_v38  ;;  %v1808_v11 = vld [vmem:[#allocation3 + $0x48] sm:$0xff]  ;;  %v1807_v14 = vld [vmem:[#allocation3 + $0x40] sm:$0xff]  ;;  %vm5663_vm11 = vmand %vm240_vm10, %vm306_vm2  ;;  %vm244_vm2 = vcmp.eq.s32.totalorder %v5627_v12, %v5592_v29  ;;  %vm310_vm12 = vcmp.eq.s32.totalorder %v5629_v3, %v5595_v30  ;;  %8964 = vst [vmem:[#allocation22_spill] sm:$0xff] %v5747_v36 }
 0x337   :  { %1762 = vst [vmem:[#allocation3 + $0x60] sm:$0xf0] %v1754_v6  ;;  %1763 = vst [vmem:[#allocation3 + $0x68] sm:$0xf0] %v1755_v7  ;;  %1838 = vmatprep.subr.bf16.mxu0 %v1808_v11  ;;  %v5764_v50 = vand.u32 15, %v146_v10  ;;  %v8969_v4 = vmov 0 }
 0x338   :  { %1839 = vmatpush1.bf16.msra.mxu0 %v1807_v14  ;;  %vm5680_vm10 = vmand %vm237_vm4, %vm303_vm8  ;;  %vm241_vm8 = vcmp.eq.s32.totalorder %v5619_v1, %v5604_v37  ;;  %8967 = vst [vmem:[#allocation23_spill] sm:$0xff] %v5762_v46  ;;  %v8974_v21 = vmov 0  ;;  %v8978_v10 = vmov 0  ;;  %v9075_v45 = vmov 0 }
 0x339   :  { %v8955_v2 = vsel %vm5680_vm10, 4294967295, %v8954_v2  ;;  %v1781_v22 = vpop.permute.xlu1 %1780  ;;  %vm5699_vm4 = vmand %vm239_vm6, %vm305_vm9  ;;  %8968 = vst [vmem:[#allocation24_spill] sm:$0xff] %v5764_v50 }
 0x33a   :  { %v8958_v23 = vsel %vm5699_vm4, 4294967295, %v8957_v23  ;;  %v1787_v24 = vsel %vm8733_vm7, %v5565_v48, %v1781_v22  ;;  %v1788_v26 = vsel %vm8733_vm7, %v1781_v22, %v5691_v13  ;;  %v1810_v27 = vld [vmem:[#allocation3 + $0x58] sm:$0xff]  ;;  %v1809_v28 = vld [vmem:[#allocation3 + $0x50] sm:$0xff]  ;;  %vm5725_vm9 = vmand %vm242_vm14, %vm308_vm15  ;;  %v8961_v48 = vmov 0 }
 0x33b   :  { %v8960_v31 = vsel %vm5725_vm9, 4294967295, %v8959_v31  ;;  %1795 = vst [vmem:[#allocation3 + $0x88] sm:$0xf] %v1787_v24  ;;  %1796 = vst [vmem:[#allocation3 + $0x90] sm:$0xf] %v1788_v26  ;;  %1879 = vmatprep.subr.bf16.mxu1 %v1810_v27  ;;  %vm312_vm14 = vcmp.eq.s32.totalorder %v5671_v20, %v5595_v30  ;;  %vm8973_vm7 = vcmp.eq.s32.totalorder %v5653_v18, %v5592_v29  ;;  %v5823_v22 = vshra.s32 %v147_v40, 4 }
 0x33c   :  { %vm5739_vm6 = vmand %vm244_vm2, %vm310_vm12  ;;  %1880 = vmatpush1.bf16.msra.mxu1 %v1809_v28  ;;  %vm311_vm2 = vcmp.eq.s32.totalorder %v5671_v20, %v5607_v39  ;;  %v5825_v24 = vand.u32 15, %v147_v40  ;;  %v1815_v26 = vld [vmem:[#allocation3 + $0x80] sm:$0xf]  ;;  %v8982_v27 = vmov 0  ;;  %v5841_v28 = vshra.s32 %v148_v52, 4 }
 0x33d   :  { %v8962_v48 = vsel %vm5739_vm6, 4294967295, %v8961_v48  ;;  %vm5756_vm15 = vmand %vm241_vm8, %vm307_vm1  ;;  %v1751_v55 = vpop.permute.xlu1 %1750  ;;  %vm245_vm8 = vcmp.eq.s32.totalorder %v5653_v18, %v5604_v37  ;;  %8980 = vst [vmem:[#allocation25_spill] sm:$0xff] %v5823_v22  ;;  %v5843_v40 = vand.u32 15, %v148_v52  ;;  %vm8992_vm9 = vcmp.eq.s32.totalorder %v5745_v35, %v5592_v29 }
 0x33e   :  { %v8966_v41 = vsel %vm5756_vm15, 4294967295, %v8965_v41  ;;  %vm5777_vm1 = vmand %vm243_vm5, %vm309_vm3  ;;  %v1756_v6 = vsel %vm8971_vm0, %v5559_v38, %v1751_v55  ;;  %v1812_v11 = vld [vmem:[#allocation3 + $0x68] sm:$0xff]  ;;  %v1811_v14 = vld [vmem:[#allocation3 + $0x60] sm:$0xff]  ;;  %v149_v38 = vadd.s32 80, %v5576_v63  ;;  %8981 = vst [vmem:[#allocation26_spill] sm:$0xff] %v5825_v24  ;;  %vm8990_vm15 = vcmask 769024  }
 0x33f   :  { %v8970_v4 = vsel %vm5777_vm1, 4294967295, %v8969_v4  ;;  %vm8972_vm3 = vmmov %vm8971_vm0  ;;  %1764 = vst [vmem:[#allocation3 + $0x70] sm:$0xf0] %v1756_v6  ;;  %1840 = vmatprep.subr.bf16.mxu0 %v1812_v11  ;;  %vm8976_vm0 = vcmp.eq.s32.totalorder %v5688_v15, %v5595_v30  ;;  %v8988_v6 = vmov 0  ;;  %v8993_v11 = vmov 0 }
 0x340   :  { %v1757_v7 = vsel %vm8972_vm3, %v1751_v55, %v5545_v16  ;;  %vm5803_vm12 = vmand %vm8973_vm7, %vm312_vm14  ;;  %v150_v16 = vadd.s32 88, %v5576_v63  ;;  %vm8977_vm3 = vcmp.eq.s32.totalorder %v5655_v19, %v5592_v29  ;;  %1841 = vmatpush1.bf16.msra.mxu0 %v1811_v14  ;;  %8984 = vst [vmem:[#allocation27_spill] sm:$0xff] %v5841_v28  ;;  %v5883_v14 = vshra.s32 %v149_v38, 4 }
 0x341   :  { %v8975_v21 = vsel %vm5803_vm12, 4294967295, %v8974_v21  ;;  %1765 = vst [vmem:[#allocation3 + $0x78] sm:$0xf0] %v1757_v7  ;;  %vm5815_vm5 = vmand %vm8977_vm3, %vm8976_vm0  ;;  %v1785_v55 = vpop.permute.xlu1 %1784  ;;  %vm9000_vm14 = vcmp.eq.s32.totalorder %v5764_v50, %v5595_v30  ;;  %vm9011_vm6 = vcmp.eq.s32.totalorder %v5762_v46, %v5604_v37  ;;  %v9050_v20 = vmov 0 }
 0x342   :  { %v8979_v10 = vsel %vm5815_vm5, 4294967295, %v8978_v10  ;;  %vm5833_vm0 = vmand %vm245_vm8, %vm311_vm2  ;;  %8985 = vst [vmem:[#allocation28_spill] sm:$0xff] %v5843_v40  ;;  %vm8986_vm2 = vcmp.eq.s32.totalorder %v5688_v15, %v5607_v39  ;;  %vm8987_vm8 = vcmp.eq.s32.totalorder %v5655_v19, %v5604_v37  ;;  %v1789_v52 = vsel %vm8990_vm15, %v5691_v13, %v1785_v55  ;;  %v1816_v7 = vld [vmem:[#allocation3 + $0x88] sm:$0xf] }
 0x343   :  { %v8983_v27 = vsel %vm5833_vm0, 4294967295, %v8982_v27  ;;  %vm5855_vm3 = vmand %vm8987_vm8, %vm8986_vm2  ;;  %vm8991_vm8 = vcmp.eq.s32.totalorder %v5747_v36, %v5595_v30  ;;  %8995 = vst [vmem:[#allocation29_spill] sm:$0xff] %v5883_v14  ;;  %v5885_v44 = vshra.s32 %v150_v16, 4  ;;  %v5887_v13 = vand.u32 15, %v149_v38 }
 0x344   :  { %v8989_v6 = vsel %vm5855_vm3, 4294967295, %v8988_v6  ;;  %vm5879_vm7 = vmand %vm8992_vm9, %vm8991_vm8  ;;  %1797 = vst [vmem:[#allocation3 + $0x98] sm:$0xf] %v1789_v52  ;;  %vm8998_vm15 = vcmask 1043456   ;;  %vm9001_vm9 = vcmp.eq.s32.totalorder %v5762_v46, %v5592_v29  ;;  %v151_v38 = vadd.s32 96, %v5576_v63 }
 0x345   :  { %v8994_v11 = vsel %vm5879_vm7, 4294967295, %v8993_v11  ;;  %8996 = vst [vmem:[#allocation30_spill] sm:$0xff] %v5885_v44  ;;  %8997 = vst [vmem:[#allocation31_spill] sm:$0xff] %v5887_v13  ;;  %4819 = vmatprep.subr.msk.bf16.mxu0 %vm8998_vm15, %v1816_v7  ;;  %v9006_v52 = vmov 0  ;;  %v5925_v7 = vand.u32 15, %v150_v16  ;;  %vm9014_vm0 = vcmp.eq.s32.totalorder %v5825_v24, %v5595_v30 }
 0x346   :  { %vm8999_vm2 = vmmov %vm8998_vm15  ;;  %v5990_v46 = vand.u32 15, %v151_v38  ;;  %v155_v15 = vadd.s32 128, %v5576_v63  ;;  %v6079_v18 = vand.u32 15, %v153_v5  ;;  %v9192_v16 = vmov 0 }
 0x347   :  { %v1823_v55 = vsel %vm8999_vm2, %v1815_v26, 0  ;;  %vm5897_vm8 = vmand %vm9001_vm9, %vm9000_vm14  ;;  %v5909_v26 = vld [vmem:[%s8713_s3] sm:$0xf]  ;;  %vm9004_vm14 = vcmp.eq.s32.totalorder %v5747_v36, %v5607_v39  ;;  %vm9005_vm2 = vcmp.eq.s32.totalorder %v5745_v35, %v5604_v37  ;;  %9008 = vst [vmem:[#allocation32_spill] sm:$0xff] %v5925_v7  ;;  %vm9010_vm9 = vcmp.eq.s32.totalorder %v5764_v50, %v5607_v39 }
 0x348   :  { %v9003_v43 = vsel %vm5897_vm8, 4294967295, %v9002_v43  ;;  %1843 = vmatpush1.bf16.msra.mxu0 %v1823_v55  ;;  %vm5917_vm15 = vmand %vm9005_vm2, %vm9004_vm14  ;;  %v152_v55 = vadd.s32 104, %v5576_v63  ;;  %v1814_v60 = vld [vmem:[#allocation3 + $0x78] sm:$0xff]  ;;  %vm9018_vm2 = vcmask 588800   ;;  %v5988_v50 = vshra.s32 %v151_v38, 4  ;;  %9024 = vst [vmem:[#allocation34_spill] sm:$0xff] %v5990_v46 }
 0x349   :  { %v9007_v52 = vsel %vm5917_vm15, 4294967295, %v9006_v52  ;;  %vm9009_vm14 = vmpackc.low %vm5663_vm11, %vm5649_vm13  ;;  %1881 = vmatprep.subr.bf16.mxu1 %v1814_v60  ;;  %v1817_v60 = vld [vmem:[#allocation3 + $0x90] sm:$0xf]  ;;  %v9025_v36 = vmov 1.0|1.0   ;;  %v9029_v35 = vmov 0 }
 0x34a   :  { %4824 = vmatprep.subr.msk.bf16.mxu0 %vm9009_vm14, %v8751_v42  ;;  %vm5944_vm12 = vmand %vm9011_vm6, %vm9010_vm9  ;;  %v1813_v42 = vld [vmem:[#allocation3 + $0x70] sm:$0xff]  ;;  %vm9015_vm6 = vcmp.eq.s32.totalorder %v5823_v22, %v5592_v29  ;;  %9023 = vst [vmem:[#allocation33_spill] sm:$0xff] %v5988_v50  ;;  %v6014_v38 = vand.u32 15, %v152_v55  ;;  %vm9037_vm14 = vcmp.eq.s32.totalorder %v5841_v28, %v5604_v37 }
 0x34b   :  { %vm5962_vm9 = vmand %vm9015_vm6, %vm9014_vm0  ;;  %4820 = vmatmul.mubr.msk.bf16.vlgmr.msra.gmra.mrb[4].mxu0 %vm9018_vm2, %v5909_v26  ;;  %vm9019_vm0 = vcmp.eq.s32.totalorder %v5843_v40, %v5595_v30  ;;  %vm9020_vm6 = vcmp.eq.s32.totalorder %v5841_v28, %v5592_v29  ;;  %1882 = vmatpush1.bf16.msra.mxu1 %v1813_v42  ;;  %v6012_v42 = vshra.s32 %v152_v55, 4  ;;  %v9038_v55 = vmov 0  ;;  %9052 = vst [vmem:[#allocation39_spill] sm:$0xff] %v6079_v18 }
 0x34c   :  { %v9017_v8 = vsel %vm5962_vm9, 4294967295, %v9016_v8  ;;  %vm5980_vm7 = vmand %vm9020_vm6, %vm9019_vm0  ;;  %vm9027_vm0 = vcmp.eq.s32.totalorder %v5825_v24, %v5607_v39  ;;  %vm9028_vm6 = vcmp.eq.s32.totalorder %v5823_v22, %v5604_v37  ;;  %9032 = vst [vmem:[#allocation36_spill] sm:$0xff] %v6014_v38  ;;  %v1818_v24 = vld [vmem:[#allocation3 + $0x98] sm:$0xf]  ;;  %v6058_v28 = vshra.s32 %v153_v5, 4 }
 0x34d   :  { %v9022_v61 = vsel %vm5980_vm7, 4294967295, %v9021_v61  ;;  %vm9026_vm2 = vmpackc.low %vm5699_vm4, %vm5680_vm10  ;;  %9031 = vst [vmem:[#allocation35_spill] sm:$0xff] %v6012_v42  ;;  %vm9034_vm10 = vnez %v8960_v31  ;;  %v6060_v22 = vshra.s32 %v154_v62, 4  ;;  %v6101_v5 = vand.u32 15, %v154_v62 }
 0x34e   :  { %4826 = vmatpush1.bf16.msk.msra.mxu0 %vm9026_vm2, %v9025_v36  ;;  %vm6004_vm5 = vmand %vm9028_vm6, %vm9027_vm0  ;;  %vm9033_vm2 = vnez %v8962_v48  ;;  %vm9036_vm6 = vcmp.eq.s32.totalorder %v5843_v40, %v5607_v39  ;;  %v9042_v40 = vmov 0  ;;  %9044 = vst [vmem:[#allocation37_spill] sm:$0xff] %v6058_v28  ;;  %vm9046_vm0 = vcmask 1043456  }
 0x34f   :  { %v9030_v35 = vsel %vm6004_vm5, 4294967295, %v9029_v35  ;;  %vm9035_vm4 = vmpackc.low %vm9033_vm2, %vm9034_vm10  ;;  %9045 = vst [vmem:[#allocation38_spill] sm:$0xff] %v6060_v22  ;;  %4821 = vmatprep.subr.msk.bf16.mxu1 %vm9046_vm0, %v1818_v24  ;;  %vm9048_vm10 = vcmp.eq.s32.totalorder %v5925_v7, %v5595_v30  ;;  %v9057_v24 = vmov 0  ;;  %vm9064_vm9 = vcmp.eq.s32.totalorder %v5925_v7, %v5607_v39 }
 0x350   :  { %4828 = vmatprep.subr.msk.bf16.mxu0 %vm9035_vm4, %v9025_v36  ;;  %vm6032_vm8 = vmand %vm9037_vm14, %vm9036_vm6  ;;  %vm9040_vm14 = vcmp.eq.s32.totalorder %v5887_v13, %v5595_v30  ;;  %vm9041_vm6 = vcmp.eq.s32.totalorder %v5883_v14, %v5592_v29  ;;  %9059 = vst [vmem:[#allocation40_spill] sm:$0xff] %v6101_v5  ;;  %vm9065_vm7 = vcmp.eq.s32.totalorder %v5885_v44, %v5604_v37  ;;  %v9066_v62 = vmov 0 }
 0x351   :  { %v9039_v55 = vsel %vm6032_vm8, 4294967295, %v9038_v55  ;;  %vm6052_vm15 = vmand %vm9041_vm6, %vm9040_vm14  ;;  %vm9049_vm14 = vcmp.eq.s32.totalorder %v5885_v44, %v5592_v29  ;;  %v6172_v7 = vand.u32 15, %v155_v15  ;;  %vm9086_vm5 = vcmp.eq.s32.totalorder %v5988_v50, %v5604_v37 }
 0x352   :  { %v9043_v40 = vsel %vm6052_vm15, 4294967295, %v9042_v40  ;;  %vm9047_vm3 = vmmov %vm9046_vm0  ;;  %vm9072_vm15 = vcmask 588800   ;;  %v159_v48 = vadd.s32 160, %v5576_v63 }
 0x353   :  { %v1829_v19 = vsel %vm9047_vm3, %v1817_v60, 0  ;;  %vm6071_vm6 = vmand %vm9049_vm14, %vm9048_vm10  ;;  %vm9053_vm3 = vnez %v8966_v41  ;;  %vm9055_vm10 = vcmp.eq.s32.totalorder %v5887_v13, %v5607_v39  ;;  %vm9056_vm14 = vcmp.eq.s32.totalorder %v5883_v14, %v5604_v37  ;;  %9078 = vst [vmem:[#allocation42_spill] sm:$0xff] %v6172_v7 }
 0x354   :  { %v9051_v20 = vsel %vm6071_vm6, 4294967295, %v9050_v20  ;;  %1884 = vmatpush1.bf16.msra.mxu1 %v1829_v19  ;;  %vm9054_vm0 = vmpackc.low %vm5777_vm1, %vm9053_vm3  ;;  %v156_v19 = vadd.s32 136, %v5576_v63  ;;  %vm9061_vm3 = vnez %v8975_v21  ;;  %v6170_v60 = vshra.s32 %v155_v15, 4 }
 0x355   :  { %4830 = vmatpush1.bf16.msk.msra.mxu0 %vm9054_vm0, %v9025_v36  ;;  %vm6093_vm4 = vmand %vm9056_vm14, %vm9055_vm10  ;;  %vm9060_vm0 = vnez %v8979_v10  ;;  %v157_v13 = vadd.s32 144, %v5576_v63  ;;  %vm9085_vm14 = vcmp.eq.s32.totalorder %v5990_v46, %v5607_v39  ;;  %v9087_v15 = vmov 0 }
 0x356   :  { %v9058_v24 = vsel %vm6093_vm4, 4294967295, %v9057_v24  ;;  %vm9062_vm1 = vmpackc.low %vm9060_vm0, %vm9061_vm3  ;;  %9077 = vst [vmem:[#allocation41_spill] sm:$0xff] %v6170_v60  ;;  %v6347_v10 = vshra.s32 %v159_v48, 4 }
 0x357   :  { %4832 = vmatprep.subr.msk.bf16.mxu0 %vm9062_vm1, %v9025_v36  ;;  %vm9063_vm10 = vmpackc.low %vm5663_vm11, %vm5649_vm13  ;;  %4822 = vmatmul.mubr.msk.bf16.vlgmr.msra.gmra.mrb[4].mxu1 %vm9072_vm15, %v5909_v26  ;;  %vm9079_vm15 = vnez %v8989_v6  ;;  %vm9080_vm11 = vnez %v8983_v27  ;;  %v6199_v26 = vshra.s32 %v156_v19, 4 }
 0x358   :  { %4888 = vmatprep.subr.msk.bf16.mxu1 %vm9063_vm10, %v9025_v36  ;;  %vm6126_vm3 = vmand %vm9065_vm7, %vm9064_vm9  ;;  %vm9068_vm10 = vcmp.eq.s32.totalorder %v5990_v46, %v5595_v30  ;;  %vm9069_vm7 = vcmp.eq.s32.totalorder %v5988_v50, %v5592_v29  ;;  %v6268_v46 = vshra.s32 %v157_v13, 4  ;;  %9133 = vst [vmem:[#allocation49_spill] sm:$0xff] %v6347_v10 }
 0x359   :  { %v9067_v62 = vsel %vm6126_vm3, 4294967295, %v9066_v62  ;;  %vm6144_vm9 = vmand %vm9069_vm7, %vm9068_vm10  ;;  %vm9073_vm10 = vcmp.eq.s32.totalorder %v6014_v38, %v5595_v30  ;;  %vm9074_vm7 = vcmp.eq.s32.totalorder %v6012_v42, %v5592_v29  ;;  %9089 = vst [vmem:[#allocation43_spill] sm:$0xff] %v6199_v26  ;;  %vm9146_vm3 = vcmp.eq.s32.totalorder %v6170_v60, %v5604_v37 }
 0x35a   :  { %v9071_v17 = vsel %vm6144_vm9, 4294967295, %v9070_v17  ;;  %vm6164_vm6 = vmand %vm9074_vm7, %vm9073_vm10  ;;  %vm9082_vm10 = vnez %v8958_v23  ;;  %vm9083_vm7 = vnez %v8955_v2  ;;  %v6201_v23 = vand.u32 15, %v156_v19  ;;  %9108 = vst [vmem:[#allocation45_spill] sm:$0xff] %v6268_v46 }
 0x35b   :  { %v9076_v45 = vsel %vm6164_vm6, 4294967295, %v9075_v45  ;;  %vm9081_vm13 = vmpackc.low %vm9079_vm15, %vm9080_vm11  ;;  %v158_v2 = vadd.s32 152, %v5576_v63  ;;  %vm9096_vm11 = vcmp.eq.s32.totalorder %v6014_v38, %v5607_v39  ;;  %vm9097_vm15 = vcmp.eq.s32.totalorder %v6012_v42, %v5604_v37 }
 0x35c   :  { %4834 = vmatpush1.bf16.msk.msra.mxu0 %vm9081_vm13, %v9025_v36  ;;  %vm9084_vm1 = vmpackc.low %vm9082_vm10, %vm9083_vm7  ;;  %9090 = vst [vmem:[#allocation44_spill] sm:$0xff] %v6201_v23  ;;  %vm9092_vm10 = vnez %v8994_v11  ;;  %v9098_v19 = vmov 0  ;;  %v160_v38 = vadd.s32 168, %v5576_v63  ;;  %vm9105_vm9 = vcmp.eq.s32.totalorder %v6060_v22, %v5592_v29 }
 0x35d   :  { %4890 = vmatpush1.bf16.msk.msra.mxu1 %vm9084_vm1, %v9025_v36  ;;  %vm6193_vm8 = vmand %vm9086_vm5, %vm9085_vm14  ;;  %vm9091_vm1 = vnez %v9003_v43  ;;  %vm9094_vm5 = vnez %v8960_v31  ;;  %v9102_v31 = vmov 0  ;;  %v6270_v42 = vand.u32 15, %v157_v13 }
 0x35e   :  { %v9088_v15 = vsel %vm6193_vm8, 4294967295, %v9087_v15  ;;  %vm9093_vm7 = vmpackc.low %vm9091_vm1, %vm9092_vm10  ;;  %vm9115_vm13 = vcmp.eq.s32.totalorder %v6058_v28, %v5604_v37  ;;  %v9116_v13 = vmov 0  ;;  %v6295_v50 = vshra.s32 %v158_v2, 4 }
 0x35f   :  { %4836 = vmatprep.subr.msk.bf16.mxu0 %vm9093_vm7, %v9025_v36  ;;  %vm9095_vm14 = vmpackc.low %vm9033_vm2, %vm9094_vm5  ;;  %vm331_vm2 = vcmp.eq.s32.totalorder %v6079_v18, %v5607_v39  ;;  %vm9104_vm5 = vcmp.eq.s32.totalorder %v6101_v5, %v5595_v30  ;;  %9109 = vst [vmem:[#allocation46_spill] sm:$0xff] %v6270_v42  ;;  %vm9110_vm7 = vnez %v9007_v52  ;;  %v9161_v43 = vmov 0 }
 0x360   :  { %4892 = vmatprep.subr.msk.bf16.mxu1 %vm9095_vm14, %v9025_v36  ;;  %vm6226_vm10 = vmand %vm9097_vm15, %vm9096_vm11  ;;  %vm9100_vm14 = vcmp.eq.s32.totalorder %v6079_v18, %v5595_v30  ;;  %vm9101_vm11 = vcmp.eq.s32.totalorder %v6058_v28, %v5592_v29  ;;  %v9106_v18 = vmov 0  ;;  %9118 = vst [vmem:[#allocation47_spill] sm:$0xff] %v6295_v50  ;;  %v6391_v28 = vand.u32 15, %v160_v38 }
 0x361   :  { %v9099_v19 = vsel %vm6226_vm10, 4294967295, %v9098_v19  ;;  %vm6244_vm15 = vmand %vm9101_vm11, %vm9100_vm14 }
 0x362   :  { %v9103_v31 = vsel %vm6244_vm15, 4294967295, %v9102_v31  ;;  %vm6260_vm14 = vmand %vm9105_vm9, %vm9104_vm5  ;;  %vm9112_vm9 = vnez %v8970_v4  ;;  %vm9113_vm5 = vnez %v8966_v41  ;;  %v6297_v4 = vand.u32 15, %v158_v2  ;;  %9149 = vst [vmem:[#allocation52_spill] sm:$0xff] %v6391_v28 }
 0x363   :  { %v9107_v18 = vsel %vm6260_vm14, 4294967295, %v9106_v18  ;;  %vm9111_vm6 = vmpackc.low %vm5944_vm12, %vm9110_vm7  ;;  %vm9126_vm7 = vcmp.eq.s32.totalorder %v6060_v22, %v5604_v37  ;;  %v9127_v41 = vmov 0  ;;  %v6349_v2 = vshra.s32 %v160_v38, 4 }
 0x364   :  { %4838 = vmatpush1.bf16.msk.msra.mxu0 %vm9111_vm6, %v9025_v36  ;;  %vm9114_vm11 = vmpackc.low %vm9112_vm9, %vm9113_vm5  ;;  %9119 = vst [vmem:[#allocation48_spill] sm:$0xff] %v6297_v4  ;;  %vm9121_vm9 = vnez %v9017_v8  ;;  %vm9125_vm6 = vcmp.eq.s32.totalorder %v6101_v5, %v5607_v39  ;;  %vm9136_vm15 = vcmp.eq.s32.totalorder %v6199_v26, %v5592_v29  ;;  %v6365_v5 = vand.u32 15, %v159_v48 }
 0x365   :  { %4894 = vmatpush1.bf16.msk.msra.mxu1 %vm9114_vm11, %v9025_v36  ;;  %vm6287_vm4 = vmand %vm9115_vm13, %vm331_vm2  ;;  %vm9120_vm11 = vnez %v9022_v61  ;;  %vm9123_vm13 = vnez %v8975_v21  ;;  %v9131_v21 = vmov 0  ;;  %9134 = vst [vmem:[#allocation50_spill] sm:$0xff] %v6349_v2  ;;  %v161_v22 = vadd.s32 176, %v5576_v63 }
 0x366   :  { %v9117_v13 = vsel %vm6287_vm4, 4294967295, %v9116_v13  ;;  %vm9122_vm5 = vmpackc.low %vm9120_vm11, %vm9121_vm9  ;;  %9139 = vst [vmem:[#allocation51_spill] sm:$0xff] %v6365_v5  ;;  %vm9141_vm14 = vnez %v9030_v35  ;;  %v9147_v48 = vmov 0  ;;  %vm276_vm11 = vcmp.eq.s32.totalorder %v6295_v50, %v5592_v29 }
 0x367   :  { %4840 = vmatprep.subr.msk.bf16.mxu0 %vm9122_vm5, %v9025_v36  ;;  %vm9124_vm2 = vmpackc.low %vm9060_vm0, %vm9123_vm13  ;;  %vm335_vm0 = vcmp.eq.s32.totalorder %v6172_v7, %v5607_v39  ;;  %vm9135_vm13 = vcmp.eq.s32.totalorder %v6201_v23, %v5595_v30  ;;  %vm9140_vm5 = vnez %v9039_v55  ;;  %v6450_v38 = vshra.s32 %v161_v22, 4 }
 0x368   :  { %4896 = vmatprep.subr.msk.bf16.mxu1 %vm9124_vm2, %v9025_v36  ;;  %vm6321_vm9 = vmand %vm9126_vm7, %vm9125_vm6  ;;  %vm9129_vm2 = vcmp.eq.s32.totalorder %v6172_v7, %v5595_v30  ;;  %vm9130_vm7 = vcmp.eq.s32.totalorder %v6170_v60, %v5592_v29  ;;  %v9137_v7 = vmov 0  ;;  %vm346_vm4 = vcmp.eq.s32.totalorder %v6391_v28, %v5595_v30 }
 0x369   :  { %v9128_v41 = vsel %vm6321_vm9, 4294967295, %v9127_v41  ;;  %vm6339_vm6 = vmand %vm9130_vm7, %vm9129_vm2  ;;  %9165 = vst [vmem:[#allocation53_spill] sm:$0xff] %v6450_v38 }
 0x36a   :  { %v9132_v21 = vsel %vm6339_vm6, 4294967295, %v9131_v21  ;;  %vm6357_vm2 = vmand %vm9136_vm15, %vm9135_vm13  ;;  %vm9143_vm15 = vnez %v8989_v6  ;;  %vm9144_vm13 = vnez %v8983_v27  ;;  %v162_v6 = vadd.s32 184, %v5576_v63 }
 0x36b   :  { %v9138_v7 = vsel %vm6357_vm2, 4294967295, %v9137_v7  ;;  %vm9142_vm8 = vmpackc.low %vm9140_vm5, %vm9141_vm14  ;;  %vm9155_vm5 = vcmp.eq.s32.totalorder %v6201_v23, %v5607_v39  ;;  %v9157_v27 = vmov 0  ;;  %vm345_vm6 = vcmp.eq.s32.totalorder %v6391_v28, %v5607_v39 }
 0x36c   :  { %4842 = vmatpush1.bf16.msk.msra.mxu0 %vm9142_vm8, %v9025_v36  ;;  %vm9145_vm7 = vmpackc.low %vm9143_vm15, %vm9144_vm13  ;;  %vm342_vm8 = vcmp.eq.s32.totalorder %v6297_v4, %v5595_v30  ;;  %vm9151_vm15 = vnez %v9043_v40  ;;  %v6476_v23 = vand.u32 15, %v162_v6  ;;  %vm9194_vm2 = vnez %v9099_v19 }
 0x36d   :  { %4898 = vmatpush1.bf16.msk.msra.mxu1 %vm9145_vm7, %v9025_v36  ;;  %vm6383_vm10 = vmand %vm9146_vm3, %vm335_vm0  ;;  %vm9150_vm7 = vnez %v9051_v20  ;;  %vm9153_vm3 = vnez %v8994_v11  ;;  %v9163_v11 = vmov 0  ;;  %v9200_v28 = vmov 0 }
 0x36e   :  { %v9148_v48 = vsel %vm6383_vm10, 4294967295, %v9147_v48  ;;  %vm9152_vm13 = vmpackc.low %vm9150_vm7, %vm9151_vm15  ;;  %vm9156_vm10 = vcmp.eq.s32.totalorder %v6199_v26, %v5604_v37  ;;  %9175 = vst [vmem:[#allocation56_spill] sm:$0xff] %v6476_v23 }
 0x36f   :  { %4844 = vmatprep.subr.msk.bf16.mxu0 %vm9152_vm13, %v9025_v36  ;;  %vm9154_vm0 = vmpackc.low %vm9091_vm1, %vm9153_vm3  ;;  %vm273_vm13 = vcmp.eq.s32.totalorder %v6268_v46, %v5604_v37  ;;  %vm339_vm1 = vcmp.eq.s32.totalorder %v6270_v42, %v5607_v39 }
 0x370   :  { %4900 = vmatprep.subr.msk.bf16.mxu1 %vm9154_vm0, %v9025_v36  ;;  %vm6416_vm15 = vmand %vm9156_vm10, %vm9155_vm5  ;;  %vm9159_vm0 = vcmp.eq.s32.totalorder %v6270_v42, %v5595_v30  ;;  %vm9160_vm10 = vcmp.eq.s32.totalorder %v6268_v46, %v5592_v29  ;;  %v6452_v42 = vand.u32 15, %v161_v22  ;;  %v9172_v46 = vmov 0 }
 0x371   :  { %v9158_v27 = vsel %vm6416_vm15, 4294967295, %v9157_v27  ;;  %vm6434_vm5 = vmand %vm9160_vm10, %vm9159_vm0  ;;  %vm9167_vm0 = vnez %v9067_v62  ;;  %vm9168_vm10 = vnez %v9058_v24  ;;  %v6474_v22 = vshra.s32 %v162_v6, 4 }
 0x372   :  { %v9162_v43 = vsel %vm6434_vm5, 4294967295, %v9161_v43  ;;  %vm6442_vm9 = vmand %vm276_vm11, %vm342_vm8  ;;  %9166 = vst [vmem:[#allocation54_spill] sm:$0xff] %v6452_v42  ;;  %vm9170_vm11 = vnez %v9007_v52  ;;  %v9185_v52 = vmov 0  ;;  %v164_v6 = vadd.s32 200, %v5576_v63 }
 0x373   :  { %v9164_v11 = vsel %vm6442_vm9, 4294967295, %v9163_v11  ;;  %vm9169_vm14 = vmpackc.low %vm9167_vm0, %vm9168_vm10  ;;  %9174 = vst [vmem:[#allocation55_spill] sm:$0xff] %v6474_v22  ;;  %vm9183_vm10 = vcmp.eq.s32.totalorder %v6297_v4, %v5607_v39  ;;  %vm9184_vm0 = vcmp.eq.s32.totalorder %v6295_v50, %v5604_v37  ;;  %vm9195_vm9 = vnez %v9088_v15 }
 0x374   :  { %4846 = vmatpush1.bf16.msk.msra.mxu0 %vm9169_vm14, %v9025_v36  ;;  %vm9171_vm8 = vmpackc.low %vm5944_vm12, %vm9170_vm11  ;;  %vm9176_vm14 = vnez %v9076_v45  ;;  %vm9177_vm12 = vnez %v9071_v17  ;;  %v6596_v4 = vand.u32 15, %v164_v6 }
 0x375   :  { %4902 = vmatpush1.bf16.msk.msra.mxu1 %vm9171_vm8, %v9025_v36  ;;  %vm6466_vm3 = vmand %vm273_vm13, %vm339_vm1  ;;  %vm9179_vm13 = vnez %v9022_v61  ;;  %vm9180_vm1 = vnez %v9017_v8  ;;  %v9189_v61 = vmov 0  ;;  %v163_v8 = vadd.s32 192, %v5576_v63 }
 0x376   :  { %v9173_v46 = vsel %vm6466_vm3, 4294967295, %v9172_v46  ;;  %vm9178_vm11 = vmpackc.low %vm9176_vm14, %vm9177_vm12  ;;  %9218 = vst [vmem:[#allocation60_spill] sm:$0xff] %v6596_v4  ;;  %vm281_vm3 = vcmp.eq.s32.totalorder %v6450_v38, %v5604_v37 }
 0x377   :  { %4848 = vmatprep.subr.msk.bf16.mxu0 %vm9178_vm11, %v9025_v36  ;;  %vm9181_vm8 = vmpackc.low %vm9179_vm13, %vm9180_vm1  ;;  %vm277_vm11 = vcmp.eq.s32.totalorder %v6347_v10, %v5604_v37  ;;  %vm343_vm13 = vcmp.eq.s32.totalorder %v6365_v5, %v5607_v39  ;;  %vm9191_vm1 = vcmp.eq.s32.totalorder %v6349_v2, %v5592_v29  ;;  %v6586_v20 = vshra.s32 %v163_v8, 4 }
 0x378   :  { %4904 = vmatprep.subr.msk.bf16.mxu1 %vm9181_vm8, %v9025_v36  ;;  %vm6500_vm12 = vmand %vm9184_vm0, %vm9183_vm10  ;;  %vm9187_vm8 = vcmp.eq.s32.totalorder %v6365_v5, %v5595_v30  ;;  %vm9188_vm0 = vcmp.eq.s32.totalorder %v6347_v10, %v5592_v29  ;;  %v9215_v5 = vmov 0  ;;  %v6594_v10 = vshra.s32 %v164_v6, 4 }
 0x379   :  { %v9186_v52 = vsel %vm6500_vm12, 4294967295, %v9185_v52  ;;  %vm6518_vm10 = vmand %vm9188_vm0, %vm9187_vm8  ;;  %vm282_vm8 = vcmp.eq.s32.totalorder %v6450_v38, %v5592_v29  ;;  %vm348_vm0 = vcmp.eq.s32.totalorder %v6452_v42, %v5595_v30  ;;  %vm350_vm12 = vcmp.eq.s32.totalorder %v6476_v23, %v5595_v30  ;;  %9213 = vst [vmem:[#allocation57_spill] sm:$0xff] %v6586_v20 }
 0x37a   :  { %v9190_v61 = vsel %vm6518_vm10, 4294967295, %v9189_v61  ;;  %vm6530_vm5 = vmand %vm9191_vm1, %vm346_vm4  ;;  %vm9197_vm4 = vnez %v9039_v55  ;;  %vm9198_vm1 = vnez %v9030_v35  ;;  %vm284_vm10 = vcmp.eq.s32.totalorder %v6474_v22, %v5592_v29  ;;  %9217 = vst [vmem:[#allocation59_spill] sm:$0xff] %v6594_v10 }
 0x37b   :  { %v9193_v16 = vsel %vm6530_vm5, 4294967295, %v9192_v16  ;;  %vm9196_vm15 = vmpackc.low %vm9194_vm2, %vm9195_vm9  ;;  %vm9203_vm9 = vnez %v9103_v31  ;;  %v9209_v35 = vmov 0  ;;  %v9211_v55 = vmov 0 }
 0x37c   :  { %4850 = vmatpush1.bf16.msk.msra.mxu0 %vm9196_vm15, %v9025_v36  ;;  %vm9199_vm14 = vmpackc.low %vm9197_vm4, %vm9198_vm1  ;;  %vm9202_vm15 = vnez %v9107_v18  ;;  %vm9208_vm1 = vcmp.eq.s32.totalorder %v6349_v2, %v5604_v37  ;;  %vm354_vm4 = vcmp.eq.s32.totalorder %v6596_v4, %v5595_v30  ;;  %v167_v6 = vadd.s32 224, %v5576_v63 }
 0x37d   :  { %4906 = vmatpush1.bf16.msk.msra.mxu1 %vm9199_vm14, %v9025_v36  ;;  %vm6551_vm5 = vmand %vm277_vm11, %vm343_vm13  ;;  %vm9205_vm14 = vnez %v9043_v40  ;;  %v6588_v40 = vand.u32 15, %v163_v8  ;;  %vm347_vm13 = vcmp.eq.s32.totalorder %v6452_v42, %v5607_v39  ;;  %v9254_v18 = vmov 0 }
 0x37e   :  { %v9201_v28 = vsel %vm6551_vm5, 4294967295, %v9200_v28  ;;  %vm9204_vm2 = vmpackc.low %vm9202_vm15, %vm9203_vm9  ;;  %vm349_vm9 = vcmp.eq.s32.totalorder %v6476_v23, %v5607_v39 }
 0x37f   :  { %4852 = vmatprep.subr.msk.bf16.mxu0 %vm9204_vm2, %v9025_v36  ;;  %vm9206_vm11 = vmpackc.low %vm9150_vm7, %vm9205_vm14  ;;  %9214 = vst [vmem:[#allocation58_spill] sm:$0xff] %v6588_v40  ;;  %vm9222_vm14 = vnez %v9067_v62  ;;  %v166_v62 = vadd.s32 216, %v5576_v63 }
 0x380   :  { %4908 = vmatprep.subr.msk.bf16.mxu1 %vm9206_vm11, %v9025_v36  ;;  %vm6578_vm5 = vmand %vm9208_vm1, %vm345_vm6  ;;  %vm9219_vm6 = vnez %v9128_v41  ;;  %vm9223_vm11 = vnez %v9058_v24  ;;  %vm283_vm1 = vcmp.eq.s32.totalorder %v6474_v22, %v5604_v37  ;;  %v165_v24 = vadd.s32 208, %v5576_v63 }
 0x381   :  { %v9210_v35 = vsel %vm6578_vm5, 4294967295, %v9209_v35  ;;  %vm6582_vm2 = vmand %vm282_vm8, %vm348_vm0  ;;  %vm9220_vm8 = vnez %v9117_v13  ;;  %vm9239_vm5 = vnez %v9099_v19 }
 0x382   :  { %v9212_v55 = vsel %vm6582_vm2, 4294967295, %v9211_v55  ;;  %vm6590_vm7 = vmand %vm284_vm10, %vm350_vm12  ;;  %vm9237_vm2 = vnez %v9148_v48  ;;  %vm285_vm10 = vcmp.eq.s32.totalorder %v6586_v20, %v5604_v37  ;;  %v6696_v19 = vshra.s32 %v165_v24, 4 }
 0x383   :  { %v9216_v5 = vsel %vm6590_vm7, 4294967295, %v9215_v5  ;;  %vm9221_vm0 = vmpackc.low %vm9219_vm6, %vm9220_vm8  ;;  %vm9228_vm8 = vnez %v9132_v21  ;;  %v6698_v8 = vand.u32 15, %v165_v24  ;;  %v9267_v24 = vmov 0 }
 0x384   :  { %4854 = vmatpush1.bf16.msk.msra.mxu0 %vm9221_vm0, %v9025_v36  ;;  %vm9224_vm12 = vmpackc.low %vm9222_vm14, %vm9223_vm11  ;;  %vm9227_vm0 = vnez %v9138_v7  ;;  %vm9230_vm14 = vnez %v9076_v45  ;;  %vm9231_vm11 = vnez %v9071_v17  ;;  %v9234_v17 = vmov 0  ;;  %9251 = vst [vmem:[#allocation61_spill] sm:$0xff] %v6696_v19 }
 0x385   :  { %4910 = vmatpush1.bf16.msk.msra.mxu1 %vm9224_vm12, %v9025_v36  ;;  %vm9229_vm6 = vmpackc.low %vm9227_vm0, %vm9228_vm8  ;;  %v9242_v45 = vmov 0  ;;  %9252 = vst [vmem:[#allocation62_spill] sm:$0xff] %v6698_v8 }
 0x386   :  { %4856 = vmatprep.subr.msk.bf16.mxu0 %vm9229_vm6, %v9025_v36  ;;  %vm9232_vm12 = vmpackc.low %vm9230_vm14, %vm9231_vm11  ;;  %vm286_vm14 = vcmp.eq.s32.totalorder %v6586_v20, %v5592_v29  ;;  %vm352_vm11 = vcmp.eq.s32.totalorder %v6588_v40, %v5595_v30  ;;  %vm9236_vm6 = vnez %v9158_v27  ;;  %v168_v20 = vadd.s32 232, %v5576_v63 }
 0x387   :  { %4912 = vmatprep.subr.msk.bf16.mxu1 %vm9232_vm12, %v9025_v36  ;;  %vm6648_vm12 = vmand %vm281_vm3, %vm347_vm13  ;;  %vm9240_vm3 = vnez %v9088_v15  ;;  %v9249_v15 = vmov 0 }
 0x388   :  { %v9235_v17 = vsel %vm6648_vm12, 4294967295, %v9234_v17  ;;  %vm9238_vm7 = vmpackc.low %vm9236_vm6, %vm9237_vm2  ;;  %vm9244_vm2 = vnez %v9164_v11  ;;  %vm9245_vm6 = vnez %v9162_v43  ;;  %v6768_v7 = vshra.s32 %v168_v20, 4 }
 0x389   :  { %4858 = vmatpush1.bf16.msk.msra.mxu0 %vm9238_vm7, %v9025_v36  ;;  %vm9241_vm13 = vmpackc.low %vm9239_vm5, %vm9240_vm3  ;;  %vm351_vm7 = vcmp.eq.s32.totalorder %v6588_v40, %v5607_v39  ;;  %v6710_v40 = vand.u32 15, %v166_v62 }
 0x38a   :  { %4914 = vmatpush1.bf16.msk.msra.mxu1 %vm9241_vm13, %v9025_v36  ;;  %vm6668_vm12 = vmand %vm283_vm1, %vm349_vm9  ;;  %vm9247_vm9 = vnez %v9103_v31  ;;  %vm353_vm13 = vcmp.eq.s32.totalorder %v6596_v4, %v5607_v39  ;;  %v6708_v31 = vshra.s32 %v166_v62, 4  ;;  %v9258_v4 = vmov 0  ;;  %9277 = vst [vmem:[#allocation67_spill] sm:$0xff] %v6768_v7 }
 0x38b   :  { %v9243_v45 = vsel %vm6668_vm12, 4294967295, %v9242_v45  ;;  %vm9246_vm5 = vmpackc.low %vm9244_vm2, %vm9245_vm6  ;;  %9257 = vst [vmem:[#allocation64_spill] sm:$0xff] %v6710_v40  ;;  %vm9269_vm6 = vnez %v9193_v16 }
 0x38c   :  { %4860 = vmatprep.subr.msk.bf16.mxu0 %vm9246_vm5, %v9025_v36  ;;  %vm9248_vm1 = vmpackc.low %vm9202_vm15, %vm9247_vm9  ;;  %vm9253_vm5 = vcmp.eq.s32.totalorder %v6594_v10, %v5592_v29  ;;  %9256 = vst [vmem:[#allocation63_spill] sm:$0xff] %v6708_v31 }
 0x38d   :  { %4916 = vmatprep.subr.msk.bf16.mxu1 %vm9248_vm1, %v9025_v36  ;;  %vm6690_vm3 = vmand %vm286_vm14, %vm352_vm11  ;;  %vm9260_vm14 = vnez %v9186_v52  ;;  %vm9261_vm11 = vnez %v9173_v46  ;;  %vm9264_vm1 = vnez %v9117_v13  ;;  %v6756_v13 = vshra.s32 %v167_v6, 4 }
 0x38e   :  { %v9250_v15 = vsel %vm6690_vm3, 4294967295, %v9249_v15  ;;  %vm6704_vm8 = vmand %vm9253_vm5, %vm354_vm4  ;;  %vm9263_vm4 = vnez %v9128_v41  ;;  %v6758_v41 = vand.u32 15, %v167_v6 }
 0x38f   :  { %v9255_v18 = vsel %vm6704_vm8, 4294967295, %v9254_v18  ;;  %vm6713_vm15 = vmand %vm285_vm10, %vm351_vm7  ;;  %vm9266_vm10 = vcmp.eq.s32.totalorder %v6594_v10, %v5604_v37  ;;  %9275 = vst [vmem:[#allocation65_spill] sm:$0xff] %v6756_v13  ;;  %vm9282_vm8 = vnez %v9158_v27  ;;  %v9294_v27 = vmov 0 }
 0x390   :  { %v9259_v4 = vsel %vm6713_vm15, 4294967295, %v9258_v4  ;;  %vm9262_vm9 = vmpackc.low %vm9260_vm14, %vm9261_vm11  ;;  %vm9270_vm11 = vnez %v9190_v61  ;;  %vm356_vm14 = vcmp.eq.s32.totalorder %v6698_v8, %v5595_v30  ;;  %9276 = vst [vmem:[#allocation66_spill] sm:$0xff] %v6758_v41  ;;  %vm291_vm15 = vcmp.eq.s32.totalorder %v6708_v31, %v5604_v37 }
 0x391   :  { %4862 = vmatpush1.bf16.msk.msra.mxu0 %vm9262_vm9, %v9025_v36  ;;  %vm9265_vm5 = vmpackc.low %vm9263_vm4, %vm9264_vm1  ;;  %vm9272_vm4 = vnez %v9132_v21  ;;  %v6770_v21 = vand.u32 15, %v168_v20  ;;  %v9285_v20 = vmov 0 }
 0x392   :  { %4918 = vmatpush1.bf16.msk.msra.mxu1 %vm9265_vm5, %v9025_v36  ;;  %vm6732_vm7 = vmand %vm9266_vm10, %vm353_vm13  ;;  %vm290_vm10 = vcmp.eq.s32.totalorder %v6696_v19, %v5592_v29  ;;  %vm289_vm13 = vcmp.eq.s32.totalorder %v6696_v19, %v5604_v37  ;;  %vm9283_vm5 = vnez %v9148_v48  ;;  %v9292_v48 = vmov 0 }
 0x393   :  { %v9268_v24 = vsel %vm6732_vm7, 4294967295, %v9267_v24  ;;  %vm9271_vm9 = vmpackc.low %vm9269_vm6, %vm9270_vm11  ;;  %9278 = vst [vmem:[#allocation68_spill] sm:$0xff] %v6770_v21  ;;  %vm9279_vm11 = vnez %v9210_v35  ;;  %vm9280_vm6 = vnez %v9201_v28  ;;  %vm357_vm7 = vcmp.eq.s32.totalorder %v6710_v40, %v5607_v39 }
 0x394   :  { %4864 = vmatprep.subr.msk.bf16.mxu0 %vm9271_vm9, %v9025_v36  ;;  %vm9273_vm1 = vmpackc.low %vm9227_vm0, %vm9272_vm4  ;;  %vm292_vm9 = vcmp.eq.s32.totalorder %v6708_v31, %v5592_v29  ;;  %vm358_vm4 = vcmp.eq.s32.totalorder %v6710_v40, %v5595_v30  ;;  %vm355_vm0 = vcmp.eq.s32.totalorder %v6698_v8, %v5607_v39 }
 0x395   :  { %4920 = vmatprep.subr.msk.bf16.mxu1 %vm9273_vm1, %v9025_v36  ;;  %vm9281_vm3 = vmpackc.low %vm9279_vm11, %vm9280_vm6  ;;  %vm9288_vm6 = vnez %v9212_v55 }
 0x396   :  { %4866 = vmatpush1.bf16.msk.msra.mxu0 %vm9281_vm3, %v9025_v36  ;;  %vm9284_vm12 = vmpackc.low %vm9282_vm8, %vm9283_vm5  ;;  %vm9287_vm3 = vnez %v9216_v5  ;;  %vm9290_vm8 = vnez %v9162_v43  ;;  %vm294_vm5 = vcmp.eq.s32.totalorder %v6756_v13, %v5592_v29  ;;  %v9296_v43 = vmov 0 }
 0x397   :  { %4922 = vmatpush1.bf16.msk.msra.mxu1 %vm9284_vm12, %v9025_v36  ;;  %vm6792_vm1 = vmand %vm290_vm10, %vm356_vm14  ;;  %vm360_vm10 = vcmp.eq.s32.totalorder %v6758_v41, %v5595_v30 }
 0x398   :  { %v9286_v20 = vsel %vm6792_vm1, 4294967295, %v9285_v20  ;;  %vm9289_vm11 = vmpackc.low %vm9287_vm3, %vm9288_vm6 }
 0x399   :  { %4868 = vmatprep.subr.msk.bf16.mxu0 %vm9289_vm11, %v9025_v36  ;;  %vm9291_vm12 = vmpackc.low %vm9244_vm2, %vm9290_vm8  ;;  %vm296_vm11 = vcmp.eq.s32.totalorder %v6768_v7, %v5592_v29  ;;  %vm362_vm2 = vcmp.eq.s32.totalorder %v6770_v21, %v5595_v30  ;;  %vm9299_vm8 = vnez %v9235_v17 }
 0x39a   :  { %4924 = vmatprep.subr.msk.bf16.mxu1 %vm9291_vm12, %v9025_v36  ;;  %vm6812_vm14 = vmand %vm292_vm9, %vm358_vm4  ;;  %vm9298_vm4 = vnez %v9243_v45 }
 0x39b   :  { %v9293_v48 = vsel %vm6812_vm14, 4294967295, %v9292_v48  ;;  %vm6820_vm1 = vmand %vm289_vm13, %vm355_vm0  ;;  %vm9301_vm13 = vnez %v9186_v52  ;;  %vm9302_vm0 = vnez %v9173_v46 }
 0x39c   :  { %v9295_v27 = vsel %vm6820_vm1, 4294967295, %v9294_v27  ;;  %vm6828_vm9 = vmand %vm291_vm15, %vm357_vm7  ;;  %vm9306_vm15 = vnez %v9255_v18  ;;  %vm9307_vm7 = vnez %v9250_v15  ;;  %vm9322_vm1 = vnez %v9286_v20 }
 0x39d   :  { %v9297_v43 = vsel %vm6828_vm9, 4294967295, %v9296_v43  ;;  %vm9300_vm12 = vmpackc.low %vm9298_vm4, %vm9299_vm8  ;;  %vm9310_vm8 = vnez %v9190_v61 }
 0x39e   :  { %4870 = vmatpush1.bf16.msk.msra.mxu0 %vm9300_vm12, %v9025_v36  ;;  %vm9303_vm6 = vmpackc.low %vm9301_vm13, %vm9302_vm0  ;;  %vm9309_vm12 = vnez %v9193_v16  ;;  %vm9316_vm0 = vnez %v9268_v24 }
 0x39f   :  { %4926 = vmatpush1.bf16.msk.msra.mxu1 %vm9303_vm6, %v9025_v36  ;;  %vm6844_vm3 = vmand %vm294_vm5, %vm360_vm10  ;;  %vm293_vm10 = vcmp.eq.s32.totalorder %v6756_v13, %v5604_v37 }
 0x3a0   :  { %vm9308_vm9 = vmpackc.low %vm9306_vm15, %vm9307_vm7  ;;  %vm9319_vm7 = vnez %v9210_v35  ;;  %vm9320_vm15 = vnez %v9201_v28  ;;  %v169_v28 = vadd.s32 240, %v5576_v63 }
 0x3a1   :  { %4872 = vmatprep.subr.msk.bf16.mxu0 %vm9308_vm9, %v9025_v36  ;;  %vm9311_vm4 = vmpackc.low %vm9309_vm12, %vm9310_vm8  ;;  %vm359_vm9 = vcmp.eq.s32.totalorder %v6758_v41, %v5607_v39  ;;  %vm9317_vm12 = vnez %v9259_v4 }
 0x3a2   :  { %4928 = vmatprep.subr.msk.bf16.mxu1 %vm9311_vm4, %v9025_v36  ;;  %vm6860_vm13 = vmand %vm296_vm11, %vm362_vm2  ;;  %vm295_vm11 = vcmp.eq.s32.totalorder %v6768_v7, %v5604_v37  ;;  %vm361_vm2 = vcmp.eq.s32.totalorder %v6770_v21, %v5607_v39  ;;  %v6954_v61 = vand.u32 15, %v169_v28 }
 0x3a3   :  { %vm9318_vm5 = vmpackc.low %vm9316_vm0, %vm9317_vm12  ;;  %vm9325_vm12 = vnez %v9212_v55 }
 0x3a4   :  { %4874 = vmatpush1.bf16.msk.msra.mxu0 %vm9318_vm5, %v9025_v36  ;;  %vm9321_vm6 = vmpackc.low %vm9319_vm7, %vm9320_vm15  ;;  %vm9324_vm5 = vnez %v9216_v5  ;;  %v170_v5 = vadd.s32 248, %v5576_v63  ;;  %9345 = vst [vmem:[#allocation71_spill] sm:$0xff] %v6954_v61 }
 0x3a5   :  { %4930 = vmatpush1.bf16.msk.msra.mxu1 %vm9321_vm6, %v9025_v36  ;;  %vm4879_vm4 = vmpackc.low %vm6860_vm13, %vm6844_vm3  ;;  %vm9327_vm6 = vnez %v9297_v43  ;;  %vm9328_vm3 = vnez %v9295_v27 }
 0x3a6   :  { %vm9323_vm8 = vmpackc.low %vm6812_vm14, %vm9322_vm1  ;;  %vm9330_vm1 = vnez %v9243_v45  ;;  %v6952_v52 = vshra.s32 %v170_v5, 4  ;;  %v6956_v16 = vand.u32 15, %v170_v5 }
 0x3a7   :  { %4876 = vmatprep.subr.msk.bf16.mxu0 %vm9323_vm8, %v9025_v36  ;;  %vm9326_vm0 = vmpackc.low %vm9324_vm5, %vm9325_vm12  ;;  %vm9331_vm8 = vnez %v9235_v17  ;;  %vm9337_vm12 = vnez %v9259_v4  ;;  %v6950_v4 = vshra.s32 %v169_v28, 4 }
 0x3a8   :  { %4932 = vmatprep.subr.msk.bf16.mxu1 %vm9326_vm0, %v9025_v36  ;;  %vm423_vm15 = vmand %vm293_vm10, %vm359_vm9  ;;  %vm9333_vm10 = vnez %v9255_v18  ;;  %vm9334_vm9 = vnez %v9250_v15  ;;  %vm9336_vm0 = vnez %v9268_v24  ;;  %9344 = vst [vmem:[#allocation70_spill] sm:$0xff] %v6952_v52 }
 0x3a9   :  { %vm425_vm7 = vmand %vm295_vm11, %vm361_vm2  ;;  %9343 = vst [vmem:[#allocation69_spill] sm:$0xff] %v6950_v4 }
 0x3aa   :  { %vm9329_vm13 = vmpackc.low %vm9327_vm6, %vm9328_vm3  ;;  %9346 = vst [vmem:[#allocation72_spill] sm:$0xff] %v6956_v16 }
 0x3ab   :  { %4878 = vmatpush1.bf16.msk.msra.mxu0 %vm9329_vm13, %v9025_v36  ;;  %vm9332_vm14 = vmpackc.low %vm9330_vm1, %vm9331_vm8  ;;  %vm9339_vm1 = vnez %v9293_v48 }
 0x3ac   :  { %4934 = vmatpush1.bf16.msk.msra.mxu1 %vm9332_vm14, %v9025_v36  ;;  %4880 = vmatprep.subr.msk.bf16.mxu0 %vm4879_vm4, %v9025_v36  ;;  %vm9335_vm11 = vmpackc.low %vm9333_vm10, %vm9334_vm9  ;;  %vm9340_vm14 = vnez %v9286_v20  ;;  %vm297_vm10 = vcmp.eq.s32.totalorder %v6950_v4, %v5604_v37  ;;  %vm363_vm9 = vcmp.eq.s32.totalorder %v6954_v61, %v5607_v39  ;;  %v9347_v20 = vmov 0.0  }
 0x3ad   :  { %4936 = vmatprep.subr.msk.bf16.mxu1 %vm9335_vm11, %v9025_v36  ;;  %vm4881_vm2 = vmpackc.low %vm425_vm7, %vm423_vm15  ;;  %vm298_vm7 = vcmp.eq.s32.totalorder %v6950_v4, %v5592_v29 }
 0x3ae   :  { %vm9338_vm5 = vmpackc.low %vm9336_vm0, %vm9337_vm12  ;;  %vm365_vm0 = vcmp.eq.s32.totalorder %v6956_v16, %v5607_v39  ;;  %v6978_v39 = vld [vmem:[#allocation2 + $0x28] sm:$0xff] }
 0x3af   :  { %4882 = vmatpush1.bf16.msk.msra.mxu0 %vm4881_vm2, %v9025_v36  ;;  %vm9341_vm13 = vmpackc.low %vm9339_vm1, %vm9340_vm14 }
 0x3b0   :  { %4938 = vmatpush1.bf16.msk.msra.mxu1 %vm9338_vm5, %v9025_v36  ;;  %vm9342_vm15 = vmpackc.low %vm9327_vm6, %vm9328_vm3  ;;  %vm364_vm6 = vcmp.eq.s32.totalorder %v6954_v61, %v5595_v30  ;;  %vm366_vm3 = vcmp.eq.s32.totalorder %v6956_v16, %v5595_v30  ;;  %v2105_v61 = vld [vmem:[#allocation2 + $0x28] sm:$0xf] }
 0x3b1   :  { %4940 = vmatprep.subr.msk.bf16.mxu1 %vm9341_vm13, %v9025_v36  ;;  %vm428_vm8 = vmand %vm298_vm7, %vm364_vm6  ;;  %vm90_vm13 = vcmp.lt.s32.totalorder %v5443_v51, 6  ;;  %vm91_vm7 = vcmp.lt.s32.totalorder %v5448_v53, 6  ;;  %v2115_v4 = vrot.slane %v2105_v61, 4 }
 0x3b2   :  { %vm427_vm5 = vmand %vm297_vm10, %vm363_vm9  ;;  %vm96_vm10 = vcmp.lt.s32.totalorder %v5456_v57, 6  ;;  %vm93_vm9 = vcmp.lt.s32.totalorder %v5460_v58, 6 }
 0x3b4   :  { %4942 = vmatpush1.bf16.msk.msra.mxu1 %vm9342_vm15, %v9025_v36  ;;  %vm94_vm15 = vcmp.lt.s32.totalorder %v5445_v0, 6 }
 0x3b5   :  { %4944 = vmatprep.subr.msk.bf16.mxu1 %vm4879_vm4, %v9025_v36  ;;  %vm300_vm4 = vcmp.eq.s32.totalorder %v6952_v52, %v5592_v29  ;;  %vm98_vm6 = vmand %vm90_vm13, %vm94_vm15  ;;  %vm9358_vm13 = vcmask 908288  }
 0x3b6   :  { %vm430_vm11 = vmand %vm300_vm4, %vm366_vm3  ;;  %vm95_vm4 = vcmp.lt.s32.totalorder %v5450_v54, 6  ;;  %v6987_v48 = vsel %vm98_vm6, 1.0, %v9347_v20 }
 0x3b7   :  { %vm4883_vm12 = vmpackc.low %vm430_vm11, %vm428_vm8  ;;  %9348 = vst [vmem:[#allocation73_spill] sm:$0xff] %v6987_v48  ;;  %vm92_vm8 = vcmp.lt.s32.totalorder %v5454_v56, 6  ;;  %vm97_vm11 = vcmp.lt.s32.totalorder %v5462_v59, 6 }
 0x3b8   :  { %4946 = vmatpush1.bf16.msk.msra.mxu1 %vm4881_vm2, %v9025_v36  ;;  %vm299_vm2 = vcmp.eq.s32.totalorder %v6952_v52, %v5604_v37  ;;  %4884 = vmatprep.subr.msk.bf16.mxu0 %vm4883_vm12, %v9025_v36  ;;  %vm99_vm3 = vmand %vm91_vm7, %vm95_vm4  ;;  %vm9360_vm7 = vcmask 1039360  }
 0x3b9   :  { %4948 = vmatprep.subr.msk.bf16.mxu1 %vm4883_vm12, %v9025_v36  ;;  %vm429_vm1 = vmand %vm299_vm2, %vm365_vm0  ;;  %v6990_v27 = vsel %vm99_vm3, 1.0, %v9347_v20  ;;  %vm9354_vm12 = vcmask 1031168   ;;  %vm9363_vm3 = vcmask 785408  }
 0x3ba   :  { %vm4885_vm14 = vmpackc.low %vm429_vm1, %vm427_vm5  ;;  %9349 = vst [vmem:[#allocation74_spill] sm:$0xff] %v6990_v27 }
 0x3bb   :  { %4886 = vmatpush1.bf16.msk.msra.mxu0 %vm4885_vm14, %v9025_v36  ;;  %vm100_vm2 = vmand %vm92_vm8, %vm96_vm10 }
 0x3bc   :  { %4950 = vmatpush1.bf16.msk.msra.mxu1 %vm4885_vm14, %v9025_v36  ;;  %vm101_vm0 = vmand %vm93_vm9, %vm97_vm11 }
 0x3bd   :  { %vm9355_vm5 = vmmov %vm9354_vm12 }
 0x3be   :  { %vm9356_vm1 = vmmov %vm9355_vm5 }
 0x3bf   :  { %vm9357_vm14 = vmmov %vm9356_vm1 }
 0x3c0   :  { %vm9359_vm15 = vmmov %vm9358_vm13 }
 0x3c1   :  { %vm9361_vm4 = vmmov %vm9358_vm13 }
 0x3c2   :  { %vm9362_vm6 = vmmov %vm9361_vm4 }
 0x3c3   :  { %vm9364_vm8 = vmmov %vm9363_vm3 }
 0x3c4   :  { %vm9365_vm10 = vmmov %vm9363_vm3 }
 0x3c5   :  { %vm9366_vm9 = vmmov %vm9363_vm3 }
 0x3c6   :  { %vm9367_vm11 = vmmov %vm9360_vm7 }
 0x41e   :  { %v1868_v29 = vpop.f32.mrb[4].mxu0 }
 0x41f   :  { %v1916_v30 = vpack.c.bf16 %v1868_v29, %v1868_v29  ;;  %v1870_v35 = vpop.f32.mrb[5].mxu0 }
 0x420   :  { %v1917_v55 = vpack.c.bf16 %v1870_v35, %v1870_v35  ;;  %v1872_v37 = vpop.f32.mrb[6].mxu0 }
 0x421   :  { %v1873_v62 = vpop.f32.mrb[7].mxu0  ;;  %v7007_v37 = vsel %vm100_vm2, 1.0, %v9347_v20  ;;  %vm9368_vm2 = vmmov %vm9360_vm7 }
 0x422   :  { %1950 = vmatprep.mubr.bf16.mxu0 %v1917_v55  ;;  %9350 = vst [vmem:[#allocation75_spill] sm:$0xff] %v7007_v37 }
 0x423   :  { %1951 = vmatmul.mubr.bf16.vlgmr.msra.gmra.mrb[8].mxu0 %v1916_v30 }
 0x424   :  { %2461 = vmatprep.mubr.bf16.mxu0 %v6978_v39 }
 0x42a   :  { %v1909_v17 = vpop.f32.mrb[4].mxu1 }
 0x42b   :  { %v1911_v45 = vpop.f32.mrb[5].mxu1  ;;  %v1961_v18 = vpack.c.bf16 %v1909_v17, %v1909_v17  ;;  %v7010_v17 = vsel %vm101_vm0, 1.0, %v9347_v20  ;;  %vm9369_vm0 = vmmov %vm9368_vm2 }
 0x42c   :  { %v1962_v15 = vpack.c.bf16 %v1911_v45, %v1911_v45  ;;  %v1913_v6 = vpop.f32.mrb[6].mxu1  ;;  %9351 = vst [vmem:[#allocation76_spill] sm:$0xff] %v7010_v17 }
 0x42d   :  { %v1914_v24 = vpop.f32.mrb[7].mxu1 }
 0x42e   :  { %1995 = vmatprep.mubr.bf16.mxu1 %v1962_v15 }
 0x42f   :  { %1996 = vmatmul.mubr.bf16.vlgmr.msra.gmra.mrb[8].mxu1 %v1961_v18 }
 0x430   :  { %2514 = vmatprep.mubr.bf16.mxu1 %v6978_v39 }
 0x4f6   :  { %v6992_v43 = vpop.f32.mrb[8].mxu0 }
 0x4f7   :  { %v2010_v11 = vmul.f32 %v6992_v43, %v6987_v48  ;;  %v6998_v46 = vpop.f32.mrb[9].mxu0 }
 0x4f8   :  { %v2011_v28 = vmul.f32 %v6998_v46, %v6990_v27  ;;  %v1956_v5 = vpop.f32.mrb[10].mxu0 }
 0x4f9   :  { %v2020_v29 = vmul.f32 %v2010_v11, %v6992_v43  ;;  %v1957_v30 = vpop.f32.mrb[11].mxu0 }
 0x4fa   :  { %v2021_v35 = vmul.f32 %v2011_v28, %v6998_v46  ;;  %v2014_v55 = vadd.f32 %v2011_v28, %v2010_v11 }
 0x4fc   :  { %v2024_v62 = vadd.f32 %v2021_v35, %v2020_v29  ;;  %v2043_v29 = vld [vmem:[%s8714_s4] sm:$0xff]  ;;  %v9352_v35 = vmov 1  }
 0x502   :  { %v1997_v45 = vpop.f32.mrb[8].mxu1 }
 0x503   :  { %v2012_v15 = vmul.f32 %v1997_v45, %v7007_v37  ;;  %v1999_v6 = vpop.f32.mrb[9].mxu1 }
 0x504   :  { %v2001_v18 = vpop.f32.mrb[10].mxu1  ;;  %v2013_v24 = vmul.f32 %v1999_v6, %v7010_v17 }
 0x505   :  { %v2022_v5 = vmul.f32 %v2012_v15, %v1997_v45  ;;  %v2002_v30 = vpop.f32.mrb[11].mxu1  ;;  %v2015_v63 = vadd.f32 %v2014_v55, %v2012_v15  ;;  %v9353_v18 = vmov 2   ;;  %v2142_v55 = vld [vmem:[#allocation2 + $0x28] sm:$0xf] }
 0x506   :  { %v2023_v16 = vmul.f32 %v2013_v24, %v1999_v6 }
 0x507   :  { %v2016_v52 = vadd.f32 %v2015_v63, %v2013_v24  ;;  %v2025_v11 = vadd.f32 %v2024_v62, %v2022_v5  ;;  %v2174_v63 = vld [vmem:[#allocation2 + $0x28] sm:$0xf] }
 0x508   :  { %v2243_v62 = vld [vmem:[#allocation2 + $0x28] sm:$0xf] }
 0x509   :  { %2017 = vadd.xlane.f32.xlu0 %v2016_v52  ;;  %v2026_v28 = vadd.f32 %v2025_v11, %v2023_v16  ;;  %v2184_v52 = vrot.slane %v2174_v63, 4  ;;  %v2211_v16 = vld [vmem:[#allocation2 + $0x28] sm:$0xf]  ;;  %v2253_v15 = vrot.slane %v2243_v62, 4 }
 0x50a   :  { %v2280_v24 = vld [vmem:[#allocation2 + $0x28] sm:$0xf] }
 0x50b   :  { %2027 = vadd.xlane.f32.xlu1 %v2026_v28  ;;  %v2312_v5 = vld [vmem:[#allocation2 + $0x28] sm:$0xf] }
 0x50c   :  { %v2322_v61 = vrot.slane %v2312_v5, 4 }
 0x51c   :  { %2054 = vperm.xlu1 %5131, %v2043_v29  }
 0x51f   :  { %2046 = vperm.xlu0 %5130, %v2043_v29  }
 0x520   :  { %5132 = vset.pattern.permute.xlu1 %v9352_v35 }
 0x523   :  { %5135 = vset.pattern.permute.xlu0 %v9353_v18 }
 0x524   :  { %2124 = vrot.lane.b32.xlu0 %v2115_v4, %s5241_s16 }
 0x528   :  { %2156 = vrot.lane.b32.xlu0 %v2142_v55, %s5242_s17 }
 0x52c   :  { %2193 = vrot.lane.b32.xlu0 %v2184_v52, %s5243_s0 }
 0x530   :  { %2225 = vrot.lane.b32.xlu0 %v2211_v16, %s5244_s18 }
 0x534   :  { %2262 = vrot.lane.b32.xlu0 %v2253_v15, %s5245_s19 }
 0x538   :  { %2294 = vrot.lane.b32.xlu0 %v2280_v24, %s5246_s20 }
 0x53c   :  { %2331 = vrot.lane.b32.xlu0 %v2322_v61, %s5247_s21 }
 0x596   :  { %v2018_v4 = vpop.xlane.xlu0 %2017 }
 0x597   :  { %v2019_v30 = vmul.f32 0.013888889, %v2018_v4 }
 0x598   :  { %v2028_v11 = vpop.xlane.xlu1 %2027 }
 0x599   :  { %v2029_v28 = vmul.f32 0.013888889, %v2028_v11  ;;  %v2030_v29 = vmul.f32 %v2019_v30, %v2019_v30  ;;  %v2033_v16 = vsub.f32 %v6992_v43, %v2019_v30  ;;  %v2034_v62 = vsub.f32 %v6998_v46, %v2019_v30 }
 0x59a   :  { %v2035_v15 = vsub.f32 %v1997_v45, %v2019_v30  ;;  %v2036_v21 = vsub.f32 %v1999_v6, %v2019_v30 }
 0x59b   :  { %v2031_v55 = vsub.f32 %v2029_v28, %v2030_v29 }
 0x59c   :  { %v2055_v28 = vpop.permute.xlu1 %2054 }
 0x59d   :  { %v2032_v63 = vmax.f32 %v2031_v55, 0.0 }
 0x59e   :  { %v2047_v13 = vpop.permute.xlu0 %2046 }
 0x59f   :  { %v2037_v52 = vadd.f32 1e-05, %v2032_v63 }
 0x5a1   :  { %5190 = vrsqrt.f32 %v2037_v52 }
 0x5ab   :  { %v5191_v7 = vpop.eup %5190 }
 0x5ac   :  { %v2039_v24 = vmul.f32 %v5191_v7, %v2033_v16  ;;  %v2040_v5 = vmul.f32 %v5191_v7, %v2034_v62  ;;  %v2041_v41 = vmul.f32 %v5191_v7, %v2035_v15  ;;  %v2042_v61 = vmul.f32 %v5191_v7, %v2036_v21 }
 0x5ae   :  { %v2049_v4 = vmul.f32 %v2047_v13, %v2039_v24  ;;  %v2050_v40 = vmul.f32 %v2047_v13, %v2040_v5  ;;  %v2051_v11 = vmul.f32 %v2047_v13, %v2041_v41  ;;  %v2052_v31 = vmul.f32 %v2047_v13, %v2042_v61 }
 0x5b0   :  { %v2057_v29 = vadd.f32 %v2055_v28, %v2049_v4  ;;  %v2058_v55 = vadd.f32 %v2055_v28, %v2050_v40  ;;  %v2059_v63 = vadd.f32 %v2055_v28, %v2051_v11  ;;  %v2060_v52 = vadd.f32 %v2055_v28, %v2052_v31 }
 0x5b2   :  { %v2061_v43 = vmul.f32 0.5, %v2057_v29  ;;  %v2062_v8 = vmul.f32 0.5, %v2058_v55  ;;  %v2063_v46 = vmul.f32 0.5, %v2059_v63  ;;  %v2064_v45 = vmul.f32 0.5, %v2060_v52 }
 0x5b4   :  { %5192 = vtanh.f32 %v2061_v43 }
 0x5b5   :  { %5194 = vtanh.f32 %v2062_v8 }
 0x5b6   :  { %5196 = vtanh.f32 %v2063_v46 }
 0x5b7   :  { %5198 = vtanh.f32 %v2064_v45 }
 0x5be   :  { %v5193_v6 = vpop.eup %5192 }
 0x5bf   :  { %v5195_v7 = vpop.eup %5194  ;;  %v2069_v21 = vadd.f32 1.0, %v5193_v6 }
 0x5c0   :  { %v5197_v30 = vpop.eup %5196  ;;  %v2070_v16 = vadd.f32 1.0, %v5195_v7 }
 0x5c1   :  { %v5199_v41 = vpop.eup %5198  ;;  %v2071_v13 = vadd.f32 1.0, %v5197_v30  ;;  %v2073_v62 = vmul.f32 0.5, %v2069_v21 }
 0x5c2   :  { %v2072_v15 = vadd.f32 1.0, %v5199_v41  ;;  %v2074_v40 = vmul.f32 0.5, %v2070_v16 }
 0x5c3   :  { %v2075_v24 = vmul.f32 0.5, %v2071_v13  ;;  %v2077_v31 = vmul.f32 %v2073_v62, %v2057_v29 }
 0x5c4   :  { %v2076_v5 = vmul.f32 0.5, %v2072_v15  ;;  %v2078_v61 = vmul.f32 %v2074_v40, %v2058_v55 }
 0x5c5   :  { %v2079_v4 = vmul.f32 %v2075_v24, %v2059_v63  ;;  %v2081_v11 = vmul.f32 %v2077_v31, %v6987_v48 }
 0x5c6   :  { %v2080_v8 = vmul.f32 %v2076_v5, %v2060_v52  ;;  %v2082_v28 = vmul.f32 %v2078_v61, %v6990_v27 }
 0x5c7   :  { %v2083_v43 = vmul.f32 %v2079_v4, %v7007_v37  ;;  %v2085_v46 = vpack.c.bf16 %v2081_v11, %v2081_v11 }
 0x5c8   :  { %v2084_v45 = vmul.f32 %v2080_v8, %v7010_v17  ;;  %v2086_v6 = vpack.c.bf16 %v2082_v28, %v2082_v28 }
 0x5c9   :  { %v2087_v7 = vpack.c.bf16 %v2083_v43, %v2083_v43  ;;  %2089 = vst [vmem:[#allocation2 + $0x8] sm:$0xf] %v2085_v46 }
 0x5ca   :  { %v2088_v21 = vpack.c.bf16 %v2084_v45, %v2084_v45  ;;  %2090 = vst [vmem:[#allocation2 + $0x10] sm:$0xf] %v2086_v6 }
 0x5cb   :  { %2091 = vst [vmem:[#allocation2 + $0x18] sm:$0xf] %v2087_v7 }
 0x5cc   :  { %2092 = vst [vmem:[#allocation2 + $0x20] sm:$0xf] %v2088_v21 }
 0x5d0   :  { %v2138_v63 = vld [vmem:[#allocation2 + $0x8] sm:$0xf] }
 0x5d1   :  { %v2139_v29 = vld [vmem:[#allocation2 + $0x10] sm:$0xf]  ;;  %v2101_v15 = vld [vmem:[#allocation2 + $0x8] sm:$0xf] }
 0x5d2   :  { %v2140_v55 = vld [vmem:[#allocation2 + $0x18] sm:$0xf]  ;;  %2150 = vrot.lane.b32.xlu1 %v2139_v29, %s5242_s17  ;;  %v2102_v41 = vld [vmem:[#allocation2 + $0x10] sm:$0xf]  ;;  %v2093_v24 = vld [vmem:[#allocation2 + $0x8] sm:$0xf] }
 0x5d3   :  { %2152 = vrot.lane.b32.xlu0 %v2140_v55, %s5242_s17  ;;  %v2209_v52 = vld [vmem:[#allocation2 + $0x18] sm:$0xf]  ;;  %v2141_v30 = vld [vmem:[#allocation2 + $0x20] sm:$0xf]  ;;  %v2112_v13 = vrot.slane %v2102_v41, 4  ;;  %v2111_v4 = vrot.slane %v2101_v15, 4 }
 0x5d4   :  { %v2278_v16 = vld [vmem:[#allocation2 + $0x18] sm:$0xf]  ;;  %v2208_v62 = vld [vmem:[#allocation2 + $0x10] sm:$0xf]  ;;  %2097 = vst [vmem:[#allocation3] sm:$0xf] %v2093_v24 }
 0x5d5   :  { %v2094_v40 = vld [vmem:[#allocation2 + $0x10] sm:$0xf]  ;;  %v2096_v31 = vld [vmem:[#allocation2 + $0x20] sm:$0xf]  ;;  %v2095_v5 = vld [vmem:[#allocation2 + $0x18] sm:$0xf] }
 0x5d6   :  { %2148 = vrot.lane.b32.xlu1 %v2138_v63, %s5242_s17  ;;  %2098 = vst [vmem:[#allocation3 + $0x8] sm:$0xf] %v2094_v40  ;;  %2100 = vst [vmem:[#allocation3 + $0x18] sm:$0xf] %v2096_v31  ;;  %v2207_v61 = vld [vmem:[#allocation2 + $0x8] sm:$0xf] }
 0x5d7   :  { %2221 = vrot.lane.b32.xlu0 %v2209_v52, %s5244_s18  ;;  %2099 = vst [vmem:[#allocation3 + $0x10] sm:$0xf] %v2095_v5  ;;  %v2172_v11 = vld [vmem:[#allocation2 + $0x18] sm:$0xf]  ;;  %v2210_v8 = vld [vmem:[#allocation2 + $0x20] sm:$0xf] }
 0x5d8   :  { %v2182_v28 = vrot.slane %v2172_v11, 4  ;;  %v2170_v43 = vld [vmem:[#allocation2 + $0x8] sm:$0xf]  ;;  %v2277_v46 = vld [vmem:[#allocation2 + $0x10] sm:$0xf] }
 0x5d9   :  { %v2180_v45 = vrot.slane %v2170_v43, 4  ;;  %v2241_v6 = vld [vmem:[#allocation2 + $0x18] sm:$0xf]  ;;  %v2276_v7 = vld [vmem:[#allocation2 + $0x8] sm:$0xf] }
 0x5da   :  { %2154 = vrot.lane.b32.xlu1 %v2141_v30, %s5242_s17  ;;  %v2251_v21 = vrot.slane %v2241_v6, 4  ;;  %v2239_v29 = vld [vmem:[#allocation2 + $0x8] sm:$0xf]  ;;  %v2279_v55 = vld [vmem:[#allocation2 + $0x20] sm:$0xf] }
 0x5db   :  { %2290 = vrot.lane.b32.xlu0 %v2278_v16, %s5246_s20  ;;  %v2249_v63 = vrot.slane %v2239_v29, 4  ;;  %v2310_v52 = vld [vmem:[#allocation2 + $0x18] sm:$0xf]  ;;  %v2345_v30 = vld [vmem:[#allocation2 + $0x8] sm:$0xf] }
 0x5dc   :  { %v2320_v16 = vrot.slane %v2310_v52, 4  ;;  %v2103_v41 = vld [vmem:[#allocation2 + $0x18] sm:$0xf]  ;;  %v2104_v40 = vld [vmem:[#allocation2 + $0x20] sm:$0xf]  ;;  %v7064_v52 = vpop.permute.xlu0 %2124 }
 0x5dd   :  { %v2114_v24 = vrot.slane %v2104_v40, 4  ;;  %v2171_v31 = vld [vmem:[#allocation2 + $0x10] sm:$0xf]  ;;  %v2348_v11 = vld [vmem:[#allocation2 + $0x20] sm:$0xf] }
 0x5de   :  { %2219 = vrot.lane.b32.xlu1 %v2208_v62, %s5244_s18  ;;  %v2113_v62 = vrot.slane %v2103_v41, 4  ;;  %v2346_v5 = vld [vmem:[#allocation2 + $0x10] sm:$0xf]  ;;  %v2311_v29 = vld [vmem:[#allocation2 + $0x20] sm:$0xf] }
 0x5df   :  { %2118 = vrot.lane.b32.xlu0 %v2112_v13, %s5241_s16  ;;  %v2308_v13 = vld [vmem:[#allocation2 + $0x8] sm:$0xf]  ;;  %v2309_v6 = vld [vmem:[#allocation2 + $0x10] sm:$0xf]  ;;  %v2667_v41 = vld [vmem:[%s8716_s6] sm:$0xff] }
 0x5e0   :  { %v2318_v15 = vrot.slane %v2308_v13, 4  ;;  %v2669_v13 = vld [vmem:[%s8716_s6 + $0x10] sm:$0xff] }
 0x5e2   :  { %2217 = vrot.lane.b32.xlu1 %v2207_v61, %s5244_s18  ;;  %v2181_v61 = vrot.slane %v2171_v31, 4 }
 0x5e3   :  { %2116 = vrot.lane.b32.xlu0 %v2111_v4, %s5241_s16  ;;  %v2173_v4 = vld [vmem:[#allocation2 + $0x20] sm:$0xf] }
 0x5e6   :  { %2223 = vrot.lane.b32.xlu1 %v2210_v8, %s5244_s18  ;;  %v2183_v8 = vrot.slane %v2173_v4, 4 }
 0x5e7   :  { %2189 = vrot.lane.b32.xlu0 %v2182_v28, %s5243_s0  ;;  %v2240_v28 = vld [vmem:[#allocation2 + $0x10] sm:$0xf] }
 0x5e8   :  { %v2250_v43 = vrot.slane %v2240_v28, 4 }
 0x5ea   :  { %2288 = vrot.lane.b32.xlu1 %v2277_v46, %s5246_s20  ;;  %v2242_v46 = vld [vmem:[#allocation2 + $0x20] sm:$0xf] }
 0x5eb   :  { %2185 = vrot.lane.b32.xlu0 %v2180_v45, %s5243_s0  ;;  %v2252_v45 = vrot.slane %v2242_v46, 4 }
 0x5ee   :  { %2286 = vrot.lane.b32.xlu1 %v2276_v7, %s5246_s20  ;;  %v2319_v7 = vrot.slane %v2309_v6, 4 }
 0x5ef   :  { %2258 = vrot.lane.b32.xlu0 %v2251_v21, %s5245_s19  ;;  %v2347_v21 = vld [vmem:[#allocation2 + $0x18] sm:$0xf] }
 0x5f2   :  { %2292 = vrot.lane.b32.xlu1 %v2279_v55, %s5246_s20  ;;  %v2321_v55 = vrot.slane %v2311_v29, 4 }
 0x5f3   :  { %2254 = vrot.lane.b32.xlu0 %v2249_v63, %s5245_s19  ;;  %v2349_v63 = vld [vmem:[#allocation2 + $0x28] sm:$0xf] }
 0x5f6   :  { %2355 = vrot.lane.b32.xlu1 %v2345_v30, %s5248_s22  ;;  %v2157_v30 = vpop.permute.xlu0 %2156 }
 0x5f7   :  { %2327 = vrot.lane.b32.xlu0 %v2320_v16, %s5247_s21 }
 0x5fa   :  { %2120 = vrot.lane.b32.xlu1 %v2113_v62, %s5241_s16  ;;  %v7067_v16 = vpop.permute.xlu0 %2193 }
 0x5fb   :  { %2323 = vrot.lane.b32.xlu0 %v2318_v15, %s5247_s21  ;;  %v2668_v15 = vld [vmem:[%s8716_s6 + $0x8] sm:$0xff] }
 0x5fe   :  { %2122 = vrot.lane.b32.xlu1 %v2114_v24, %s5241_s16  ;;  %v2226_v62 = vpop.permute.xlu0 %2225  ;;  %v2670_v24 = vld [vmem:[%s8716_s6 + $0x18] sm:$0xff] }
 0x5ff   :  { %2357 = vrot.lane.b32.xlu0 %v2346_v5, %s5248_s22  ;;  %v7089_v5 = vpack.i.bf16 %v6978_v39, %v6978_v39 }
 0x602   :  { %2187 = vrot.lane.b32.xlu1 %v2181_v61, %s5243_s0  ;;  %v7080_v40 = vpop.permute.xlu0 %2262 }
 0x603   :  { %2361 = vrot.lane.b32.xlu0 %v2348_v11, %s5248_s22 }
 0x606   :  { %2191 = vrot.lane.b32.xlu1 %v2183_v8, %s5243_s0  ;;  %v2295_v31 = vpop.permute.xlu0 %2294  ;;  %s5253_s0 = smov 34  }
 0x607   :  { %2716 = vperm.xlu0 %5135, %v2669_v13  }
 0x60a   :  { %2256 = vrot.lane.b32.xlu1 %v2250_v43, %s5245_s19  ;;  %v7091_v61 = vpop.permute.xlu0 %2331 }
 0x60b   :  { %5136 = vset.pattern.permute.xlu0 %v9352_v35 }
 0x60c   :  { %2678 = vperm.xlu0 %5136, %v2668_v15  }
 0x60e   :  { %2260 = vrot.lane.b32.xlu1 %v2252_v45, %s5245_s19 }
 0x610   :  { %2683 = vperm.xlu0 %5136, %v2669_v13  }
 0x612   :  { %2325 = vrot.lane.b32.xlu1 %v2319_v7, %s5247_s21 }
 0x616   :  { %2359 = vrot.lane.b32.xlu1 %v2347_v21, %s5248_s22 }
 0x61a   :  { %2329 = vrot.lane.b32.xlu1 %v2321_v55, %s5247_s21  ;;  %s5255_s21 = smov 33  }
 0x61e   :  { %2363 = vrot.lane.b32.xlu1 %v2349_v63, %s5248_s22  ;;  %s5256_s22 = smov 17  }
 0x622   :  { %2673 = vperm.xlu1 %5132, %v2667_v41  }
 0x626   :  { %5133 = vset.pattern.permute.xlu1 %v9353_v18 }
 0x627   :  { %2708 = vperm.xlu1 %5133, %v2667_v41  }
 0x62b   :  { %2712 = vperm.xlu1 %5133, %v2668_v15  }
 0x62f   :  { %5134 = vset.pattern.permute.xlu1 %v9352_v35 }
 0x630   :  { %2688 = vperm.xlu1 %5134, %v2670_v24  }
 0x634   :  { %5137 = vset.pattern.permute.xlu1 %v9353_v18 }
 0x635   :  { %2720 = vperm.xlu1 %5137, %v2670_v24  }
 0x639   :  { %5139 = vrot.lane.b32.xlu1 %v7089_v5, %s5253_s0 }
 0x644   :  { %v2151_v4 = vpop.permute.xlu1 %2150 }
 0x645   :  { %v2153_v11 = vpop.permute.xlu0 %2152 }
 0x646   :  { %v2159_v8 = vsel %vm9354_vm12, %v2151_v4, %v2153_v11  ;;  %vm9370_vm12 = vcmask 769024  }
 0x647   :  { %2167 = vst [vmem:[#allocation3 + $0x28] sm:$0xf] %v2159_v8 }
 0x648   :  { %v2149_v35 = vpop.permute.xlu1 %2148 }
 0x649   :  { %v2158_v28 = vsel %vm9355_vm5, %v2149_v35, %v2151_v4  ;;  %v2222_v18 = vpop.permute.xlu0 %2221  ;;  %vm9371_vm5 = vcmask 916480  }
 0x64a   :  { %2166 = vst [vmem:[#allocation3 + $0x20] sm:$0xf] %v2158_v28 }
 0x64c   :  { %v2155_v43 = vpop.permute.xlu1 %2154 }
 0x64d   :  { %v2160_v46 = vsel %vm9356_vm1, %v2153_v11, %v2155_v43  ;;  %v2161_v45 = vsel %vm9357_vm14, %v2155_v43, %v2157_v30  ;;  %v2291_v6 = vpop.permute.xlu0 %2290  ;;  %vm9372_vm1 = vmmov %vm9371_vm5 }
 0x64e   :  { %2168 = vst [vmem:[#allocation3 + $0x30] sm:$0xf] %v2160_v46  ;;  %2169 = vst [vmem:[#allocation3 + $0x38] sm:$0xf] %v2161_v45 }
 0x64f   :  { %vm9373_vm14 = vmmov %vm9372_vm1 }
 0x650   :  { %v2220_v7 = vpop.permute.xlu1 %2219 }
 0x651   :  { %v2228_v21 = vsel %vm9358_vm13, %v2220_v7, %v2222_v18  ;;  %v2119_v29 = vpop.permute.xlu0 %2118  ;;  %vm9374_vm13 = vmmov %vm9372_vm1 }
 0x652   :  { %2236 = vst [vmem:[#allocation3 + $0x48] sm:$0xf] %v2228_v21 }
 0x654   :  { %v2218_v55 = vpop.permute.xlu1 %2217 }
 0x655   :  { %v2227_v63 = vsel %vm9359_vm15, %v2218_v55, %v2220_v7  ;;  %v2117_v41 = vpop.permute.xlu0 %2116  ;;  %vm9375_vm15 = vcmask 900096  }
 0x656   :  { %2235 = vst [vmem:[#allocation3 + $0x40] sm:$0xf] %v2227_v63  ;;  %v2126_v13 = vsel %vm9360_vm7, %v2117_v41, %v2119_v29  ;;  %vm9376_vm7 = vmmov %vm9375_vm15 }
 0x657   :  { %2134 = vst [vmem:[#allocation3] sm:$0xf0] %v2126_v13 }
 0x658   :  { %v2224_v15 = vpop.permute.xlu1 %2223 }
 0x659   :  { %v2229_v24 = vsel %vm9361_vm4, %v2222_v18, %v2224_v15  ;;  %v2230_v30 = vsel %vm9362_vm6, %v2224_v15, %v2226_v62  ;;  %v2190_v4 = vpop.permute.xlu0 %2189  ;;  %vm9377_vm4 = vmmov %vm9376_vm7 }
 0x65a   :  { %2237 = vst [vmem:[#allocation3 + $0x50] sm:$0xf] %v2229_v24  ;;  %2238 = vst [vmem:[#allocation3 + $0x58] sm:$0xf] %v2230_v30 }
 0x65b   :  { %vm9378_vm6 = vmmov %vm9377_vm4 }
 0x65c   :  { %v2289_v11 = vpop.permute.xlu1 %2288 }
 0x65d   :  { %v2297_v8 = vsel %vm9363_vm3, %v2289_v11, %v2291_v6  ;;  %v2186_v35 = vpop.permute.xlu0 %2185  ;;  %vm9379_vm3 = vcmask 777216  }
 0x65e   :  { %2305 = vst [vmem:[#allocation3 + $0x68] sm:$0xf] %v2297_v8 }
 0x660   :  { %v2287_v28 = vpop.permute.xlu1 %2286 }
 0x661   :  { %v2296_v43 = vsel %vm9364_vm8, %v2287_v28, %v2289_v11  ;;  %v2259_v46 = vpop.permute.xlu0 %2258  ;;  %vm9380_vm8 = vmmov %vm9379_vm3 }
 0x662   :  { %2304 = vst [vmem:[#allocation3 + $0x60] sm:$0xf] %v2296_v43  ;;  %v2381_v43 = vld [vmem:[#allocation3] sm:$0xff] }
 0x664   :  { %v2293_v45 = vpop.permute.xlu1 %2292 }
 0x665   :  { %v2298_v7 = vsel %vm9365_vm10, %v2291_v6, %v2293_v45  ;;  %v2299_v18 = vsel %vm9366_vm9, %v2293_v45, %v2295_v31  ;;  %v2255_v21 = vpop.permute.xlu0 %2254  ;;  %vm9381_vm10 = vmmov %vm9370_vm12 }
 0x666   :  { %2306 = vst [vmem:[#allocation3 + $0x70] sm:$0xf] %v2298_v7  ;;  %2307 = vst [vmem:[#allocation3 + $0x78] sm:$0xf] %v2299_v18 }
 0x667   :  { %vm9382_vm9 = vmmov %vm9381_vm10 }
 0x668   :  { %v2356_v62 = vpop.permute.xlu1 %2355 }
 0x669   :  { %v7108_v55 = vpop.permute.xlu0 %2327 }
 0x66c   :  { %v2121_v63 = vpop.permute.xlu1 %2120 }
 0x66d   :  { %v2127_v41 = vsel %vm9367_vm11, %v2119_v29, %v2121_v63  ;;  %v2324_v13 = vpop.permute.xlu0 %2323  ;;  %vm9383_vm11 = vmmov %vm9379_vm3 }
 0x66e   :  { %2135 = vst [vmem:[#allocation3 + $0x8] sm:$0xf0] %v2127_v41 }
 0x670   :  { %v2123_v15 = vpop.permute.xlu1 %2122 }
 0x671   :  { %v2128_v24 = vsel %vm9368_vm2, %v2121_v63, %v2123_v15  ;;  %v2129_v30 = vsel %vm9369_vm0, %v2123_v15, %v7064_v52  ;;  %v2358_v6 = vpop.permute.xlu0 %2357  ;;  %vm9384_vm2 = vmmov %vm9379_vm3 }
 0x672   :  { %2136 = vst [vmem:[#allocation3 + $0x10] sm:$0xf0] %v2128_v24  ;;  %2137 = vst [vmem:[#allocation3 + $0x18] sm:$0xf0] %v2129_v30  ;;  %v2365_v31 = vsel %vm9370_vm12, %v2356_v62, %v2358_v6  ;;  %vm9386_vm12 = vcmask 1043456  }
 0x673   :  { %2373 = vst [vmem:[#allocation3 + $0x80] sm:$0xf] %v2365_v31  ;;  %vm9385_vm0 = vmmov %vm9382_vm9 }
 0x674   :  { %v2188_v11 = vpop.permute.xlu1 %2187 }
 0x675   :  { %v2195_v8 = vsel %vm9371_vm5, %v2186_v35, %v2188_v11  ;;  %v2196_v28 = vsel %vm9372_vm1, %v2188_v11, %v2190_v4  ;;  %v2382_v29 = vld [vmem:[#allocation3 + $0x8] sm:$0xff]  ;;  %vm9387_vm5 = vmmov %vm9386_vm12  ;;  %vm9388_vm1 = vcmask 588800  }
 0x676   :  { %2203 = vst [vmem:[#allocation3 + $0x20] sm:$0xf0] %v2195_v8  ;;  %2204 = vst [vmem:[#allocation3 + $0x28] sm:$0xf0] %v2196_v28  ;;  %2429 = vmatprep.subr.bf16.mxu0 %v2382_v29 }
 0x677   :  { %2430 = vmatpush1.bf16.msra.mxu0 %v2381_v43 }
 0x678   :  { %v2192_v45 = vpop.permute.xlu1 %2191 }
 0x679   :  { %v2197_v52 = vsel %vm9373_vm14, %v2190_v4, %v2192_v45  ;;  %v2198_v7 = vsel %vm9374_vm13, %v2192_v45, %v7067_v16  ;;  %v2384_v18 = vld [vmem:[#allocation3 + $0x18] sm:$0xff]  ;;  %v2383_v62 = vld [vmem:[#allocation3 + $0x10] sm:$0xff]  ;;  %vm9389_vm14 = vmmov %vm9387_vm5 }
 0x67a   :  { %2205 = vst [vmem:[#allocation3 + $0x30] sm:$0xf0] %v2197_v52  ;;  %2206 = vst [vmem:[#allocation3 + $0x38] sm:$0xf0] %v2198_v7  ;;  %2482 = vmatprep.subr.bf16.mxu1 %v2384_v18 }
 0x67b   :  { %2483 = vmatpush1.bf16.msra.mxu1 %v2383_v62  ;;  %vm9390_vm13 = vmmov %vm9387_vm5 }
 0x67c   :  { %v2257_v35 = vpop.permute.xlu1 %2256 }
 0x67d   :  { %v2264_v63 = vsel %vm9375_vm15, %v2255_v21, %v2257_v35  ;;  %v2265_v41 = vsel %vm9376_vm7, %v2257_v35, %v2259_v46  ;;  %v2386_v15 = vld [vmem:[#allocation3 + $0x28] sm:$0xff]  ;;  %v2385_v24 = vld [vmem:[#allocation3 + $0x20] sm:$0xff]  ;;  %vm9391_vm15 = vmmov %vm9388_vm1 }
 0x67e   :  { %2272 = vst [vmem:[#allocation3 + $0x40] sm:$0xf0] %v2264_v63  ;;  %2273 = vst [vmem:[#allocation3 + $0x48] sm:$0xf0] %v2265_v41  ;;  %2431 = vmatprep.subr.bf16.mxu0 %v2386_v15 }
 0x67f   :  { %2432 = vmatpush1.bf16.msra.mxu0 %v2385_v24  ;;  %vm9392_vm7 = vmmov %vm9388_vm1 }
 0x680   :  { %v2261_v4 = vpop.permute.xlu1 %2260 }
 0x681   :  { %v2266_v16 = vsel %vm9377_vm4, %v2259_v46, %v2261_v4  ;;  %v2267_v30 = vsel %vm9378_vm6, %v2261_v4, %v7080_v40  ;;  %v2388_v31 = vld [vmem:[#allocation3 + $0x38] sm:$0xff]  ;;  %v2387_v11 = vld [vmem:[#allocation3 + $0x30] sm:$0xff]  ;;  %v2362_v46 = vpop.permute.xlu0 %2361  ;;  %vm9393_vm4 = vmmov %vm9388_vm1  ;;  %vm74_vm6 = vcmp.lt.s32.totalorder %v5443_v51, 4 }
 0x682   :  { %2274 = vst [vmem:[#allocation3 + $0x50] sm:$0xf0] %v2266_v16  ;;  %2275 = vst [vmem:[#allocation3 + $0x58] sm:$0xf0] %v2267_v30  ;;  %2484 = vmatprep.subr.bf16.mxu1 %v2388_v31 }
 0x683   :  { %2485 = vmatpush1.bf16.msra.mxu1 %v2387_v11 }
 0x684   :  { %v2326_v21 = vpop.permute.xlu1 %2325 }
 0x685   :  { %v2333_v8 = vsel %vm9379_vm3, %v2324_v13, %v2326_v21  ;;  %v2334_v28 = vsel %vm9380_vm8, %v2326_v21, %v7108_v55  ;;  %v2390_v29 = vld [vmem:[#allocation3 + $0x48] sm:$0xff]  ;;  %v2389_v43 = vld [vmem:[#allocation3 + $0x40] sm:$0xff]  ;;  %vm78_vm3 = vcmp.lt.s32.totalorder %v5445_v0, 4  ;;  %vm75_vm8 = vcmp.lt.s32.totalorder %v5448_v53, 4 }
 0x686   :  { %2341 = vst [vmem:[#allocation3 + $0x60] sm:$0xf0] %v2333_v8  ;;  %2342 = vst [vmem:[#allocation3 + $0x68] sm:$0xf0] %v2334_v28  ;;  %2433 = vmatprep.subr.bf16.mxu0 %v2390_v29  ;;  %v5176_v8 = vld [vmem:[%s8715_s5 + $0x8] sm:$0xff]  }
 0x687   :  { %2434 = vmatpush1.bf16.msra.mxu0 %v2389_v43 }
 0x688   :  { %v2360_v40 = vpop.permute.xlu1 %2359 }
 0x689   :  { %v2366_v45 = vsel %vm9381_vm10, %v2358_v6, %v2360_v40  ;;  %v2367_v52 = vsel %vm9382_vm9, %v2360_v40, %v2362_v46  ;;  %v2392_v7 = vld [vmem:[#allocation3 + $0x58] sm:$0xff]  ;;  %v2391_v18 = vld [vmem:[#allocation3 + $0x50] sm:$0xff]  ;;  %v2397_v6 = vld [vmem:[#allocation3 + $0x80] sm:$0xf]  ;;  %vm79_vm10 = vcmp.lt.s32.totalorder %v5450_v54, 4 }
 0x68a   :  { %2374 = vst [vmem:[#allocation3 + $0x88] sm:$0xf] %v2366_v45  ;;  %2375 = vst [vmem:[#allocation3 + $0x90] sm:$0xf] %v2367_v52  ;;  %2486 = vmatprep.subr.bf16.mxu1 %v2392_v7  ;;  %v2418_v16 = vsel %vm9387_vm5, %v2397_v6, 0  ;;  %vm81_vm5 = vcmp.lt.s32.totalorder %v5462_v59, 4 }
 0x68b   :  { %2487 = vmatpush1.bf16.msra.mxu1 %v2391_v18  ;;  %vm82_vm9 = vmand %vm74_vm6, %vm78_vm3  ;;  %vm8924_vm6 = vcmask 138240   ;;  %vm8920_vm3 = vcmask 130048  }
 0x68c   :  { %v2330_v13 = vpop.permute.xlu1 %2329  ;;  %v7156_v28 = vsel %vm82_vm9, 1.0, %v9347_v20 }
 0x68d   :  { %v2335_v62 = vsel %vm9383_vm11, %v7108_v55, %v2330_v13  ;;  %v2336_v35 = vsel %vm9384_vm2, %v2330_v13, %v7091_v61  ;;  %v2394_v63 = vld [vmem:[#allocation3 + $0x68] sm:$0xff]  ;;  %v2393_v41 = vld [vmem:[#allocation3 + $0x60] sm:$0xff]  ;;  %vm83_vm11 = vmand %vm75_vm8, %vm79_vm10  ;;  %vm76_vm2 = vcmp.lt.s32.totalorder %v5454_v56, 4  ;;  %vm8923_vm8 = vcmask 15360  }
 0x68e   :  { %2343 = vst [vmem:[#allocation3 + $0x70] sm:$0xf0] %v2335_v62  ;;  %2344 = vst [vmem:[#allocation3 + $0x78] sm:$0xf0] %v2336_v35  ;;  %2435 = vmatprep.subr.bf16.mxu0 %v2394_v63  ;;  %v5175_v61 = vld [vmem:[%s8715_s5] sm:$0xff]   ;;  %v7159_v29 = vsel %vm83_vm11, 1.0, %v9347_v20 }
 0x68f   :  { %2436 = vmatpush1.bf16.msra.mxu0 %v2393_v41  ;;  %s5254_s5 = smov 32   ;;  %vm8919_vm10 = vcmask 7168  }
 0x690   :  { %v2364_v15 = vpop.permute.xlu1 %2363 }
 0x691   :  { %v2368_v24 = vsel %vm9385_vm0, %v2362_v46, %v2364_v15  ;;  %v2398_v4 = vld [vmem:[#allocation3 + $0x88] sm:$0xf]  ;;  %v2399_v31 = vld [vmem:[#allocation3 + $0x90] sm:$0xf]  ;;  %vm80_vm0 = vcmp.lt.s32.totalorder %v5456_v57, 4 }
 0x692   :  { %2376 = vst [vmem:[#allocation3 + $0x98] sm:$0xf] %v2368_v24  ;;  %4953 = vmatprep.subr.msk.bf16.mxu0 %vm9386_vm12, %v2398_v4  ;;  %v2424_v21 = vsel %vm9390_vm13, %v2399_v31, 0  ;;  %vm77_vm12 = vcmp.lt.s32.totalorder %v5460_v58, 4  ;;  %vm2811_vm13 = vcmask 277504  }
 0x693   :  { %2438 = vmatpush1.bf16.msra.mxu0 %v2418_v16 }
 0x695   :  { %v2396_v55 = vld [vmem:[#allocation3 + $0x78] sm:$0xff]  ;;  %v2395_v30 = vld [vmem:[#allocation3 + $0x70] sm:$0xff] }
 0x696   :  { %4954 = vmatmul.mubr.msk.bf16.vlgmr.msra.gmra.mrb[12].mxu0 %vm9388_vm1, %v5175_v61  ;;  %2488 = vmatprep.subr.bf16.mxu1 %v2396_v55  ;;  %vm84_vm1 = vmand %vm76_vm2, %vm80_vm0 }
 0x697   :  { %2489 = vmatpush1.bf16.msra.mxu1 %v2395_v30  ;;  %2471 = vmatprep.mubr.bf16.mxu0 %v6978_v39  ;;  %v7186_v6 = vsel %vm84_vm1, 1.0, %v9347_v20 }
 0x699   :  { %v2400_v11 = vld [vmem:[#allocation3 + $0x98] sm:$0xf] }
 0x69a   :  { %4956 = vmatprep.subr.msk.bf16.mxu1 %vm9389_vm14, %v2400_v11  ;;  %vm85_vm14 = vmand %vm77_vm12, %vm81_vm5 }
 0x69b   :  { %2491 = vmatpush1.bf16.msra.mxu1 %v2424_v21  ;;  %v7189_v15 = vsel %vm85_vm14, 1.0, %v9347_v20 }
 0x69e   :  { %4957 = vmatmul.mubr.msk.bf16.vlgmr.msra.gmra.mrb[12].mxu1 %vm9391_vm15, %v5175_v61  ;;  %4955 = vmatmul.mubr.msk.bf16.gmra.mrb[16].mxu0 %vm9392_vm7, %v5176_v8  ;;  %vm8922_vm15 = vcmask 269312   ;;  %vm2941_vm7 = vcmask 261120  }
 0x69f   :  { %2524 = vmatprep.mubr.bf16.mxu1 %v6978_v39 }
 0x6a6   :  { %4958 = vmatmul.mubr.msk.bf16.gmra.mrb[16].mxu1 %vm9393_vm4, %v5176_v8  ;;  %vm8921_vm4 = vcmask 146432  }
 0x769   :  { %v7163_v39 = vpop.f32.mrb[12].mxu0 }
 0x76a   :  { %v2535_v43 = vmul.f32 %v7163_v39, %v7156_v28  ;;  %v7169_v46 = vpop.f32.mrb[13].mxu0 }
 0x76b   :  { %v2536_v40 = vmul.f32 %v7169_v46, %v7159_v29  ;;  %v7173_v45 = vpop.f32.mrb[14].mxu0 }
 0x76c   :  { %v2575_v52 = vmul.f32 %v2535_v43, %v7163_v39  ;;  %v2539_v57 = vmul.f32 %v7173_v45, %v7156_v28  ;;  %v7178_v7 = vpop.f32.mrb[15].mxu0 }
 0x76d   :  { %v2551_v59 = vadd.f32 %v2536_v40, %v2535_v43  ;;  %v2576_v18 = vmul.f32 %v2536_v40, %v7169_v46  ;;  %v2540_v13 = vmul.f32 %v7178_v7, %v7159_v29 }
 0x76e   :  { %v2579_v62 = vmul.f32 %v2539_v57, %v7173_v45 }
 0x76f   :  { %v2591_v35 = vadd.f32 %v2576_v18, %v2575_v52  ;;  %v2556_v63 = vadd.f32 %v2540_v13, %v2539_v57  ;;  %v2580_v41 = vmul.f32 %v2540_v13, %v7178_v7 }
 0x771   :  { %v2596_v24 = vadd.f32 %v2580_v41, %v2579_v62  ;;  %v7191_v4 = vpop.f32.mrb[12].mxu1  ;;  %v7193_v16 = vpop.f32.mrb[16].mxu0 }
 0x772   :  { %v2537_v61 = vmul.f32 %v7191_v4, %v7186_v6  ;;  %v7197_v55 = vpop.f32.mrb[13].mxu1  ;;  %v2543_v30 = vmul.f32 %v7193_v16, %v7156_v28  ;;  %v7201_v31 = vpop.f32.mrb[17].mxu0 }
 0x773   :  { %v2538_v11 = vmul.f32 %v7197_v55, %v7189_v15  ;;  %v7205_v21 = vpop.f32.mrb[14].mxu1  ;;  %v2544_v8 = vmul.f32 %v7201_v31, %v7159_v29  ;;  %v7209_v43 = vpop.f32.mrb[18].mxu0 }
 0x774   :  { %v2552_v40 = vadd.f32 %v2551_v59, %v2537_v61  ;;  %v2577_v52 = vmul.f32 %v2537_v61, %v7191_v4  ;;  %v2541_v57 = vmul.f32 %v7205_v21, %v7186_v6  ;;  %v7214_v18 = vpop.f32.mrb[15].mxu1  ;;  %v2583_v13 = vmul.f32 %v2543_v30, %v7193_v16  ;;  %v7217_v62 = vpop.f32.mrb[19].mxu0 }
 0x775   :  { %v2578_v41 = vmul.f32 %v2538_v11, %v7197_v55  ;;  %v2542_v53 = vmul.f32 %v7214_v18, %v7189_v15  ;;  %v2561_v20 = vadd.f32 %v2544_v8, %v2543_v30  ;;  %v2584_v51 = vmul.f32 %v2544_v8, %v7201_v31 }
 0x776   :  { %v2592_v59 = vadd.f32 %v2591_v35, %v2577_v52  ;;  %v2557_v58 = vadd.f32 %v2556_v63, %v2541_v57  ;;  %v2581_v61 = vmul.f32 %v2541_v57, %v7205_v21  ;;  %v2553_v56 = vadd.f32 %v2552_v40, %v2538_v11 }
 0x777   :  { %v2582_v19 = vmul.f32 %v2542_v53, %v7214_v18  ;;  %v2601_v10 = vadd.f32 %v2584_v51, %v2583_v13  ;;  %v2547_v23 = vmul.f32 %v7209_v43, %v7156_v28  ;;  %v2548_v22 = vmul.f32 %v7217_v62, %v7159_v29 }
 0x778   :  { %v2597_v42 = vadd.f32 %v2596_v24, %v2581_v61  ;;  %2554 = vadd.xlane.f32.xlu0 %v2553_v56  ;;  %v2558_v38 = vadd.f32 %v2557_v58, %v2542_v53  ;;  %v2593_v30 = vadd.f32 %v2592_v59, %v2578_v41 }
 0x779   :  { %v7229_v2 = vpop.f32.mrb[16].mxu1  ;;  %v2587_v35 = vmul.f32 %v2547_v23, %v7209_v43  ;;  %v2566_v63 = vadd.f32 %v2548_v22, %v2547_v23  ;;  %v2588_v11 = vmul.f32 %v2548_v22, %v7217_v62 }
 0x77a   :  { %v2545_v51 = vmul.f32 %v7229_v2, %v7186_v6  ;;  %2559 = vadd.xlane.f32.xlu1 %v2558_v38  ;;  %v7235_v8 = vpop.f32.mrb[17].mxu1  ;;  %v2598_v40 = vadd.f32 %v2597_v42, %v2582_v19 }
 0x77b   :  { %v2606_v52 = vadd.f32 %v2588_v11, %v2587_v35  ;;  %v2546_v56 = vmul.f32 %v7235_v8, %v7189_v15  ;;  %v7239_v53 = vpop.f32.mrb[18].mxu1 }
 0x77c   :  { %v2562_v58 = vadd.f32 %v2561_v20, %v2545_v51  ;;  %v2585_v24 = vmul.f32 %v2545_v51, %v7229_v2  ;;  %2594 = vadd.xlane.f32.xlu0 %v2593_v30  ;;  %v2549_v23 = vmul.f32 %v7239_v53, %v7186_v6  ;;  %v7244_v22 = vpop.f32.mrb[19].mxu1 }
 0x77d   :  { %v2586_v38 = vmul.f32 %v2546_v56, %v7235_v8  ;;  %v2550_v42 = vmul.f32 %v7244_v22, %v7189_v15 }
 0x77e   :  { %v2602_v19 = vadd.f32 %v2601_v10, %v2585_v24  ;;  %v2567_v57 = vadd.f32 %v2566_v63, %v2549_v23  ;;  %v2589_v13 = vmul.f32 %v2549_v23, %v7239_v53  ;;  %v2563_v41 = vadd.f32 %v2562_v58, %v2546_v56  ;;  %v5237_v10 = vld [vmem:[#allocation2 + $0x28] sm:$0xff]  ;;  %v7265_v63 = vpop.permute.xlu1 %2673 }
 0x77f   :  { %v2590_v20 = vmul.f32 %v2550_v42, %v7244_v22 }
 0x780   :  { %v2607_v59 = vadd.f32 %v2606_v52, %v2589_v13  ;;  %2599 = vadd.xlane.f32.xlu0 %v2598_v40  ;;  %2564 = vadd.xlane.f32.xlu1 %v2563_v41  ;;  %v2603_v61 = vadd.f32 %v2602_v19, %v2586_v38  ;;  %v2568_v30 = vadd.f32 %v2567_v57, %v2550_v42  ;;  %v7271_v40 = vpop.permute.xlu0 %2716 }
 0x782   :  { %v2608_v35 = vadd.f32 %v2607_v59, %v2590_v20  ;;  %v7267_v11 = vpop.permute.xlu1 %2708 }
 0x784   :  { %2604 = vadd.xlane.f32.xlu1 %v2603_v61  ;;  %2569 = vadd.xlane.f32.xlu0 %v2568_v30  ;;  %v7275_v56 = vpop.permute.xlu0 %2678 }
 0x786   :  { %v7269_v51 = vpop.permute.xlu1 %2712 }
 0x788   :  { %2609 = vadd.xlane.f32.xlu0 %v2608_v35 }
 0x78a   :  { %v7273_v52 = vpop.permute.xlu1 %2688 }
 0x78e   :  { %v7277_v58 = vpop.permute.xlu1 %2720 }
 0x792   :  { %v7281_v24 = vpop.permute.xlu1 %5139 }
 0x795   :  { %5149 = vrot.lane.b32.xlu1 %v7089_v5, %s5254_s5 }
 0x799   :  { %5159 = vrot.lane.b32.xlu1 %v7089_v5, %s5256_s22 }
 0x79d   :  { %5169 = vrot.lane.b32.xlu1 %v7089_v5, %s5258_s24 }
 0x79e   :  { %5144 = vrot.lane.b32.xlu0 %v7089_v5, %s5255_s21 }
 0x7a1   :  { %3256 = vrot.lane.b32.xlu1 %v5237_v10, %s5260_s25 }
 0x7a2   :  { %5154 = vrot.lane.b32.xlu0 %v7089_v5, %s5257_s23 }
 0x7a6   :  { %5164 = vrot.lane.b32.xlu0 %v7089_v5, %s5259_s1  ;;  %v7279_v5 = vpop.permute.xlu0 %2683 }
 0x7aa   :  { %3246 = vrot.lane.b32.xlu0 %v5237_v10, %s5260_s25 }
 0x805   :  { %v2555_v23 = vpop.xlane.xlu0 %2554 }
 0x806   :  { %v2571_v38 = vmul.f32 0.03125, %v2555_v23 }
 0x807   :  { %v2560_v42 = vpop.xlane.xlu1 %2559 }
 0x808   :  { %v7283_v57 = vmul.f32 0.03125, %v2560_v42  ;;  %v2615_v13 = vmul.f32 %v2571_v38, %v2571_v38  ;;  %v2627_v27 = vsub.f32 %v7163_v39, %v2571_v38 }
 0x809   :  { %v2595_v19 = vpop.xlane.xlu0 %2594 }
 0x80a   :  { %v2611_v41 = vmul.f32 0.03125, %v2595_v19  ;;  %v2616_v10 = vmul.f32 %v7283_v57, %v7283_v57 }
 0x80c   :  { %v2619_v20 = vsub.f32 %v2611_v41, %v2615_v13 }
 0x80d   :  { %v2600_v59 = vpop.xlane.xlu0 %2599  ;;  %v2565_v61 = vpop.xlane.xlu1 %2564 }
 0x80e   :  { %v2623_v30 = vmax.f32 %v2619_v20, 0.0  ;;  %v2612_v35 = vmul.f32 0.03125, %v2600_v59  ;;  %v7287_v50 = vmul.f32 0.03125, %v2565_v61 }
 0x810   :  { %v2643_v26 = vadd.f32 1e-05, %v2623_v30  ;;  %v2620_v60 = vsub.f32 %v2612_v35, %v2616_v10  ;;  %v2617_v23 = vmul.f32 %v7287_v50, %v7287_v50 }
 0x811   :  { %v2605_v44 = vpop.xlane.xlu1 %2604  ;;  %v2570_v42 = vpop.xlane.xlu0 %2569 }
 0x812   :  { %5200 = vrsqrt.f32 %v2643_v26  ;;  %v2624_v14 = vmax.f32 %v2620_v60, 0.0  ;;  %v2613_v19 = vmul.f32 0.03125, %v2605_v44  ;;  %v7291_v13 = vmul.f32 0.03125, %v2570_v42 }
 0x813   :  { %v2628_v60 = vsub.f32 %v7169_v46, %v2571_v38  ;;  %v2629_v44 = vsub.f32 %v7191_v4, %v2571_v38  ;;  %v2632_v42 = vsub.f32 %v7178_v7, %v7283_v57  ;;  %v2634_v46 = vsub.f32 %v7214_v18, %v7283_v57 }
 0x814   :  { %v2644_v41 = vadd.f32 1e-05, %v2624_v14  ;;  %v2621_v20 = vsub.f32 %v2613_v19, %v2617_v23  ;;  %v2618_v59 = vmul.f32 %v7291_v13, %v7291_v13  ;;  %v2630_v14 = vsub.f32 %v7197_v55, %v2571_v38 }
 0x815   :  { %v2610_v17 = vpop.xlane.xlu0 %2609  ;;  %v2631_v23 = vsub.f32 %v7173_v45, %v7283_v57  ;;  %v2635_v4 = vsub.f32 %v7193_v16, %v7287_v50  ;;  %v2636_v45 = vsub.f32 %v7201_v31, %v7287_v50  ;;  %v2637_v38 = vsub.f32 %v7229_v2, %v7287_v50 }
 0x816   :  { %5202 = vrsqrt.f32 %v2644_v41  ;;  %v2625_v61 = vmax.f32 %v2621_v20, 0.0  ;;  %v2614_v30 = vmul.f32 0.03125, %v2610_v17  ;;  %v2633_v17 = vsub.f32 %v7205_v21, %v7283_v57 }
 0x817   :  { %v2638_v18 = vsub.f32 %v7235_v8, %v7287_v50  ;;  %v2639_v16 = vsub.f32 %v7209_v43, %v7291_v13  ;;  %v2640_v31 = vsub.f32 %v7217_v62, %v7291_v13 }
 0x818   :  { %v2645_v35 = vadd.f32 1e-05, %v2625_v61  ;;  %v2622_v10 = vsub.f32 %v2614_v30, %v2618_v59  ;;  %v2642_v30 = vsub.f32 %v7244_v22, %v7291_v13 }
 0x81a   :  { %5204 = vrsqrt.f32 %v2645_v35  ;;  %v2626_v37 = vmax.f32 %v2622_v10, 0.0 }
 0x81c   :  { %v5201_v26 = vpop.eup %5200  ;;  %v2646_v19 = vadd.f32 1e-05, %v2626_v37 }
 0x81d   :  { %v2651_v41 = vmul.f32 %v5201_v26, %v2627_v27  ;;  %v2652_v20 = vmul.f32 %v5201_v26, %v2628_v60  ;;  %v2653_v39 = vmul.f32 %v5201_v26, %v2629_v44  ;;  %v2654_v59 = vmul.f32 %v5201_v26, %v2630_v14 }
 0x81e   :  { %5206 = vrsqrt.f32 %v2646_v19 }
 0x81f   :  { %v2691_v7 = vmul.f32 %v7265_v63, %v2651_v41  ;;  %v2692_v55 = vmul.f32 %v7265_v63, %v2652_v20  ;;  %v2693_v37 = vmul.f32 %v7265_v63, %v2653_v39  ;;  %v2694_v27 = vmul.f32 %v7265_v63, %v2654_v59 }
 0x820   :  { %v5203_v21 = vpop.eup %5202  ;;  %v2641_v63 = vsub.f32 %v7239_v53, %v7291_v13 }
 0x821   :  { %v2723_v57 = vadd.f32 %v7267_v11, %v2691_v7  ;;  %v2724_v61 = vadd.f32 %v7267_v11, %v2692_v55  ;;  %v2655_v2 = vmul.f32 %v5203_v21, %v2631_v23  ;;  %v2656_v35 = vmul.f32 %v5203_v21, %v2632_v42 }
 0x822   :  { %v2657_v10 = vmul.f32 %v5203_v21, %v2633_v17  ;;  %v2658_v50 = vmul.f32 %v5203_v21, %v2634_v46  ;;  %v2725_v8 = vadd.f32 %v7267_v11, %v2693_v37  ;;  %v2726_v43 = vadd.f32 %v7267_v11, %v2694_v27 }
 0x823   :  { %v2739_v62 = vmul.f32 %v2723_v57, %v7156_v28  ;;  %v2740_v60 = vmul.f32 %v2724_v61, %v7159_v29  ;;  %v2695_v14 = vmul.f32 %v7275_v56, %v2655_v2  ;;  %v2696_v53 = vmul.f32 %v7275_v56, %v2656_v35 }
 0x824   :  { %v5205_v44 = vpop.eup %5204  ;;  %v2697_v26 = vmul.f32 %v7275_v56, %v2657_v10  ;;  %v2698_v22 = vmul.f32 %v7275_v56, %v2658_v50  ;;  %v2741_v39 = vmul.f32 %v2725_v8, %v7186_v6  ;;  %v2742_v59 = vmul.f32 %v2726_v43, %v7189_v15 }
 0x825   :  { %v2660_v13 = vmul.f32 %v5205_v44, %v2636_v45  ;;  %v2659_v23 = vmul.f32 %v5205_v44, %v2635_v4  ;;  %v2662_v42 = vmul.f32 %v5205_v44, %v2638_v18  ;;  %v2661_v17 = vmul.f32 %v5205_v44, %v2637_v38 }
 0x826   :  { %v2727_v19 = vadd.f32 %v7269_v51, %v2695_v14  ;;  %v2728_v11 = vadd.f32 %v7269_v51, %v2696_v53  ;;  %v2729_v41 = vadd.f32 %v7269_v51, %v2697_v26  ;;  %v2730_v20 = vadd.f32 %v7269_v51, %v2698_v22 }
 0x827   :  { %v2700_v46 = vmul.f32 %v7279_v5, %v2660_v13  ;;  %v2699_v56 = vmul.f32 %v7279_v5, %v2659_v23  ;;  %v2702_v51 = vmul.f32 %v7279_v5, %v2662_v42  ;;  %v2701_v38 = vmul.f32 %v7279_v5, %v2661_v17 }
 0x828   :  { %v5207_v45 = vpop.eup %5206  ;;  %v2743_v4 = vmul.f32 %v2727_v19, %v7156_v28  ;;  %v2744_v7 = vmul.f32 %v2728_v11, %v7159_v29  ;;  %v2745_v55 = vmul.f32 %v2729_v41, %v7186_v6  ;;  %v2746_v37 = vmul.f32 %v2730_v20, %v7189_v15  ;;  %v7493_v20 = vpop.permute.xlu0 %5144 }
 0x829   :  { %v2664_v27 = vmul.f32 %v5207_v45, %v2640_v31  ;;  %v2663_v21 = vmul.f32 %v5207_v45, %v2639_v16  ;;  %v2732_v10 = vadd.f32 %v7271_v40, %v2700_v46  ;;  %v2731_v16 = vadd.f32 %v7271_v40, %v2699_v56 }
 0x82a   :  { %v7351_v18 = vpack.c.bf16 %v2743_v4, %v2739_v62  ;;  %v7353_v57 = vpack.c.bf16 %v2744_v7, %v2740_v60  ;;  %v7355_v61 = vpack.c.bf16 %v2745_v55, %v2741_v39  ;;  %v7357_v2 = vpack.c.bf16 %v2746_v37, %v2742_v59  ;;  %v7535_v55 = vld [vmem:[%s8717_s7] sm:$0xff] }
 0x82b   :  { %v2704_v35 = vmul.f32 %v7273_v52, %v2664_v27  ;;  %v2703_v50 = vmul.f32 %v7273_v52, %v2663_v21  ;;  %v2666_v5 = vmul.f32 %v5207_v45, %v2642_v30  ;;  %v2665_v31 = vmul.f32 %v5207_v45, %v2641_v63 }
 0x82c   :  { %2763 = vst [vmem:[#allocation2 + $0x8] sm:$0xff] %v7351_v18  ;;  %2764 = vst [vmem:[#allocation2 + $0x10] sm:$0xff] %v7353_v57  ;;  %2793 = vrot.lane.b32.xlu1 %v7351_v18, %s5253_s0  ;;  %2795 = vrot.lane.b32.xlu0 %v7353_v57, %s5253_s0  ;;  %v2734_v60 = vadd.f32 %v7271_v40, %v2702_v51  ;;  %v2733_v14 = vadd.f32 %v7271_v40, %v2701_v38  ;;  %v7505_v59 = vpop.permute.xlu0 %5154  ;;  %v5141_v7 = vunpack.i.l.bf16 %v7281_v24 }
 0x82d   :  { %2765 = vst [vmem:[#allocation2 + $0x18] sm:$0xff] %v7355_v61  ;;  %2766 = vst [vmem:[#allocation2 + $0x20] sm:$0xff] %v7357_v2  ;;  %v2736_v8 = vadd.f32 %v7277_v58, %v2704_v35  ;;  %v2735_v43 = vadd.f32 %v7277_v58, %v2703_v50  ;;  %v2706_v62 = vmul.f32 %v7273_v52, %v2666_v5  ;;  %v5146_v35 = vunpack.i.l.bf16 %v7493_v20 }
 0x82e   :  { %v2705_v44 = vmul.f32 %v7273_v52, %v2665_v31  ;;  %v2748_v53 = vmul.f32 %v2732_v10, %v7159_v29  ;;  %v2747_v22 = vmul.f32 %v2731_v16, %v7156_v28  ;;  %v4960_v21 = vcombine.high %v7535_v55, %v7535_v55 }
 0x82f   :  { %v2752_v26 = vmul.f32 %v2736_v8, %v7159_v29  ;;  %v2751_v63 = vmul.f32 %v2735_v43, %v7156_v28  ;;  %v2738_v30 = vadd.f32 %v7277_v58, %v2706_v62  ;;  %v2750_v29 = vmul.f32 %v2734_v60, %v7189_v15 }
 0x830   :  { %2799 = vrot.lane.b32.xlu1 %v7357_v2, %s5253_s0  ;;  %2797 = vrot.lane.b32.xlu0 %v7355_v61, %s5253_s0  ;;  %v2737_v52 = vadd.f32 %v7277_v58, %v2705_v44  ;;  %v2749_v28 = vmul.f32 %v2733_v14, %v7186_v6  ;;  %v7513_v56 = vpop.permute.xlu0 %5164 }
 0x831   :  { %v7387_v13 = vpack.c.bf16 %v2752_v26, %v2748_v53  ;;  %v7389_v40 = vpack.c.bf16 %v2751_v63, %v2747_v22  ;;  %v2754_v23 = vmul.f32 %v2738_v30, %v7189_v15  ;;  %3427 = vmatprep.mubr.bf16.mxu0 %v4960_v21  ;;  %3509 = vmatprep.mubr.bf16.mxu1 %v4960_v21 }
 0x832   :  { %v2753_v42 = vmul.f32 %v2737_v52, %v7186_v6  ;;  %v7491_v6 = vpop.permute.xlu1 %5149 }
 0x833   :  { %v7395_v17 = vld [vmem:[#allocation2 + $0x10] sm:$0xff]  ;;  %v7397_v19 = vld [vmem:[#allocation2 + $0x8] sm:$0xff]  ;;  %v7405_v58 = vpack.c.bf16 %v2754_v23, %v2750_v29  ;;  %v5151_v60 = vunpack.i.l.bf16 %v7491_v6  ;;  %v5156_v29 = vunpack.i.l.bf16 %v7505_v59 }
 0x834   :  { %v7399_v11 = vld [vmem:[#allocation2 + $0x20] sm:$0xff]  ;;  %2860 = vrot.lane.b32.xlu1 %v7353_v57, %s5255_s21  ;;  %2858 = vrot.lane.b32.xlu0 %v7351_v18, %s5255_s21  ;;  %v7407_v41 = vpack.c.bf16 %v2753_v42, %v2749_v28  ;;  %v7409_v15 = vld [vmem:[#allocation2 + $0x18] sm:$0xff]  ;;  %v7525_v4 = vpop.permute.xlu0 %3246 }
 0x836   :  { %v7503_v39 = vpop.permute.xlu1 %5159 }
 0x838   :  { %2862 = vrot.lane.b32.xlu1 %v7355_v61, %s5255_s21  ;;  %2864 = vrot.lane.b32.xlu0 %v7357_v2, %s5255_s21 }
 0x83a   :  { %v7511_v46 = vpop.permute.xlu1 %5169 }
 0x83c   :  { %2923 = vrot.lane.b32.xlu1 %v7351_v18, %s5254_s5  ;;  %2925 = vrot.lane.b32.xlu0 %v7353_v57, %s5254_s5 }
 0x83e   :  { %v7523_v45 = vpop.permute.xlu1 %3256 }
 0x840   :  { %2929 = vrot.lane.b32.xlu1 %v7357_v2, %s5254_s5  ;;  %2927 = vrot.lane.b32.xlu0 %v7355_v61, %s5254_s5 }
 0x844   :  { %2990 = vrot.lane.b32.xlu1 %v7353_v57, %s5257_s23  ;;  %2988 = vrot.lane.b32.xlu0 %v7351_v18, %s5257_s23 }
 0x848   :  { %2992 = vrot.lane.b32.xlu1 %v7355_v61, %s5257_s23  ;;  %2994 = vrot.lane.b32.xlu0 %v7357_v2, %s5257_s23 }
 0x84c   :  { %3053 = vrot.lane.b32.xlu1 %v7351_v18, %s5256_s22  ;;  %3055 = vrot.lane.b32.xlu0 %v7353_v57, %s5256_s22 }
 0x850   :  { %3059 = vrot.lane.b32.xlu1 %v7357_v2, %s5256_s22  ;;  %3057 = vrot.lane.b32.xlu0 %v7355_v61, %s5256_s22 }
 0x854   :  { %3120 = vrot.lane.b32.xlu1 %v7353_v57, %s5259_s1  ;;  %3118 = vrot.lane.b32.xlu0 %v7351_v18, %s5259_s1 }
 0x858   :  { %3122 = vrot.lane.b32.xlu1 %v7355_v61, %s5259_s1  ;;  %3124 = vrot.lane.b32.xlu0 %v7357_v2, %s5259_s1 }
 0x85c   :  { %3183 = vrot.lane.b32.xlu1 %v7351_v18, %s5258_s24  ;;  %3185 = vrot.lane.b32.xlu0 %v7353_v57, %s5258_s24 }
 0x860   :  { %3189 = vrot.lane.b32.xlu1 %v7357_v2, %s5258_s24  ;;  %3187 = vrot.lane.b32.xlu0 %v7355_v61, %s5258_s24 }
 0x864   :  { %3250 = vrot.lane.b32.xlu1 %v7353_v57, %s5260_s25  ;;  %3248 = vrot.lane.b32.xlu0 %v7351_v18, %s5260_s25 }
 0x868   :  { %3252 = vrot.lane.b32.xlu1 %v7355_v61, %s5260_s25  ;;  %3254 = vrot.lane.b32.xlu0 %v7357_v2, %s5260_s25 }
 0x86c   :  { %2805 = vrot.lane.b32.xlu1 %v7387_v13, %s5253_s0  ;;  %2803 = vrot.lane.b32.xlu0 %v7389_v40, %s5253_s0 }
 0x870   :  { %2809 = vrot.lane.b32.xlu1 %v7405_v58, %s5253_s0  ;;  %2807 = vrot.lane.b32.xlu0 %v7407_v41, %s5253_s0 }
 0x874   :  { %2868 = vrot.lane.b32.xlu1 %v7389_v40, %s5255_s21  ;;  %2870 = vrot.lane.b32.xlu0 %v7387_v13, %s5255_s21 }
 0x878   :  { %2872 = vrot.lane.b32.xlu1 %v7407_v41, %s5255_s21  ;;  %2874 = vrot.lane.b32.xlu0 %v7405_v58, %s5255_s21 }
 0x87c   :  { %2935 = vrot.lane.b32.xlu1 %v7387_v13, %s5254_s5  ;;  %2933 = vrot.lane.b32.xlu0 %v7389_v40, %s5254_s5 }
 0x880   :  { %2939 = vrot.lane.b32.xlu1 %v7405_v58, %s5254_s5  ;;  %2937 = vrot.lane.b32.xlu0 %v7407_v41, %s5254_s5 }
 0x884   :  { %2998 = vrot.lane.b32.xlu1 %v7389_v40, %s5257_s23  ;;  %3000 = vrot.lane.b32.xlu0 %v7387_v13, %s5257_s23 }
 0x888   :  { %3002 = vrot.lane.b32.xlu1 %v7407_v41, %s5257_s23  ;;  %3004 = vrot.lane.b32.xlu0 %v7405_v58, %s5257_s23 }
 0x88c   :  { %3065 = vrot.lane.b32.xlu1 %v7387_v13, %s5256_s22  ;;  %3063 = vrot.lane.b32.xlu0 %v7389_v40, %s5256_s22 }
 0x890   :  { %3069 = vrot.lane.b32.xlu1 %v7405_v58, %s5256_s22  ;;  %3067 = vrot.lane.b32.xlu0 %v7407_v41, %s5256_s22 }
 0x894   :  { %3128 = vrot.lane.b32.xlu1 %v7389_v40, %s5259_s1  ;;  %3130 = vrot.lane.b32.xlu0 %v7387_v13, %s5259_s1 }
 0x898   :  { %3132 = vrot.lane.b32.xlu1 %v7407_v41, %s5259_s1  ;;  %3134 = vrot.lane.b32.xlu0 %v7405_v58, %s5259_s1 }
 0x89c   :  { %3195 = vrot.lane.b32.xlu1 %v7387_v13, %s5258_s24  ;;  %3193 = vrot.lane.b32.xlu0 %v7389_v40, %s5258_s24 }
 0x89e   :  { %v2794_v37 = vpop.permute.xlu1 %2793  ;;  %v2796_v27 = vpop.permute.xlu0 %2795 }
 0x89f   :  { %v2812_v51 = vsel %vm2811_vm13, %v5141_v7, %v2794_v37  ;;  %v2813_v38 = vsel %vm2811_vm13, %v2794_v37, %v2796_v27 }
 0x8a0   :  { %2828 = vst [vmem:[#allocation3] sm:$0xff] %v2812_v51  ;;  %2829 = vst [vmem:[#allocation3 + $0x8] sm:$0xff] %v2813_v38  ;;  %3199 = vrot.lane.b32.xlu1 %v7405_v58, %s5258_s24  ;;  %3197 = vrot.lane.b32.xlu0 %v7407_v41, %s5258_s24 }
 0x8a1   :  { %3395 = vmatprep.subr.bf16.mxu0 %v2813_v38  ;;  %v5161_v38 = vunpack.i.l.bf16 %v7503_v39 }
 0x8a2   :  { %v2800_v18 = vpop.permute.xlu1 %2799  ;;  %v2798_v57 = vpop.permute.xlu0 %2797  ;;  %3396 = vmatpush1.bf16.msra.mxu0 %v2812_v51 }
 0x8a3   :  { %v2814_v61 = vsel %vm2811_vm13, %v2796_v27, %v2798_v57  ;;  %v2815_v2 = vsel %vm2811_vm13, %v2798_v57, %v2800_v18 }
 0x8a4   :  { %2830 = vst [vmem:[#allocation3 + $0x10] sm:$0xff] %v2814_v61  ;;  %2831 = vst [vmem:[#allocation3 + $0x18] sm:$0xff] %v2815_v2  ;;  %3258 = vrot.lane.b32.xlu1 %v7389_v40, %s5260_s25  ;;  %3260 = vrot.lane.b32.xlu0 %v7387_v13, %s5260_s25 }
 0x8a5   :  { %3477 = vmatprep.subr.bf16.mxu1 %v2815_v2 }
 0x8a6   :  { %v2861_v10 = vpop.permute.xlu1 %2860  ;;  %v2859_v50 = vpop.permute.xlu0 %2858  ;;  %3478 = vmatpush1.bf16.msra.mxu1 %v2814_v61 }
 0x8a7   :  { %v7553_v16 = vsel %vm8922_vm15, %v5146_v35, %v2859_v50  ;;  %v7556_v5 = vsel %vm8922_vm15, %v2859_v50, %v2861_v10 }
 0x8a8   :  { %2893 = vst [vmem:[#allocation3 + $0x40] sm:$0xff] %v7553_v16  ;;  %2894 = vst [vmem:[#allocation3 + $0x48] sm:$0xff] %v7556_v5  ;;  %3264 = vrot.lane.b32.xlu1 %v7405_v58, %s5260_s25  ;;  %3262 = vrot.lane.b32.xlu0 %v7407_v41, %s5260_s25 }
 0x8aa   :  { %v2863_v31 = vpop.permute.xlu1 %2862  ;;  %v2865_v8 = vpop.permute.xlu0 %2864 }
 0x8ab   :  { %v7565_v43 = vsel %vm8922_vm15, %v2861_v10, %v2863_v31  ;;  %v7568_v62 = vsel %vm8922_vm15, %v2863_v31, %v2865_v8  ;;  %v5166_v8 = vunpack.i.l.bf16 %v7513_v56 }
 0x8ac   :  { %2895 = vst [vmem:[#allocation3 + $0x50] sm:$0xff] %v7565_v43  ;;  %2896 = vst [vmem:[#allocation3 + $0x58] sm:$0xff] %v7568_v62 }
 0x8ae   :  { %v2924_v44 = vpop.permute.xlu1 %2923  ;;  %v2926_v14 = vpop.permute.xlu0 %2925 }
 0x8af   :  { %v7574_v53 = vsel %vm2941_vm7, %v5151_v60, %v2924_v44  ;;  %v7577_v26 = vsel %vm2941_vm7, %v2924_v44, %v2926_v14 }
 0x8b0   :  { %2958 = vst [vmem:[#allocation3 + $0x80] sm:$0xff] %v7574_v53  ;;  %2959 = vst [vmem:[#allocation3 + $0x88] sm:$0xff] %v7577_v26 }
 0x8b2   :  { %v2930_v22 = vpop.permute.xlu1 %2929  ;;  %v2928_v63 = vpop.permute.xlu0 %2927 }
 0x8b3   :  { %v7582_v30 = vsel %vm2941_vm7, %v2926_v14, %v2928_v63  ;;  %v7585_v52 = vsel %vm2941_vm7, %v2928_v63, %v2930_v22 }
 0x8b4   :  { %2960 = vst [vmem:[#allocation3 + $0x90] sm:$0xff] %v7582_v30  ;;  %2961 = vst [vmem:[#allocation3 + $0x98] sm:$0xff] %v7585_v52 }
 0x8b6   :  { %v2991_v23 = vpop.permute.xlu1 %2990  ;;  %v2989_v28 = vpop.permute.xlu0 %2988 }
 0x8b7   :  { %v7591_v42 = vsel %vm8921_vm4, %v5156_v29, %v2989_v28  ;;  %v7594_v7 = vsel %vm8921_vm4, %v2989_v28, %v2991_v23 }
 0x8ba   :  { %v2993_v37 = vpop.permute.xlu1 %2992  ;;  %v2995_v27 = vpop.permute.xlu0 %2994 }
 0x8bb   :  { %v7597_v21 = vsel %vm8921_vm4, %v2991_v23, %v2993_v37  ;;  %v7600_v51 = vsel %vm8921_vm4, %v2993_v37, %v2995_v27  ;;  %v5171_v37 = vunpack.i.l.bf16 %v7511_v46 }
 0x8be   :  { %v3054_v18 = vpop.permute.xlu1 %3053  ;;  %v3056_v57 = vpop.permute.xlu0 %3055 }
 0x8bf   :  { %v7604_v61 = vsel %vm8924_vm6, %v5161_v38, %v3054_v18  ;;  %v7607_v2 = vsel %vm8924_vm6, %v3054_v18, %v3056_v57 }
 0x8c2   :  { %v3060_v35 = vpop.permute.xlu1 %3059  ;;  %v3058_v10 = vpop.permute.xlu0 %3057 }
 0x8c3   :  { %v7610_v50 = vsel %vm8924_vm6, %v3056_v57, %v3058_v10  ;;  %v7613_v31 = vsel %vm8924_vm6, %v3058_v10, %v3060_v35 }
 0x8c6   :  { %v3121_v60 = vpop.permute.xlu1 %3120  ;;  %v3119_v44 = vpop.permute.xlu0 %3118 }
 0x8c7   :  { %v7617_v14 = vsel %vm8920_vm3, %v5166_v8, %v3119_v44  ;;  %v7620_v22 = vsel %vm8920_vm3, %v3119_v44, %v3121_v60 }
 0x8ca   :  { %v3123_v63 = vpop.permute.xlu1 %3122  ;;  %v3125_v29 = vpop.permute.xlu0 %3124 }
 0x8cb   :  { %v7623_v23 = vsel %vm8920_vm3, %v3121_v60, %v3123_v63  ;;  %v7626_v28 = vsel %vm8920_vm3, %v3123_v63, %v3125_v29 }
 0x8ce   :  { %v3184_v27 = vpop.permute.xlu1 %3183  ;;  %v3186_v38 = vpop.permute.xlu0 %3185 }
 0x8cf   :  { %v7630_v18 = vsel %vm8923_vm8, %v5171_v37, %v3184_v27  ;;  %v7633_v57 = vsel %vm8923_vm8, %v3184_v27, %v3186_v38 }
 0x8d2   :  { %v3190_v35 = vpop.permute.xlu1 %3189  ;;  %v3188_v10 = vpop.permute.xlu0 %3187 }
 0x8d3   :  { %v7636_v8 = vsel %vm8923_vm8, %v3186_v38, %v3188_v10  ;;  %v7639_v60 = vsel %vm8923_vm8, %v3188_v10, %v3190_v35  ;;  %v5142_v35 = vunpack.i.h.bf16 %v7281_v24  ;;  %v5147_v24 = vunpack.i.h.bf16 %v7493_v20 }
 0x8d6   :  { %v3251_v44 = vpop.permute.xlu1 %3250  ;;  %v3249_v63 = vpop.permute.xlu0 %3248 }
 0x8d7   :  { %v7643_v29 = vsel %vm8919_vm10, %v7525_v4, %v3249_v63  ;;  %v7646_v37 = vsel %vm8919_vm10, %v3249_v63, %v3251_v44 }
 0x8da   :  { %v3253_v27 = vpop.permute.xlu1 %3252  ;;  %v3255_v48 = vpop.permute.xlu0 %3254 }
 0x8db   :  { %v7649_v36 = vsel %vm8919_vm10, %v3251_v44, %v3253_v27  ;;  %v7652_v38 = vsel %vm8919_vm10, %v3253_v27, %v3255_v48 }
 0x8de   :  { %v2806_v10 = vpop.permute.xlu1 %2805  ;;  %v2804_v3 = vpop.permute.xlu0 %2803 }
 0x8df   :  { %v2816_v32 = vsel %vm2811_vm13, %v5142_v35, %v2804_v3  ;;  %v2817_v4 = vsel %vm2811_vm13, %v2804_v3, %v2806_v10 }
 0x8e0   :  { %2832 = vst [vmem:[#allocation3 + $0x20] sm:$0xff] %v2816_v32  ;;  %2833 = vst [vmem:[#allocation3 + $0x28] sm:$0xff] %v2817_v4  ;;  %3397 = vmatprep.subr.bf16.mxu0 %v2817_v4 }
 0x8e1   :  { %3398 = vmatpush1.bf16.msra.mxu0 %v2816_v32 }
 0x8e2   :  { %v2810_v63 = vpop.permute.xlu1 %2809  ;;  %v2808_v12 = vpop.permute.xlu0 %2807  ;;  %3399 = vmatprep.subr.bf16.mxu0 %v7556_v5 }
 0x8e3   :  { %v2818_v44 = vsel %vm2811_vm13, %v2806_v10, %v2808_v12  ;;  %v2819_v48 = vsel %vm2811_vm13, %v2808_v12, %v2810_v63 }
 0x8e4   :  { %2834 = vst [vmem:[#allocation3 + $0x30] sm:$0xff] %v2818_v44  ;;  %2835 = vst [vmem:[#allocation3 + $0x38] sm:$0xff] %v2819_v48  ;;  %3479 = vmatprep.subr.bf16.mxu1 %v2819_v48  ;;  %v5157_v48 = vunpack.i.h.bf16 %v7505_v59 }
 0x8e5   :  { %3400 = vmatpush1.bf16.msra.mxu0 %v7553_v16  ;;  %3480 = vmatpush1.bf16.msra.mxu1 %v2818_v44 }
 0x8e6   :  { %v2869_v3 = vpop.permute.xlu1 %2868  ;;  %v2871_v27 = vpop.permute.xlu0 %2870  ;;  %3481 = vmatprep.subr.bf16.mxu1 %v7568_v62  ;;  %v5152_v62 = vunpack.i.h.bf16 %v7491_v6 }
 0x8e7   :  { %v2881_v32 = vsel %vm8922_vm15, %v5147_v24, %v2869_v3  ;;  %v2882_v5 = vsel %vm8922_vm15, %v2869_v3, %v2871_v27 }
 0x8e8   :  { %2897 = vst [vmem:[#allocation3 + $0x60] sm:$0xff] %v2881_v32  ;;  %2898 = vst [vmem:[#allocation3 + $0x68] sm:$0xff] %v2882_v5  ;;  %3401 = vmatprep.subr.bf16.mxu0 %v2882_v5 }
 0x8e9   :  { %3402 = vmatpush1.bf16.msra.mxu0 %v2881_v32  ;;  %3482 = vmatpush1.bf16.msra.mxu1 %v7565_v43  ;;  %v5162_v32 = vunpack.i.h.bf16 %v7503_v39 }
 0x8ea   :  { %v2873_v12 = vpop.permute.xlu1 %2872  ;;  %v2875_v35 = vpop.permute.xlu0 %2874  ;;  %3403 = vmatprep.subr.bf16.mxu0 %v7577_v26 }
 0x8eb   :  { %v2883_v20 = vsel %vm8922_vm15, %v2871_v27, %v2873_v12  ;;  %v2884_v16 = vsel %vm8922_vm15, %v2873_v12, %v2875_v35 }
 0x8ec   :  { %2899 = vst [vmem:[#allocation3 + $0x70] sm:$0xff] %v2883_v20  ;;  %2900 = vst [vmem:[#allocation3 + $0x78] sm:$0xff] %v2884_v16  ;;  %3483 = vmatprep.subr.bf16.mxu1 %v2884_v16 }
 0x8ed   :  { %3404 = vmatpush1.bf16.msra.mxu0 %v7574_v53  ;;  %3484 = vmatpush1.bf16.msra.mxu1 %v2883_v20  ;;  %v5167_v20 = vunpack.i.h.bf16 %v7513_v56 }
 0x8ee   :  { %v2936_v10 = vpop.permute.xlu1 %2935  ;;  %v2934_v4 = vpop.permute.xlu0 %2933  ;;  %3485 = vmatprep.subr.bf16.mxu1 %v7585_v52 }
 0x8ef   :  { %v2946_v43 = vsel %vm2941_vm7, %v5152_v62, %v2934_v4  ;;  %v2947_v26 = vsel %vm2941_vm7, %v2934_v4, %v2936_v10  ;;  %v5172_v4 = vunpack.i.h.bf16 %v7511_v46 }
 0x8f0   :  { %3405 = vmatprep.subr.bf16.mxu0 %v2947_v26 }
 0x8f1   :  { %3406 = vmatpush1.bf16.msra.mxu0 %v2946_v43  ;;  %3486 = vmatpush1.bf16.msra.mxu1 %v7582_v30 }
 0x8f2   :  { %v2940_v63 = vpop.permute.xlu1 %2939  ;;  %v2938_v44 = vpop.permute.xlu0 %2937  ;;  %3407 = vmatprep.subr.bf16.mxu0 %v7594_v7 }
 0x8f3   :  { %v2948_v6 = vsel %vm2941_vm7, %v2936_v10, %v2938_v44  ;;  %v2949_v53 = vsel %vm2941_vm7, %v2938_v44, %v2940_v63 }
 0x8f4   :  { %3487 = vmatprep.subr.bf16.mxu1 %v2949_v53 }
 0x8f5   :  { %3408 = vmatpush1.bf16.msra.mxu0 %v7591_v42  ;;  %3488 = vmatpush1.bf16.msra.mxu1 %v2948_v6 }
 0x8f6   :  { %v2999_v52 = vpop.permute.xlu1 %2998  ;;  %v3001_v24 = vpop.permute.xlu0 %3000  ;;  %3489 = vmatprep.subr.bf16.mxu1 %v7600_v51 }
 0x8f7   :  { %v3011_v30 = vsel %vm8921_vm4, %v5157_v48, %v2999_v52  ;;  %v3012_v3 = vsel %vm8921_vm4, %v2999_v52, %v3001_v24 }
 0x8f8   :  { %3409 = vmatprep.subr.bf16.mxu0 %v3012_v3 }
 0x8f9   :  { %3410 = vmatpush1.bf16.msra.mxu0 %v3011_v30  ;;  %3490 = vmatpush1.bf16.msra.mxu1 %v7597_v21  ;;  %v9442_v30 = vld [vmem:[#allocation26_spill] sm:$0xff] }
 0x8fa   :  { %v3003_v7 = vpop.permute.xlu1 %3002  ;;  %v3005_v27 = vpop.permute.xlu0 %3004  ;;  %3411 = vmatprep.subr.bf16.mxu0 %v7607_v2  ;;  %v695_v3 = vmul.u32 2, %v9442_v30 }
 0x8fb   :  { %v3013_v59 = vsel %vm8921_vm4, %v3001_v24, %v3003_v7  ;;  %v3014_v42 = vsel %vm8921_vm4, %v3003_v7, %v3005_v27  ;;  %v9403_v24 = vmov 1.0|1.0   ;;  %v9412_v27 = vld [vmem:[#allocation17_spill] sm:$0xff]  ;;  %v9443_v7 = vld [vmem:[#allocation28_spill] sm:$0xff] }
 0x8fc   :  { %3491 = vmatprep.subr.bf16.mxu1 %v3014_v42  ;;  %v9413_v42 = vld [vmem:[#allocation19_spill] sm:$0xff] }
 0x8fd   :  { %3412 = vmatpush1.bf16.msra.mxu0 %v7604_v61  ;;  %3492 = vmatpush1.bf16.msra.mxu1 %v3013_v59  ;;  %v595_v59 = vmul.u32 2, %v9412_v27  ;;  %v696_v27 = vmul.u32 2, %v9443_v7 }
 0x8fe   :  { %v3066_v51 = vpop.permute.xlu1 %3065  ;;  %v3064_v5 = vpop.permute.xlu0 %3063  ;;  %3493 = vmatprep.subr.bf16.mxu1 %v7613_v31 }
 0x8ff   :  { %v3076_v21 = vsel %vm8924_vm6, %v5162_v32, %v3064_v5  ;;  %v3077_v12 = vsel %vm8924_vm6, %v3064_v5, %v3066_v51  ;;  %v691_v32 = vmul.u32 2, %v9413_v42  ;;  %vm7830_vm4 = vcmp.eq.s32.totalorder %v5440_v49, %v595_v59  ;;  %v9501_v42 = vld [vmem:[#allocation44_spill] sm:$0xff] }
 0x900   :  { %3413 = vmatprep.subr.bf16.mxu0 %v3077_v12 }
 0x901   :  { %3414 = vmatpush1.bf16.msra.mxu0 %v3076_v21  ;;  %3494 = vmatpush1.bf16.msra.mxu1 %v7610_v50  ;;  %v9418_v21 = vld [vmem:[#allocation18_spill] sm:$0xff] }
 0x902   :  { %v3070_v2 = vpop.permute.xlu1 %3069  ;;  %v3068_v35 = vpop.permute.xlu0 %3067  ;;  %3415 = vmatprep.subr.bf16.mxu0 %v7620_v22  ;;  %v596_v12 = vmul.u32 2, %v9418_v21  ;;  %v9451_v21 = vld [vmem:[#allocation30_spill] sm:$0xff] }
 0x903   :  { %v3078_v39 = vsel %vm8924_vm6, %v3066_v51, %v3068_v35  ;;  %v3079_v61 = vsel %vm8924_vm6, %v3068_v35, %v3070_v2  ;;  %v9419_v2 = vld [vmem:[#allocation20_spill] sm:$0xff]  ;;  %v9450_v51 = vld [vmem:[#allocation29_spill] sm:$0xff] }
 0x904   :  { %3495 = vmatprep.subr.bf16.mxu1 %v3079_v61  ;;  %v692_v35 = vmul.u32 2, %v9419_v2  ;;  %v601_v5 = vmul.u32 2, %v9450_v51  ;;  %v9452_v2 = vld [vmem:[#allocation31_spill] sm:$0xff] }
 0x905   :  { %3416 = vmatpush1.bf16.msra.mxu0 %v7617_v14  ;;  %3496 = vmatpush1.bf16.msra.mxu1 %v3078_v39  ;;  %v9453_v39 = vld [vmem:[#allocation32_spill] sm:$0xff] }
 0x906   :  { %v3129_v31 = vpop.permute.xlu1 %3128  ;;  %v3131_v16 = vpop.permute.xlu0 %3130  ;;  %3497 = vmatprep.subr.bf16.mxu1 %v7626_v28  ;;  %v698_v61 = vmul.u32 2, %v9453_v39  ;;  %v9511_v39 = vld [vmem:[#allocation46_spill] sm:$0xff] }
 0x907   :  { %v3141_v50 = vsel %vm8920_vm3, %v5167_v20, %v3129_v31  ;;  %v3142_v62 = vsel %vm8920_vm3, %v3129_v31, %v3131_v16 }
 0x908   :  { %3417 = vmatprep.subr.bf16.mxu0 %v3142_v62  ;;  %v9429_v62 = vld [vmem:[#allocation22_spill] sm:$0xff] }
 0x909   :  { %3418 = vmatpush1.bf16.msra.mxu0 %v3141_v50  ;;  %3498 = vmatpush1.bf16.msra.mxu1 %v7623_v23 }
 0x90a   :  { %v3133_v22 = vpop.permute.xlu1 %3132  ;;  %v3135_v10 = vpop.permute.xlu0 %3134  ;;  %3419 = vmatprep.subr.bf16.mxu0 %v7633_v57 }
 0x90b   :  { %v3143_v56 = vsel %vm8920_vm3, %v3131_v16, %v3133_v22  ;;  %v3144_v14 = vsel %vm8920_vm3, %v3133_v22, %v3135_v10  ;;  %v9428_v16 = vld [vmem:[#allocation21_spill] sm:$0xff]  ;;  %v693_v22 = vmul.u32 2, %v9429_v62  ;;  %v9463_v10 = vld [vmem:[#allocation35_spill] sm:$0xff] }
 0x90c   :  { %3499 = vmatprep.subr.bf16.mxu1 %v3144_v14  ;;  %v597_v50 = vmul.u32 2, %v9428_v16  ;;  %v9434_v14 = vld [vmem:[#allocation23_spill] sm:$0xff]  ;;  %v9462_v62 = vld [vmem:[#allocation33_spill] sm:$0xff] }
 0x90d   :  { %3420 = vmatpush1.bf16.msra.mxu0 %v7630_v18  ;;  %3500 = vmatpush1.bf16.msra.mxu1 %v3143_v56  ;;  %vm732_vm15 = vcmp.eq.s32.totalorder %v5450_v54, %v693_v22  ;;  %v604_v56 = vmul.u32 2, %v9463_v10  ;;  %v9516_v16 = vld [vmem:[#allocation47_spill] sm:$0xff] }
 0x90e   :  { %v3196_v28 = vpop.permute.xlu1 %3195  ;;  %v3194_v43 = vpop.permute.xlu0 %3193  ;;  %3501 = vmatprep.subr.bf16.mxu1 %v7639_v60 }
 0x90f   :  { %v3206_v23 = vsel %vm8923_vm8, %v5172_v4, %v3194_v43  ;;  %v3207_v26 = vsel %vm8923_vm8, %v3194_v43, %v3196_v28  ;;  %v598_v4 = vmul.u32 2, %v9434_v14 }
 0x910   :  { %3421 = vmatprep.subr.bf16.mxu0 %v3207_v26  ;;  %v9436_v26 = vld [vmem:[#allocation73_spill] sm:$0xff] }
 0x911   :  { %3422 = vmatpush1.bf16.msra.mxu0 %v3206_v23  ;;  %3502 = vmatpush1.bf16.msra.mxu1 %v7636_v8 }
 0x912   :  { %v3200_v57 = vpop.permute.xlu1 %3199  ;;  %v3198_v63 = vpop.permute.xlu0 %3197  ;;  %3423 = vmatprep.subr.bf16.mxu0 %v7646_v37  ;;  %v4959_v37 = vcombine.low %v7535_v55, %v7535_v55  ;;  %v9402_v55 = vld [vmem:[#allocation16_spill] sm:$0xff] }
 0x913   :  { %v3208_v46 = vsel %vm8923_vm8, %v3196_v28, %v3198_v63  ;;  %v3209_v18 = vsel %vm8923_vm8, %v3198_v63, %v3200_v57  ;;  %v690_v52 = vmul.u32 2, %v9402_v55  ;;  %v9435_v28 = vld [vmem:[#allocation24_spill] sm:$0xff] }
 0x914   :  { %3503 = vmatprep.subr.bf16.mxu1 %v3209_v18  ;;  %v694_v43 = vmul.u32 2, %v9435_v28  ;;  %v9468_v28 = vld [vmem:[#allocation34_spill] sm:$0xff] }
 0x915   :  { %3424 = vmatpush1.bf16.msra.mxu0 %v7643_v29  ;;  %3504 = vmatpush1.bf16.msra.mxu1 %v3208_v46  ;;  %v9437_v46 = vld [vmem:[#allocation74_spill] sm:$0xff] }
 0x916   :  { %v3259_v60 = vpop.permute.xlu1 %3258  ;;  %v3261_v44 = vpop.permute.xlu0 %3260  ;;  %3505 = vmatprep.subr.bf16.mxu1 %v7652_v38 }
 0x917   :  { %v3271_v6 = vsel %vm8919_vm10, %v7523_v45, %v3259_v60  ;;  %v3272_v8 = vsel %vm8919_vm10, %v3259_v60, %v3261_v44  ;;  %v7728_v45 = vld [vmem:[#allocation2 + $0x28] sm:$0xff] }
 0x918   :  { %3425 = vmatprep.subr.bf16.mxu0 %v3272_v8 }
 0x919   :  { %3426 = vmatpush1.bf16.msra.mxu0 %v3271_v6  ;;  %3506 = vmatpush1.bf16.msra.mxu1 %v7649_v36  ;;  %v5179_v36 = vld [vmem:[%s8717_s7 + $0x8] ss:$0 sps:$4 sm:$0xff]  }
 0x91a   :  { %v3265_v53 = vpop.permute.xlu1 %3264  ;;  %v3263_v48 = vpop.permute.xlu0 %3262  ;;  %3436 = vmatprep.subr.bf16.mxu0 %v7395_v17  ;;  %v687_v17 = vmul.u32 2, %v5589_v9 }
 0x91b   :  { %v3273_v29 = vsel %vm8919_vm10, %v3261_v44, %v3263_v48  ;;  %v3274_v38 = vsel %vm8919_vm10, %v3263_v48, %v3265_v53  ;;  %v9438_v48 = vld [vmem:[#allocation75_spill] sm:$0xff] }
 0x91c   :  { %3428 = vmatmul.mubr.bf16.vlgmr.msra.gmra.mrb[20].mxu0 %v4959_v37  ;;  %3507 = vmatprep.subr.bf16.mxu1 %v3274_v38  ;;  %vm720_vm2 = vcmp.eq.s32.totalorder %v5450_v54, %v687_v17  ;;  %vm7761_vm1 = vcmp.eq.s32.totalorder %v5445_v0, %v687_v17 }
 0x91d   :  { %3437 = vmatpush1.bf16.msra.mxu0 %v7397_v19  ;;  %3508 = vmatpush1.bf16.msra.mxu1 %v3273_v29  ;;  %v688_v19 = vmul.u32 2, %v5600_v34  ;;  %v9400_v34 = vld [vmem:[#allocation15_spill] sm:$0xff] }
 0x91e   :  { %3438 = vmatprep.subr.bf16.mxu0 %v7387_v13  ;;  %3518 = vmatprep.subr.bf16.mxu1 %v7399_v11  ;;  %v591_v13 = vmul.u32 2, %v5586_v25 }
 0x91f   :  { %3468 = vmatprep.mubr.bf16.mxu0 %v7728_v45  ;;  %vm722_vm0 = vcmp.eq.s32.totalorder %v5450_v54, %v688_v19  ;;  %vm721_vm3 = vcmp.eq.s32.totalorder %v5445_v0, %v688_v19 }
 0x920   :  { %3510 = vmatmul.mubr.bf16.vlgmr.msra.gmra.mrb[20].mxu1 %v4959_v37  ;;  %vm7746_vm9 = vcmp.eq.s32.totalorder %v5440_v49, %v591_v13  ;;  %vm7756_vm5 = vcmp.eq.s32.totalorder %v5438_v47, %v591_v13  ;;  %v9439_v13 = vld [vmem:[#allocation76_spill] sm:$0xff] }
 0x921   :  { %3439 = vmatpush1.bf16.msra.mxu0 %v7389_v40  ;;  %3519 = vmatpush1.bf16.msra.mxu1 %v7409_v15  ;;  %v592_v40 = vmul.u32 2, %v5598_v33  ;;  %vm784_vm12 = vmand %vm7746_vm9, %vm720_vm2  ;;  %v593_v33 = vmul.u32 2, %v5619_v1 }
 0x922   :  { %3520 = vmatprep.subr.bf16.mxu1 %v7405_v58  ;;  %3550 = vmatprep.mubr.bf16.mxu1 %v7728_v45  ;;  %v594_v58 = vmul.u32 2, %v9400_v34  ;;  %vm783_vm2 = vmand %vm7756_vm5, %vm7761_vm1 }
 0x923   :  { %vm626_vm11 = vcmp.eq.s32.totalorder %v5440_v49, %v592_v40  ;;  %vm625_vm10 = vcmp.eq.s32.totalorder %v5438_v47, %v592_v40 }
 0x924   :  { %vm786_vm14 = vmand %vm626_vm11, %vm722_vm0  ;;  %vm7778_vm11 = vcmp.eq.s32.totalorder %v5440_v49, %v593_v33 }
 0x925   :  { %3521 = vmatpush1.bf16.msra.mxu1 %v7407_v41  ;;  %v9401_v41 = vld [vmem:[#allocation14_spill] sm:$0xff]  ;;  %vm4964_vm9 = vmpackc.low %vm786_vm14, %vm784_vm12  ;;  %vm7788_vm14 = vcmp.eq.s32.totalorder %v5440_v49, %v594_v58 }
 0x926   :  { %v689_v15 = vmul.u32 2, %v9401_v41  ;;  %4965 = vmatprep.subr.msk.bf16.mxu0 %vm4964_vm9, %v9403_v24  ;;  %5029 = vmatprep.subr.msk.bf16.mxu1 %vm4964_vm9, %v9403_v24  ;;  %vm785_vm12 = vmand %vm625_vm10, %vm721_vm3  ;;  %vm7793_vm9 = vcmp.eq.s32.totalorder %v5450_v54, %v690_v52  ;;  %vm7806_vm10 = vcmp.eq.s32.totalorder %v5438_v47, %v593_v33  ;;  %v3592_v41 = vld [vmem:[%s8718_s8] sm:$0xff] }
 0x927   :  { %vm4966_vm5 = vmpackc.low %vm785_vm12, %vm783_vm2 }
 0x928   :  { %4962 = vmatmul.mubr.msk.bf16.vlgmr.msra.gmra.mrb[20].mxu0 %vm2941_vm7, %v5179_v36  ;;  %vm7783_vm0 = vcmp.eq.s32.totalorder %v5450_v54, %v689_v15  ;;  %vm7811_vm1 = vcmp.eq.s32.totalorder %v5445_v0, %v689_v15  ;;  %vm790_vm2 = vmand %vm7788_vm14, %vm7793_vm9  ;;  %vm7835_vm14 = vcmp.eq.s32.totalorder %v5450_v54, %v691_v32  ;;  %v9440_v15 = vld [vmem:[#allocation25_spill] sm:$0xff] }
 0x929   :  { %4967 = vmatpush1.bf16.msk.msra.mxu0 %vm4966_vm5, %v9403_v24  ;;  %vm788_vm3 = vmand %vm7778_vm11, %vm7783_vm0  ;;  %vm629_vm11 = vcmp.eq.s32.totalorder %v5438_v47, %v594_v58  ;;  %vm725_vm0 = vcmp.eq.s32.totalorder %v5445_v0, %v690_v52  ;;  %v599_v55 = vmul.u32 2, %v9440_v15  ;;  %v9441_v52 = vld [vmem:[#allocation27_spill] sm:$0xff] }
 0x92a   :  { %vm4968_vm12 = vmpackc.low %vm790_vm2, %vm788_vm3  ;;  %vm7840_vm3 = vcmp.eq.s32.totalorder %v5440_v49, %v596_v12  ;;  %vm7845_vm2 = vcmp.eq.s32.totalorder %v5450_v54, %v692_v35  ;;  %v600_v1 = vmul.u32 2, %v9441_v52 }
 0x92b   :  { %4969 = vmatprep.subr.msk.bf16.mxu0 %vm4968_vm12, %v9403_v24  ;;  %vm789_vm9 = vmand %vm629_vm11, %vm725_vm0  ;;  %vm7858_vm11 = vcmp.eq.s32.totalorder %v5438_v47, %v595_v59  ;;  %vm7863_vm0 = vcmp.eq.s32.totalorder %v5445_v0, %v691_v32  ;;  %v704_v32 = vmul.u32 2, %v9501_v42 }
 0x92c   :  { %4963 = vmatmul.mubr.msk.bf16.vlgmr.msra.gmra.mrb[20].mxu1 %vm2941_vm7, %v5179_v36 }
 0x92d   :  { %5031 = vmatpush1.bf16.msk.msra.mxu1 %vm4966_vm5, %v9403_v24  ;;  %vm787_vm5 = vmand %vm7806_vm10, %vm7811_vm1 }
 0x92e   :  { %5033 = vmatprep.subr.msk.bf16.mxu1 %vm4968_vm12, %v9403_v24  ;;  %vm4970_vm10 = vmpackc.low %vm789_vm9, %vm787_vm5  ;;  %vm729_vm5 = vcmp.eq.s32.totalorder %v5445_v0, %v692_v35  ;;  %v697_v35 = vmul.u32 2, %v9452_v2  ;;  %v9510_v2 = vld [vmem:[#allocation45_spill] sm:$0xff] }
 0x92f   :  { %4971 = vmatpush1.bf16.msk.msra.mxu0 %vm4970_vm10, %v9403_v24  ;;  %vm792_vm1 = vmand %vm7830_vm4, %vm7835_vm14  ;;  %vm633_vm4 = vcmp.eq.s32.totalorder %v5438_v47, %v596_v12  ;;  %v602_v12 = vmul.u32 2, %v9451_v21 }
 0x930   :  { %vm794_vm12 = vmand %vm7840_vm3, %vm7845_vm2  ;;  %vm638_vm3 = vcmp.eq.s32.totalorder %v5440_v49, %v598_v4  ;;  %vm734_vm2 = vcmp.eq.s32.totalorder %v5450_v54, %v694_v43 }
 0x931   :  { %5035 = vmatpush1.bf16.msk.msra.mxu1 %vm4970_vm10, %v9403_v24  ;;  %vm4972_vm14 = vmpackc.low %vm794_vm12, %vm792_vm1  ;;  %vm636_vm10 = vcmp.eq.s32.totalorder %v5440_v49, %v597_v50 }
 0x932   :  { %4973 = vmatprep.subr.msk.bf16.mxu0 %vm4972_vm14, %v9403_v24  ;;  %5037 = vmatprep.subr.msk.bf16.mxu1 %vm4972_vm14, %v9403_v24  ;;  %vm791_vm9 = vmand %vm7858_vm11, %vm7863_vm0  ;;  %vm733_vm11 = vcmp.eq.s32.totalorder %v5445_v0, %v694_v43  ;;  %v699_v43 = vmul.u32 2, %v9468_v28  ;;  %v9526_v28 = vld [vmem:[#allocation49_spill] sm:$0xff] }
 0x933   :  { %vm793_vm8 = vmand %vm633_vm4, %vm729_vm5 }
 0x934   :  { %vm4974_vm6 = vmpackc.low %vm793_vm8, %vm791_vm9  ;;  %vm731_vm8 = vcmp.eq.s32.totalorder %v5445_v0, %v693_v22  ;;  %vm7923_vm9 = vcmp.eq.s32.totalorder %v5440_v49, %v599_v55  ;;  %v603_v22 = vmul.u32 2, %v9462_v62  ;;  %v9517_v62 = vld [vmem:[#allocation48_spill] sm:$0xff] }
 0x935   :  { %4975 = vmatpush1.bf16.msk.msra.mxu0 %vm4974_vm6, %v9403_v24  ;;  %5039 = vmatpush1.bf16.msk.msra.mxu1 %vm4974_vm6, %v9403_v24  ;;  %vm796_vm1 = vmand %vm636_vm10, %vm732_vm15  ;;  %vm635_vm15 = vcmp.eq.s32.totalorder %v5438_v47, %v597_v50  ;;  %vm637_vm6 = vcmp.eq.s32.totalorder %v5438_v47, %v598_v4  ;;  %vm642_vm10 = vcmp.eq.s32.totalorder %v5440_v49, %v600_v1  ;;  %v610_v50 = vmul.u32 2, %v9516_v16 }
 0x936   :  { %vm798_vm12 = vmand %vm638_vm3, %vm734_vm2  ;;  %vm736_vm3 = vcmp.eq.s32.totalorder %v5450_v54, %v695_v3  ;;  %vm738_vm2 = vcmp.eq.s32.totalorder %v5450_v54, %v696_v27 }
 0x937   :  { %vm4976_vm14 = vmpackc.low %vm798_vm12, %vm796_vm1  ;;  %vm7933_vm12 = vcmp.eq.s32.totalorder %v5438_v47, %v599_v55  ;;  %v9494_v55 = vld [vmem:[#allocation41_spill] sm:$0xff] }
 0x938   :  { %4977 = vmatprep.subr.msk.bf16.mxu0 %vm4976_vm14, %v9403_v24  ;;  %5041 = vmatprep.subr.msk.bf16.mxu1 %vm4976_vm14, %v9403_v24  ;;  %vm795_vm0 = vmand %vm635_vm15, %vm731_vm8  ;;  %vm7938_vm14 = vcmp.eq.s32.totalorder %v5445_v0, %v695_v3  ;;  %vm737_vm8 = vcmp.eq.s32.totalorder %v5445_v0, %v696_v27  ;;  %v607_v52 = vmul.u32 2, %v9494_v55  ;;  %v9500_v27 = vld [vmem:[#allocation43_spill] sm:$0xff]  ;;  %v9549_v55 = vld [vmem:[#allocation56_spill] sm:$0xff] }
 0x939   :  { %vm797_vm4 = vmand %vm637_vm6, %vm733_vm11  ;;  %vm641_vm6 = vcmp.eq.s32.totalorder %v5438_v47, %v600_v1  ;;  %v9495_v1 = vld [vmem:[#allocation42_spill] sm:$0xff]  ;;  %v608_v59 = vmul.u32 2, %v9500_v27  ;;  %v3736_v27 = vld [vmem:[#allocation2] sm:$0xf] }
 0x93a   :  { %vm4978_vm5 = vmpackc.low %vm797_vm4, %vm795_vm0  ;;  %vm7955_vm4 = vcmp.eq.s32.totalorder %v5440_v49, %v601_v5  ;;  %v703_v30 = vmul.u32 2, %v9495_v1 }
 0x93b   :  { %4979 = vmatpush1.bf16.msk.msra.mxu0 %vm4978_vm5, %v9403_v24  ;;  %5043 = vmatpush1.bf16.msk.msra.mxu1 %vm4978_vm5, %v9403_v24  ;;  %vm800_vm1 = vmand %vm7923_vm9, %vm736_vm3  ;;  %vm7960_vm5 = vcmp.eq.s32.totalorder %v5450_v54, %v697_v35  ;;  %vm7970_vm3 = vcmp.eq.s32.totalorder %v5450_v54, %v698_v61 }
 0x93c   :  { %vm802_vm15 = vmand %vm642_vm10, %vm738_vm2  ;;  %vm7965_vm10 = vcmp.eq.s32.totalorder %v5440_v49, %v602_v12 }
 0x93d   :  { %vm4980_vm11 = vmpackc.low %vm802_vm15, %vm800_vm1 }
 0x93e   :  { %4981 = vmatprep.subr.msk.bf16.mxu0 %vm4980_vm11, %v9403_v24  ;;  %5045 = vmatprep.subr.msk.bf16.mxu1 %vm4980_vm11, %v9403_v24  ;;  %vm799_vm0 = vmand %vm7933_vm12, %vm7938_vm14  ;;  %vm7983_vm12 = vcmp.eq.s32.totalorder %v5438_v47, %v601_v5  ;;  %vm7988_vm14 = vcmp.eq.s32.totalorder %v5445_v0, %v697_v35  ;;  %v609_v35 = vmul.u32 2, %v9510_v2  ;;  %v9561_v5 = vld [vmem:[#allocation58_spill] sm:$0xff]  ;;  %v9564_v2 = vld [vmem:[#allocation59_spill] sm:$0xff] }
 0x93f   :  { %vm801_vm9 = vmand %vm641_vm6, %vm737_vm8  ;;  %vm645_vm6 = vcmp.eq.s32.totalorder %v5438_v47, %v602_v12  ;;  %vm741_vm8 = vcmp.eq.s32.totalorder %v5445_v0, %v698_v61  ;;  %v705_v61 = vmul.u32 2, %v9511_v39  ;;  %v711_v21 = vmul.u32 2, %v9561_v5  ;;  %v9565_v39 = vld [vmem:[#allocation60_spill] sm:$0xff] }
 0x940   :  { %vm4982_vm2 = vmpackc.low %vm801_vm9, %vm799_vm0 }
 0x941   :  { %4983 = vmatpush1.bf16.msk.msra.mxu0 %vm4982_vm2, %v9403_v24  ;;  %5047 = vmatpush1.bf16.msk.msra.mxu1 %vm4982_vm2, %v9403_v24  ;;  %vm804_vm1 = vmand %vm7955_vm4, %vm7960_vm5  ;;  %vm8007_vm4 = vcmp.eq.s32.totalorder %v5440_v49, %v603_v22  ;;  %vm8012_vm5 = vcmp.eq.s32.totalorder %v5450_v54, %v699_v43 }
 0x942   :  { %vm806_vm15 = vmand %vm7965_vm10, %vm7970_vm3  ;;  %vm8017_vm10 = vcmp.eq.s32.totalorder %v5440_v49, %v604_v56 }
 0x943   :  { %vm4984_vm11 = vmpackc.low %vm806_vm15, %vm804_vm1 }
 0x944   :  { %4985 = vmatprep.subr.msk.bf16.mxu0 %vm4984_vm11, %v9403_v24  ;;  %5049 = vmatprep.subr.msk.bf16.mxu1 %vm4984_vm11, %v9403_v24  ;;  %vm803_vm0 = vmand %vm7983_vm12, %vm7988_vm14  ;;  %vm8035_vm12 = vcmp.eq.s32.totalorder %v5438_v47, %v603_v22  ;;  %vm8040_vm14 = vcmp.eq.s32.totalorder %v5445_v0, %v699_v43  ;;  %v706_v22 = vmul.u32 2, %v9517_v62  ;;  %v611_v43 = vmul.u32 2, %v9526_v28 }
 0x945   :  { %vm805_vm9 = vmand %vm645_vm6, %vm741_vm8  ;;  %vm649_vm6 = vcmp.eq.s32.totalorder %v5438_v47, %v604_v56  ;;  %v9575_v56 = vld [vmem:[#allocation62_spill] sm:$0xff] }
 0x946   :  { %vm4986_vm2 = vmpackc.low %vm805_vm9, %vm803_vm0  ;;  %v713_v14 = vmul.u32 2, %v9575_v56 }
 0x947   :  { %4987 = vmatpush1.bf16.msk.msra.mxu0 %vm4986_vm2, %v9403_v24  ;;  %5051 = vmatpush1.bf16.msk.msra.mxu1 %vm4986_vm2, %v9403_v24  ;;  %vm808_vm1 = vmand %vm8007_vm4, %vm8012_vm5 }
 0x948   :  { %vm807_vm0 = vmand %vm8035_vm12, %vm8040_vm14 }
 0x9fb   :  { %v7889_v23 = vpop.f32.mrb[20].mxu0 }
 0x9fc   :  { %v3559_v57 = vmul.f32 %v7889_v23, %v9436_v26  ;;  %v7893_v63 = vpop.f32.mrb[21].mxu0 }
 0x9fd   :  { %v3560_v18 = vmul.f32 %v7893_v63, %v9437_v46  ;;  %v3474_v60 = vpop.f32.mrb[22].mxu0 }
 0x9fe   :  { %v3569_v44 = vmul.f32 %v3559_v57, %v7889_v23  ;;  %v3475_v6 = vpop.f32.mrb[23].mxu0 }
 0x9ff   :  { %v3563_v8 = vadd.f32 %v3560_v18, %v3559_v57  ;;  %v3570_v37 = vmul.f32 %v3560_v18, %v7893_v63  ;;  %v7899_v53 = vpop.f32.mrb[20].mxu1  ;;  %v9469_v57 = vld [vmem:[#allocation36_spill] sm:$0xff]  ;;  %v9532_v6 = vld [vmem:[#allocation50_spill] sm:$0xff] }
 0xa00   :  { %v3561_v29 = vmul.f32 %v7899_v53, %v9438_v48  ;;  %v7903_v38 = vpop.f32.mrb[21].mxu1  ;;  %v700_v18 = vmul.u32 2, %v9469_v57  ;;  %v9527_v57 = vld [vmem:[#allocation51_spill] sm:$0xff] }
 0xa01   :  { %v3573_v36 = vadd.f32 %v3570_v37, %v3569_v44  ;;  %v3562_v40 = vmul.f32 %v7903_v38, %v9439_v13  ;;  %v3556_v17 = vpop.f32.mrb[22].mxu1  ;;  %v9478_v37 = vld [vmem:[#allocation37_spill] sm:$0xff] }
 0xa02   :  { %v3564_v19 = vadd.f32 %v3563_v8, %v3561_v29  ;;  %v3571_v11 = vmul.f32 %v3561_v29, %v7899_v53  ;;  %v3557_v25 = vpop.f32.mrb[23].mxu1  ;;  %vm8022_vm3 = vcmp.eq.s32.totalorder %v5450_v54, %v700_v18  ;;  %v605_v29 = vmul.u32 2, %v9478_v37  ;;  %v9533_v37 = vld [vmem:[#allocation52_spill] sm:$0xff] }
 0xa03   :  { %v3572_v9 = vmul.f32 %v3562_v40, %v7903_v38  ;;  %vm810_vm15 = vmand %vm8017_vm10, %vm8022_vm3  ;;  %vm745_vm8 = vcmp.eq.s32.totalorder %v5445_v0, %v700_v18  ;;  %v707_v18 = vmul.u32 2, %v9527_v57  ;;  %v612_v8 = vmul.u32 2, %v9532_v6 }
 0xa04   :  { %v3574_v33 = vadd.f32 %v3573_v36, %v3571_v11  ;;  %v3565_v34 = vadd.f32 %v3564_v19, %v3562_v40  ;;  %v9479_v36 = vld [vmem:[#allocation39_spill] sm:$0xff]  ;;  %v9484_v11 = vld [vmem:[#allocation38_spill] sm:$0xff]  ;;  %vm4988_vm11 = vmpackc.low %vm810_vm15, %vm808_vm1  ;;  %vm8059_vm4 = vcmp.eq.s32.totalorder %v5440_v49, %v605_v29  ;;  %vm8087_vm12 = vcmp.eq.s32.totalorder %v5438_v47, %v605_v29 }
 0xa05   :  { %v701_v40 = vmul.u32 2, %v9479_v36  ;;  %v606_v25 = vmul.u32 2, %v9484_v11  ;;  %4989 = vmatprep.subr.msk.bf16.mxu0 %vm4988_vm11, %v9403_v24  ;;  %5053 = vmatprep.subr.msk.bf16.mxu1 %vm4988_vm11, %v9403_v24  ;;  %vm809_vm9 = vmand %vm649_vm6, %vm745_vm8  ;;  %v9542_v11 = vld [vmem:[#allocation53_spill] sm:$0xff] }
 0xa06   :  { %3566 = vadd.xlane.f32.xlu0 %v3565_v34  ;;  %v3575_v58 = vadd.f32 %v3574_v33, %v3572_v9  ;;  %v9485_v9 = vld [vmem:[#allocation40_spill] sm:$0xff]  ;;  %vm4990_vm2 = vmpackc.low %vm809_vm9, %vm807_vm0  ;;  %v708_v29 = vmul.u32 2, %v9533_v37 }
 0xa07   :  { %v702_v33 = vmul.u32 2, %v9485_v9  ;;  %vm8064_vm5 = vcmp.eq.s32.totalorder %v5450_v54, %v701_v40  ;;  %vm8069_vm10 = vcmp.eq.s32.totalorder %v5440_v49, %v606_v25  ;;  %4991 = vmatpush1.bf16.msk.msra.mxu0 %vm4990_vm2, %v9403_v24  ;;  %5055 = vmatpush1.bf16.msk.msra.mxu1 %vm4990_vm2, %v9403_v24  ;;  %vm8092_vm14 = vcmp.eq.s32.totalorder %v5445_v0, %v701_v40  ;;  %v9543_v9 = vld [vmem:[#allocation54_spill] sm:$0xff] }
 0xa08   :  { %3576 = vadd.xlane.f32.xlu1 %v3575_v58  ;;  %vm812_vm1 = vmand %vm8059_vm4, %vm8064_vm5  ;;  %vm653_vm6 = vcmp.eq.s32.totalorder %v5438_v47, %v606_v25  ;;  %vm8111_vm4 = vcmp.eq.s32.totalorder %v5440_v49, %v607_v52  ;;  %vm8116_vm5 = vcmp.eq.s32.totalorder %v5450_v54, %v703_v30  ;;  %v613_v25 = vmul.u32 2, %v9542_v11  ;;  %v9591_v40 = vld [vmem:[#allocation66_spill] sm:$0xff] }
 0xa09   :  { %vm8074_vm3 = vcmp.eq.s32.totalorder %v5450_v54, %v702_v33  ;;  %vm749_vm8 = vcmp.eq.s32.totalorder %v5445_v0, %v702_v33  ;;  %vm811_vm0 = vmand %vm8087_vm12, %vm8092_vm14  ;;  %vm8139_vm12 = vcmp.eq.s32.totalorder %v5438_v47, %v607_v52  ;;  %vm8144_vm14 = vcmp.eq.s32.totalorder %v5445_v0, %v703_v30  ;;  %v9607_v30 = vld [vmem:[#allocation71_spill] sm:$0xff] }
 0xa0a   :  { %vm814_vm15 = vmand %vm8069_vm10, %vm8074_vm3  ;;  %vm8121_vm10 = vcmp.eq.s32.totalorder %v5440_v49, %v608_v59  ;;  %vm8126_vm3 = vcmp.eq.s32.totalorder %v5450_v54, %v704_v32  ;;  %v709_v33 = vmul.u32 2, %v9543_v9  ;;  %v710_v52 = vmul.u32 2, %v9549_v55 }
 0xa0b   :  { %vm4992_vm11 = vmpackc.low %vm814_vm15, %vm812_vm1  ;;  %v715_v17 = vmul.u32 2, %v9591_v40  ;;  %v717_v3 = vmul.u32 2, %v9607_v30 }
 0xa0c   :  { %4993 = vmatprep.subr.msk.bf16.mxu0 %vm4992_vm11, %v9403_v24  ;;  %5057 = vmatprep.subr.msk.bf16.mxu1 %vm4992_vm11, %v9403_v24  ;;  %vm813_vm9 = vmand %vm653_vm6, %vm749_vm8  ;;  %vm657_vm6 = vcmp.eq.s32.totalorder %v5438_v47, %v608_v59  ;;  %vm753_vm8 = vcmp.eq.s32.totalorder %v5445_v0, %v704_v32  ;;  %v3768_v59 = vld [vmem:[#allocation2] sm:$0xf] }
 0xa0d   :  { %vm4994_vm2 = vmpackc.low %vm813_vm9, %vm811_vm0  ;;  %v9560_v32 = vld [vmem:[#allocation57_spill] sm:$0xff]  ;;  %v3778_v20 = vrot.slane %v3768_v59, 4  ;;  %v9612_v59 = vld [vmem:[#allocation70_spill] sm:$0xff] }
 0xa0e   :  { %4995 = vmatpush1.bf16.msk.msra.mxu0 %vm4994_vm2, %v9403_v24  ;;  %5059 = vmatpush1.bf16.msk.msra.mxu1 %vm4994_vm2, %v9403_v24  ;;  %vm816_vm1 = vmand %vm8111_vm4, %vm8116_vm5  ;;  %vm8163_vm4 = vcmp.eq.s32.totalorder %v5440_v49, %v609_v35  ;;  %vm8168_vm5 = vcmp.eq.s32.totalorder %v5450_v54, %v705_v61  ;;  %v615_v51 = vmul.u32 2, %v9560_v32  ;;  %v622_v42 = vmul.u32 2, %v9612_v59  ;;  %v9613_v32 = vld [vmem:[#allocation72_spill] sm:$0xff] }
 0xa0f   :  { %vm818_vm15 = vmand %vm8121_vm10, %vm8126_vm3  ;;  %vm8173_vm10 = vcmp.eq.s32.totalorder %v5440_v49, %v610_v50  ;;  %vm8178_vm3 = vcmp.eq.s32.totalorder %v5450_v54, %v706_v22 }
 0xa10   :  { %vm4996_vm11 = vmpackc.low %vm818_vm15, %vm816_vm1 }
 0xa11   :  { %4997 = vmatprep.subr.msk.bf16.mxu0 %vm4996_vm11, %v9403_v24  ;;  %5061 = vmatprep.subr.msk.bf16.mxu1 %vm4996_vm11, %v9403_v24  ;;  %vm815_vm0 = vmand %vm8139_vm12, %vm8144_vm14  ;;  %vm8191_vm12 = vcmp.eq.s32.totalorder %v5438_v47, %v609_v35  ;;  %vm8196_vm14 = vcmp.eq.s32.totalorder %v5445_v0, %v705_v61  ;;  %v616_v35 = vmul.u32 2, %v9564_v2  ;;  %v712_v61 = vmul.u32 2, %v9565_v39 }
 0xa12   :  { %vm817_vm9 = vmand %vm657_vm6, %vm753_vm8  ;;  %vm661_vm6 = vcmp.eq.s32.totalorder %v5438_v47, %v610_v50  ;;  %vm757_vm8 = vcmp.eq.s32.totalorder %v5445_v0, %v706_v22  ;;  %v9574_v22 = vld [vmem:[#allocation61_spill] sm:$0xff] }
 0xa13   :  { %vm4998_vm2 = vmpackc.low %vm817_vm9, %vm815_vm0  ;;  %v617_v10 = vmul.u32 2, %v9574_v22 }
 0xa14   :  { %4999 = vmatpush1.bf16.msk.msra.mxu0 %vm4998_vm2, %v9403_v24  ;;  %5063 = vmatpush1.bf16.msk.msra.mxu1 %vm4998_vm2, %v9403_v24  ;;  %vm820_vm1 = vmand %vm8163_vm4, %vm8168_vm5  ;;  %vm8215_vm4 = vcmp.eq.s32.totalorder %v5440_v49, %v611_v43  ;;  %vm8220_vm5 = vcmp.eq.s32.totalorder %v5450_v54, %v707_v18 }
 0xa15   :  { %vm822_vm15 = vmand %vm8173_vm10, %vm8178_vm3  ;;  %vm8225_vm10 = vcmp.eq.s32.totalorder %v5440_v49, %v612_v8  ;;  %vm8230_vm3 = vcmp.eq.s32.totalorder %v5450_v54, %v708_v29 }
 0xa16   :  { %vm5000_vm11 = vmpackc.low %vm822_vm15, %vm820_vm1 }
 0xa17   :  { %5001 = vmatprep.subr.msk.bf16.mxu0 %vm5000_vm11, %v9403_v24  ;;  %5065 = vmatprep.subr.msk.bf16.mxu1 %vm5000_vm11, %v9403_v24  ;;  %vm819_vm0 = vmand %vm8191_vm12, %vm8196_vm14  ;;  %vm8243_vm12 = vcmp.eq.s32.totalorder %v5438_v47, %v611_v43  ;;  %vm8248_vm14 = vcmp.eq.s32.totalorder %v5445_v0, %v707_v18  ;;  %v9580_v43 = vld [vmem:[#allocation63_spill] sm:$0xff]  ;;  %v9581_v18 = vld [vmem:[#allocation64_spill] sm:$0xff] }
 0xa18   :  { %vm821_vm9 = vmand %vm661_vm6, %vm757_vm8  ;;  %vm665_vm6 = vcmp.eq.s32.totalorder %v5438_v47, %v612_v8  ;;  %vm761_vm8 = vcmp.eq.s32.totalorder %v5445_v0, %v708_v29  ;;  %v618_v57 = vmul.u32 2, %v9580_v43  ;;  %v714_v60 = vmul.u32 2, %v9581_v18  ;;  %v9590_v29 = vld [vmem:[#allocation65_spill] sm:$0xff] }
 0xa19   :  { %3603 = vperm.xlu1 %5137, %v3592_v41   ;;  %vm5002_vm2 = vmpackc.low %vm821_vm9, %vm819_vm0  ;;  %v619_v36 = vmul.u32 2, %v9590_v29 }
 0xa1a   :  { %5003 = vmatpush1.bf16.msk.msra.mxu0 %vm5002_vm2, %v9403_v24  ;;  %5067 = vmatpush1.bf16.msk.msra.mxu1 %vm5002_vm2, %v9403_v24  ;;  %vm824_vm1 = vmand %vm8215_vm4, %vm8220_vm5  ;;  %vm8267_vm4 = vcmp.eq.s32.totalorder %v5440_v49, %v613_v25  ;;  %vm8272_vm5 = vcmp.eq.s32.totalorder %v5450_v54, %v709_v33 }
 0xa1b   :  { %vm826_vm15 = vmand %vm8225_vm10, %vm8230_vm3  ;;  %vm8282_vm3 = vcmp.eq.s32.totalorder %v5450_v54, %v710_v52 }
 0xa1c   :  { %3595 = vperm.xlu0 %5136, %v3592_v41   ;;  %v9548_v41 = vld [vmem:[#allocation55_spill] sm:$0xff]  ;;  %vm5004_vm11 = vmpackc.low %vm826_vm15, %vm824_vm1  ;;  %vm8287_vm1 = vcmp.eq.s32.totalorder %v5438_v47, %v613_v25 }
 0xa1d   :  { %v614_v15 = vmul.u32 2, %v9548_v41  ;;  %5005 = vmatprep.subr.msk.bf16.mxu0 %vm5004_vm11, %v9403_v24  ;;  %5069 = vmatprep.subr.msk.bf16.mxu1 %vm5004_vm11, %v9403_v24  ;;  %vm823_vm0 = vmand %vm8243_vm12, %vm8248_vm14  ;;  %vm8301_vm14 = vcmp.eq.s32.totalorder %v5445_v0, %v709_v33  ;;  %v9596_v25 = vld [vmem:[#allocation67_spill] sm:$0xff]  ;;  %v9597_v33 = vld [vmem:[#allocation68_spill] sm:$0xff] }
 0xa1e   :  { %vm825_vm9 = vmand %vm665_vm6, %vm761_vm8  ;;  %3746 = vrot.lane.b32.xlu1 %v3736_v27, %s5253_s0  ;;  %vm765_vm8 = vcmp.eq.s32.totalorder %v5445_v0, %v710_v52  ;;  %v620_v9 = vmul.u32 2, %v9596_v25  ;;  %v716_v34 = vmul.u32 2, %v9597_v33  ;;  %v9606_v52 = vld [vmem:[#allocation69_spill] sm:$0xff] }
 0xa1f   :  { %vm8277_vm10 = vcmp.eq.s32.totalorder %v5440_v49, %v614_v15  ;;  %vm5006_vm2 = vmpackc.low %vm825_vm9, %vm823_vm0  ;;  %vm669_vm6 = vcmp.eq.s32.totalorder %v5438_v47, %v614_v15  ;;  %v621_v1 = vmul.u32 2, %v9606_v52 }
 0xa20   :  { %5007 = vmatpush1.bf16.msk.msra.mxu0 %vm5006_vm2, %v9403_v24  ;;  %5071 = vmatpush1.bf16.msk.msra.mxu1 %vm5006_vm2, %v9403_v24  ;;  %vm828_vm12 = vmand %vm8267_vm4, %vm8272_vm5  ;;  %vm8321_vm4 = vcmp.eq.s32.totalorder %v5440_v49, %v615_v51  ;;  %vm8326_vm5 = vcmp.eq.s32.totalorder %v5450_v54, %v711_v21 }
 0xa21   :  { %vm830_vm15 = vmand %vm8277_vm10, %vm8282_vm3  ;;  %3783 = vrot.lane.b32.xlu0 %v3778_v20, %s5255_s21  ;;  %vm8331_vm10 = vcmp.eq.s32.totalorder %v5440_v49, %v616_v35  ;;  %vm8336_vm3 = vcmp.eq.s32.totalorder %v5450_v54, %v712_v61 }
 0xa22   :  { %vm5008_vm11 = vmpackc.low %vm830_vm15, %vm828_vm12  ;;  %vm8349_vm12 = vcmp.eq.s32.totalorder %v5438_v47, %v615_v51  ;;  %v718_v51 = vmul.u32 2, %v9613_v32  ;;  %v3906_v32 = vld [vmem:[#allocation2] sm:$0xf] }
 0xa23   :  { %5009 = vmatprep.subr.msk.bf16.mxu0 %vm5008_vm11, %v9403_v24  ;;  %5073 = vmatprep.subr.msk.bf16.mxu1 %vm5008_vm11, %v9403_v24  ;;  %vm827_vm0 = vmand %vm8287_vm1, %vm8301_vm14  ;;  %vm8354_vm14 = vcmp.eq.s32.totalorder %v5445_v0, %v711_v21 }
 0xa24   :  { %vm829_vm9 = vmand %vm669_vm6, %vm765_vm8  ;;  %vm673_vm6 = vcmp.eq.s32.totalorder %v5438_v47, %v616_v35  ;;  %vm769_vm8 = vcmp.eq.s32.totalorder %v5445_v0, %v712_v61 }
 0xa25   :  { %vm5010_vm2 = vmpackc.low %vm829_vm9, %vm827_vm0 }
 0xa26   :  { %5011 = vmatpush1.bf16.msk.msra.mxu0 %vm5010_vm2, %v9403_v24  ;;  %5075 = vmatpush1.bf16.msk.msra.mxu1 %vm5010_vm2, %v9403_v24  ;;  %vm832_vm1 = vmand %vm8321_vm4, %vm8326_vm5  ;;  %vm8373_vm4 = vcmp.eq.s32.totalorder %v5440_v49, %v617_v10  ;;  %vm8378_vm5 = vcmp.eq.s32.totalorder %v5450_v54, %v713_v14 }
 0xa27   :  { %vm834_vm15 = vmand %vm8331_vm10, %vm8336_vm3  ;;  %vm8383_vm10 = vcmp.eq.s32.totalorder %v5440_v49, %v618_v57  ;;  %vm8388_vm3 = vcmp.eq.s32.totalorder %v5450_v54, %v714_v60 }
 0xa28   :  { %vm5012_vm11 = vmpackc.low %vm834_vm15, %vm832_vm1 }
 0xa29   :  { %5013 = vmatprep.subr.msk.bf16.mxu0 %vm5012_vm11, %v9403_v24  ;;  %5077 = vmatprep.subr.msk.bf16.mxu1 %vm5012_vm11, %v9403_v24  ;;  %vm831_vm0 = vmand %vm8349_vm12, %vm8354_vm14  ;;  %vm8401_vm12 = vcmp.eq.s32.totalorder %v5438_v47, %v617_v10  ;;  %vm8406_vm14 = vcmp.eq.s32.totalorder %v5445_v0, %v713_v14 }
 0xa2a   :  { %vm833_vm9 = vmand %vm673_vm6, %vm769_vm8  ;;  %vm677_vm6 = vcmp.eq.s32.totalorder %v5438_v47, %v618_v57  ;;  %vm773_vm8 = vcmp.eq.s32.totalorder %v5445_v0, %v714_v60 }
 0xa2b   :  { %vm5014_vm2 = vmpackc.low %vm833_vm9, %vm831_vm0 }
 0xa2c   :  { %5015 = vmatpush1.bf16.msk.msra.mxu0 %vm5014_vm2, %v9403_v24  ;;  %5079 = vmatpush1.bf16.msk.msra.mxu1 %vm5014_vm2, %v9403_v24  ;;  %vm836_vm1 = vmand %vm8373_vm4, %vm8378_vm5  ;;  %vm8425_vm4 = vcmp.eq.s32.totalorder %v5440_v49, %v619_v36  ;;  %vm8430_vm5 = vcmp.eq.s32.totalorder %v5450_v54, %v715_v17 }
 0xa2d   :  { %vm838_vm15 = vmand %vm8383_vm10, %vm8388_vm3  ;;  %vm8435_vm10 = vcmp.eq.s32.totalorder %v5440_v49, %v620_v9  ;;  %vm8440_vm3 = vcmp.eq.s32.totalorder %v5450_v54, %v716_v34 }
 0xa2e   :  { %vm5016_vm11 = vmpackc.low %vm838_vm15, %vm836_vm1 }
 0xa2f   :  { %5017 = vmatprep.subr.msk.bf16.mxu0 %vm5016_vm11, %v9403_v24  ;;  %5081 = vmatprep.subr.msk.bf16.mxu1 %vm5016_vm11, %v9403_v24  ;;  %vm835_vm0 = vmand %vm8401_vm12, %vm8406_vm14  ;;  %vm8453_vm12 = vcmp.eq.s32.totalorder %v5438_v47, %v619_v36  ;;  %vm8458_vm14 = vcmp.eq.s32.totalorder %v5445_v0, %v715_v17 }
 0xa30   :  { %vm837_vm9 = vmand %vm677_vm6, %vm773_vm8  ;;  %vm681_vm6 = vcmp.eq.s32.totalorder %v5438_v47, %v620_v9  ;;  %vm777_vm8 = vcmp.eq.s32.totalorder %v5445_v0, %v716_v34 }
 0xa31   :  { %vm5018_vm2 = vmpackc.low %vm837_vm9, %vm835_vm0 }
 0xa32   :  { %5019 = vmatpush1.bf16.msk.msra.mxu0 %vm5018_vm2, %v9403_v24  ;;  %5083 = vmatpush1.bf16.msk.msra.mxu1 %vm5018_vm2, %v9403_v24  ;;  %vm840_vm1 = vmand %vm8425_vm4, %vm8430_vm5  ;;  %vm8477_vm4 = vcmp.eq.s32.totalorder %v5440_v49, %v621_v1  ;;  %vm780_vm5 = vcmp.eq.s32.totalorder %v5450_v54, %v717_v3 }
 0xa33   :  { %vm842_vm15 = vmand %vm8435_vm10, %vm8440_vm3  ;;  %vm686_vm10 = vcmp.eq.s32.totalorder %v5440_v49, %v622_v42  ;;  %vm782_vm3 = vcmp.eq.s32.totalorder %v5450_v54, %v718_v51 }
 0xa34   :  { %vm5020_vm11 = vmpackc.low %vm842_vm15, %vm840_vm1 }
 0xa35   :  { %5021 = vmatprep.subr.msk.bf16.mxu0 %vm5020_vm11, %v9403_v24  ;;  %5085 = vmatprep.subr.msk.bf16.mxu1 %vm5020_vm11, %v9403_v24  ;;  %vm839_vm0 = vmand %vm8453_vm12, %vm8458_vm14  ;;  %vm683_vm12 = vcmp.eq.s32.totalorder %v5438_v47, %v621_v1  ;;  %vm779_vm14 = vcmp.eq.s32.totalorder %v5445_v0, %v717_v3  ;;  %vm685_vm11 = vcmp.eq.s32.totalorder %v5438_v47, %v622_v42  ;;  %v3837_v42 = vld [vmem:[#allocation2] sm:$0xf] }
 0xa36   :  { %vm841_vm9 = vmand %vm681_vm6, %vm777_vm8  ;;  %vm781_vm6 = vcmp.eq.s32.totalorder %v5445_v0, %v718_v51 }
 0xa37   :  { %vm5022_vm2 = vmpackc.low %vm841_vm9, %vm839_vm0 }
 0xa38   :  { %5023 = vmatpush1.bf16.msk.msra.mxu0 %vm5022_vm2, %v9403_v24  ;;  %5087 = vmatpush1.bf16.msk.msra.mxu1 %vm5022_vm2, %v9403_v24  ;;  %vm844_vm1 = vmand %vm8477_vm4, %vm780_vm5  ;;  %vm9616_vm4 = vcmask 138240  }
 0xa39   :  { %vm846_vm15 = vmand %vm686_vm10, %vm782_vm3 }
 0xa3a   :  { %vm5024_vm8 = vmpackc.low %vm846_vm15, %vm844_vm1  ;;  %vm9620_vm1 = vcmask 15360   ;;  %vm9623_vm15 = vcmask 146432  }
 0xa3b   :  { %5025 = vmatprep.subr.msk.bf16.mxu0 %vm5024_vm8, %v9403_v24  ;;  %5089 = vmatprep.subr.msk.bf16.mxu1 %vm5024_vm8, %v9403_v24  ;;  %vm843_vm0 = vmand %vm683_vm12, %vm779_vm14  ;;  %vm9621_vm12 = vcmask 269312  }
 0xa3c   :  { %vm845_vm9 = vmand %vm685_vm11, %vm781_vm6 }
 0xa3d   :  { %vm5026_vm2 = vmpackc.low %vm845_vm9, %vm843_vm0  ;;  %vm9627_vm0 = vcmask 130048  }
 0xa3e   :  { %5027 = vmatpush1.bf16.msk.msra.mxu0 %vm5026_vm2, %v9403_v24  ;;  %5091 = vmatpush1.bf16.msk.msra.mxu1 %vm5026_vm2, %v9403_v24  ;;  %vm9617_vm5 = vmmov %vm9616_vm4 }
 0xa3f   :  { %vm9618_vm10 = vmmov %vm9616_vm4 }
 0xa40   :  { %vm9619_vm3 = vmmov %vm9616_vm4 }
 0xa41   :  { %vm9622_vm14 = vmmov %vm9621_vm12 }
 0xa42   :  { %vm9624_vm11 = vmmov %vm9623_vm15 }
 0xa43   :  { %vm9625_vm6 = vmmov %vm9624_vm11 }
 0xa44   :  { %vm9626_vm8 = vmmov %vm9625_vm6 }
 0xa45   :  { %vm9628_vm9 = vmmov %vm9627_vm0 }
 0xa46   :  { %vm9629_vm2 = vmmov %vm9627_vm0 }
 0xa93   :  { %v3567_v49 = vpop.xlane.xlu0 %3566 }
 0xa94   :  { %v3568_v54 = vmul.f32 0.013888889, %v3567_v49 }
 0xa95   :  { %v3577_v21 = vpop.xlane.xlu1 %3576 }
 0xa96   :  { %v3578_v12 = vmul.f32 0.013888889, %v3577_v21  ;;  %v3579_v2 = vmul.f32 %v3568_v54, %v3568_v54  ;;  %v3582_v39 = vsub.f32 %v7889_v23, %v3568_v54  ;;  %v3583_v61 = vsub.f32 %v7893_v63, %v3568_v54 }
 0xa97   :  { %v3584_v20 = vsub.f32 %v7899_v53, %v3568_v54  ;;  %v3585_v31 = vsub.f32 %v7903_v38, %v3568_v54 }
 0xa98   :  { %v3580_v47 = vsub.f32 %v3578_v12, %v3579_v2 }
 0xa99   :  { %v3604_v43 = vpop.permute.xlu1 %3603 }
 0xa9a   :  { %v3581_v35 = vmax.f32 %v3580_v47, 0.0 }
 0xa9b   :  { %v3596_v10 = vpop.permute.xlu0 %3595 }
 0xa9c   :  { %v3586_v0 = vadd.f32 1e-05, %v3581_v35 }
 0xa9e   :  { %5208 = vrsqrt.f32 %v3586_v0 }
 0xaa8   :  { %v5209_v16 = vpop.eup %5208 }
 0xaa9   :  { %v3588_v50 = vmul.f32 %v5209_v16, %v3582_v39  ;;  %v3589_v24 = vmul.f32 %v5209_v16, %v3583_v61  ;;  %v3590_v62 = vmul.f32 %v5209_v16, %v3584_v20  ;;  %v3591_v22 = vmul.f32 %v5209_v16, %v3585_v31 }
 0xaab   :  { %v3598_v56 = vmul.f32 %v3596_v10, %v3588_v50  ;;  %v3599_v14 = vmul.f32 %v3596_v10, %v3589_v24  ;;  %v3600_v4 = vmul.f32 %v3596_v10, %v3590_v62  ;;  %v3601_v28 = vmul.f32 %v3596_v10, %v3591_v22 }
 0xaad   :  { %v3606_v57 = vadd.f32 %v3604_v43, %v3598_v56  ;;  %v3607_v18 = vadd.f32 %v3604_v43, %v3599_v14  ;;  %v3608_v23 = vadd.f32 %v3604_v43, %v3600_v4  ;;  %v3609_v60 = vadd.f32 %v3604_v43, %v3601_v28 }
 0xaaf   :  { %v3610_v63 = vmul.f32 0.5, %v3606_v57  ;;  %v3611_v44 = vmul.f32 0.5, %v3607_v18  ;;  %v3612_v53 = vmul.f32 0.5, %v3608_v23  ;;  %v3613_v6 = vmul.f32 0.5, %v3609_v60 }
 0xab1   :  { %5210 = vtanh.f32 %v3610_v63 }
 0xab2   :  { %5212 = vtanh.f32 %v3611_v44 }
 0xab3   :  { %5214 = vtanh.f32 %v3612_v53 }
 0xab4   :  { %5216 = vtanh.f32 %v3613_v6 }
 0xabb   :  { %v5211_v38 = vpop.eup %5210 }
 0xabc   :  { %v5213_v8 = vpop.eup %5212  ;;  %v3618_v37 = vadd.f32 1.0, %v5211_v38 }
 0xabd   :  { %v5215_v29 = vpop.eup %5214  ;;  %v3619_v36 = vadd.f32 1.0, %v5213_v8 }
 0xabe   :  { %v5217_v40 = vpop.eup %5216  ;;  %v3620_v17 = vadd.f32 1.0, %v5215_v29  ;;  %v3622_v19 = vmul.f32 0.5, %v3618_v37 }
 0xabf   :  { %v3623_v11 = vmul.f32 0.5, %v3619_v36  ;;  %v3621_v25 = vadd.f32 1.0, %v5217_v40 }
 0xac0   :  { %v3624_v9 = vmul.f32 0.5, %v3620_v17  ;;  %v3626_v33 = vmul.f32 %v3622_v19, %v3606_v57 }
 0xac1   :  { %v3627_v34 = vmul.f32 %v3623_v11, %v3607_v18  ;;  %v3625_v58 = vmul.f32 0.5, %v3621_v25  ;;  %v3975_v18 = vld [vmem:[#allocation2] sm:$0xf] }
 0xac2   :  { %v3628_v41 = vmul.f32 %v3624_v9, %v3608_v23  ;;  %v3630_v15 = vmul.f32 %v3626_v33, %v9436_v26  ;;  %v3805_v26 = vld [vmem:[#allocation2] sm:$0xf]  ;;  %v3985_v63 = vrot.slane %v3975_v18, 4 }
 0xac3   :  { %v3631_v55 = vmul.f32 %v3627_v34, %v9437_v46  ;;  %v3629_v52 = vmul.f32 %v3625_v58, %v3609_v60  ;;  %3815 = vrot.lane.b32.xlu1 %v3805_v26, %s5254_s5  ;;  %v3847_v46 = vrot.slane %v3837_v42, 4 }
 0xac4   :  { %v3634_v1 = vpack.c.bf16 %v3630_v15, %v3630_v15  ;;  %v3632_v30 = vmul.f32 %v3628_v41, %v9438_v48  ;;  %v3874_v48 = vld [vmem:[#allocation2] sm:$0xf] }
 0xac5   :  { %v3635_v3 = vpack.c.bf16 %v3631_v55, %v3631_v55  ;;  %v3633_v7 = vmul.f32 %v3629_v52, %v9439_v13  ;;  %3852 = vrot.lane.b32.xlu0 %v3847_v46, %s5257_s23  ;;  %v3916_v13 = vrot.slane %v3906_v32, 4 }
 0xac6   :  { %v3679_v27 = vpack.c.bf16 %v3632_v30, %v3632_v30 }
 0xac7   :  { %3668 = vmatprep.mubr.bf16.mxu0 %v3635_v3  ;;  %v3680_v59 = vpack.c.bf16 %v3633_v7, %v3633_v7  ;;  %3884 = vrot.lane.b32.xlu1 %v3874_v48, %s5256_s22 }
 0xac8   :  { %3669 = vmatmul.mubr.bf16.vlgmr.msra.gmra.mrb[24].mxu0 %v3634_v1 }
 0xac9   :  { %3713 = vmatprep.mubr.bf16.mxu1 %v3680_v59  ;;  %4088 = vmatprep.mubr.bf16.mxu0 %v7728_v45 }
 0xaca   :  { %3714 = vmatmul.mubr.bf16.vlgmr.msra.gmra.mrb[24].mxu1 %v3679_v27  ;;  %3921 = vrot.lane.b32.xlu0 %v3916_v13, %s5259_s1  ;;  %v3943_v13 = vld [vmem:[#allocation2] sm:$0xf] }
 0xacb   :  { %4129 = vmatprep.mubr.bf16.mxu1 %v7728_v45 }
 0xb9b   :  { %v3670_v51 = vpop.f32.mrb[24].mxu0 }
 0xb9c   :  { %v3728_v5 = vpack.c.bf16 %v3670_v51, %v3670_v51  ;;  %v3672_v49 = vpop.f32.mrb[25].mxu0 }
 0xb9d   :  { %v3715_v54 = vpop.f32.mrb[24].mxu1  ;;  %v3729_v21 = vpack.c.bf16 %v3672_v49, %v3672_v49  ;;  %v3674_v45 = vpop.f32.mrb[26].mxu0 }
 0xb9e   :  { %3732 = vst [vmem:[#allocation2 + $0x8] sm:$0xf] %v3728_v5  ;;  %v3730_v12 = vpack.c.bf16 %v3715_v54, %v3715_v54  ;;  %v3717_v2 = vpop.f32.mrb[25].mxu1  ;;  %v3675_v47 = vpop.f32.mrb[27].mxu0 }
 0xb9f   :  { %3733 = vst [vmem:[#allocation2 + $0x10] sm:$0xf] %v3729_v21  ;;  %v3731_v35 = vpack.c.bf16 %v3717_v2, %v3717_v2  ;;  %v3719_v0 = vpop.f32.mrb[26].mxu1  ;;  %v3747_v54 = vpop.permute.xlu1 %3746 }
 0xba0   :  { %3734 = vst [vmem:[#allocation2 + $0x18] sm:$0xf] %v3730_v12  ;;  %v3720_v39 = vpop.f32.mrb[27].mxu1  ;;  %v3784_v21 = vpop.permute.xlu0 %3783 }
 0xba1   :  { %3735 = vst [vmem:[#allocation2 + $0x20] sm:$0xf] %v3731_v35 }
 0xba3   :  { %v3816_v45 = vpop.permute.xlu1 %3815 }
 0xba4   :  { %v3853_v12 = vpop.permute.xlu0 %3852 }
 0xba5   :  { %v3737_v61 = vld [vmem:[#allocation2 + $0x8] sm:$0xf] }
 0xba6   :  { %3748 = vrot.lane.b32.xlu1 %v3737_v61, %s5253_s0  ;;  %v3807_v16 = vld [vmem:[#allocation2 + $0x10] sm:$0xf]  ;;  %v3806_v50 = vld [vmem:[#allocation2 + $0x8] sm:$0xf] }
 0xba7   :  { %v3739_v31 = vld [vmem:[#allocation2 + $0x18] sm:$0xf]  ;;  %v4013_v22 = vld [vmem:[#allocation2 + $0x10] sm:$0xf]  ;;  %v4012_v10 = vld [vmem:[#allocation2 + $0x8] sm:$0xf]  ;;  %v3885_v2 = vpop.permute.xlu1 %3884 }
 0xba8   :  { %v3740_v20 = vld [vmem:[#allocation2 + $0x20] sm:$0xf]  ;;  %v3808_v62 = vld [vmem:[#allocation2 + $0x18] sm:$0xf]  ;;  %4017 = vst [vmem:[#allocation3 + $0x88] sm:$0xf] %v4013_v22  ;;  %v8544_v47 = vpop.permute.xlu0 %3921 }
 0xba9   :  { %3754 = vrot.lane.b32.xlu0 %v3740_v20, %s5253_s0  ;;  %v3809_v24 = vld [vmem:[#allocation2 + $0x20] sm:$0xf]  ;;  %v3876_v14 = vld [vmem:[#allocation2 + $0x10] sm:$0xf]  ;;  %4016 = vst [vmem:[#allocation3 + $0x80] sm:$0xf] %v4012_v10 }
 0xbaa   :  { %3752 = vrot.lane.b32.xlu1 %v3739_v31, %s5253_s0  ;;  %v4015_v56 = vld [vmem:[#allocation2 + $0x20] sm:$0xf]  ;;  %v4014_v4 = vld [vmem:[#allocation2 + $0x18] sm:$0xf]  ;;  %v3875_v28 = vld [vmem:[#allocation2 + $0x8] sm:$0xf] }
 0xbab   :  { %4019 = vst [vmem:[#allocation3 + $0x98] sm:$0xf] %v4015_v56  ;;  %4018 = vst [vmem:[#allocation3 + $0x90] sm:$0xf] %v4014_v4  ;;  %v3878_v43 = vld [vmem:[#allocation2 + $0x20] sm:$0xf] }
 0xbac   :  { %v3877_v57 = vld [vmem:[#allocation2 + $0x18] sm:$0xf]  ;;  %v3945_v23 = vld [vmem:[#allocation2 + $0x10] sm:$0xf]  ;;  %v3944_v60 = vld [vmem:[#allocation2 + $0x8] sm:$0xf] }
 0xbad   :  { %3819 = vrot.lane.b32.xlu0 %v3807_v16, %s5254_s5  ;;  %v3738_v44 = vld [vmem:[#allocation2 + $0x10] sm:$0xf]  ;;  %v3769_v53 = vld [vmem:[#allocation2 + $0x8] sm:$0xf]  ;;  %v3947_v6 = vld [vmem:[#allocation2 + $0x20] sm:$0xf] }
 0xbae   :  { %3817 = vrot.lane.b32.xlu1 %v3806_v50, %s5254_s5  ;;  %v3779_v38 = vrot.slane %v3769_v53, 4  ;;  %v3772_v8 = vld [vmem:[#allocation2 + $0x20] sm:$0xf]  ;;  %v3771_v37 = vld [vmem:[#allocation2 + $0x18] sm:$0xf] }
 0xbaf   :  { %v3782_v29 = vrot.slane %v3772_v8, 4  ;;  %v3781_v36 = vrot.slane %v3771_v37, 4  ;;  %v3839_v40 = vld [vmem:[#allocation2 + $0x10] sm:$0xf]  ;;  %v3838_v17 = vld [vmem:[#allocation2 + $0x8] sm:$0xf] }
 0xbb0   :  { %v3849_v19 = vrot.slane %v3839_v40, 4  ;;  %v3848_v11 = vrot.slane %v3838_v17, 4  ;;  %v3841_v25 = vld [vmem:[#allocation2 + $0x20] sm:$0xf]  ;;  %v3840_v9 = vld [vmem:[#allocation2 + $0x18] sm:$0xf] }
 0xbb1   :  { %3823 = vrot.lane.b32.xlu0 %v3809_v24, %s5254_s5  ;;  %v3851_v33 = vrot.slane %v3841_v25, 4  ;;  %v3850_v34 = vrot.slane %v3840_v9, 4  ;;  %v3908_v58 = vld [vmem:[#allocation2 + $0x10] sm:$0xf]  ;;  %v3907_v41 = vld [vmem:[#allocation2 + $0x8] sm:$0xf] }
 0xbb2   :  { %3821 = vrot.lane.b32.xlu1 %v3808_v62, %s5254_s5  ;;  %v3918_v15 = vrot.slane %v3908_v58, 4  ;;  %v3917_v55 = vrot.slane %v3907_v41, 4  ;;  %v3910_v52 = vld [vmem:[#allocation2 + $0x20] sm:$0xf]  ;;  %v3909_v1 = vld [vmem:[#allocation2 + $0x18] sm:$0xf] }
 0xbb3   :  { %v3920_v30 = vrot.slane %v3910_v52, 4  ;;  %v3919_v3 = vrot.slane %v3909_v1, 4  ;;  %v3977_v7 = vld [vmem:[#allocation2 + $0x10] sm:$0xf]  ;;  %v3979_v42 = vld [vmem:[#allocation2 + $0x20] sm:$0xf] }
 0xbb4   :  { %v3770_v27 = vld [vmem:[#allocation2 + $0x10] sm:$0xf]  ;;  %v3987_v59 = vrot.slane %v3977_v7, 4  ;;  %v3976_v46 = vld [vmem:[#allocation2 + $0x8] sm:$0xf]  ;;  %v3989_v32 = vrot.slane %v3979_v42, 4 }
 0xbb5   :  { %3888 = vrot.lane.b32.xlu0 %v3876_v14, %s5256_s22  ;;  %v3780_v26 = vrot.slane %v3770_v27, 4  ;;  %v3986_v48 = vrot.slane %v3976_v46, 4  ;;  %v3946_v51 = vld [vmem:[#allocation2 + $0x18] sm:$0xf] }
 0xbb6   :  { %3886 = vrot.lane.b32.xlu1 %v3875_v28, %s5256_s22  ;;  %v3978_v5 = vld [vmem:[#allocation2 + $0x18] sm:$0xf] }
 0xbb7   :  { %v3988_v49 = vrot.slane %v3978_v5, 4 }
 0xbb9   :  { %3892 = vrot.lane.b32.xlu0 %v3878_v43, %s5256_s22 }
 0xbba   :  { %3890 = vrot.lane.b32.xlu1 %v3877_v57, %s5256_s22 }
 0xbbd   :  { %3957 = vrot.lane.b32.xlu0 %v3945_v23, %s5258_s24 }
 0xbbe   :  { %3955 = vrot.lane.b32.xlu1 %v3944_v60, %s5258_s24 }
 0xbc1   :  { %3990 = vrot.lane.b32.xlu0 %v3985_v63, %s5260_s25 }
 0xbc2   :  { %3750 = vrot.lane.b32.xlu1 %v3738_v44, %s5253_s0 }
 0xbc5   :  { %3961 = vrot.lane.b32.xlu0 %v3947_v6, %s5258_s24 }
 0xbc6   :  { %3785 = vrot.lane.b32.xlu1 %v3779_v38, %s5255_s21 }
 0xbc9   :  { %3791 = vrot.lane.b32.xlu0 %v3782_v29, %s5255_s21 }
 0xbca   :  { %3789 = vrot.lane.b32.xlu1 %v3781_v36, %s5255_s21 }
 0xbcd   :  { %3856 = vrot.lane.b32.xlu0 %v3849_v19, %s5257_s23 }
 0xbce   :  { %3854 = vrot.lane.b32.xlu1 %v3848_v11, %s5257_s23 }
 0xbd1   :  { %3860 = vrot.lane.b32.xlu0 %v3851_v33, %s5257_s23 }
 0xbd2   :  { %3858 = vrot.lane.b32.xlu1 %v3850_v34, %s5257_s23 }
 0xbd5   :  { %3925 = vrot.lane.b32.xlu0 %v3918_v15, %s5259_s1 }
 0xbd6   :  { %3923 = vrot.lane.b32.xlu1 %v3917_v55, %s5259_s1 }
 0xbd9   :  { %3929 = vrot.lane.b32.xlu0 %v3920_v30, %s5259_s1 }
 0xbda   :  { %3927 = vrot.lane.b32.xlu1 %v3919_v3, %s5259_s1 }
 0xbdd   :  { %3994 = vrot.lane.b32.xlu0 %v3987_v59, %s5260_s25 }
 0xbde   :  { %3787 = vrot.lane.b32.xlu1 %v3780_v26, %s5255_s21 }
 0xbe1   :  { %3998 = vrot.lane.b32.xlu0 %v3989_v32, %s5260_s25 }
 0xbe2   :  { %3992 = vrot.lane.b32.xlu1 %v3986_v48, %s5260_s25 }
 0xbe6   :  { %3953 = vrot.lane.b32.xlu1 %v3943_v13, %s5258_s24 }
 0xbea   :  { %3959 = vrot.lane.b32.xlu1 %v3946_v51, %s5258_s24 }
 0xbee   :  { %3996 = vrot.lane.b32.xlu1 %v3988_v49, %s5260_s25 }
 0xc18   :  { %v3749_v35 = vpop.permute.xlu1 %3748 }
 0xc19   :  { %v3756_v0 = vsel %vm2811_vm13, %v3747_v54, %v3749_v35 }
 0xc1a   :  { %3764 = vst [vmem:[#allocation3] sm:$0xf] %v3756_v0 }
 0xc1b   :  { %v3755_v39 = vpop.permute.xlu0 %3754 }
 0xc1c   :  { %v3753_v61 = vpop.permute.xlu1 %3752 }
 0xc1d   :  { %v3759_v20 = vsel %vm2811_vm13, %v3753_v61, %v3755_v39 }
 0xc1e   :  { %3767 = vst [vmem:[#allocation3 + $0x18] sm:$0xf] %v3759_v20 }
 0xc1f   :  { %v3820_v31 = vpop.permute.xlu0 %3819 }
 0xc20   :  { %v3818_v16 = vpop.permute.xlu1 %3817 }
 0xc21   :  { %v3825_v50 = vsel %vm2941_vm7, %v3816_v45, %v3818_v16  ;;  %v3826_v24 = vsel %vm2941_vm7, %v3818_v16, %v3820_v31 }
 0xc22   :  { %3833 = vst [vmem:[#allocation3 + $0x20] sm:$0xf] %v3825_v50  ;;  %3834 = vst [vmem:[#allocation3 + $0x28] sm:$0xf] %v3826_v24 }
 0xc23   :  { %v3824_v62 = vpop.permute.xlu0 %3823 }
 0xc24   :  { %v3822_v22 = vpop.permute.xlu1 %3821 }
 0xc25   :  { %v3827_v10 = vsel %vm2941_vm7, %v3820_v31, %v3822_v22  ;;  %v3828_v56 = vsel %vm2941_vm7, %v3822_v22, %v3824_v62 }
 0xc26   :  { %3835 = vst [vmem:[#allocation3 + $0x30] sm:$0xf] %v3827_v10  ;;  %3836 = vst [vmem:[#allocation3 + $0x38] sm:$0xf] %v3828_v56 }
 0xc27   :  { %v3889_v14 = vpop.permute.xlu0 %3888 }
 0xc28   :  { %v3887_v4 = vpop.permute.xlu1 %3886 }
 0xc29   :  { %v3894_v28 = vsel %vm9616_vm4, %v3885_v2, %v3887_v4  ;;  %v3895_v43 = vsel %vm9617_vm5, %v3887_v4, %v3889_v14  ;;  %vm9630_vm4 = vmmov %vm9627_vm0 }
 0xc2a   :  { %3902 = vst [vmem:[#allocation3 + $0x40] sm:$0xf] %v3894_v28  ;;  %3903 = vst [vmem:[#allocation3 + $0x48] sm:$0xf] %v3895_v43  ;;  %v4038_v43 = vld [vmem:[#allocation3 + $0x88] sm:$0xf] }
 0xc2b   :  { %v3893_v57 = vpop.permute.xlu0 %3892  ;;  %vm9631_vm5 = vmmov %vm9621_vm12 }
 0xc2c   :  { %v3891_v18 = vpop.permute.xlu1 %3890 }
 0xc2d   :  { %v3896_v23 = vsel %vm9618_vm10, %v3889_v14, %v3891_v18  ;;  %v3897_v60 = vsel %vm9619_vm3, %v3891_v18, %v3893_v57  ;;  %vm9632_vm10 = vmmov %vm9631_vm5  ;;  %vm9633_vm3 = vcmask 7168   ;;  %v4037_v57 = vld [vmem:[#allocation3 + $0x80] sm:$0xf] }
 0xc2e   :  { %3904 = vst [vmem:[#allocation3 + $0x50] sm:$0xf] %v3896_v23  ;;  %3905 = vst [vmem:[#allocation3 + $0x58] sm:$0xf] %v3897_v60 }
 0xc2f   :  { %v8556_v63 = vpop.permute.xlu0 %3957 }
 0xc30   :  { %v3956_v44 = vpop.permute.xlu1 %3955 }
 0xc31   :  { %v3964_v53 = vsel %vm9620_vm1, %v3956_v44, %v8556_v63  ;;  %vm9634_vm1 = vmmov %vm9633_vm3 }
 0xc32   :  { %3972 = vst [vmem:[#allocation3 + $0x68] sm:$0xf] %v3964_v53  ;;  %v4039_v53 = vld [vmem:[#allocation3 + $0x90] sm:$0xf] }
 0xc33   :  { %v3991_v6 = vpop.permute.xlu0 %3990 }
 0xc34   :  { %v3751_v38 = vpop.permute.xlu1 %3750 }
 0xc35   :  { %v3757_v8 = vsel %vm2811_vm13, %v3749_v35, %v3751_v38  ;;  %v3758_v37 = vsel %vm2811_vm13, %v3751_v38, %v3753_v61  ;;  %v5239_v38 = vld [vmem:[#allocation2 + $0x28] sm:$0xff] }
 0xc36   :  { %3765 = vst [vmem:[#allocation3 + $0x8] sm:$0xf] %v3757_v8  ;;  %3766 = vst [vmem:[#allocation3 + $0x10] sm:$0xf] %v3758_v37  ;;  %v9646_v37 = vld [vmem:[#allocation9_spill] sm:$0xff] }
 0xc37   :  { %v3962_v29 = vpop.permute.xlu0 %3961 }
 0xc38   :  { %v3786_v36 = vpop.permute.xlu1 %3785 }
 0xc39   :  { %v3793_v40 = vsel %vm9621_vm12, %v3784_v21, %v3786_v36  ;;  %vm9635_vm12 = vcmask 15360  }
 0xc3a   :  { %3801 = vst [vmem:[#allocation3] sm:$0xf0] %v3793_v40  ;;  %v9647_v40 = vld [vmem:[#allocation10_spill] sm:$0xff] }
 0xc3b   :  { %v3792_v17 = vpop.permute.xlu0 %3791 }
 0xc3c   :  { %v3790_v19 = vpop.permute.xlu1 %3789 }
 0xc3d   :  { %v3796_v11 = vsel %vm9622_vm14, %v3790_v19, %v3792_v17  ;;  %vm9636_vm14 = vmmov %vm9635_vm12 }
 0xc3e   :  { %3804 = vst [vmem:[#allocation3 + $0x18] sm:$0xf0] %v3796_v11 }
 0xc3f   :  { %v3857_v25 = vpop.permute.xlu0 %3856 }
 0xc40   :  { %v3855_v9 = vpop.permute.xlu1 %3854 }
 0xc41   :  { %v3862_v33 = vsel %vm9623_vm15, %v3853_v12, %v3855_v9  ;;  %v3863_v34 = vsel %vm9624_vm11, %v3855_v9, %v3857_v25  ;;  %v4021_v2 = vld [vmem:[#allocation3] sm:$0xff]  ;;  %vm9637_vm15 = vmmov %vm9635_vm12 }
 0xc42   :  { %3870 = vst [vmem:[#allocation3 + $0x20] sm:$0xf0] %v3862_v33  ;;  %3871 = vst [vmem:[#allocation3 + $0x28] sm:$0xf0] %v3863_v34 }
 0xc43   :  { %v3861_v58 = vpop.permute.xlu0 %3860  ;;  %vm9638_vm11 = vmmov %vm9634_vm1 }
 0xc44   :  { %v3859_v41 = vpop.permute.xlu1 %3858 }
 0xc45   :  { %v3864_v15 = vsel %vm9625_vm6, %v3857_v25, %v3859_v41  ;;  %v3865_v55 = vsel %vm9626_vm8, %v3859_v41, %v3861_v58  ;;  %v4024_v52 = vld [vmem:[#allocation3 + $0x18] sm:$0xff]  ;;  %vm9639_vm6 = vmmov %vm9634_vm1  ;;  %vm9640_vm8 = vcmask 1043456   ;;  %v9648_v58 = vld [vmem:[#allocation11_spill] sm:$0xff] }
 0xc46   :  { %3872 = vst [vmem:[#allocation3 + $0x30] sm:$0xf0] %v3864_v15  ;;  %3873 = vst [vmem:[#allocation3 + $0x38] sm:$0xf0] %v3865_v55  ;;  %4097 = vmatprep.subr.bf16.mxu1 %v4024_v52  ;;  %v9649_v52 = vld [vmem:[#allocation12_spill] sm:$0xff] }
 0xc47   :  { %v3926_v1 = vpop.permute.xlu0 %3925 }
 0xc48   :  { %v3924_v30 = vpop.permute.xlu1 %3923 }
 0xc49   :  { %v3931_v3 = vsel %vm9627_vm0, %v8544_v47, %v3924_v30  ;;  %v3932_v7 = vsel %vm9628_vm9, %v3924_v30, %v3926_v1  ;;  %v4026_v35 = vld [vmem:[#allocation3 + $0x28] sm:$0xff]  ;;  %v4025_v31 = vld [vmem:[#allocation3 + $0x20] sm:$0xff]  ;;  %vm9641_vm0 = vmmov %vm9640_vm8 }
 0xc4a   :  { %3939 = vst [vmem:[#allocation3 + $0x40] sm:$0xf0] %v3931_v3  ;;  %3940 = vst [vmem:[#allocation3 + $0x48] sm:$0xf0] %v3932_v7  ;;  %v4045_v60 = vsel %vm9641_vm0, %v4037_v57, 0 }
 0xc4b   :  { %v3930_v27 = vpop.permute.xlu0 %3929  ;;  %vm9642_vm9 = vmmov %vm9641_vm0 }
 0xc4c   :  { %v3928_v59 = vpop.permute.xlu1 %3927 }
 0xc4d   :  { %v3933_v26 = vsel %vm9629_vm2, %v3926_v1, %v3928_v59  ;;  %v3934_v42 = vsel %vm9630_vm4, %v3928_v59, %v3930_v27  ;;  %v4028_v47 = vld [vmem:[#allocation3 + $0x38] sm:$0xff]  ;;  %v4027_v20 = vld [vmem:[#allocation3 + $0x30] sm:$0xff]  ;;  %vm9643_vm2 = vcmask 588800   ;;  %vm9644_vm4 = vmmov %vm9641_vm0  ;;  %vm9661_vm0 = vcmask 146432  }
 0xc4e   :  { %3941 = vst [vmem:[#allocation3 + $0x50] sm:$0xf0] %v3933_v26  ;;  %3942 = vst [vmem:[#allocation3 + $0x58] sm:$0xf0] %v3934_v42 }
 0xc4f   :  { %v3995_v13 = vpop.permute.xlu0 %3994 }
 0xc50   :  { %v3788_v46 = vpop.permute.xlu1 %3787 }
 0xc51   :  { %v3794_v32 = vsel %vm9631_vm5, %v3786_v36, %v3788_v46  ;;  %v3795_v48 = vsel %vm9632_vm10, %v3788_v46, %v3790_v19  ;;  %v4030_v50 = vld [vmem:[#allocation3 + $0x48] sm:$0xff]  ;;  %v4029_v14 = vld [vmem:[#allocation3 + $0x40] sm:$0xff]  ;;  %vm9645_vm5 = vmmov %vm9643_vm2 }
 0xc52   :  { %3802 = vst [vmem:[#allocation3 + $0x8] sm:$0xf0] %v3794_v32  ;;  %3803 = vst [vmem:[#allocation3 + $0x10] sm:$0xf0] %v3795_v48  ;;  %v4171_v32 = vld [vmem:[%s8720_s10] sm:$0xff] }
 0xc53   :  { %v3999_v24 = vpop.permute.xlu0 %3998  ;;  %v4253_v48 = vld [vmem:[#allocation2] sm:$0xf] }
 0xc54   :  { %v3993_v51 = vpop.permute.xlu1 %3992 }
 0xc55   :  { %v4000_v5 = vsel %vm9633_vm3, %v3991_v6, %v3993_v51  ;;  %v4001_v49 = vsel %vm9634_vm1, %v3993_v51, %v3995_v13  ;;  %v4032_v16 = vld [vmem:[#allocation3 + $0x58] sm:$0xff]  ;;  %v4031_v56 = vld [vmem:[#allocation3 + $0x50] sm:$0xff]  ;;  %v4051_v6 = vsel %vm9644_vm4, %v4039_v53, 0  ;;  %v4322_v51 = vld [vmem:[#allocation2] sm:$0xf] }
 0xc56   :  { %4008 = vst [vmem:[#allocation3 + $0x60] sm:$0xf0] %v4000_v5  ;;  %4009 = vst [vmem:[#allocation3 + $0x68] sm:$0xf0] %v4001_v49  ;;  %v4263_v5 = vrot.slane %v4253_v48, 4 }
 0xc57   :  { %v4290_v49 = vld [vmem:[#allocation2] sm:$0xf]  ;;  %vm9664_vm4 = vmmov %vm9661_vm0 }
 0xc58   :  { %v3954_v54 = vpop.permute.xlu1 %3953 }
 0xc59   :  { %v3963_v21 = vsel %vm9635_vm12, %v3954_v54, %v3956_v44  ;;  %v4022_v45 = vld [vmem:[#allocation3 + $0x8] sm:$0xff]  ;;  %v4023_v12 = vld [vmem:[#allocation3 + $0x10] sm:$0xff]  ;;  %v4020_v44 = vld [vmem:[%s8719_s9] sm:$0xf]  ;;  %v4332_v54 = vrot.slane %v4322_v51, 4 }
 0xc5a   :  { %3971 = vst [vmem:[#allocation3 + $0x60] sm:$0xf] %v3963_v21  ;;  %4056 = vmatprep.subr.bf16.mxu0 %v4022_v45  ;;  %4098 = vmatpush1.bf16.msra.mxu1 %v4023_v12  ;;  %v4391_v21 = vld [vmem:[#allocation2] sm:$0xf] }
 0xc5b   :  { %4057 = vmatpush1.bf16.msra.mxu0 %v4021_v2  ;;  %4099 = vmatprep.subr.bf16.mxu1 %v4028_v47  ;;  %v4359_v45 = vld [vmem:[#allocation2] sm:$0xf]  ;;  %v4401_v12 = vrot.slane %v4391_v21, 4 }
 0xc5c   :  { %4058 = vmatprep.subr.bf16.mxu0 %v4026_v35  ;;  %v3960_v0 = vpop.permute.xlu1 %3959 }
 0xc5d   :  { %v3965_v39 = vsel %vm9636_vm14, %v8556_v63, %v3960_v0  ;;  %v3966_v61 = vsel %vm9637_vm15, %v3960_v0, %v3962_v29  ;;  %v4034_v4 = vld [vmem:[#allocation3 + $0x68] sm:$0xff]  ;;  %v4040_v63 = vld [vmem:[#allocation3 + $0x98] sm:$0xf]  ;;  %vm9657_vm15 = vcmask 269312  }
 0xc5e   :  { %3973 = vst [vmem:[#allocation3 + $0x70] sm:$0xf] %v3965_v39  ;;  %3974 = vst [vmem:[#allocation3 + $0x78] sm:$0xf] %v3966_v61  ;;  %4100 = vmatpush1.bf16.msra.mxu1 %v4027_v20 }
 0xc5f   :  { %4059 = vmatpush1.bf16.msra.mxu0 %v4025_v31  ;;  %4101 = vmatprep.subr.bf16.mxu1 %v4032_v16 }
 0xc60   :  { %4060 = vmatprep.subr.bf16.mxu0 %v4030_v50  ;;  %v3997_v62 = vpop.permute.xlu1 %3996 }
 0xc61   :  { %v4002_v22 = vsel %vm9638_vm11, %v3995_v13, %v3997_v62  ;;  %v4003_v10 = vsel %vm9639_vm6, %v3997_v62, %v3999_v24  ;;  %v4033_v28 = vld [vmem:[#allocation3 + $0x60] sm:$0xff]  ;;  %vm9658_vm11 = vmmov %vm9657_vm15 }
 0xc62   :  { %4010 = vst [vmem:[#allocation3 + $0x70] sm:$0xf0] %v4002_v22  ;;  %4011 = vst [vmem:[#allocation3 + $0x78] sm:$0xf0] %v4003_v10  ;;  %4102 = vmatpush1.bf16.msra.mxu1 %v4031_v56  ;;  %v4221_v13 = vld [vmem:[#allocation2] sm:$0xf] }
 0xc63   :  { %4061 = vmatpush1.bf16.msra.mxu0 %v4029_v14  ;;  %vm9659_vm6 = vmmov %vm9658_vm11 }
 0xc64   :  { %4062 = vmatprep.subr.bf16.mxu0 %v4034_v4 }
 0xc67   :  { %4063 = vmatpush1.bf16.msra.mxu0 %v4033_v28 }
 0xc68   :  { %5092 = vmatprep.subr.msk.bf16.mxu0 %vm9640_vm8, %v4038_v43  ;;  %vm9660_vm8 = vmmov %vm9659_vm6 }
 0xc69   :  { %v4036_v18 = vld [vmem:[#allocation3 + $0x78] sm:$0xff]  ;;  %v4035_v23 = vld [vmem:[#allocation3 + $0x70] sm:$0xff] }
 0xc6a   :  { %4103 = vmatprep.subr.bf16.mxu1 %v4036_v18 }
 0xc6b   :  { %4065 = vmatpush1.bf16.msra.mxu0 %v4045_v60  ;;  %4104 = vmatpush1.bf16.msra.mxu1 %v4035_v23 }
 0xc6c   :  { %5094 = vmatprep.subr.msk.bf16.mxu1 %vm9642_vm9, %v4040_v63  ;;  %vm9662_vm9 = vmmov %vm9661_vm0 }
 0xc6e   :  { %5093 = vmatmul.mubr.msk.bf16.vlgmr.msra.gmra.mrb[28].mxu0 %vm9643_vm2, %v4020_v44  ;;  %vm9663_vm2 = vmmov %vm9661_vm0 }
 0xc6f   :  { %4106 = vmatpush1.bf16.msra.mxu1 %v4051_v6  ;;  %4579 = vmatprep.mubr.bf16.mxu0 %v5239_v38 }
 0xc72   :  { %5095 = vmatmul.mubr.msk.bf16.vlgmr.msra.gmra.mrb[28].mxu1 %vm9645_vm5, %v4020_v44  ;;  %vm9665_vm5 = vcmask 130048  }
 0xc73   :  { %4620 = vmatprep.mubr.bf16.mxu1 %v5239_v38 }
 0xd41   :  { %v4090_v8 = vpop.f32.mrb[28].mxu0 }
 0xd42   :  { %v4138_v29 = vmul.f32 %v4090_v8, %v9646_v37  ;;  %v4092_v36 = vpop.f32.mrb[29].mxu0 }
 0xd43   :  { %v4139_v17 = vmul.f32 %v4092_v36, %v9647_v40  ;;  %v4094_v19 = vpop.f32.mrb[30].mxu0 }
 0xd44   :  { %v4148_v11 = vmul.f32 %v4138_v29, %v4090_v8  ;;  %v4095_v25 = vpop.f32.mrb[31].mxu0 }
 0xd45   :  { %v4142_v9 = vadd.f32 %v4139_v17, %v4138_v29  ;;  %v4149_v33 = vmul.f32 %v4139_v17, %v4092_v36  ;;  %v4131_v34 = vpop.f32.mrb[28].mxu1 }
 0xd46   :  { %v4140_v41 = vmul.f32 %v4131_v34, %v9648_v58  ;;  %v4133_v15 = vpop.f32.mrb[29].mxu1 }
 0xd47   :  { %v4152_v55 = vadd.f32 %v4149_v33, %v4148_v11  ;;  %v4141_v1 = vmul.f32 %v4133_v15, %v9649_v52  ;;  %v4135_v30 = vpop.f32.mrb[30].mxu1 }
 0xd48   :  { %v4143_v3 = vadd.f32 %v4142_v9, %v4140_v41  ;;  %v4150_v7 = vmul.f32 %v4140_v41, %v4131_v34  ;;  %v4136_v27 = vpop.f32.mrb[31].mxu1 }
 0xd49   :  { %v4151_v59 = vmul.f32 %v4141_v1, %v4133_v15 }
 0xd4a   :  { %v4153_v26 = vadd.f32 %v4152_v55, %v4150_v7  ;;  %v4144_v42 = vadd.f32 %v4143_v3, %v4141_v1 }
 0xd4c   :  { %4145 = vadd.xlane.f32.xlu1 %v4144_v42  ;;  %v4154_v46 = vadd.f32 %v4153_v26, %v4151_v59 }
 0xd4e   :  { %4155 = vadd.xlane.f32.xlu0 %v4154_v46 }
 0xd5d   :  { %4182 = vperm.xlu1 %5137, %v4171_v32  }
 0xd61   :  { %5173 = vset.pattern.permute.xlu1 %v5239_v38 }
 0xd62   :  { %4231 = vrot.lane.b32.xlu1 %v4221_v13, %s5253_s0 }
 0xd64   :  { %4174 = vperm.xlu0 %5136, %v4171_v32  }
 0xd66   :  { %4300 = vrot.lane.b32.xlu1 %v4290_v49, %s5254_s5 }
 0xd68   :  { %5174 = vset.pattern.permute.xlu0 %v5239_v38 }
 0xd69   :  { %4268 = vrot.lane.b32.xlu0 %v4263_v5, %s5255_s21 }
 0xd6a   :  { %4369 = vrot.lane.b32.xlu1 %v4359_v45, %s5256_s22 }
 0xd6d   :  { %4337 = vrot.lane.b32.xlu0 %v4332_v54, %s5257_s23 }
 0xd71   :  { %4406 = vrot.lane.b32.xlu0 %v4401_v12, %s5259_s1 }
 0xdd9   :  { %v4146_v2 = vpop.xlane.xlu1 %4145 }
 0xdda   :  { %v4147_v47 = vmul.f32 0.0025510204, %v4146_v2 }
 0xddb   :  { %v4156_v35 = vpop.xlane.xlu0 %4155 }
 0xddc   :  { %v4157_v0 = vmul.f32 0.0025510204, %v4156_v35  ;;  %v4158_v39 = vmul.f32 %v4147_v47, %v4147_v47  ;;  %v4161_v16 = vsub.f32 %v4090_v8, %v4147_v47  ;;  %v4162_v50 = vsub.f32 %v4092_v36, %v4147_v47 }
 0xddd   :  { %v4163_v24 = vsub.f32 %v4131_v34, %v4147_v47  ;;  %v4164_v62 = vsub.f32 %v4133_v15, %v4147_v47  ;;  %v4183_v60 = vpop.permute.xlu1 %4182 }
 0xdde   :  { %v4159_v61 = vsub.f32 %v4157_v0, %v4158_v39 }
 0xde0   :  { %v4160_v20 = vmax.f32 %v4159_v61, 0.0 }
 0xde2   :  { %v4165_v31 = vadd.f32 1e-05, %v4160_v20 }
 0xde3   :  { %v4175_v28 = vpop.permute.xlu0 %4174 }
 0xde4   :  { %5218 = vrsqrt.f32 %v4165_v31 }
 0xdee   :  { %v5219_v22 = vpop.eup %5218 }
 0xdef   :  { %v4167_v10 = vmul.f32 %v5219_v22, %v4161_v16  ;;  %v4168_v56 = vmul.f32 %v5219_v22, %v4162_v50  ;;  %v4169_v14 = vmul.f32 %v5219_v22, %v4163_v24  ;;  %v4170_v4 = vmul.f32 %v5219_v22, %v4164_v62 }
 0xdf1   :  { %v4177_v43 = vmul.f32 %v4175_v28, %v4167_v10  ;;  %v4178_v57 = vmul.f32 %v4175_v28, %v4168_v56  ;;  %v4179_v18 = vmul.f32 %v4175_v28, %v4169_v14  ;;  %v4180_v23 = vmul.f32 %v4175_v28, %v4170_v4 }
 0xdf3   :  { %v4185_v63 = vadd.f32 %v4183_v60, %v4177_v43  ;;  %v4186_v44 = vadd.f32 %v4183_v60, %v4178_v57  ;;  %v4187_v53 = vadd.f32 %v4183_v60, %v4179_v18  ;;  %v4188_v6 = vadd.f32 %v4183_v60, %v4180_v23 }
 0xdf5   :  { %v4189_v38 = vmul.f32 0.5, %v4185_v63  ;;  %v4190_v8 = vmul.f32 0.5, %v4186_v44  ;;  %v4191_v29 = vmul.f32 0.5, %v4187_v53  ;;  %v4192_v36 = vmul.f32 0.5, %v4188_v6 }
 0xdf7   :  { %5220 = vtanh.f32 %v4189_v38 }
 0xdf8   :  { %5222 = vtanh.f32 %v4190_v8 }
 0xdf9   :  { %5224 = vtanh.f32 %v4191_v29 }
 0xdfa   :  { %5226 = vtanh.f32 %v4192_v36 }
 0xe01   :  { %v5221_v17 = vpop.eup %5220 }
 0xe02   :  { %v5223_v19 = vpop.eup %5222  ;;  %v4197_v11 = vadd.f32 1.0, %v5221_v17 }
 0xe03   :  { %v5225_v25 = vpop.eup %5224  ;;  %v4198_v9 = vadd.f32 1.0, %v5223_v19 }
 0xe04   :  { %v5227_v33 = vpop.eup %5226  ;;  %v4199_v34 = vadd.f32 1.0, %v5225_v25  ;;  %v4201_v41 = vmul.f32 0.5, %v4197_v11 }
 0xe05   :  { %v4200_v15 = vadd.f32 1.0, %v5227_v33  ;;  %v4202_v55 = vmul.f32 0.5, %v4198_v9 }
 0xe06   :  { %v4203_v1 = vmul.f32 0.5, %v4199_v34  ;;  %v4205_v30 = vmul.f32 %v4201_v41, %v4185_v63 }
 0xe07   :  { %v4204_v3 = vmul.f32 0.5, %v4200_v15  ;;  %v4206_v7 = vmul.f32 %v4202_v55, %v4186_v44 }
 0xe08   :  { %v4207_v27 = vmul.f32 %v4203_v1, %v4187_v53  ;;  %v4209_v59 = vmul.f32 %v4205_v30, %v9646_v37  ;;  %v4460_v30 = vld [vmem:[#allocation2] sm:$0xf] }
 0xe09   :  { %v4208_v26 = vmul.f32 %v4204_v3, %v4188_v6  ;;  %v4210_v42 = vmul.f32 %v4206_v7, %v9647_v40  ;;  %v4470_v7 = vrot.slane %v4460_v30, 4 }
 0xe0a   :  { %v4211_v46 = vmul.f32 %v4207_v27, %v9648_v58  ;;  %v4213_v32 = vpack.c.bf16 %v4209_v59, %v4209_v59  ;;  %v4428_v27 = vld [vmem:[#allocation2] sm:$0xf] }
 0xe0b   :  { %v4212_v48 = vmul.f32 %v4208_v26, %v9649_v52  ;;  %v4214_v13 = vpack.c.bf16 %v4210_v42, %v4210_v42  ;;  %v4526_v59 = vld [vmem:[%s8721_s12] sm:$0xff]  ;;  %v4232_v26 = vpop.permute.xlu1 %4231  ;;  %v4269_v42 = vpop.permute.xlu0 %4268 }
 0xe0c   :  { %v4215_v51 = vpack.c.bf16 %v4211_v46, %v4211_v46  ;;  %4217 = vst [vmem:[#allocation2 + $0x8] sm:$0xf] %v4213_v32 }
 0xe0d   :  { %v4216_v5 = vpack.c.bf16 %v4212_v48, %v4212_v48  ;;  %4218 = vst [vmem:[#allocation2 + $0x10] sm:$0xf] %v4214_v13 }
 0xe0e   :  { %4219 = vst [vmem:[#allocation2 + $0x18] sm:$0xf] %v4215_v51 }
 0xe0f   :  { %4220 = vst [vmem:[#allocation2 + $0x20] sm:$0xf] %v4216_v5  ;;  %v4301_v46 = vpop.permute.xlu1 %4300  ;;  %v8646_v32 = vpop.permute.xlu0 %4337 }
 0xe13   :  { %v4222_v49 = vld [vmem:[#allocation2 + $0x8] sm:$0xf]  ;;  %v4370_v48 = vpop.permute.xlu1 %4369  ;;  %v8648_v13 = vpop.permute.xlu0 %4406 }
 0xe14   :  { %v4223_v54 = vld [vmem:[#allocation2 + $0x10] sm:$0xf]  ;;  %4233 = vrot.lane.b32.xlu1 %v4222_v49, %s5253_s0  ;;  %v4291_v58 = vld [vmem:[#allocation2 + $0x8] sm:$0xf] }
 0xe15   :  { %4235 = vrot.lane.b32.xlu0 %v4223_v54, %s5253_s0  ;;  %v4224_v37 = vld [vmem:[#allocation2 + $0x18] sm:$0xf]  ;;  %v4292_v52 = vld [vmem:[#allocation2 + $0x10] sm:$0xf]  ;;  %v4497_v35 = vld [vmem:[#allocation2 + $0x8] sm:$0xf] }
 0xe16   :  { %v4225_v40 = vld [vmem:[#allocation2 + $0x20] sm:$0xf]  ;;  %v4293_v21 = vld [vmem:[#allocation2 + $0x18] sm:$0xf]  ;;  %v4498_v2 = vld [vmem:[#allocation2 + $0x10] sm:$0xf] }
 0xe17   :  { %v4294_v45 = vld [vmem:[#allocation2 + $0x20] sm:$0xf]  ;;  %4502 = vst [vmem:[#allocation3 + $0x88] sm:$0xf] %v4498_v2  ;;  %v4499_v47 = vld [vmem:[#allocation2 + $0x18] sm:$0xf] }
 0xe18   :  { %4237 = vrot.lane.b32.xlu1 %v4224_v37, %s5253_s0  ;;  %v4500_v12 = vld [vmem:[#allocation2 + $0x20] sm:$0xf]  ;;  %4503 = vst [vmem:[#allocation3 + $0x90] sm:$0xf] %v4499_v47  ;;  %4501 = vst [vmem:[#allocation3 + $0x80] sm:$0xf] %v4497_v35 }
 0xe19   :  { %4239 = vrot.lane.b32.xlu0 %v4225_v40, %s5253_s0  ;;  %4504 = vst [vmem:[#allocation3 + $0x98] sm:$0xf] %v4500_v12  ;;  %v4360_v0 = vld [vmem:[#allocation2 + $0x8] sm:$0xf]  ;;  %v4361_v39 = vld [vmem:[#allocation2 + $0x10] sm:$0xf] }
 0xe1a   :  { %v4362_v61 = vld [vmem:[#allocation2 + $0x18] sm:$0xf]  ;;  %v4363_v20 = vld [vmem:[#allocation2 + $0x20] sm:$0xf]  ;;  %v4429_v31 = vld [vmem:[#allocation2 + $0x8] sm:$0xf] }
 0xe1b   :  { %v4430_v16 = vld [vmem:[#allocation2 + $0x10] sm:$0xf]  ;;  %v4431_v50 = vld [vmem:[#allocation2 + $0x18] sm:$0xf]  ;;  %v4254_v24 = vld [vmem:[#allocation2 + $0x8] sm:$0xf] }
 0xe1c   :  { %4302 = vrot.lane.b32.xlu1 %v4291_v58, %s5254_s5  ;;  %v4432_v62 = vld [vmem:[#allocation2 + $0x20] sm:$0xf]  ;;  %v4255_v22 = vld [vmem:[#allocation2 + $0x10] sm:$0xf]  ;;  %v4264_v10 = vrot.slane %v4254_v24, 4 }
 0xe1d   :  { %4304 = vrot.lane.b32.xlu0 %v4292_v52, %s5254_s5  ;;  %v4265_v56 = vrot.slane %v4255_v22, 4  ;;  %v4256_v14 = vld [vmem:[#allocation2 + $0x18] sm:$0xf]  ;;  %v4257_v4 = vld [vmem:[#allocation2 + $0x20] sm:$0xf] }
 0xe1e   :  { %v4266_v28 = vrot.slane %v4256_v14, 4  ;;  %v4267_v43 = vrot.slane %v4257_v4, 4  ;;  %v4323_v57 = vld [vmem:[#allocation2 + $0x8] sm:$0xf]  ;;  %v4324_v18 = vld [vmem:[#allocation2 + $0x10] sm:$0xf] }
 0xe1f   :  { %v4333_v23 = vrot.slane %v4323_v57, 4  ;;  %v4334_v60 = vrot.slane %v4324_v18, 4  ;;  %v4325_v63 = vld [vmem:[#allocation2 + $0x18] sm:$0xf]  ;;  %v4326_v44 = vld [vmem:[#allocation2 + $0x20] sm:$0xf] }
 0xe20   :  { %4306 = vrot.lane.b32.xlu1 %v4293_v21, %s5254_s5  ;;  %v4335_v53 = vrot.slane %v4325_v63, 4  ;;  %v4336_v6 = vrot.slane %v4326_v44, 4  ;;  %v4392_v38 = vld [vmem:[#allocation2 + $0x8] sm:$0xf]  ;;  %v4393_v8 = vld [vmem:[#allocation2 + $0x10] sm:$0xf] }
 0xe21   :  { %4308 = vrot.lane.b32.xlu0 %v4294_v45, %s5254_s5  ;;  %v4402_v29 = vrot.slane %v4392_v38, 4  ;;  %v4403_v36 = vrot.slane %v4393_v8, 4  ;;  %v4394_v17 = vld [vmem:[#allocation2 + $0x18] sm:$0xf]  ;;  %v4395_v19 = vld [vmem:[#allocation2 + $0x20] sm:$0xf] }
 0xe22   :  { %v4404_v11 = vrot.slane %v4394_v17, 4  ;;  %v4405_v25 = vrot.slane %v4395_v19, 4  ;;  %v4461_v9 = vld [vmem:[#allocation2 + $0x8] sm:$0xf]  ;;  %v4462_v33 = vld [vmem:[#allocation2 + $0x10] sm:$0xf] }
 0xe23   :  { %v4471_v34 = vrot.slane %v4461_v9, 4  ;;  %v4472_v41 = vrot.slane %v4462_v33, 4  ;;  %v4463_v15 = vld [vmem:[#allocation2 + $0x18] sm:$0xf]  ;;  %v4464_v55 = vld [vmem:[#allocation2 + $0x20] sm:$0xf] }
 0xe24   :  { %4371 = vrot.lane.b32.xlu1 %v4360_v0, %s5256_s22  ;;  %v4473_v1 = vrot.slane %v4463_v15, 4  ;;  %v4474_v3 = vrot.slane %v4464_v55, 4 }
 0xe25   :  { %4373 = vrot.lane.b32.xlu0 %v4361_v39, %s5256_s22 }
 0xe28   :  { %4375 = vrot.lane.b32.xlu1 %v4362_v61, %s5256_s22 }
 0xe29   :  { %4377 = vrot.lane.b32.xlu0 %v4363_v20, %s5256_s22 }
 0xe2c   :  { %4440 = vrot.lane.b32.xlu1 %v4429_v31, %s5258_s24 }
 0xe2d   :  { %4442 = vrot.lane.b32.xlu0 %v4430_v16, %s5258_s24 }
 0xe30   :  { %4444 = vrot.lane.b32.xlu1 %v4431_v50, %s5258_s24 }
 0xe31   :  { %4446 = vrot.lane.b32.xlu0 %v4432_v62, %s5258_s24 }
 0xe34   :  { %4270 = vrot.lane.b32.xlu1 %v4264_v10, %s5255_s21 }
 0xe35   :  { %4272 = vrot.lane.b32.xlu0 %v4265_v56, %s5255_s21 }
 0xe38   :  { %4274 = vrot.lane.b32.xlu1 %v4266_v28, %s5255_s21 }
 0xe39   :  { %4276 = vrot.lane.b32.xlu0 %v4267_v43, %s5255_s21 }
 0xe3c   :  { %4339 = vrot.lane.b32.xlu1 %v4333_v23, %s5257_s23 }
 0xe3d   :  { %4341 = vrot.lane.b32.xlu0 %v4334_v60, %s5257_s23 }
 0xe40   :  { %4343 = vrot.lane.b32.xlu1 %v4335_v53, %s5257_s23 }
 0xe41   :  { %4345 = vrot.lane.b32.xlu0 %v4336_v6, %s5257_s23 }
 0xe44   :  { %4408 = vrot.lane.b32.xlu1 %v4402_v29, %s5259_s1 }
 0xe45   :  { %4410 = vrot.lane.b32.xlu0 %v4403_v36, %s5259_s1 }
 0xe48   :  { %4412 = vrot.lane.b32.xlu1 %v4404_v11, %s5259_s1 }
 0xe49   :  { %4414 = vrot.lane.b32.xlu0 %v4405_v25, %s5259_s1 }
 0xe4c   :  { %4477 = vrot.lane.b32.xlu1 %v4471_v34, %s5260_s25 }
 0xe4d   :  { %4479 = vrot.lane.b32.xlu0 %v4472_v41, %s5260_s25 }
 0xe50   :  { %4481 = vrot.lane.b32.xlu1 %v4473_v1, %s5260_s25 }
 0xe51   :  { %4483 = vrot.lane.b32.xlu0 %v4474_v3, %s5260_s25 }
 0xe54   :  { %4438 = vrot.lane.b32.xlu1 %v4428_v27, %s5258_s24 }
 0xe55   :  { %4475 = vrot.lane.b32.xlu0 %v4470_v7, %s5260_s25 }
 0xe58   :  { %4529 = vperm.xlu1 %5173, %v4526_v59  }
 0xe86   :  { %v4234_v51 = vpop.permute.xlu1 %4233 }
 0xe87   :  { %v4236_v5 = vpop.permute.xlu0 %4235  ;;  %v4241_v49 = vsel %vm2811_vm13, %v4232_v26, %v4234_v51 }
 0xe88   :  { %v4242_v54 = vsel %vm2811_vm13, %v4234_v51, %v4236_v5  ;;  %4249 = vst [vmem:[#allocation3] sm:$0xf] %v4241_v49 }
 0xe89   :  { %4250 = vst [vmem:[#allocation3 + $0x8] sm:$0xf] %v4242_v54 }
 0xe8a   :  { %v4238_v37 = vpop.permute.xlu1 %4237 }
 0xe8b   :  { %v4240_v40 = vpop.permute.xlu0 %4239  ;;  %v4243_v58 = vsel %vm2811_vm13, %v4236_v5, %v4238_v37 }
 0xe8c   :  { %v4244_v52 = vsel %vm2811_vm13, %v4238_v37, %v4240_v40  ;;  %4251 = vst [vmem:[#allocation3 + $0x10] sm:$0xf] %v4243_v58  ;;  %vm9650_vm13 = vcmask 138240  }
 0xe8d   :  { %4252 = vst [vmem:[#allocation3 + $0x18] sm:$0xf] %v4244_v52  ;;  %vm9651_vm10 = vmmov %vm9650_vm13 }
 0xe8e   :  { %v4303_v21 = vpop.permute.xlu1 %4302  ;;  %vm9652_vm3 = vmmov %vm9651_vm10 }
 0xe8f   :  { %v4305_v45 = vpop.permute.xlu0 %4304  ;;  %v4310_v12 = vsel %vm2941_vm7, %v4301_v46, %v4303_v21  ;;  %vm9653_vm1 = vmmov %vm9652_vm3 }
 0xe90   :  { %v4311_v2 = vsel %vm2941_vm7, %v4303_v21, %v4305_v45  ;;  %4318 = vst [vmem:[#allocation3 + $0x20] sm:$0xf] %v4310_v12 }
 0xe91   :  { %4319 = vst [vmem:[#allocation3 + $0x28] sm:$0xf] %v4311_v2 }
 0xe92   :  { %v4307_v47 = vpop.permute.xlu1 %4306 }
 0xe93   :  { %v4309_v35 = vpop.permute.xlu0 %4308  ;;  %v4312_v0 = vsel %vm2941_vm7, %v4305_v45, %v4307_v47 }
 0xe94   :  { %v4313_v39 = vsel %vm2941_vm7, %v4307_v47, %v4309_v35  ;;  %4320 = vst [vmem:[#allocation3 + $0x30] sm:$0xf] %v4312_v0  ;;  %vm9654_vm7 = vmmov %vm9635_vm12 }
 0xe95   :  { %4321 = vst [vmem:[#allocation3 + $0x38] sm:$0xf] %v4313_v39  ;;  %vm9655_vm12 = vmmov %vm9654_vm7 }
 0xe96   :  { %v4372_v61 = vpop.permute.xlu1 %4371  ;;  %vm9656_vm14 = vmmov %vm9654_vm7 }
 0xe97   :  { %v4374_v20 = vpop.permute.xlu0 %4373  ;;  %v4379_v31 = vsel %vm9650_vm13, %v4370_v48, %v4372_v61  ;;  %vm9666_vm13 = vmmov %vm9665_vm5 }
 0xe98   :  { %v4380_v16 = vsel %vm9651_vm10, %v4372_v61, %v4374_v20  ;;  %4387 = vst [vmem:[#allocation3 + $0x40] sm:$0xf] %v4379_v31  ;;  %vm9667_vm10 = vmmov %vm9665_vm5  ;;  %v4524_v31 = vld [vmem:[#allocation3 + $0x90] sm:$0xf] }
 0xe99   :  { %4388 = vst [vmem:[#allocation3 + $0x48] sm:$0xf] %v4380_v16 }
 0xe9a   :  { %v4376_v50 = vpop.permute.xlu1 %4375 }
 0xe9b   :  { %v4378_v24 = vpop.permute.xlu0 %4377  ;;  %v4381_v62 = vsel %vm9652_vm3, %v4374_v20, %v4376_v50  ;;  %vm9668_vm3 = vmmov %vm9665_vm5  ;;  %v4525_v20 = vld [vmem:[#allocation3 + $0x98] sm:$0xf] }
 0xe9c   :  { %v4382_v22 = vsel %vm9653_vm1, %v4376_v50, %v4378_v24  ;;  %4389 = vst [vmem:[#allocation3 + $0x50] sm:$0xf] %v4381_v62  ;;  %vm9669_vm1 = vcmask 7168   ;;  %v4523_v50 = vld [vmem:[#allocation3 + $0x88] sm:$0xf] }
 0xe9d   :  { %4390 = vst [vmem:[#allocation3 + $0x58] sm:$0xf] %v4382_v22  ;;  %v4522_v62 = vld [vmem:[#allocation3 + $0x80] sm:$0xf] }
 0xe9e   :  { %v8662_v10 = vpop.permute.xlu1 %4440  ;;  %v4505_v22 = vld [vmem:[%s8722_s11] sm:$0xf] }
 0xe9f   :  { %v4443_v56 = vpop.permute.xlu0 %4442 }
 0xea0   :  { %v4449_v14 = vsel %vm9654_vm7, %v8662_v10, %v4443_v56  ;;  %vm9670_vm7 = vmmov %vm9669_vm1 }
 0xea1   :  { %4457 = vst [vmem:[#allocation3 + $0x68] sm:$0xf] %v4449_v14 }
 0xea2   :  { %v4445_v4 = vpop.permute.xlu1 %4444 }
 0xea3   :  { %v4447_v28 = vpop.permute.xlu0 %4446  ;;  %v4450_v43 = vsel %vm9655_vm12, %v4443_v56, %v4445_v4  ;;  %vm9671_vm12 = vmmov %vm9669_vm1 }
 0xea4   :  { %v4451_v57 = vsel %vm9656_vm14, %v4445_v4, %v4447_v28  ;;  %4458 = vst [vmem:[#allocation3 + $0x70] sm:$0xf] %v4450_v43 }
 0xea5   :  { %4459 = vst [vmem:[#allocation3 + $0x78] sm:$0xf] %v4451_v57 }
 0xea6   :  { %v4271_v18 = vpop.permute.xlu1 %4270 }
 0xea7   :  { %v4273_v23 = vpop.permute.xlu0 %4272  ;;  %v4278_v60 = vsel %vm9657_vm15, %v4269_v42, %v4271_v18  ;;  %vm9672_vm15 = vmmov %vm9669_vm1 }
 0xea8   :  { %v4279_v63 = vsel %vm9658_vm11, %v4271_v18, %v4273_v23  ;;  %4286 = vst [vmem:[#allocation3] sm:$0xf0] %v4278_v60  ;;  %vm9673_vm11 = vcmask 1043456  }
 0xea9   :  { %4287 = vst [vmem:[#allocation3 + $0x8] sm:$0xf0] %v4279_v63 }
 0xeaa   :  { %v4275_v44 = vpop.permute.xlu1 %4274 }
 0xeab   :  { %v4277_v53 = vpop.permute.xlu0 %4276  ;;  %v4280_v6 = vsel %vm9659_vm6, %v4273_v23, %v4275_v44  ;;  %vm9674_vm6 = vmmov %vm9673_vm11 }
 0xeac   :  { %v4281_v38 = vsel %vm9660_vm8, %v4275_v44, %v4277_v53  ;;  %4288 = vst [vmem:[#allocation3 + $0x10] sm:$0xf0] %v4280_v6  ;;  %v4542_v24 = vsel %vm9674_vm6, %v4524_v31, 0  ;;  %vm9675_vm8 = vmmov %vm9674_vm6 }
 0xead   :  { %4289 = vst [vmem:[#allocation3 + $0x18] sm:$0xf0] %v4281_v38 }
 0xeae   :  { %v4340_v8 = vpop.permute.xlu1 %4339 }
 0xeaf   :  { %v4342_v29 = vpop.permute.xlu0 %4341  ;;  %v4347_v36 = vsel %vm9661_vm0, %v8646_v32, %v4340_v8  ;;  %v4506_v17 = vld [vmem:[#allocation3] sm:$0xff]  ;;  %vm9676_vm0 = vmmov %vm9674_vm6 }
 0xeb0   :  { %v4348_v19 = vsel %vm9662_vm9, %v4340_v8, %v4342_v29  ;;  %4355 = vst [vmem:[#allocation3 + $0x20] sm:$0xf0] %v4347_v36  ;;  %v4507_v11 = vld [vmem:[#allocation3 + $0x8] sm:$0xff]  ;;  %vm9677_vm9 = vcmask 588800  }
 0xeb1   :  { %4356 = vst [vmem:[#allocation3 + $0x28] sm:$0xf0] %v4348_v19  ;;  %4547 = vmatprep.subr.bf16.mxu0 %v4507_v11  ;;  %v5261_v19 = vmov 1966171168  }
 0xeb2   :  { %4548 = vmatpush1.bf16.msra.mxu0 %v4506_v17  ;;  %v4344_v25 = vpop.permute.xlu1 %4343  ;;  %v9679_v17 = vld [vmem:[#allocation7_spill] sm:$0xff]  ;;  %v4656_v11 = vunpack.c.l.s4 %v5261_v19 }
 0xeb3   :  { %v4346_v9 = vpop.permute.xlu0 %4345  ;;  %v4349_v33 = vsel %vm9663_vm2, %v4342_v29, %v4344_v25  ;;  %v4508_v34 = vld [vmem:[#allocation3 + $0x10] sm:$0xff]  ;;  %vm9678_vm2 = vmmov %vm9677_vm9 }
 0xeb4   :  { %v4350_v41 = vsel %vm9664_vm4, %v4344_v25, %v4346_v9  ;;  %4357 = vst [vmem:[#allocation3 + $0x30] sm:$0xf0] %v4349_v33  ;;  %v4509_v15 = vld [vmem:[#allocation3 + $0x18] sm:$0xff]  ;;  %vm124_vm4 = vcmp.lt.s32.totalorder %v9679_v17, 16 }
 0xeb5   :  { %4358 = vst [vmem:[#allocation3 + $0x38] sm:$0xf0] %v4350_v41  ;;  %4588 = vmatprep.subr.bf16.mxu1 %v4509_v15  ;;  %v9680_v9 = vld [vmem:[#allocation8_spill] sm:$0xff]  ;;  %v9681_v41 = vld [vmem:[#allocation5_spill] sm:$0xff]  ;;  %v9682_v15 = vmov 0.0  }
 0xeb6   :  { %4589 = vmatpush1.bf16.msra.mxu1 %v4508_v34  ;;  %v4409_v55 = vpop.permute.xlu1 %4408 }
 0xeb7   :  { %v4411_v1 = vpop.permute.xlu0 %4410  ;;  %v4416_v30 = vsel %vm9665_vm5, %v8648_v13, %v4409_v55  ;;  %v4510_v3 = vld [vmem:[#allocation3 + $0x20] sm:$0xff]  ;;  %vm125_vm5 = vcmp.lt.s32.totalorder %v9680_v9, 16 }
 0xeb8   :  { %v4417_v7 = vsel %vm9666_vm13, %v4409_v55, %v4411_v1  ;;  %4424 = vst [vmem:[#allocation3 + $0x40] sm:$0xf0] %v4416_v30  ;;  %v4511_v27 = vld [vmem:[#allocation3 + $0x28] sm:$0xff]  ;;  %vm122_vm13 = vcmp.lt.s32.totalorder %v9681_v41, 16  ;;  %v136_v55 = vsel %vm124_vm4, 1.0, %v9682_v15 }
 0xeb9   :  { %4425 = vst [vmem:[#allocation3 + $0x48] sm:$0xf0] %v4417_v7  ;;  %4549 = vmatprep.subr.bf16.mxu0 %v4511_v27  ;;  %v4657_v7 = vunpack.c.0.s8 %v4656_v11 }
 0xeba   :  { %4550 = vmatpush1.bf16.msra.mxu0 %v4510_v3  ;;  %v4413_v59 = vpop.permute.xlu1 %4412  ;;  %v137_v3 = vsel %vm125_vm5, 1.0, %v9682_v15 }
 0xebb   :  { %v4415_v26 = vpop.permute.xlu0 %4414  ;;  %v4418_v42 = vsel %vm9667_vm10, %v4411_v1, %v4413_v59  ;;  %v4512_v46 = vld [vmem:[#allocation3 + $0x30] sm:$0xff] }
 0xebc   :  { %v4419_v32 = vsel %vm9668_vm3, %v4413_v59, %v4415_v26  ;;  %4426 = vst [vmem:[#allocation3 + $0x50] sm:$0xf0] %v4418_v42  ;;  %v4513_v48 = vld [vmem:[#allocation3 + $0x38] sm:$0xff]  ;;  %v9683_v59 = vld [vmem:[#allocation6_spill] sm:$0xff] }
 0xebd   :  { %4427 = vst [vmem:[#allocation3 + $0x58] sm:$0xf0] %v4419_v32  ;;  %4590 = vmatprep.subr.bf16.mxu1 %v4513_v48  ;;  %vm123_vm10 = vcmp.lt.s32.totalorder %v9683_v59, 16  ;;  %v134_v32 = vsel %vm122_vm13, 1.0, %v9682_v15 }
 0xebe   :  { %4591 = vmatpush1.bf16.msra.mxu1 %v4512_v46  ;;  %v4478_v13 = vpop.permute.xlu1 %4477 }
 0xebf   :  { %v4480_v51 = vpop.permute.xlu0 %4479  ;;  %v4514_v5 = vld [vmem:[#allocation3 + $0x40] sm:$0xff] }
 0xec0   :  { %v4486_v49 = vsel %vm9669_vm1, %v4478_v13, %v4480_v51  ;;  %v4515_v54 = vld [vmem:[#allocation3 + $0x48] sm:$0xff] }
 0xec1   :  { %4494 = vst [vmem:[#allocation3 + $0x68] sm:$0xf0] %v4486_v49  ;;  %4551 = vmatprep.subr.bf16.mxu0 %v4515_v54  ;;  %v135_v49 = vsel %vm123_vm10, 1.0, %v9682_v15  ;;  %v9684_v54 = vld [vmem:[#allocation13_spill] sm:$0xff] }
 0xec2   :  { %4552 = vmatpush1.bf16.msra.mxu0 %v4514_v5  ;;  %v4482_v37 = vpop.permute.xlu1 %4481 }
 0xec3   :  { %v4484_v40 = vpop.permute.xlu0 %4483  ;;  %v4487_v58 = vsel %vm9670_vm7, %v4480_v51, %v4482_v37  ;;  %v4516_v52 = vld [vmem:[#allocation3 + $0x50] sm:$0xff] }
 0xec4   :  { %v4488_v21 = vsel %vm9671_vm12, %v4482_v37, %v4484_v40  ;;  %4495 = vst [vmem:[#allocation3 + $0x70] sm:$0xf0] %v4487_v58  ;;  %v4517_v45 = vld [vmem:[#allocation3 + $0x58] sm:$0xff]  ;;  %v4660_v37 = vsub.s32 %v4657_v7, %v9684_v54 }
 0xec5   :  { %4496 = vst [vmem:[#allocation3 + $0x78] sm:$0xf0] %v4488_v21  ;;  %4592 = vmatprep.subr.bf16.mxu1 %v4517_v45 }
 0xec6   :  { %4593 = vmatpush1.bf16.msra.mxu1 %v4516_v52  ;;  %v4439_v12 = vpop.permute.xlu1 %4438 }
 0xec7   :  { %v4476_v2 = vpop.permute.xlu0 %4475  ;;  %v4448_v47 = vsel %vm9656_vm14, %v4439_v12, %v8662_v10  ;;  %v4536_v10 = vsel %vm9676_vm0, %v4522_v62, 0 }
 0xec8   :  { %v4485_v35 = vsel %vm9672_vm15, %v4476_v2, %v4478_v13  ;;  %4456 = vst [vmem:[#allocation3 + $0x60] sm:$0xf] %v4448_v47  ;;  %v4519_v0 = vld [vmem:[#allocation3 + $0x68] sm:$0xff] }
 0xec9   :  { %4493 = vst [vmem:[#allocation3 + $0x60] sm:$0xf0] %v4485_v35  ;;  %4553 = vmatprep.subr.bf16.mxu0 %v4519_v0  ;;  %v9685_v35 = vlaneseq }
 0xecb   :  { %v4520_v39 = vld [vmem:[#allocation3 + $0x70] sm:$0xff]  ;;  %vm4680_vm3 = vcmp.lt.s32.totalorder %v9685_v35, 512 }
 0xecc   :  { %v4521_v61 = vld [vmem:[#allocation3 + $0x78] sm:$0xff] }
 0xecd   :  { %4594 = vmatprep.subr.bf16.mxu1 %v4521_v61 }
 0xece   :  { %4595 = vmatpush1.bf16.msra.mxu1 %v4520_v39 }
 0xecf   :  { %5098 = vmatprep.subr.msk.bf16.mxu1 %vm9673_vm11, %v4525_v20 }
 0xed0   :  { %v4518_v16 = vld [vmem:[#allocation3 + $0x60] sm:$0xff] }
 0xed1   :  { %4554 = vmatpush1.bf16.msra.mxu0 %v4518_v16 }
 0xed2   :  { %5096 = vmatprep.subr.msk.bf16.mxu0 %vm9675_vm8, %v4523_v50  ;;  %4597 = vmatpush1.bf16.msra.mxu1 %v4542_v24 }
 0xed5   :  { %4556 = vmatpush1.bf16.msra.mxu0 %v4536_v10  ;;  %5099 = vmatmul.mubr.msk.bf16.vlgmr.msra.gmra.mrb[32].mxu1 %vm9677_vm9, %v4505_v22 }
 0xed7   :  { %v4530_v56 = vpop.permute.xlu1 %4529 }
 0xed8   :  { %5097 = vmatmul.mubr.msk.bf16.vlgmr.msra.gmra.mrb[32].mxu0 %vm9678_vm2, %v4505_v22 }
 0xfa8   :  { %v4622_v14 = vpop.f32.mrb[32].mxu1 }
 0xfa9   :  { %v4624_v4 = vpop.f32.mrb[33].mxu1  ;;  %v4623_v28 = vadd.f32 %v4622_v14, %v4530_v56 }
 0xfaa   :  { %v4626_v43 = vpop.f32.mrb[34].mxu1  ;;  %v4625_v57 = vadd.f32 %v4624_v4, %v4530_v56 }
 0xfab   :  { %v4581_v18 = vpop.f32.mrb[32].mxu0  ;;  %v4627_v23 = vpop.f32.mrb[35].mxu1  ;;  %v4631_v60 = vmul.f32 0.5, %v4623_v28 }
 0xfac   :  { %v4582_v63 = vadd.f32 %v4581_v18, %v4530_v56  ;;  %v4632_v44 = vmul.f32 0.5, %v4625_v57  ;;  %v4583_v53 = vpop.f32.mrb[33].mxu0 }
 0xfad   :  { %5228 = vtanh.f32 %v4631_v60  ;;  %v4584_v6 = vadd.f32 %v4583_v53, %v4530_v56  ;;  %v4585_v38 = vpop.f32.mrb[34].mxu0 }
 0xfae   :  { %v4629_v8 = vmul.f32 0.5, %v4582_v63  ;;  %5230 = vtanh.f32 %v4632_v44  ;;  %v4586_v29 = vpop.f32.mrb[35].mxu0 }
 0xfaf   :  { %v4630_v36 = vmul.f32 0.5, %v4584_v6 }
 0xfb0   :  { %5232 = vtanh.f32 %v4629_v8 }
 0xfb1   :  { %5234 = vtanh.f32 %v4630_v36 }
 0xfb7   :  { %v5229_v25 = vpop.eup %5228 }
 0xfb8   :  { %v5231_v33 = vpop.eup %5230  ;;  %v4639_v34 = vadd.f32 1.0, %v5229_v25 }
 0xfb9   :  { %v4640_v1 = vadd.f32 1.0, %v5231_v33 }
 0xfba   :  { %v5233_v30 = vpop.eup %5232  ;;  %v4643_v27 = vmul.f32 0.5, %v4639_v34 }
 0xfbb   :  { %v5235_v26 = vpop.eup %5234  ;;  %v4637_v42 = vadd.f32 1.0, %v5233_v30  ;;  %v4644_v46 = vmul.f32 0.5, %v4640_v1 }
 0xfbc   :  { %v4647_v48 = vmul.f32 %v4643_v27, %v136_v55  ;;  %v4638_v13 = vadd.f32 1.0, %v5235_v26 }
 0xfbd   :  { %v4641_v51 = vmul.f32 0.5, %v4637_v42  ;;  %v4648_v5 = vmul.f32 %v4644_v46, %v137_v3 }
 0xfbe   :  { %v4642_v40 = vmul.f32 0.5, %v4638_v13 }
 0xfbf   :  { %v4645_v58 = vmul.f32 %v4641_v51, %v134_v32  ;;  %v4654_v52 = vcombine.low %v4647_v48, %v4648_v5 }
 0xfc0   :  { %v4646_v21 = vmul.f32 %v4642_v40, %v135_v49 }
 0xfc1   :  { %v4668_v45 = vrot.slane %v4654_v52, %v4660_v37 }
 0xfc2   :  { %v4653_v12 = vcombine.low %v4645_v58, %v4646_v21 }
 0xfc4   :  { %v4661_v2 = vrot.slane %v4653_v12, %v4660_v37 }
 0xfc6   :  { %v4669_v47 = vcombine.low %v4661_v2, %v4668_v45 }
 0xfc8   :  { %v4676_v0 = vrot.slane %v4669_v47, %v4660_v37 }
 0xfca   :  { %4682 = vst.msk [vmem:[%s8723_s13] sm:$0xf] %vm4680_vm3, %v4676_v0 }

</bundles_post_ra>
